<compile_context>
chip_gen: v6e
topology: v6e:2x2x1
jax: 0.10.0
libtpu: 0.0.40
codegen_flags: <defaults>
</compile_context>

<pallas_src>
import functools

import jax
import jax.numpy as jnp
import numpy as np
from jax import lax
from jax.experimental import pallas as pl
from jax.experimental.pallas import tpu as pltpu

VMEM = pltpu.MemorySpace.VMEM


# ------------------------------ fused kernel -------------------------------
def _lenet_kernel(patches_ref, w1_ref, b1_ref, w2s_ref, b2_ref, m_ref,
                  fw1_ref, fb1_ref, fw2_ref, fb2_ref, fw3_ref, fb3_ref,
                  o_ref, *, n_batch):
    n = n_batch
    f32 = jnp.float32

    # ---- conv1: (6, 75) @ (75, 4*196n) on the MXU, lane dim = spatial ----
    y1 = jnp.dot(w1_ref[...], patches_ref[...], preferred_element_type=f32)
    blk1 = 196 * n                      # 14 * n * 14 columns per pool phase
    p1 = jnp.maximum(jnp.maximum(y1[:, :blk1], y1[:, blk1:2 * blk1]),
                     jnp.maximum(y1[:, 2 * blk1:3 * blk1], y1[:, 3 * blk1:]))
    p1 = jnp.maximum(p1 + b1_ref[...], 0.0)          # (6, 196n) pooled conv1

    # ---- conv2: kh-stacked shifted-window matmuls (5 MXU pushes) followed
    #      by 0/1 gather matmuls (5 pushes), all on the MXU ----
    # a_all rows are ordered kw*16 + oc; each kh adds its shifted window.
    a_all = jnp.zeros((80, 140 * n), f32)
    for kh in range(5):
        r_kh = p1[:, kh * 14 * n: kh * 14 * n + 140 * n]       # (6, 140n)
        a_all = a_all + jnp.dot(w2s_ref[kh], r_kh,
                                preferred_element_type=f32)    # (80, 140n)
    conv2 = jnp.zeros((16, 100 * n), f32)
    for kw in range(5):
        conv2 = conv2 + jnp.dot(a_all[16 * kw:16 * (kw + 1), :], m_ref[kw],
                                preferred_element_type=f32)    # (16, 100n)
    blk2 = 25 * n                       # columns per pool-2 phase
    p2 = jnp.maximum(jnp.maximum(conv2[:, :blk2], conv2[:, blk2:2 * blk2]),
                     jnp.maximum(conv2[:, 2 * blk2:3 * blk2], conv2[:, 3 * blk2:]))
    p2 = jnp.maximum(p2 + b2_ref[...], 0.0)          # (16, 25n) pooled conv2

    # ---- fc1: the torch view(-1,400) flatten is folded into fw1 packing ----
    z1 = jnp.zeros((128, n), f32)
    for s2 in range(25):
        z1 = z1 + jnp.dot(fw1_ref[s2], p2[:, s2 * n:(s2 + 1) * n],
                          preferred_element_type=f32)
    z1 = jnp.maximum(z1 + fb1_ref[...], 0.0)         # (128, n), rows>=120 == 0

    # ---- fc2 / fc3 with 128-padded weights ----
    z2 = jnp.dot(fw2_ref[...], z1, preferred_element_type=f32) + fb2_ref[...]
    z2 = jnp.maximum(z2, 0.0)                        # (128, n), rows>=84 == 0
    o_ref[...] = jnp.dot(fw3_ref[...], z2,
                         preferred_element_type=f32) + fb3_ref[...]   # (10, n)


# ------------------------------- glue (XLA) --------------------------------
def _build_patches(x):
    """im2col for conv1 with columns pre-grouped by 2x2-pool phase.

    Returns (75, 4*14*N*14):
      row  = ic*25 + kh*5 + kw
      col  = ((dh*2+dw)*14 + h1)*N*14 + n*14 + w1
      val  = x[n, ic, 2*h1+dh+kh, 2*w1+dw+kw]
    """
    n = x.shape[0]
    pieces = []
    for dh in range(2):
        for dw in range(2):
            for kh in range(5):
                for kw in range(5):
                    pieces.append(
                        x[:, :, dh + kh: dh + kh + 27: 2,
                              dw + kw: dw + kw + 27: 2])     # (n, 3, 14, 14)
    p = jnp.stack(pieces, axis=0)                    # (100, n, 3, 14, 14)
    p = p.reshape(4, 25, n, 3, 14, 14)               # (phase, khkw, n, ic, h, w)
    p = p.transpose(3, 1, 0, 4, 2, 5)                # (ic, khkw, phase, h, n, w)
    return p.reshape(75, 4 * 14 * n * 14)


def _build_gather_mats(n):
    """Host-built 0/1 matrices realizing conv2's im2col gather on the MXU.

    m[kw, j, l2] == 1 picks lane j = (oh2*n + b)*14 + ow2 + kw of the
    kh-accumulated conv2 partial for output column
    l2 = (2e+f)*25n + (p2h*5+p2w)*n + b  (pool-2-phase-major ordering).
    """
    m = np.zeros((5, 140 * n, 100 * n), np.float32)
    for e in range(2):
        for f in range(2):
            for p2h in range(5):
                for p2w in range(5):
                    for b in range(n):
                        l2 = (2 * e + f) * 25 * n + (p2h * 5 + p2w) * n + b
                        oh2, ow2 = 2 * p2h + e, 2 * p2w + f
                        for kw in range(5):
                            j = (oh2 * n + b) * 14 + ow2 + kw
                            m[kw, j, l2] = 1.0
    return m


# --------------------------------- the Net ----------------------------------
def init_params(key):
    def uniform(key, shape, fan_in):
        bound = 1.0 / np.sqrt(fan_in)
        return jax.random.uniform(key, shape, jnp.float32, -bound, bound)

    ks = jax.random.split(key, 10)
    return dict(
        w1=uniform(ks[0], (6, 3, 5, 5), 3 * 5 * 5),
        b1=uniform(ks[1], (6,), 3 * 5 * 5),
        w2=uniform(ks[2], (16, 6, 5, 5), 6 * 5 * 5),
        b2=uniform(ks[3], (16,), 6 * 5 * 5),
        fw1=uniform(ks[4], (400, 120), 400),
        fb1=uniform(ks[5], (120,), 400),
        fw2=uniform(ks[6], (120, 84), 120),
        fb2=uniform(ks[7], (84,), 120),
        fw3=uniform(ks[8], (84, 10), 84),
        fb3=uniform(ks[9], (10,), 84),
    )


def net_forward(params, x):
    # x: (N, 3, 32, 32) float32
    n = x.shape[0]
    patches = _build_patches(x)                              # (75, 784n)

    # Weight packing (tiny, done once per trace in XLA / numpy).
    w1p = params["w1"].reshape(6, 75)                        # (oc, ic*25+kh*5+kw)
    b1 = params["b1"].reshape(6, 1)
    # conv2 weights stacked so all five kw partials come out of one matmul per
    # kh: w2s[kh, kw*16 + oc, ic] = w2[oc, ic, kh, kw]  -> (5, 80, 6).
    w2s = jnp.transpose(params["w2"], (2, 3, 0, 1)).reshape(5, 80, 6)
    b2 = params["b2"].reshape(16, 1)
    mstack = jnp.asarray(_build_gather_mats(n))              # (5, 140n, 100n)

    # fc1 regrouped as (s2, out, c) so the flatten needs no in-kernel reshape;
    # out dims padded to 128 lanes/sublanes.
    fw1p = params["fw1"].reshape(16, 25, 120).transpose(1, 2, 0)
    fw1p = jnp.pad(fw1p, ((0, 0), (0, 8), (0, 0)))           # (25, 128, 16)
    fb1 = jnp.pad(params["fb1"], (0, 8)).reshape(128, 1)
    fw2p = jnp.pad(params["fw2"].T, ((0, 44), (0, 8)))       # (128, 128)
    fb2 = jnp.pad(params["fb2"], (0, 44)).reshape(128, 1)
    fw3p = jnp.pad(params["fw3"].T, ((0, 0), (0, 44)))       # (10, 128)
    fb3 = params["fb3"].reshape(10, 1)

    out = pl.pallas_call(
        functools.partial(_lenet_kernel, n_batch=n),
        out_shape=jax.ShapeDtypeStruct((10, n), jnp.float32),
        in_specs=[pl.BlockSpec(memory_space=VMEM)] * 12,
        out_specs=pl.BlockSpec(memory_space=VMEM),
    )(patches, w1p, b1, w2s, b2, mstack,
      fw1p, fb1, fw2p, fb2, fw3p, fb3)
    return out.T                                             # (n, 10)


def reference_forward(params, x):
    # Pure-JAX reference for correctness checking.
    def conv(x, w, b):
        y = lax.conv_general_dilated(
            x, w, (1, 1), "VALID",
            dimension_numbers=("NCHW", "OIHW", "NCHW"),
            precision=lax.Precision.HIGHEST)
        return jax.nn.relu(y + b[None, :, None, None])

    def pool(x):
        return lax.reduce_window(x, -jnp.inf, lax.max,
                                 (1, 1, 2, 2), (1, 1, 2, 2), "VALID")

    hi = lax.Precision.HIGHEST
    x = pool(conv(x, params["w1"], params["b1"]))
    x = pool(conv(x, params["w2"], params["b2"]))
    x = x.reshape(x.shape[0], -1)
    x = jax.nn.relu(jnp.dot(x, params["fw1"], precision=hi) + params["fb1"])
    x = jax.nn.relu(jnp.dot(x, params["fw2"], precision=hi) + params["fb2"])
    return jnp.dot(x, params["fw3"], precision=hi) + params["fb3"]


if __name__ == "__main__":
    key = jax.random.PRNGKey(0)
    pkey, xkey = jax.random.split(key)
    params = init_params(pkey)
    # Batch=2; 32x32 inputs are required by the module's view(-1, 16*5*5).
    x = jax.random.normal(xkey, (2, 3, 32, 32), jnp.float32)

    out = jax.jit(net_forward)(params, x)
    out = jax.block_until_ready(out)
    assert out.shape == (2, 10), out.shape

    ref = jax.block_until_ready(jax.jit(reference_forward)(params, x))
    np.testing.assert_allclose(np.asarray(out), np.asarray(ref),
                               rtol=1e-2, atol=1e-2)
    print("KERNEL_OK")
</pallas_src>

<mosaic_0001>
module attributes {stable_mosaic.version = 11 : i64} {
  func.func @_lenet_kernel(%arg0: memref<75x1568xf32, #tpu.memory_space<vmem>>, %arg1: memref<6x75xf32, #tpu.memory_space<vmem>>, %arg2: memref<6x1xf32, #tpu.memory_space<vmem>>, %arg3: memref<5x80x6xf32, #tpu.memory_space<vmem>>, %arg4: memref<16x1xf32, #tpu.memory_space<vmem>>, %arg5: memref<5x280x200xf32, #tpu.memory_space<vmem>>, %arg6: memref<25x128x16xf32, #tpu.memory_space<vmem>>, %arg7: memref<128x1xf32, #tpu.memory_space<vmem>>, %arg8: memref<128x128xf32, #tpu.memory_space<vmem>>, %arg9: memref<128x1xf32, #tpu.memory_space<vmem>>, %arg10: memref<10x128xf32, #tpu.memory_space<vmem>>, %arg11: memref<10x1xf32, #tpu.memory_space<vmem>>, %arg12: memref<10x2xf32, #tpu.memory_space<vmem>>) attributes {dimension_semantics = [], scalar_prefetch = 0 : i64, scratch_operands = 0 : i64, tpu.core_type = #tpu.core_type<tc>} {
    %c0 = arith.constant 0 : index
    %c0_0 = arith.constant 0 : index
    %0 = vector.load %arg1[%c0, %c0_0] : memref<6x75xf32, #tpu.memory_space<vmem>>, vector<6x75xf32>
    %c0_1 = arith.constant 0 : index
    %c0_2 = arith.constant 0 : index
    %1 = vector.load %arg0[%c0_1, %c0_2] : memref<75x1568xf32, #tpu.memory_space<vmem>>, vector<75x1568xf32>
    %cst = arith.constant dense<0.000000e+00> : vector<6x1568xf32>
    %2 = tpu.matmul %0, %1, %cst {dimension_numbers = #tpu.dot_dimension_numbers<[1], [0], [0], [1], [0, 0, 1, 1], [], []>} : vector<6x75xf32>, vector<75x1568xf32>, vector<6x1568xf32> -> vector<6x1568xf32>
    %3 = vector.extract_strided_slice %2 {offsets = [0, 0], sizes = [6, 392], strides = [1, 1]} : vector<6x1568xf32> to vector<6x392xf32>
    %4 = vector.extract_strided_slice %2 {offsets = [0, 392], sizes = [6, 392], strides = [1, 1]} : vector<6x1568xf32> to vector<6x392xf32>
    %5 = arith.maximumf %3, %4 : vector<6x392xf32>
    %6 = vector.extract_strided_slice %2 {offsets = [0, 784], sizes = [6, 392], strides = [1, 1]} : vector<6x1568xf32> to vector<6x392xf32>
    %7 = vector.extract_strided_slice %2 {offsets = [0, 1176], sizes = [6, 392], strides = [1, 1]} : vector<6x1568xf32> to vector<6x392xf32>
    %8 = arith.maximumf %6, %7 : vector<6x392xf32>
    %9 = arith.maximumf %5, %8 : vector<6x392xf32>
    %c0_3 = arith.constant 0 : index
    %c0_4 = arith.constant 0 : index
    %10 = vector.load %arg2[%c0_3, %c0_4] : memref<6x1xf32, #tpu.memory_space<vmem>>, vector<6x1xf32>
    %11 = vector.broadcast %10 : vector<6x1xf32> to vector<6x392xf32>
    %12 = arith.addf %9, %11 : vector<6x392xf32>
    %cst_5 = arith.constant 0.000000e+00 : f32
    %13 = vector.broadcast %cst_5 : f32 to vector<6x392xf32>
    %14 = arith.maximumf %12, %13 : vector<6x392xf32>
    %cst_6 = arith.constant 0.000000e+00 : f32
    %15 = vector.broadcast %cst_6 : f32 to vector<80x280xf32>
    %16 = vector.extract_strided_slice %14 {offsets = [0, 0], sizes = [6, 280], strides = [1, 1]} : vector<6x392xf32> to vector<6x280xf32>
    %c0_7 = arith.constant 0 : index
    %c0_8 = arith.constant 0 : index
    %c0_9 = arith.constant 0 : index
    %17 = vector.load %arg3[%c0_7, %c0_8, %c0_9] : memref<5x80x6xf32, #tpu.memory_space<vmem>>, vector<1x80x6xf32>
    %18 = vector.shape_cast %17 : vector<1x80x6xf32> to vector<80x6xf32>
    %cst_10 = arith.constant dense<0.000000e+00> : vector<80x280xf32>
    %19 = tpu.matmul %18, %16, %cst_10 {dimension_numbers = #tpu.dot_dimension_numbers<[1], [0], [0], [1], [0, 0, 1, 1], [], []>} : vector<80x6xf32>, vector<6x280xf32>, vector<80x280xf32> -> vector<80x280xf32>
    %20 = arith.addf %15, %19 : vector<80x280xf32>
    %21 = vector.extract_strided_slice %14 {offsets = [0, 28], sizes = [6, 280], strides = [1, 1]} : vector<6x392xf32> to vector<6x280xf32>
    %c1 = arith.constant 1 : index
    %c0_11 = arith.constant 0 : index
    %c0_12 = arith.constant 0 : index
    %22 = vector.load %arg3[%c1, %c0_11, %c0_12] : memref<5x80x6xf32, #tpu.memory_space<vmem>>, vector<1x80x6xf32>
    %23 = vector.shape_cast %22 : vector<1x80x6xf32> to vector<80x6xf32>
    %cst_13 = arith.constant dense<0.000000e+00> : vector<80x280xf32>
    %24 = tpu.matmul %23, %21, %cst_13 {dimension_numbers = #tpu.dot_dimension_numbers<[1], [0], [0], [1], [0, 0, 1, 1], [], []>} : vector<80x6xf32>, vector<6x280xf32>, vector<80x280xf32> -> vector<80x280xf32>
    %25 = arith.addf %20, %24 : vector<80x280xf32>
    %26 = vector.extract_strided_slice %14 {offsets = [0, 56], sizes = [6, 280], strides = [1, 1]} : vector<6x392xf32> to vector<6x280xf32>
    %c2 = arith.constant 2 : index
    %c0_14 = arith.constant 0 : index
    %c0_15 = arith.constant 0 : index
    %27 = vector.load %arg3[%c2, %c0_14, %c0_15] : memref<5x80x6xf32, #tpu.memory_space<vmem>>, vector<1x80x6xf32>
    %28 = vector.shape_cast %27 : vector<1x80x6xf32> to vector<80x6xf32>
    %cst_16 = arith.constant dense<0.000000e+00> : vector<80x280xf32>
    %29 = tpu.matmul %28, %26, %cst_16 {dimension_numbers = #tpu.dot_dimension_numbers<[1], [0], [0], [1], [0, 0, 1, 1], [], []>} : vector<80x6xf32>, vector<6x280xf32>, vector<80x280xf32> -> vector<80x280xf32>
    %30 = arith.addf %25, %29 : vector<80x280xf32>
    %31 = vector.extract_strided_slice %14 {offsets = [0, 84], sizes = [6, 280], strides = [1, 1]} : vector<6x392xf32> to vector<6x280xf32>
    %c3 = arith.constant 3 : index
    %c0_17 = arith.constant 0 : index
    %c0_18 = arith.constant 0 : index
    %32 = vector.load %arg3[%c3, %c0_17, %c0_18] : memref<5x80x6xf32, #tpu.memory_space<vmem>>, vector<1x80x6xf32>
    %33 = vector.shape_cast %32 : vector<1x80x6xf32> to vector<80x6xf32>
    %cst_19 = arith.constant dense<0.000000e+00> : vector<80x280xf32>
    %34 = tpu.matmul %33, %31, %cst_19 {dimension_numbers = #tpu.dot_dimension_numbers<[1], [0], [0], [1], [0, 0, 1, 1], [], []>} : vector<80x6xf32>, vector<6x280xf32>, vector<80x280xf32> -> vector<80x280xf32>
    %35 = arith.addf %30, %34 : vector<80x280xf32>
    %36 = vector.extract_strided_slice %14 {offsets = [0, 112], sizes = [6, 280], strides = [1, 1]} : vector<6x392xf32> to vector<6x280xf32>
    %c4 = arith.constant 4 : index
    %c0_20 = arith.constant 0 : index
    %c0_21 = arith.constant 0 : index
    %37 = vector.load %arg3[%c4, %c0_20, %c0_21] : memref<5x80x6xf32, #tpu.memory_space<vmem>>, vector<1x80x6xf32>
    %38 = vector.shape_cast %37 : vector<1x80x6xf32> to vector<80x6xf32>
    %cst_22 = arith.constant dense<0.000000e+00> : vector<80x280xf32>
    %39 = tpu.matmul %38, %36, %cst_22 {dimension_numbers = #tpu.dot_dimension_numbers<[1], [0], [0], [1], [0, 0, 1, 1], [], []>} : vector<80x6xf32>, vector<6x280xf32>, vector<80x280xf32> -> vector<80x280xf32>
    %40 = arith.addf %35, %39 : vector<80x280xf32>
    %cst_23 = arith.constant 0.000000e+00 : f32
    %41 = vector.broadcast %cst_23 : f32 to vector<16x200xf32>
    %42 = vector.extract_strided_slice %40 {offsets = [0, 0], sizes = [16, 280], strides = [1, 1]} : vector<80x280xf32> to vector<16x280xf32>
    %c0_24 = arith.constant 0 : index
    %c0_25 = arith.constant 0 : index
    %c0_26 = arith.constant 0 : index
    %43 = vector.load %arg5[%c0_24, %c0_25, %c0_26] : memref<5x280x200xf32, #tpu.memory_space<vmem>>, vector<1x280x200xf32>
    %44 = vector.shape_cast %43 : vector<1x280x200xf32> to vector<280x200xf32>
    %cst_27 = arith.constant dense<0.000000e+00> : vector<16x200xf32>
    %45 = tpu.matmul %42, %44, %cst_27 {dimension_numbers = #tpu.dot_dimension_numbers<[1], [0], [0], [1], [0, 0, 1, 1], [], []>} : vector<16x280xf32>, vector<280x200xf32>, vector<16x200xf32> -> vector<16x200xf32>
    %46 = arith.addf %41, %45 : vector<16x200xf32>
    %47 = vector.extract_strided_slice %40 {offsets = [16, 0], sizes = [16, 280], strides = [1, 1]} : vector<80x280xf32> to vector<16x280xf32>
    %c1_28 = arith.constant 1 : index
    %c0_29 = arith.constant 0 : index
    %c0_30 = arith.constant 0 : index
    %48 = vector.load %arg5[%c1_28, %c0_29, %c0_30] : memref<5x280x200xf32, #tpu.memory_space<vmem>>, vector<1x280x200xf32>
    %49 = vector.shape_cast %48 : vector<1x280x200xf32> to vector<280x200xf32>
    %cst_31 = arith.constant dense<0.000000e+00> : vector<16x200xf32>
    %50 = tpu.matmul %47, %49, %cst_31 {dimension_numbers = #tpu.dot_dimension_numbers<[1], [0], [0], [1], [0, 0, 1, 1], [], []>} : vector<16x280xf32>, vector<280x200xf32>, vector<16x200xf32> -> vector<16x200xf32>
    %51 = arith.addf %46, %50 : vector<16x200xf32>
    %52 = vector.extract_strided_slice %40 {offsets = [32, 0], sizes = [16, 280], strides = [1, 1]} : vector<80x280xf32> to vector<16x280xf32>
    %c2_32 = arith.constant 2 : index
    %c0_33 = arith.constant 0 : index
    %c0_34 = arith.constant 0 : index
    %53 = vector.load %arg5[%c2_32, %c0_33, %c0_34] : memref<5x280x200xf32, #tpu.memory_space<vmem>>, vector<1x280x200xf32>
    %54 = vector.shape_cast %53 : vector<1x280x200xf32> to vector<280x200xf32>
    %cst_35 = arith.constant dense<0.000000e+00> : vector<16x200xf32>
    %55 = tpu.matmul %52, %54, %cst_35 {dimension_numbers = #tpu.dot_dimension_numbers<[1], [0], [0], [1], [0, 0, 1, 1], [], []>} : vector<16x280xf32>, vector<280x200xf32>, vector<16x200xf32> -> vector<16x200xf32>
    %56 = arith.addf %51, %55 : vector<16x200xf32>
    %57 = vector.extract_strided_slice %40 {offsets = [48, 0], sizes = [16, 280], strides = [1, 1]} : vector<80x280xf32> to vector<16x280xf32>
    %c3_36 = arith.constant 3 : index
    %c0_37 = arith.constant 0 : index
    %c0_38 = arith.constant 0 : index
    %58 = vector.load %arg5[%c3_36, %c0_37, %c0_38] : memref<5x280x200xf32, #tpu.memory_space<vmem>>, vector<1x280x200xf32>
    %59 = vector.shape_cast %58 : vector<1x280x200xf32> to vector<280x200xf32>
    %cst_39 = arith.constant dense<0.000000e+00> : vector<16x200xf32>
    %60 = tpu.matmul %57, %59, %cst_39 {dimension_numbers = #tpu.dot_dimension_numbers<[1], [0], [0], [1], [0, 0, 1, 1], [], []>} : vector<16x280xf32>, vector<280x200xf32>, vector<16x200xf32> -> vector<16x200xf32>
    %61 = arith.addf %56, %60 : vector<16x200xf32>
    %62 = vector.extract_strided_slice %40 {offsets = [64, 0], sizes = [16, 280], strides = [1, 1]} : vector<80x280xf32> to vector<16x280xf32>
    %c4_40 = arith.constant 4 : index
    %c0_41 = arith.constant 0 : index
    %c0_42 = arith.constant 0 : index
    %63 = vector.load %arg5[%c4_40, %c0_41, %c0_42] : memref<5x280x200xf32, #tpu.memory_space<vmem>>, vector<1x280x200xf32>
    %64 = vector.shape_cast %63 : vector<1x280x200xf32> to vector<280x200xf32>
    %cst_43 = arith.constant dense<0.000000e+00> : vector<16x200xf32>
    %65 = tpu.matmul %62, %64, %cst_43 {dimension_numbers = #tpu.dot_dimension_numbers<[1], [0], [0], [1], [0, 0, 1, 1], [], []>} : vector<16x280xf32>, vector<280x200xf32>, vector<16x200xf32> -> vector<16x200xf32>
    %66 = arith.addf %61, %65 : vector<16x200xf32>
    %67 = vector.extract_strided_slice %66 {offsets = [0, 0], sizes = [16, 50], strides = [1, 1]} : vector<16x200xf32> to vector<16x50xf32>
    %68 = vector.extract_strided_slice %66 {offsets = [0, 50], sizes = [16, 50], strides = [1, 1]} : vector<16x200xf32> to vector<16x50xf32>
    %69 = arith.maximumf %67, %68 : vector<16x50xf32>
    %70 = vector.extract_strided_slice %66 {offsets = [0, 100], sizes = [16, 50], strides = [1, 1]} : vector<16x200xf32> to vector<16x50xf32>
    %71 = vector.extract_strided_slice %66 {offsets = [0, 150], sizes = [16, 50], strides = [1, 1]} : vector<16x200xf32> to vector<16x50xf32>
    %72 = arith.maximumf %70, %71 : vector<16x50xf32>
    %73 = arith.maximumf %69, %72 : vector<16x50xf32>
    %c0_44 = arith.constant 0 : index
    %c0_45 = arith.constant 0 : index
    %74 = vector.load %arg4[%c0_44, %c0_45] : memref<16x1xf32, #tpu.memory_space<vmem>>, vector<16x1xf32>
    %75 = vector.broadcast %74 : vector<16x1xf32> to vector<16x50xf32>
    %76 = arith.addf %73, %75 : vector<16x50xf32>
    %cst_46 = arith.constant 0.000000e+00 : f32
    %77 = vector.broadcast %cst_46 : f32 to vector<16x50xf32>
    %78 = arith.maximumf %76, %77 : vector<16x50xf32>
    %cst_47 = arith.constant 0.000000e+00 : f32
    %79 = vector.broadcast %cst_47 : f32 to vector<128x2xf32>
    %c0_48 = arith.constant 0 : index
    %c0_49 = arith.constant 0 : index
    %c0_50 = arith.constant 0 : index
    %80 = vector.load %arg6[%c0_48, %c0_49, %c0_50] : memref<25x128x16xf32, #tpu.memory_space<vmem>>, vector<1x128x16xf32>
    %81 = vector.shape_cast %80 : vector<1x128x16xf32> to vector<128x16xf32>
    %82 = vector.extract_strided_slice %78 {offsets = [0, 0], sizes = [16, 2], strides = [1, 1]} : vector<16x50xf32> to vector<16x2xf32>
    %cst_51 = arith.constant dense<0.000000e+00> : vector<128x2xf32>
    %83 = tpu.matmul %81, %82, %cst_51 {dimension_numbers = #tpu.dot_dimension_numbers<[1], [0], [0], [1], [0, 0, 1, 1], [], []>} : vector<128x16xf32>, vector<16x2xf32>, vector<128x2xf32> -> vector<128x2xf32>
    %84 = arith.addf %79, %83 : vector<128x2xf32>
    %c1_52 = arith.constant 1 : index
    %c0_53 = arith.constant 0 : index
    %c0_54 = arith.constant 0 : index
    %85 = vector.load %arg6[%c1_52, %c0_53, %c0_54] : memref<25x128x16xf32, #tpu.memory_space<vmem>>, vector<1x128x16xf32>
    %86 = vector.shape_cast %85 : vector<1x128x16xf32> to vector<128x16xf32>
    %87 = vector.extract_strided_slice %78 {offsets = [0, 2], sizes = [16, 2], strides = [1, 1]} : vector<16x50xf32> to vector<16x2xf32>
    %cst_55 = arith.constant dense<0.000000e+00> : vector<128x2xf32>
    %88 = tpu.matmul %86, %87, %cst_55 {dimension_numbers = #tpu.dot_dimension_numbers<[1], [0], [0], [1], [0, 0, 1, 1], [], []>} : vector<128x16xf32>, vector<16x2xf32>, vector<128x2xf32> -> vector<128x2xf32>
    %89 = arith.addf %84, %88 : vector<128x2xf32>
    %c2_56 = arith.constant 2 : index
    %c0_57 = arith.constant 0 : index
    %c0_58 = arith.constant 0 : index
    %90 = vector.load %arg6[%c2_56, %c0_57, %c0_58] : memref<25x128x16xf32, #tpu.memory_space<vmem>>, vector<1x128x16xf32>
    %91 = vector.shape_cast %90 : vector<1x128x16xf32> to vector<128x16xf32>
    %92 = vector.extract_strided_slice %78 {offsets = [0, 4], sizes = [16, 2], strides = [1, 1]} : vector<16x50xf32> to vector<16x2xf32>
    %cst_59 = arith.constant dense<0.000000e+00> : vector<128x2xf32>
    %93 = tpu.matmul %91, %92, %cst_59 {dimension_numbers = #tpu.dot_dimension_numbers<[1], [0], [0], [1], [0, 0, 1, 1], [], []>} : vector<128x16xf32>, vector<16x2xf32>, vector<128x2xf32> -> vector<128x2xf32>
    %94 = arith.addf %89, %93 : vector<128x2xf32>
    %c3_60 = arith.constant 3 : index
    %c0_61 = arith.constant 0 : index
    %c0_62 = arith.constant 0 : index
    %95 = vector.load %arg6[%c3_60, %c0_61, %c0_62] : memref<25x128x16xf32, #tpu.memory_space<vmem>>, vector<1x128x16xf32>
    %96 = vector.shape_cast %95 : vector<1x128x16xf32> to vector<128x16xf32>
    %97 = vector.extract_strided_slice %78 {offsets = [0, 6], sizes = [16, 2], strides = [1, 1]} : vector<16x50xf32> to vector<16x2xf32>
    %cst_63 = arith.constant dense<0.000000e+00> : vector<128x2xf32>
    %98 = tpu.matmul %96, %97, %cst_63 {dimension_numbers = #tpu.dot_dimension_numbers<[1], [0], [0], [1], [0, 0, 1, 1], [], []>} : vector<128x16xf32>, vector<16x2xf32>, vector<128x2xf32> -> vector<128x2xf32>
    %99 = arith.addf %94, %98 : vector<128x2xf32>
    %c4_64 = arith.constant 4 : index
    %c0_65 = arith.constant 0 : index
    %c0_66 = arith.constant 0 : index
    %100 = vector.load %arg6[%c4_64, %c0_65, %c0_66] : memref<25x128x16xf32, #tpu.memory_space<vmem>>, vector<1x128x16xf32>
    %101 = vector.shape_cast %100 : vector<1x128x16xf32> to vector<128x16xf32>
    %102 = vector.extract_strided_slice %78 {offsets = [0, 8], sizes = [16, 2], strides = [1, 1]} : vector<16x50xf32> to vector<16x2xf32>
    %cst_67 = arith.constant dense<0.000000e+00> : vector<128x2xf32>
    %103 = tpu.matmul %101, %102, %cst_67 {dimension_numbers = #tpu.dot_dimension_numbers<[1], [0], [0], [1], [0, 0, 1, 1], [], []>} : vector<128x16xf32>, vector<16x2xf32>, vector<128x2xf32> -> vector<128x2xf32>
    %104 = arith.addf %99, %103 : vector<128x2xf32>
    %c5 = arith.constant 5 : index
    %c0_68 = arith.constant 0 : index
    %c0_69 = arith.constant 0 : index
    %105 = vector.load %arg6[%c5, %c0_68, %c0_69] : memref<25x128x16xf32, #tpu.memory_space<vmem>>, vector<1x128x16xf32>
    %106 = vector.shape_cast %105 : vector<1x128x16xf32> to vector<128x16xf32>
    %107 = vector.extract_strided_slice %78 {offsets = [0, 10], sizes = [16, 2], strides = [1, 1]} : vector<16x50xf32> to vector<16x2xf32>
    %cst_70 = arith.constant dense<0.000000e+00> : vector<128x2xf32>
    %108 = tpu.matmul %106, %107, %cst_70 {dimension_numbers = #tpu.dot_dimension_numbers<[1], [0], [0], [1], [0, 0, 1, 1], [], []>} : vector<128x16xf32>, vector<16x2xf32>, vector<128x2xf32> -> vector<128x2xf32>
    %109 = arith.addf %104, %108 : vector<128x2xf32>
    %c6 = arith.constant 6 : index
    %c0_71 = arith.constant 0 : index
    %c0_72 = arith.constant 0 : index
    %110 = vector.load %arg6[%c6, %c0_71, %c0_72] : memref<25x128x16xf32, #tpu.memory_space<vmem>>, vector<1x128x16xf32>
    %111 = vector.shape_cast %110 : vector<1x128x16xf32> to vector<128x16xf32>
    %112 = vector.extract_strided_slice %78 {offsets = [0, 12], sizes = [16, 2], strides = [1, 1]} : vector<16x50xf32> to vector<16x2xf32>
    %cst_73 = arith.constant dense<0.000000e+00> : vector<128x2xf32>
    %113 = tpu.matmul %111, %112, %cst_73 {dimension_numbers = #tpu.dot_dimension_numbers<[1], [0], [0], [1], [0, 0, 1, 1], [], []>} : vector<128x16xf32>, vector<16x2xf32>, vector<128x2xf32> -> vector<128x2xf32>
    %114 = arith.addf %109, %113 : vector<128x2xf32>
    %c7 = arith.constant 7 : index
    %c0_74 = arith.constant 0 : index
    %c0_75 = arith.constant 0 : index
    %115 = vector.load %arg6[%c7, %c0_74, %c0_75] : memref<25x128x16xf32, #tpu.memory_space<vmem>>, vector<1x128x16xf32>
    %116 = vector.shape_cast %115 : vector<1x128x16xf32> to vector<128x16xf32>
    %117 = vector.extract_strided_slice %78 {offsets = [0, 14], sizes = [16, 2], strides = [1, 1]} : vector<16x50xf32> to vector<16x2xf32>
    %cst_76 = arith.constant dense<0.000000e+00> : vector<128x2xf32>
    %118 = tpu.matmul %116, %117, %cst_76 {dimension_numbers = #tpu.dot_dimension_numbers<[1], [0], [0], [1], [0, 0, 1, 1], [], []>} : vector<128x16xf32>, vector<16x2xf32>, vector<128x2xf32> -> vector<128x2xf32>
    %119 = arith.addf %114, %118 : vector<128x2xf32>
    %c8 = arith.constant 8 : index
    %c0_77 = arith.constant 0 : index
    %c0_78 = arith.constant 0 : index
    %120 = vector.load %arg6[%c8, %c0_77, %c0_78] : memref<25x128x16xf32, #tpu.memory_space<vmem>>, vector<1x128x16xf32>
    %121 = vector.shape_cast %120 : vector<1x128x16xf32> to vector<128x16xf32>
    %122 = vector.extract_strided_slice %78 {offsets = [0, 16], sizes = [16, 2], strides = [1, 1]} : vector<16x50xf32> to vector<16x2xf32>
    %cst_79 = arith.constant dense<0.000000e+00> : vector<128x2xf32>
    %123 = tpu.matmul %121, %122, %cst_79 {dimension_numbers = #tpu.dot_dimension_numbers<[1], [0], [0], [1], [0, 0, 1, 1], [], []>} : vector<128x16xf32>, vector<16x2xf32>, vector<128x2xf32> -> vector<128x2xf32>
    %124 = arith.addf %119, %123 : vector<128x2xf32>
    %c9 = arith.constant 9 : index
    %c0_80 = arith.constant 0 : index
    %c0_81 = arith.constant 0 : index
    %125 = vector.load %arg6[%c9, %c0_80, %c0_81] : memref<25x128x16xf32, #tpu.memory_space<vmem>>, vector<1x128x16xf32>
    %126 = vector.shape_cast %125 : vector<1x128x16xf32> to vector<128x16xf32>
    %127 = vector.extract_strided_slice %78 {offsets = [0, 18], sizes = [16, 2], strides = [1, 1]} : vector<16x50xf32> to vector<16x2xf32>
    %cst_82 = arith.constant dense<0.000000e+00> : vector<128x2xf32>
    %128 = tpu.matmul %126, %127, %cst_82 {dimension_numbers = #tpu.dot_dimension_numbers<[1], [0], [0], [1], [0, 0, 1, 1], [], []>} : vector<128x16xf32>, vector<16x2xf32>, vector<128x2xf32> -> vector<128x2xf32>
    %129 = arith.addf %124, %128 : vector<128x2xf32>
    %c10 = arith.constant 10 : index
    %c0_83 = arith.constant 0 : index
    %c0_84 = arith.constant 0 : index
    %130 = vector.load %arg6[%c10, %c0_83, %c0_84] : memref<25x128x16xf32, #tpu.memory_space<vmem>>, vector<1x128x16xf32>
    %131 = vector.shape_cast %130 : vector<1x128x16xf32> to vector<128x16xf32>
    %132 = vector.extract_strided_slice %78 {offsets = [0, 20], sizes = [16, 2], strides = [1, 1]} : vector<16x50xf32> to vector<16x2xf32>
    %cst_85 = arith.constant dense<0.000000e+00> : vector<128x2xf32>
    %133 = tpu.matmul %131, %132, %cst_85 {dimension_numbers = #tpu.dot_dimension_numbers<[1], [0], [0], [1], [0, 0, 1, 1], [], []>} : vector<128x16xf32>, vector<16x2xf32>, vector<128x2xf32> -> vector<128x2xf32>
    %134 = arith.addf %129, %133 : vector<128x2xf32>
    %c11 = arith.constant 11 : index
    %c0_86 = arith.constant 0 : index
    %c0_87 = arith.constant 0 : index
    %135 = vector.load %arg6[%c11, %c0_86, %c0_87] : memref<25x128x16xf32, #tpu.memory_space<vmem>>, vector<1x128x16xf32>
    %136 = vector.shape_cast %135 : vector<1x128x16xf32> to vector<128x16xf32>
    %137 = vector.extract_strided_slice %78 {offsets = [0, 22], sizes = [16, 2], strides = [1, 1]} : vector<16x50xf32> to vector<16x2xf32>
    %cst_88 = arith.constant dense<0.000000e+00> : vector<128x2xf32>
    %138 = tpu.matmul %136, %137, %cst_88 {dimension_numbers = #tpu.dot_dimension_numbers<[1], [0], [0], [1], [0, 0, 1, 1], [], []>} : vector<128x16xf32>, vector<16x2xf32>, vector<128x2xf32> -> vector<128x2xf32>
    %139 = arith.addf %134, %138 : vector<128x2xf32>
    %c12 = arith.constant 12 : index
    %c0_89 = arith.constant 0 : index
    %c0_90 = arith.constant 0 : index
    %140 = vector.load %arg6[%c12, %c0_89, %c0_90] : memref<25x128x16xf32, #tpu.memory_space<vmem>>, vector<1x128x16xf32>
    %141 = vector.shape_cast %140 : vector<1x128x16xf32> to vector<128x16xf32>
    %142 = vector.extract_strided_slice %78 {offsets = [0, 24], sizes = [16, 2], strides = [1, 1]} : vector<16x50xf32> to vector<16x2xf32>
    %cst_91 = arith.constant dense<0.000000e+00> : vector<128x2xf32>
    %143 = tpu.matmul %141, %142, %cst_91 {dimension_numbers = #tpu.dot_dimension_numbers<[1], [0], [0], [1], [0, 0, 1, 1], [], []>} : vector<128x16xf32>, vector<16x2xf32>, vector<128x2xf32> -> vector<128x2xf32>
    %144 = arith.addf %139, %143 : vector<128x2xf32>
    %c13 = arith.constant 13 : index
    %c0_92 = arith.constant 0 : index
    %c0_93 = arith.constant 0 : index
    %145 = vector.load %arg6[%c13, %c0_92, %c0_93] : memref<25x128x16xf32, #tpu.memory_space<vmem>>, vector<1x128x16xf32>
    %146 = vector.shape_cast %145 : vector<1x128x16xf32> to vector<128x16xf32>
    %147 = vector.extract_strided_slice %78 {offsets = [0, 26], sizes = [16, 2], strides = [1, 1]} : vector<16x50xf32> to vector<16x2xf32>
    %cst_94 = arith.constant dense<0.000000e+00> : vector<128x2xf32>
    %148 = tpu.matmul %146, %147, %cst_94 {dimension_numbers = #tpu.dot_dimension_numbers<[1], [0], [0], [1], [0, 0, 1, 1], [], []>} : vector<128x16xf32>, vector<16x2xf32>, vector<128x2xf32> -> vector<128x2xf32>
    %149 = arith.addf %144, %148 : vector<128x2xf32>
    %c14 = arith.constant 14 : index
    %c0_95 = arith.constant 0 : index
    %c0_96 = arith.constant 0 : index
    %150 = vector.load %arg6[%c14, %c0_95, %c0_96] : memref<25x128x16xf32, #tpu.memory_space<vmem>>, vector<1x128x16xf32>
    %151 = vector.shape_cast %150 : vector<1x128x16xf32> to vector<128x16xf32>
    %152 = vector.extract_strided_slice %78 {offsets = [0, 28], sizes = [16, 2], strides = [1, 1]} : vector<16x50xf32> to vector<16x2xf32>
    %cst_97 = arith.constant dense<0.000000e+00> : vector<128x2xf32>
    %153 = tpu.matmul %151, %152, %cst_97 {dimension_numbers = #tpu.dot_dimension_numbers<[1], [0], [0], [1], [0, 0, 1, 1], [], []>} : vector<128x16xf32>, vector<16x2xf32>, vector<128x2xf32> -> vector<128x2xf32>
    %154 = arith.addf %149, %153 : vector<128x2xf32>
    %c15 = arith.constant 15 : index
    %c0_98 = arith.constant 0 : index
    %c0_99 = arith.constant 0 : index
    %155 = vector.load %arg6[%c15, %c0_98, %c0_99] : memref<25x128x16xf32, #tpu.memory_space<vmem>>, vector<1x128x16xf32>
    %156 = vector.shape_cast %155 : vector<1x128x16xf32> to vector<128x16xf32>
    %157 = vector.extract_strided_slice %78 {offsets = [0, 30], sizes = [16, 2], strides = [1, 1]} : vector<16x50xf32> to vector<16x2xf32>
    %cst_100 = arith.constant dense<0.000000e+00> : vector<128x2xf32>
    %158 = tpu.matmul %156, %157, %cst_100 {dimension_numbers = #tpu.dot_dimension_numbers<[1], [0], [0], [1], [0, 0, 1, 1], [], []>} : vector<128x16xf32>, vector<16x2xf32>, vector<128x2xf32> -> vector<128x2xf32>
    %159 = arith.addf %154, %158 : vector<128x2xf32>
    %c16 = arith.constant 16 : index
    %c0_101 = arith.constant 0 : index
    %c0_102 = arith.constant 0 : index
    %160 = vector.load %arg6[%c16, %c0_101, %c0_102] : memref<25x128x16xf32, #tpu.memory_space<vmem>>, vector<1x128x16xf32>
    %161 = vector.shape_cast %160 : vector<1x128x16xf32> to vector<128x16xf32>
    %162 = vector.extract_strided_slice %78 {offsets = [0, 32], sizes = [16, 2], strides = [1, 1]} : vector<16x50xf32> to vector<16x2xf32>
    %cst_103 = arith.constant dense<0.000000e+00> : vector<128x2xf32>
    %163 = tpu.matmul %161, %162, %cst_103 {dimension_numbers = #tpu.dot_dimension_numbers<[1], [0], [0], [1], [0, 0, 1, 1], [], []>} : vector<128x16xf32>, vector<16x2xf32>, vector<128x2xf32> -> vector<128x2xf32>
    %164 = arith.addf %159, %163 : vector<128x2xf32>
    %c17 = arith.constant 17 : index
    %c0_104 = arith.constant 0 : index
    %c0_105 = arith.constant 0 : index
    %165 = vector.load %arg6[%c17, %c0_104, %c0_105] : memref<25x128x16xf32, #tpu.memory_space<vmem>>, vector<1x128x16xf32>
    %166 = vector.shape_cast %165 : vector<1x128x16xf32> to vector<128x16xf32>
    %167 = vector.extract_strided_slice %78 {offsets = [0, 34], sizes = [16, 2], strides = [1, 1]} : vector<16x50xf32> to vector<16x2xf32>
    %cst_106 = arith.constant dense<0.000000e+00> : vector<128x2xf32>
    %168 = tpu.matmul %166, %167, %cst_106 {dimension_numbers = #tpu.dot_dimension_numbers<[1], [0], [0], [1], [0, 0, 1, 1], [], []>} : vector<128x16xf32>, vector<16x2xf32>, vector<128x2xf32> -> vector<128x2xf32>
    %169 = arith.addf %164, %168 : vector<128x2xf32>
    %c18 = arith.constant 18 : index
    %c0_107 = arith.constant 0 : index
    %c0_108 = arith.constant 0 : index
    %170 = vector.load %arg6[%c18, %c0_107, %c0_108] : memref<25x128x16xf32, #tpu.memory_space<vmem>>, vector<1x128x16xf32>
    %171 = vector.shape_cast %170 : vector<1x128x16xf32> to vector<128x16xf32>
    %172 = vector.extract_strided_slice %78 {offsets = [0, 36], sizes = [16, 2], strides = [1, 1]} : vector<16x50xf32> to vector<16x2xf32>
    %cst_109 = arith.constant dense<0.000000e+00> : vector<128x2xf32>
    %173 = tpu.matmul %171, %172, %cst_109 {dimension_numbers = #tpu.dot_dimension_numbers<[1], [0], [0], [1], [0, 0, 1, 1], [], []>} : vector<128x16xf32>, vector<16x2xf32>, vector<128x2xf32> -> vector<128x2xf32>
    %174 = arith.addf %169, %173 : vector<128x2xf32>
    %c19 = arith.constant 19 : index
    %c0_110 = arith.constant 0 : index
    %c0_111 = arith.constant 0 : index
    %175 = vector.load %arg6[%c19, %c0_110, %c0_111] : memref<25x128x16xf32, #tpu.memory_space<vmem>>, vector<1x128x16xf32>
    %176 = vector.shape_cast %175 : vector<1x128x16xf32> to vector<128x16xf32>
    %177 = vector.extract_strided_slice %78 {offsets = [0, 38], sizes = [16, 2], strides = [1, 1]} : vector<16x50xf32> to vector<16x2xf32>
    %cst_112 = arith.constant dense<0.000000e+00> : vector<128x2xf32>
    %178 = tpu.matmul %176, %177, %cst_112 {dimension_numbers = #tpu.dot_dimension_numbers<[1], [0], [0], [1], [0, 0, 1, 1], [], []>} : vector<128x16xf32>, vector<16x2xf32>, vector<128x2xf32> -> vector<128x2xf32>
    %179 = arith.addf %174, %178 : vector<128x2xf32>
    %c20 = arith.constant 20 : index
    %c0_113 = arith.constant 0 : index
    %c0_114 = arith.constant 0 : index
    %180 = vector.load %arg6[%c20, %c0_113, %c0_114] : memref<25x128x16xf32, #tpu.memory_space<vmem>>, vector<1x128x16xf32>
    %181 = vector.shape_cast %180 : vector<1x128x16xf32> to vector<128x16xf32>
    %182 = vector.extract_strided_slice %78 {offsets = [0, 40], sizes = [16, 2], strides = [1, 1]} : vector<16x50xf32> to vector<16x2xf32>
    %cst_115 = arith.constant dense<0.000000e+00> : vector<128x2xf32>
    %183 = tpu.matmul %181, %182, %cst_115 {dimension_numbers = #tpu.dot_dimension_numbers<[1], [0], [0], [1], [0, 0, 1, 1], [], []>} : vector<128x16xf32>, vector<16x2xf32>, vector<128x2xf32> -> vector<128x2xf32>
    %184 = arith.addf %179, %183 : vector<128x2xf32>
    %c21 = arith.constant 21 : index
    %c0_116 = arith.constant 0 : index
    %c0_117 = arith.constant 0 : index
    %185 = vector.load %arg6[%c21, %c0_116, %c0_117] : memref<25x128x16xf32, #tpu.memory_space<vmem>>, vector<1x128x16xf32>
    %186 = vector.shape_cast %185 : vector<1x128x16xf32> to vector<128x16xf32>
    %187 = vector.extract_strided_slice %78 {offsets = [0, 42], sizes = [16, 2], strides = [1, 1]} : vector<16x50xf32> to vector<16x2xf32>
    %cst_118 = arith.constant dense<0.000000e+00> : vector<128x2xf32>
    %188 = tpu.matmul %186, %187, %cst_118 {dimension_numbers = #tpu.dot_dimension_numbers<[1], [0], [0], [1], [0, 0, 1, 1], [], []>} : vector<128x16xf32>, vector<16x2xf32>, vector<128x2xf32> -> vector<128x2xf32>
    %189 = arith.addf %184, %188 : vector<128x2xf32>
    %c22 = arith.constant 22 : index
    %c0_119 = arith.constant 0 : index
    %c0_120 = arith.constant 0 : index
    %190 = vector.load %arg6[%c22, %c0_119, %c0_120] : memref<25x128x16xf32, #tpu.memory_space<vmem>>, vector<1x128x16xf32>
    %191 = vector.shape_cast %190 : vector<1x128x16xf32> to vector<128x16xf32>
    %192 = vector.extract_strided_slice %78 {offsets = [0, 44], sizes = [16, 2], strides = [1, 1]} : vector<16x50xf32> to vector<16x2xf32>
    %cst_121 = arith.constant dense<0.000000e+00> : vector<128x2xf32>
    %193 = tpu.matmul %191, %192, %cst_121 {dimension_numbers = #tpu.dot_dimension_numbers<[1], [0], [0], [1], [0, 0, 1, 1], [], []>} : vector<128x16xf32>, vector<16x2xf32>, vector<128x2xf32> -> vector<128x2xf32>
    %194 = arith.addf %189, %193 : vector<128x2xf32>
    %c23 = arith.constant 23 : index
    %c0_122 = arith.constant 0 : index
    %c0_123 = arith.constant 0 : index
    %195 = vector.load %arg6[%c23, %c0_122, %c0_123] : memref<25x128x16xf32, #tpu.memory_space<vmem>>, vector<1x128x16xf32>
    %196 = vector.shape_cast %195 : vector<1x128x16xf32> to vector<128x16xf32>
    %197 = vector.extract_strided_slice %78 {offsets = [0, 46], sizes = [16, 2], strides = [1, 1]} : vector<16x50xf32> to vector<16x2xf32>
    %cst_124 = arith.constant dense<0.000000e+00> : vector<128x2xf32>
    %198 = tpu.matmul %196, %197, %cst_124 {dimension_numbers = #tpu.dot_dimension_numbers<[1], [0], [0], [1], [0, 0, 1, 1], [], []>} : vector<128x16xf32>, vector<16x2xf32>, vector<128x2xf32> -> vector<128x2xf32>
    %199 = arith.addf %194, %198 : vector<128x2xf32>
    %c24 = arith.constant 24 : index
    %c0_125 = arith.constant 0 : index
    %c0_126 = arith.constant 0 : index
    %200 = vector.load %arg6[%c24, %c0_125, %c0_126] : memref<25x128x16xf32, #tpu.memory_space<vmem>>, vector<1x128x16xf32>
    %201 = vector.shape_cast %200 : vector<1x128x16xf32> to vector<128x16xf32>
    %202 = vector.extract_strided_slice %78 {offsets = [0, 48], sizes = [16, 2], strides = [1, 1]} : vector<16x50xf32> to vector<16x2xf32>
    %cst_127 = arith.constant dense<0.000000e+00> : vector<128x2xf32>
    %203 = tpu.matmul %201, %202, %cst_127 {dimension_numbers = #tpu.dot_dimension_numbers<[1], [0], [0], [1], [0, 0, 1, 1], [], []>} : vector<128x16xf32>, vector<16x2xf32>, vector<128x2xf32> -> vector<128x2xf32>
    %204 = arith.addf %199, %203 : vector<128x2xf32>
    %c0_128 = arith.constant 0 : index
    %c0_129 = arith.constant 0 : index
    %205 = vector.load %arg7[%c0_128, %c0_129] : memref<128x1xf32, #tpu.memory_space<vmem>>, vector<128x1xf32>
    %206 = vector.broadcast %205 : vector<128x1xf32> to vector<128x2xf32>
    %207 = arith.addf %204, %206 : vector<128x2xf32>
    %cst_130 = arith.constant 0.000000e+00 : f32
    %208 = vector.broadcast %cst_130 : f32 to vector<128x2xf32>
    %209 = arith.maximumf %207, %208 : vector<128x2xf32>
    %c0_131 = arith.constant 0 : index
    %c0_132 = arith.constant 0 : index
    %210 = vector.load %arg8[%c0_131, %c0_132] : memref<128x128xf32, #tpu.memory_space<vmem>>, vector<128x128xf32>
    %cst_133 = arith.constant dense<0.000000e+00> : vector<128x2xf32>
    %211 = tpu.matmul %210, %209, %cst_133 {dimension_numbers = #tpu.dot_dimension_numbers<[1], [0], [0], [1], [0, 0, 1, 1], [], []>} : vector<128x128xf32>, vector<128x2xf32>, vector<128x2xf32> -> vector<128x2xf32>
    %c0_134 = arith.constant 0 : index
    %c0_135 = arith.constant 0 : index
    %212 = vector.load %arg9[%c0_134, %c0_135] : memref<128x1xf32, #tpu.memory_space<vmem>>, vector<128x1xf32>
    %213 = vector.broadcast %212 : vector<128x1xf32> to vector<128x2xf32>
    %214 = arith.addf %211, %213 : vector<128x2xf32>
    %cst_136 = arith.constant 0.000000e+00 : f32
    %215 = vector.broadcast %cst_136 : f32 to vector<128x2xf32>
    %216 = arith.maximumf %214, %215 : vector<128x2xf32>
    %c0_137 = arith.constant 0 : index
    %c0_138 = arith.constant 0 : index
    %217 = vector.load %arg10[%c0_137, %c0_138] : memref<10x128xf32, #tpu.memory_space<vmem>>, vector<10x128xf32>
    %cst_139 = arith.constant dense<0.000000e+00> : vector<10x2xf32>
    %218 = tpu.matmul %217, %216, %cst_139 {dimension_numbers = #tpu.dot_dimension_numbers<[1], [0], [0], [1], [0, 0, 1, 1], [], []>} : vector<10x128xf32>, vector<128x2xf32>, vector<10x2xf32> -> vector<10x2xf32>
    %c0_140 = arith.constant 0 : index
    %c0_141 = arith.constant 0 : index
    %219 = vector.load %arg11[%c0_140, %c0_141] : memref<10x1xf32, #tpu.memory_space<vmem>>, vector<10x1xf32>
    %220 = vector.broadcast %219 : vector<10x1xf32> to vector<10x2xf32>
    %221 = arith.addf %218, %220 : vector<10x2xf32>
    %c0_142 = arith.constant 0 : index
    %c0_143 = arith.constant 0 : index
    %222 = vector.load %arg12[%c0_142, %c0_143] : memref<10x2xf32, #tpu.memory_space<vmem>>, vector<10x2xf32>
    tpu.vector_store %arg12[%c0_142, %c0_143], %221 {strides = array<i32>} : memref<10x2xf32, #tpu.memory_space<vmem>>, vector<10x2xf32>,
    return
  }
}

</mosaic_0001>

<bundles_post_ra>
// kernel: net_forward.1
= control target key start
LH: loop header
LB: loop body
LE: loop exit
PB: predicated region body
PF: predicated region fallthrough
CT: control target
= control target key end

     0   :  { %vm176_vm0 = vcmask 1042432   ;;  %v17642_v3 = vmov 0.0   ;;  %vm172_vm1 = vcmask 613376   ;;  %vm12602_vm2 = vmmov 0   ;;  %s12604_s21 = smov 120   ;;  %s12605_s23 = smov 112   ;;  %s17629_s0 = inlined_call_operand.vmem [shape: f32[75,1568], index: 0, kind: input, shape index: {}]   ;;  %s17630_s1 = inlined_call_operand.vmem [shape: f32[6,75], index: 1, kind: input, shape index: {}]   ;;  %s17631_s2 = inlined_call_operand.vmem [shape: f32[6,1], index: 2, kind: input, shape index: {}]   ;;  %s17632_s3 = inlined_call_operand.vmem [shape: f32[5,80,6], index: 3, kind: input, shape index: {}]   ;;  %s17633_s5 = inlined_call_operand.vmem [shape: f32[5,280,200], index: 5, kind: input, shape index: {}]   ;;  %s17634_s4 = inlined_call_operand.vmem [shape: f32[16,1], index: 4, kind: input, shape index: {}]   ;;  %s17635_s6 = inlined_call_operand.vmem [shape: f32[25,128,16], index: 6, kind: input, shape index: {}]   ;;  %s17636_s7 = inlined_call_operand.vmem [shape: f32[128,1], index: 7, kind: input, shape index: {}]   ;;  %s17637_s9 = inlined_call_operand.vmem [shape: f32[128,1], index: 9, kind: input, shape index: {}]   ;;  %s17638_s11 = inlined_call_operand.vmem [shape: f32[10,1], index: 11, kind: input, shape index: {}]   ;;  %s17639_s8 = inlined_call_operand.vmem [shape: f32[128,128], index: 8, kind: input, shape index: {}]   ;;  %s17640_s10 = inlined_call_operand.vmem [shape: f32[10,128], index: 10, kind: input, shape index: {}]   ;;  %s17641_s12 = inlined_call_operand.vmem [shape: f32[10,2], index: 12, kind: output, shape index: {}]  }
   0x1   :  { %v160_v0 = vld [vmem:[%s17629_s0 + $0x3b0] sm:$0x7]  ;;  %v162_v1 = vld [vmem:[%s17629_s0 + $0x3c0] sm:$0x7]  ;;  %v159_v2 = vld [vmem:[%s17629_s0 + $0x3a8] sm:$0x7]  ;;  %280 = vmatprep.mubr.f32.mxu0 %v17642_v3  ;;  %351 = vmatprep.mubr.f32.mxu1 %v17642_v3 }
   0x2   :  { %9851 = vmatprep.subr.msk.mxu0 %vm176_vm0, %v160_v0  ;;  %9854 = vmatprep.subr.msk.mxu1 %vm176_vm0, %v162_v1  ;;  %v161_v4 = vld [vmem:[%s17629_s0 + $0x3b8] sm:$0x7]  ;;  %v147_v5 = vld [vmem:[%s17629_s0 + $0x348] sm:$0xff]  ;;  %v146_v7 = vld [vmem:[%s17629_s0 + $0x340] sm:$0xff]  ;;  %vm724_vm3 = vcmask 982016   ;;  %vm771_vm4 = vcmask 916480  }
   0x3   :  { %v149_v6 = vld [vmem:[%s17629_s0 + $0x358] sm:$0xff]  ;;  %9852 = vmatpush1.msk.msra.mxu0 %vm176_vm0, %v159_v2  ;;  %9855 = vmatpush1.msk.msra.mxu1 %vm176_vm0, %v161_v4  ;;  %v148_v8 = vld [vmem:[%s17629_s0 + $0x350] sm:$0xff]  ;;  %v134_v9 = vld [vmem:[%s17629_s0 + $0x2e0] sm:$0xff]  ;;  %s12607_s24 = smov 72   ;;  %s12608_s25 = smov 44   ;;  %vm827_vm5 = vcmask 818176  }
   0x4   :  { %230 = vmatprep.subr.mxu0 %v147_v5  ;;  %301 = vmatprep.subr.mxu1 %v149_v6  ;;  %v136_v10 = vld [vmem:[%s17629_s0 + $0x2f0] sm:$0xff]  ;;  %v133_v11 = vld [vmem:[%s17629_s0 + $0x2d8] sm:$0xff]  ;;  %v135_v12 = vld [vmem:[%s17629_s0 + $0x2e8] sm:$0xff]  ;;  %s12609_s26 = smov 16   ;;  %vm861_vm6 = vcmask 1045504   ;;  %vm830_vm7 = vcmask 48128  }
   0x5   :  { %231 = vmatpush1.msra.mxu0 %v146_v7  ;;  %302 = vmatpush1.msra.mxu1 %v148_v8  ;;  %v121_v13 = vld [vmem:[%s17629_s0 + $0x278] sm:$0xff]  ;;  %v123_v14 = vld [vmem:[%s17629_s0 + $0x288] sm:$0xff]  ;;  %v120_v15 = vld [vmem:[%s17629_s0 + $0x270] sm:$0xff]  ;;  %vm1401_vm8 = vcmask 588800   ;;  %vm1727_vm9 = vcmask 359424   ;;  %vm2056_vm10 = vcmask 130048  }
   0x6   :  { %232 = vmatprep.subr.mxu0 %v134_v9  ;;  %303 = vmatprep.subr.mxu1 %v136_v10  ;;  %v122_v16 = vld [vmem:[%s17629_s0 + $0x280] sm:$0xff]  ;;  %v108_v17 = vld [vmem:[%s17629_s0 + $0x210] sm:$0xff]  ;;  %v107_v19 = vld [vmem:[%s17629_s0 + $0x208] sm:$0xff]  ;;  %vm2507_vm11 = vcmask 195584   ;;  %s12611_s20 = smov 28   ;;  %vm3567_vm12 = vcmask 228352  }
   0x7   :  { %233 = vmatpush1.msra.mxu0 %v133_v11  ;;  %304 = vmatpush1.msra.mxu1 %v135_v12  ;;  %v110_v18 = vld [vmem:[%s17629_s0 + $0x220] sm:$0xff]  ;;  %v109_v20 = vld [vmem:[%s17629_s0 + $0x218] sm:$0xff]  ;;  %v95_v21 = vld [vmem:[%s17629_s0 + $0x1a8] sm:$0xff]  ;;  %s12614_s30 = smov 122   ;;  %s12617_s27 = smov 114   ;;  %vm9845_vm13 = vcmask 9216  }
   0x8   :  { %234 = vmatprep.subr.mxu0 %v121_v13  ;;  %305 = vmatprep.subr.mxu1 %v123_v14  ;;  %v97_v22 = vld [vmem:[%s17629_s0 + $0x1b8] sm:$0xff]  ;;  %v94_v23 = vld [vmem:[%s17629_s0 + $0x1a0] sm:$0xff]  ;;  %v96_v24 = vld [vmem:[%s17629_s0 + $0x1b0] sm:$0xff]  ;;  %s12618_s17 = smov 110   ;;  %s12622_s22 = smov 102   ;;  %vm9843_vm14 = vcmask 15360  }
   0x9   :  { %235 = vmatpush1.msra.mxu0 %v120_v15  ;;  %306 = vmatpush1.msra.mxu1 %v122_v16  ;;  %v82_v25 = vld [vmem:[%s17629_s0 + $0x140] sm:$0xff]  ;;  %v84_v26 = vld [vmem:[%s17629_s0 + $0x150] sm:$0xff]  ;;  %v81_v27 = vld [vmem:[%s17629_s0 + $0x138] sm:$0xff]  ;;  %s12630_s28 = smov 84   ;;  %s12631_s29 = smov 82  }
   0xa   :  { %236 = vmatprep.subr.mxu0 %v108_v17  ;;  %307 = vmatprep.subr.mxu1 %v110_v18  ;;  %v83_v28 = vld [vmem:[%s17629_s0 + $0x148] sm:$0xff]  ;;  %v69_v29 = vld [vmem:[%s17629_s0 + $0xd8] sm:$0xff]  ;;  %v68_v31 = vld [vmem:[%s17629_s0 + $0xd0] sm:$0xff] }
   0xb   :  { %237 = vmatpush1.msra.mxu0 %v107_v19  ;;  %308 = vmatpush1.msra.mxu1 %v109_v20  ;;  %v71_v30 = vld [vmem:[%s17629_s0 + $0xe8] sm:$0xff]  ;;  %v70_v32 = vld [vmem:[%s17629_s0 + $0xe0] sm:$0xff]  ;;  %v56_v33 = vld [vmem:[%s17629_s0 + $0x70] sm:$0xff] }
   0xc   :  { %238 = vmatprep.subr.mxu0 %v95_v21  ;;  %309 = vmatprep.subr.mxu1 %v97_v22  ;;  %v58_v34 = vld [vmem:[%s17629_s0 + $0x80] sm:$0xff]  ;;  %v55_v35 = vld [vmem:[%s17629_s0 + $0x68] sm:$0xff]  ;;  %v57_v36 = vld [vmem:[%s17629_s0 + $0x78] sm:$0xff] }
   0xd   :  { %239 = vmatpush1.msra.mxu0 %v94_v23  ;;  %310 = vmatpush1.msra.mxu1 %v96_v24  ;;  %v43_v37 = vld [vmem:[%s17629_s0 + $0x8] sm:$0xff]  ;;  %v45_v38 = vld [vmem:[%s17629_s0 + $0x18] sm:$0xff]  ;;  %v42_v39 = vld [vmem:[%s17629_s0] sm:$0xff] }
   0xe   :  { %240 = vmatprep.subr.mxu0 %v82_v25  ;;  %311 = vmatprep.subr.mxu1 %v84_v26  ;;  %v44_v40 = vld [vmem:[%s17629_s0 + $0x10] sm:$0xff]  ;;  %v12827_v41 = vld [vmem:[%s17630_s1] sm:$0x3f]  ;;  %v163_v44 = vld [vmem:[%s17629_s0 + $0x3c8] sm:$0x7]  ;;  %s12615_s1 = smov 118  }
   0xf   :  { %241 = vmatpush1.msra.mxu0 %v81_v27  ;;  %312 = vmatpush1.msra.mxu1 %v83_v28  ;;  %v164_v42 = vld [vmem:[%s17629_s0 + $0x3d0] sm:$0x7]  ;;  %v166_v43 = vld [vmem:[%s17629_s0 + $0x3e0] sm:$0x7]  ;;  %v165_v45 = vld [vmem:[%s17629_s0 + $0x3d8] sm:$0x7] }
  0x10   :  { %242 = vmatprep.subr.mxu0 %v69_v29  ;;  %313 = vmatprep.subr.mxu1 %v71_v30  ;;  %v151_v46 = vld [vmem:[%s17629_s0 + $0x368] sm:$0xff]  ;;  %v153_v47 = vld [vmem:[%s17629_s0 + $0x378] sm:$0xff]  ;;  %v150_v48 = vld [vmem:[%s17629_s0 + $0x360] sm:$0xff] }
  0x11   :  { %243 = vmatpush1.msra.mxu0 %v68_v31  ;;  %314 = vmatpush1.msra.mxu1 %v70_v32  ;;  %v152_v49 = vld [vmem:[%s17629_s0 + $0x370] sm:$0xff]  ;;  %v138_v50 = vld [vmem:[%s17629_s0 + $0x300] sm:$0xff]  ;;  %v137_v52 = vld [vmem:[%s17629_s0 + $0x2f8] sm:$0xff] }
  0x12   :  { %244 = vmatprep.subr.mxu0 %v56_v33  ;;  %315 = vmatprep.subr.mxu1 %v58_v34  ;;  %v140_v51 = vld [vmem:[%s17629_s0 + $0x310] sm:$0xff]  ;;  %v139_v53 = vld [vmem:[%s17629_s0 + $0x308] sm:$0xff]  ;;  %v125_v54 = vld [vmem:[%s17629_s0 + $0x298] sm:$0xff] }
  0x13   :  { %245 = vmatpush1.msra.mxu0 %v55_v35  ;;  %316 = vmatpush1.msra.mxu1 %v57_v36  ;;  %v127_v55 = vld [vmem:[%s17629_s0 + $0x2a8] sm:$0xff]  ;;  %v124_v56 = vld [vmem:[%s17629_s0 + $0x290] sm:$0xff]  ;;  %v126_v57 = vld [vmem:[%s17629_s0 + $0x2a0] sm:$0xff] }
  0x14   :  { %246 = vmatprep.subr.mxu0 %v43_v37  ;;  %317 = vmatprep.subr.mxu1 %v45_v38  ;;  %v112_v58 = vld [vmem:[%s17629_s0 + $0x230] sm:$0xff]  ;;  %v114_v59 = vld [vmem:[%s17629_s0 + $0x240] sm:$0xff]  ;;  %v111_v60 = vld [vmem:[%s17629_s0 + $0x228] sm:$0xff] }
  0x15   :  { %247 = vmatpush1.msra.mxu0 %v42_v39  ;;  %318 = vmatpush1.msra.mxu1 %v44_v40  ;;  %v113_v61 = vld [vmem:[%s17629_s0 + $0x238] sm:$0xff]  ;;  %v99_v62 = vld [vmem:[%s17629_s0 + $0x1c8] sm:$0xff]  ;;  %v98_v0 = vld [vmem:[%s17629_s0 + $0x1c0] sm:$0xff] }
  0x16   :  { %9853 = vmatmul.mubr.msk.f32.vlgmr.msra.gmra.mxu0 %vm172_vm1, %v12827_v41  ;;  %9857 = vmatprep.subr.msk.mxu0 %vm176_vm0, %v164_v42  ;;  %v101_v63 = vld [vmem:[%s17629_s0 + $0x1d8] sm:$0xff]  ;;  %v100_v1 = vld [vmem:[%s17629_s0 + $0x1d0] sm:$0xff]  ;;  %v86_v2 = vld [vmem:[%s17629_s0 + $0x160] sm:$0xff] }
  0x17   :  { %9860 = vmatprep.subr.msk.mxu1 %vm176_vm0, %v166_v43  ;;  %9856 = vmatmul.mubr.msk.f32.vlgmr.msra.gmra.mxu1 %vm172_vm1, %v12827_v41  ;;  %v88_v4 = vld [vmem:[%s17629_s0 + $0x170] sm:$0xff]  ;;  %v85_v5 = vld [vmem:[%s17629_s0 + $0x158] sm:$0xff]  ;;  %v87_v6 = vld [vmem:[%s17629_s0 + $0x168] sm:$0xff] }
  0x18   :  { %9858 = vmatpush1.msk.msra.mxu0 %vm176_vm0, %v163_v44  ;;  %9861 = vmatpush1.msk.msra.mxu1 %vm176_vm0, %v165_v45  ;;  %v73_v7 = vld [vmem:[%s17629_s0 + $0xf8] sm:$0xff]  ;;  %v75_v8 = vld [vmem:[%s17629_s0 + $0x108] sm:$0xff]  ;;  %v72_v9 = vld [vmem:[%s17629_s0 + $0xf0] sm:$0xff] }
  0x19   :  { %372 = vmatprep.subr.mxu0 %v151_v46  ;;  %443 = vmatprep.subr.mxu1 %v153_v47  ;;  %v74_v10 = vld [vmem:[%s17629_s0 + $0x100] sm:$0xff]  ;;  %v60_v11 = vld [vmem:[%s17629_s0 + $0x90] sm:$0xff]  ;;  %v59_v13 = vld [vmem:[%s17629_s0 + $0x88] sm:$0xff] }
  0x1a   :  { %373 = vmatpush1.msra.mxu0 %v150_v48  ;;  %444 = vmatpush1.msra.mxu1 %v152_v49  ;;  %v62_v12 = vld [vmem:[%s17629_s0 + $0xa0] sm:$0xff]  ;;  %v61_v14 = vld [vmem:[%s17629_s0 + $0x98] sm:$0xff]  ;;  %v47_v15 = vld [vmem:[%s17629_s0 + $0x28] sm:$0xff] }
  0x1b   :  { %374 = vmatprep.subr.mxu0 %v138_v50  ;;  %445 = vmatprep.subr.mxu1 %v140_v51  ;;  %v49_v16 = vld [vmem:[%s17629_s0 + $0x38] sm:$0xff]  ;;  %v46_v17 = vld [vmem:[%s17629_s0 + $0x20] sm:$0xff]  ;;  %v48_v18 = vld [vmem:[%s17629_s0 + $0x30] sm:$0xff] }
  0x1c   :  { %375 = vmatpush1.msra.mxu0 %v137_v52  ;;  %446 = vmatpush1.msra.mxu1 %v139_v53  ;;  %v168_v19 = vld [vmem:[%s17629_s0 + $0x3f0] sm:$0x7]  ;;  %v170_v20 = vld [vmem:[%s17629_s0 + $0x400] sm:$0x7]  ;;  %v167_v21 = vld [vmem:[%s17629_s0 + $0x3e8] sm:$0x7] }
  0x1d   :  { %376 = vmatprep.subr.mxu0 %v125_v54  ;;  %447 = vmatprep.subr.mxu1 %v127_v55  ;;  %v169_v22 = vld [vmem:[%s17629_s0 + $0x3f8] sm:$0x7]  ;;  %v155_v23 = vld [vmem:[%s17629_s0 + $0x388] sm:$0xff]  ;;  %v154_v25 = vld [vmem:[%s17629_s0 + $0x380] sm:$0xff] }
  0x1e   :  { %377 = vmatpush1.msra.mxu0 %v124_v56  ;;  %448 = vmatpush1.msra.mxu1 %v126_v57  ;;  %v157_v24 = vld [vmem:[%s17629_s0 + $0x398] sm:$0xff]  ;;  %v156_v26 = vld [vmem:[%s17629_s0 + $0x390] sm:$0xff]  ;;  %v142_v27 = vld [vmem:[%s17629_s0 + $0x320] sm:$0xff] }
  0x1f   :  { %378 = vmatprep.subr.mxu0 %v112_v58  ;;  %449 = vmatprep.subr.mxu1 %v114_v59  ;;  %v144_v28 = vld [vmem:[%s17629_s0 + $0x330] sm:$0xff]  ;;  %v141_v29 = vld [vmem:[%s17629_s0 + $0x318] sm:$0xff]  ;;  %v143_v30 = vld [vmem:[%s17629_s0 + $0x328] sm:$0xff] }
  0x20   :  { %379 = vmatpush1.msra.mxu0 %v111_v60  ;;  %450 = vmatpush1.msra.mxu1 %v113_v61  ;;  %v129_v31 = vld [vmem:[%s17629_s0 + $0x2b8] sm:$0xff]  ;;  %v131_v32 = vld [vmem:[%s17629_s0 + $0x2c8] sm:$0xff]  ;;  %v128_v33 = vld [vmem:[%s17629_s0 + $0x2b0] sm:$0xff] }
  0x21   :  { %380 = vmatprep.subr.mxu0 %v99_v62  ;;  %451 = vmatprep.subr.mxu1 %v101_v63  ;;  %v130_v34 = vld [vmem:[%s17629_s0 + $0x2c0] sm:$0xff]  ;;  %v116_v35 = vld [vmem:[%s17629_s0 + $0x250] sm:$0xff]  ;;  %v115_v37 = vld [vmem:[%s17629_s0 + $0x248] sm:$0xff] }
  0x22   :  { %381 = vmatpush1.msra.mxu0 %v98_v0  ;;  %452 = vmatpush1.msra.mxu1 %v100_v1  ;;  %v118_v36 = vld [vmem:[%s17629_s0 + $0x260] sm:$0xff]  ;;  %v117_v38 = vld [vmem:[%s17629_s0 + $0x258] sm:$0xff]  ;;  %v103_v39 = vld [vmem:[%s17629_s0 + $0x1e8] sm:$0xff] }
  0x23   :  { %382 = vmatprep.subr.mxu0 %v86_v2  ;;  %453 = vmatprep.subr.mxu1 %v88_v4  ;;  %v105_v40 = vld [vmem:[%s17629_s0 + $0x1f8] sm:$0xff]  ;;  %v102_v42 = vld [vmem:[%s17629_s0 + $0x1e0] sm:$0xff]  ;;  %v104_v43 = vld [vmem:[%s17629_s0 + $0x1f0] sm:$0xff] }
  0x24   :  { %383 = vmatpush1.msra.mxu0 %v85_v5  ;;  %454 = vmatpush1.msra.mxu1 %v87_v6  ;;  %v90_v44 = vld [vmem:[%s17629_s0 + $0x180] sm:$0xff]  ;;  %v92_v45 = vld [vmem:[%s17629_s0 + $0x190] sm:$0xff]  ;;  %v89_v46 = vld [vmem:[%s17629_s0 + $0x178] sm:$0xff] }
  0x25   :  { %384 = vmatprep.subr.mxu0 %v73_v7  ;;  %455 = vmatprep.subr.mxu1 %v75_v8  ;;  %v91_v47 = vld [vmem:[%s17629_s0 + $0x188] sm:$0xff]  ;;  %v77_v48 = vld [vmem:[%s17629_s0 + $0x118] sm:$0xff]  ;;  %v76_v50 = vld [vmem:[%s17629_s0 + $0x110] sm:$0xff]  ;;  %v12603_v7 = vmov 0  }
  0x26   :  { %385 = vmatpush1.msra.mxu0 %v72_v9  ;;  %456 = vmatpush1.msra.mxu1 %v74_v10  ;;  %v79_v49 = vld [vmem:[%s17629_s0 + $0x128] sm:$0xff]  ;;  %v78_v51 = vld [vmem:[%s17629_s0 + $0x120] sm:$0xff]  ;;  %v64_v52 = vld [vmem:[%s17629_s0 + $0xb0] sm:$0xff] }
  0x27   :  { %386 = vmatprep.subr.mxu0 %v60_v11  ;;  %457 = vmatprep.subr.mxu1 %v62_v12  ;;  %v66_v53 = vld [vmem:[%s17629_s0 + $0xc0] sm:$0xff]  ;;  %v63_v54 = vld [vmem:[%s17629_s0 + $0xa8] sm:$0xff]  ;;  %v65_v55 = vld [vmem:[%s17629_s0 + $0xb8] sm:$0xff] }
  0x28   :  { %387 = vmatpush1.msra.mxu0 %v59_v13  ;;  %458 = vmatpush1.msra.mxu1 %v61_v14  ;;  %v51_v56 = vld [vmem:[%s17629_s0 + $0x48] sm:$0xff]  ;;  %v53_v57 = vld [vmem:[%s17629_s0 + $0x58] sm:$0xff]  ;;  %v50_v58 = vld [vmem:[%s17629_s0 + $0x40] sm:$0xff] }
  0x29   :  { %388 = vmatprep.subr.mxu0 %v47_v15  ;;  %459 = vmatprep.subr.mxu1 %v49_v16  ;;  %v52_v59 = vld [vmem:[%s17629_s0 + $0x50] sm:$0xff]  ;;  %v171_v60 = vld [vmem:[%s17629_s0 + $0x408] sm:$0x7]  ;;  %v158_v61 = vld [vmem:[%s17629_s0 + $0x3a0] sm:$0xff] }
  0x2a   :  { %389 = vmatpush1.msra.mxu0 %v46_v17  ;;  %422 = vmatprep.mubr.f32.mxu0 %v17642_v3  ;;  %v145_v62 = vld [vmem:[%s17629_s0 + $0x338] sm:$0xff]  ;;  %v132_v63 = vld [vmem:[%s17629_s0 + $0x2d0] sm:$0xff]  ;;  %v119_v0 = vld [vmem:[%s17629_s0 + $0x268] sm:$0xff] }
  0x2b   :  { %460 = vmatpush1.msra.mxu1 %v48_v18  ;;  %9859 = vmatmul.mubr.msk.f32.vlgmr.msra.gmra.mxu0 %vm172_vm1, %v12827_v41  ;;  %v106_v1 = vld [vmem:[%s17629_s0 + $0x200] sm:$0xff]  ;;  %v93_v2 = vld [vmem:[%s17629_s0 + $0x198] sm:$0xff]  ;;  %v80_v4 = vld [vmem:[%s17629_s0 + $0x130] sm:$0xff] }
  0x2c   :  { %493 = vmatprep.mubr.f32.mxu1 %v17642_v3  ;;  %9863 = vmatprep.subr.msk.mxu0 %vm176_vm0, %v168_v19  ;;  %v67_v5 = vld [vmem:[%s17629_s0 + $0xc8] sm:$0xff]  ;;  %v54_v6 = vld [vmem:[%s17629_s0 + $0x60] sm:$0xff]  ;;  %s12619_s0 = smov 108  }
  0x2d   :  { %9866 = vmatprep.subr.msk.mxu1 %vm176_vm0, %v170_v20  ;;  %9862 = vmatmul.mubr.msk.f32.vlgmr.msra.gmra.mxu1 %vm172_vm1, %v12827_v41 }
  0x2e   :  { %9864 = vmatpush1.msk.msra.mxu0 %vm176_vm0, %v167_v21  ;;  %9867 = vmatpush1.msk.msra.mxu1 %vm176_vm0, %v169_v22  ;;  %v783_v21 = vld [vmem:[%s17631_s2] sm:$0x3f]  ;;  %s12606_s2 = smov 100  }
  0x2f   :  { %514 = vmatprep.subr.mxu0 %v155_v23  ;;  %585 = vmatprep.subr.mxu1 %v157_v24 }
  0x30   :  { %515 = vmatpush1.msra.mxu0 %v154_v25  ;;  %586 = vmatpush1.msra.mxu1 %v156_v26 }
  0x31   :  { %516 = vmatprep.subr.mxu0 %v142_v27  ;;  %587 = vmatprep.subr.mxu1 %v144_v28 }
  0x32   :  { %517 = vmatpush1.msra.mxu0 %v141_v29  ;;  %588 = vmatpush1.msra.mxu1 %v143_v30 }
  0x33   :  { %518 = vmatprep.subr.mxu0 %v129_v31  ;;  %589 = vmatprep.subr.mxu1 %v131_v32 }
  0x34   :  { %519 = vmatpush1.msra.mxu0 %v128_v33  ;;  %590 = vmatpush1.msra.mxu1 %v130_v34 }
  0x35   :  { %520 = vmatprep.subr.mxu0 %v116_v35  ;;  %591 = vmatprep.subr.mxu1 %v118_v36 }
  0x36   :  { %521 = vmatpush1.msra.mxu0 %v115_v37  ;;  %592 = vmatpush1.msra.mxu1 %v117_v38 }
  0x37   :  { %522 = vmatprep.subr.mxu0 %v103_v39  ;;  %593 = vmatprep.subr.mxu1 %v105_v40 }
  0x38   :  { %523 = vmatpush1.msra.mxu0 %v102_v42  ;;  %594 = vmatpush1.msra.mxu1 %v104_v43 }
  0x39   :  { %524 = vmatprep.subr.mxu0 %v90_v44  ;;  %595 = vmatprep.subr.mxu1 %v92_v45 }
  0x3a   :  { %525 = vmatpush1.msra.mxu0 %v89_v46  ;;  %596 = vmatpush1.msra.mxu1 %v91_v47 }
  0x3b   :  { %526 = vmatprep.subr.mxu0 %v77_v48  ;;  %597 = vmatprep.subr.mxu1 %v79_v49 }
  0x3c   :  { %527 = vmatpush1.msra.mxu0 %v76_v50  ;;  %598 = vmatpush1.msra.mxu1 %v78_v51 }
  0x3d   :  { %528 = vmatprep.subr.mxu0 %v64_v52  ;;  %599 = vmatprep.subr.mxu1 %v66_v53 }
  0x3e   :  { %529 = vmatpush1.msra.mxu0 %v63_v54  ;;  %600 = vmatpush1.msra.mxu1 %v65_v55 }
  0x3f   :  { %530 = vmatprep.subr.mxu0 %v51_v56  ;;  %601 = vmatprep.subr.mxu1 %v53_v57 }
  0x40   :  { %531 = vmatpush1.msra.mxu0 %v50_v58  ;;  %564 = vmatprep.mubr.f32.mxu0 %v17642_v3 }
  0x41   :  { %602 = vmatpush1.msra.mxu1 %v52_v59  ;;  %635 = vmatprep.mubr.f32.mxu1 %v17642_v3 }
  0x42   :  { %9865 = vmatmul.mubr.msk.f32.vlgmr.msra.gmra.mxu0 %vm172_vm1, %v12827_v41  ;;  %9868 = vmatmul.mubr.msk.f32.vlgmr.msra.gmra.mxu1 %vm172_vm1, %v12827_v41 }
  0x43   :  { %11666 = vmatprep.subr.mxu0 %v17642_v3  ;;  %11686 = vmatprep.mubr.msk.f32.mxu0 %vm12602_vm2, %v17642_v3 }
  0x44   :  { %11667 = vmatpush3.msk.msra.mxu0 %vm176_vm0, %v171_v60  ;;  %944 = vmatprep.mubr.f32.mxu1 %v17642_v3 }
  0x45   :  { %11668 = vmatprep.subr.mxu0 %v17642_v3  ;;  %12599 = vset.pattern.permute.xlu1 %v12603_v7 }
  0x46   :  { %11669 = vmatpush3.msra.mxu0 %v158_v61  ;;  %12600 = vset.pattern.permute.xlu0 %v12603_v7  ;;  %v9873_v7 = vld [vmem:[%s17632_s3 + $0x60] sm:$0xff] }
  0x47   :  { %11670 = vmatprep.subr.mxu0 %v17642_v3 }
  0x48   :  { %11671 = vmatpush3.msra.mxu0 %v145_v62 }
  0x49   :  { %11672 = vmatprep.subr.mxu0 %v17642_v3 }
  0x4a   :  { %11673 = vmatpush3.msra.mxu0 %v132_v63 }
  0x4b   :  { %11674 = vmatprep.subr.mxu0 %v17642_v3 }
  0x4c   :  { %11675 = vmatpush3.msra.mxu0 %v119_v0 }
  0x4d   :  { %11676 = vmatprep.subr.mxu0 %v17642_v3 }
  0x4e   :  { %11677 = vmatpush3.msra.mxu0 %v106_v1 }
  0x4f   :  { %11678 = vmatprep.subr.mxu0 %v17642_v3 }
  0x50   :  { %11679 = vmatpush3.msra.mxu0 %v93_v2 }
  0x51   :  { %11680 = vmatprep.subr.mxu0 %v17642_v3 }
  0x52   :  { %11681 = vmatpush3.msra.mxu0 %v80_v4 }
  0x53   :  { %11682 = vmatprep.subr.mxu0 %v17642_v3 }
  0x54   :  { %11683 = vmatpush3.msra.mxu0 %v67_v5 }
  0x55   :  { %11684 = vmatprep.subr.mxu0 %v17642_v3 }
  0x56   :  { %11685 = vmatpush3.msra.mxu0 %v54_v6  ;;  %v9871_v6 = vld [vmem:[%s17632_s3 + $0x50] sm:$0xff] }
  0x57   :  { %11687 = vmatmul.mubr.msk.f32.vlgmr.msra.gmra.mxu0 %vm172_vm1, %v12827_v41 }
  0x58   :  { %932 = vmatprep.mubr.f32.mxu0 %v17642_v3 }
  0xd6   :  { %v282_v13 = vpop.f32.mrf.mxu0 }
  0xd7   :  { %v353_v8 = vpop.f32.mrf.mxu1 }
  0xd8   :  { %v284_v15 = vpop.f32.mrf.mxu0 }
  0xd9   :  { %v13139_v9 = vpop.f32.mrf.mxu1 }
  0xeb   :  { %v424_v41 = vpop.f32.mrf.mxu0 }
  0xed   :  { %v495_v10 = vpop.f32.mrf.mxu1  ;;  %v426_v16 = vpop.f32.mrf.mxu0 }
  0xef   :  { %v497_v11 = vpop.f32.mrf.mxu1 }
 0x102   :  { %v637_v12 = vpop.f32.mrf.mxu1  ;;  %v566_v17 = vpop.f32.mrf.mxu0 }
 0x103   :  { %742 = vrot.lane.b32.xlu0 %v637_v12, %s12604_s21  ;;  %v9872_v12 = vld [vmem:[%s17632_s3 + $0x58] sm:$0xff] }
 0x104   :  { %v639_v14 = vpop.f32.mrf.mxu1  ;;  %v568_v18 = vpop.f32.mrf.mxu0 }
 0x107   :  { %744 = vrot.lane.b32.xlu0 %v639_v14, %s12604_s21  ;;  %v9875_v14 = vld [vmem:[%s17632_s3 + $0x70] sm:$0xff] }
 0x10b   :  { %718 = vrot.lane.b32.xlu0 %v424_v41, %s12604_s21  ;;  %v9877_v41 = vld [vmem:[%s17632_s3 + $0x80] sm:$0xff] }
 0x10f   :  { %722 = vrot.lane.b32.xlu0 %v495_v10, %s12604_s21 }
 0x113   :  { %716 = vrot.lane.b32.xlu0 %v13139_v9, %s12604_s21 }
 0x117   :  { %v708_v19 = vpop.f32.mrf.mxu0 }
 0x118   :  { %746 = vrot.lane.b32.xlu1 %v708_v19, %s12604_s21  ;;  %v9880_v19 = vld [vmem:[%s17632_s3 + $0x98] sm:$0xff] }
 0x119   :  { %v11688_v20 = vpop.f32.mrf.mxu0 }
 0x11a   :  { %v797_v20 = vld [vmem:[%s17632_s3] sm:$0xff] }
 0x11c   :  { %740 = vrot.lane.b32.xlu1 %v568_v18, %s12604_s21 }
 0x120   :  { %720 = vrot.lane.b32.xlu1 %v426_v16, %s12604_s21  ;;  %v9878_v16 = vld [vmem:[%s17632_s3 + $0x88] sm:$0xff] }
 0x124   :  { %786 = vperm.xlu1 %12599, %v783_v21  }
 0x175   :  { %v743_v22 = vpop.permute.xlu0 %742 }
 0x179   :  { %v745_v23 = vpop.permute.xlu0 %744 }
 0x17a   :  { %v749_v24 = vsel %vm724_vm3, %v743_v22, %v745_v23 }
 0x17b   :  { %v756_v25 = vmax.f32 %v497_v11, %v749_v24  ;;  %v798_v24 = vld [vmem:[%s17632_s3 + $0x8] sm:$0xff] }
 0x17d   :  { %765 = vrot.lane.b32.xlu1 %v756_v25, %s12605_s23  ;;  %v719_v33 = vpop.permute.xlu0 %718  ;;  %v799_v25 = vld [vmem:[%s17632_s3 + $0x10] sm:$0xff] }
 0x181   :  { %v723_v36 = vpop.permute.xlu0 %722 }
 0x182   :  { %v735_v61 = vmax.f32 %v13139_v9, %v723_v36 }
 0x185   :  { %v717_v38 = vpop.permute.xlu0 %716 }
 0x186   :  { %v725_v46 = vsel %vm724_vm3, %v717_v38, %v719_v33 }
 0x187   :  { %v732_v51 = vmax.f32 %v282_v13, %v725_v46  ;;  %v9874_v13 = vld [vmem:[%s17632_s3 + $0x68] sm:$0xff] }
 0x18a   :  { %v747_v26 = vpop.permute.xlu1 %746 }
 0x18b   :  { %v750_v27 = vsel %vm724_vm3, %v745_v23, %v747_v26  ;;  %v758_v28 = vmax.f32 %v568_v18, %v747_v26 }
 0x18c   :  { %v757_v29 = vmax.f32 %v566_v17, %v750_v27  ;;  %v9879_v17 = vld [vmem:[%s17632_s3 + $0x90] sm:$0xff]  ;;  %v800_v27 = vld [vmem:[%s17632_s3 + $0x18] sm:$0xff] }
 0x18d   :  { %769 = vrot.lane.b32.xlu1 %v758_v28, %s12605_s23  ;;  %v801_v28 = vld [vmem:[%s17632_s3 + $0x20] sm:$0xff] }
 0x18e   :  { %767 = vrot.lane.b32.xlu0 %v757_v29, %s12605_s23  ;;  %v741_v30 = vpop.permute.xlu1 %740  ;;  %v802_v29 = vld [vmem:[%s17632_s3 + $0x28] sm:$0xff] }
 0x18f   :  { %v748_v31 = vsel %vm724_vm3, %v741_v30, %v743_v22  ;;  %v803_v30 = vld [vmem:[%s17632_s3 + $0x30] sm:$0xff] }
 0x190   :  { %v755_v32 = vmax.f32 %v495_v10, %v748_v31  ;;  %v804_v31 = vld [vmem:[%s17632_s3 + $0x38] sm:$0xff] }
 0x192   :  { %763 = vrot.lane.b32.xlu0 %v755_v32, %s12605_s23  ;;  %v721_v34 = vpop.permute.xlu1 %720  ;;  %v805_v32 = vld [vmem:[%s17632_s3 + $0x40] sm:$0xff] }
 0x193   :  { %v726_v39 = vsel %vm724_vm3, %v719_v33, %v721_v34  ;;  %v727_v40 = vsel %vm724_vm3, %v721_v34, %v723_v36  ;;  %v806_v34 = vld [vmem:[%s17632_s3 + $0x48] sm:$0xff] }
 0x194   :  { %v733_v43 = vmax.f32 %v284_v15, %v726_v39  ;;  %v734_v44 = vmax.f32 %v353_v8, %v727_v40  ;;  %v9876_v15 = vld [vmem:[%s17632_s3 + $0x78] sm:$0xff]  ;;  %v9928_v39 = vld [vmem:[%s17632_s3 + $0xa8] sm:$0xff]  ;;  %v9929_v40 = vld [vmem:[%s17632_s3 + $0xb0] sm:$0xff] }
 0x19f   :  { %v787_v35 = vpop.permute.xlu1 %786 }
 0x1ef   :  { %v766_v37 = vpop.permute.xlu1 %765 }
 0x1ff   :  { %v770_v42 = vpop.permute.xlu1 %769 }
 0x200   :  { %v768_v45 = vpop.permute.xlu0 %767  ;;  %v782_v62 = vmax.f32 %v735_v61, %v770_v42  ;;  %v9967_v61 = vld [vmem:[%s17632_s3 + $0x128] sm:$0xff] }
 0x201   :  { %v773_v47 = vsel %vm771_vm4, %v766_v37, %v768_v45  ;;  %v774_v48 = vsel %vm771_vm4, %v768_v45, %v770_v42  ;;  %v9930_v42 = vld [vmem:[%s17632_s3 + $0xb8] sm:$0xff] }
 0x202   :  { %v780_v49 = vmax.f32 %v733_v43, %v773_v47  ;;  %v781_v50 = vmax.f32 %v734_v44, %v774_v48  ;;  %v792_v63 = vadd.f32 %v787_v35, %v782_v62  ;;  %v9931_v43 = vld [vmem:[%s17632_s3 + $0xc0] sm:$0xff]  ;;  %v9932_v47 = vld [vmem:[%s17632_s3 + $0xc8] sm:$0xff]  ;;  %v9933_v48 = vld [vmem:[%s17632_s3 + $0xd0] sm:$0xff] }
 0x203   :  { %v9968_v62 = vld [vmem:[%s17632_s3 + $0x130] sm:$0xff] }
 0x204   :  { %v790_v52 = vadd.f32 %v787_v35, %v780_v49  ;;  %v791_v53 = vadd.f32 %v787_v35, %v781_v50  ;;  %v764_v54 = vpop.permute.xlu0 %763  ;;  %v796_v0 = vmax.f32 %v792_v63, 0.0  ;;  %v9934_v49 = vld [vmem:[%s17632_s3 + $0xd8] sm:$0xff]  ;;  %v9935_v50 = vld [vmem:[%s17632_s3 + $0xe0] sm:$0xff] }
 0x205   :  { %v772_v55 = vsel %vm771_vm4, %v764_v54, %v766_v37  ;;  %v9961_v54 = vld [vmem:[%s17632_s3 + $0xf8] sm:$0xff] }
 0x206   :  { %v794_v56 = vmax.f32 %v790_v52, 0.0  ;;  %v795_v57 = vmax.f32 %v791_v53, 0.0  ;;  %v779_v58 = vmax.f32 %v732_v51, %v772_v55  ;;  %v9936_v51 = vld [vmem:[%s17632_s3 + $0xe8] sm:$0xff]  ;;  %v9960_v52 = vld [vmem:[%s17632_s3 + $0xf0] sm:$0xff]  ;;  %v9962_v55 = vld [vmem:[%s17632_s3 + $0x100] sm:$0xff] }
 0x207   :  { %v9969_v63 = vld [vmem:[%s17632_s3 + $0x138] sm:$0xff] }
 0x208   :  { %v789_v59 = vadd.f32 %v787_v35, %v779_v58  ;;  %823 = vrot.lane.b32.xlu1 %v794_v56, %s12606_s2  ;;  %825 = vrot.lane.b32.xlu0 %v795_v57, %s12606_s2  ;;  %v9927_v35 = vld [vmem:[%s17632_s3 + $0xa0] sm:$0xff]  ;;  %v9964_v58 = vld [vmem:[%s17632_s3 + $0x110] sm:$0xff] }
 0x20a   :  { %v793_v60 = vmax.f32 %v789_v59, 0.0  ;;  %v9965_v59 = vld [vmem:[%s17632_s3 + $0x118] sm:$0xff] }
 0x20c   :  { %821 = vrot.lane.b32.xlu1 %v793_v60, %s12606_s2  ;;  %1397 = vrot.lane.b32.xlu0 %v794_v56, %s12607_s24 }
 0x210   :  { %1399 = vrot.lane.b32.xlu1 %v795_v57, %s12607_s24  ;;  %1395 = vrot.lane.b32.xlu0 %v793_v60, %s12607_s24  ;;  %s12616_s24 = smov 116  }
 0x214   :  { %1723 = vrot.lane.b32.xlu1 %v794_v56, %s12608_s25  ;;  %1725 = vrot.lane.b32.xlu0 %v795_v57, %s12608_s25 }
 0x218   :  { %1721 = vrot.lane.b32.xlu1 %v793_v60, %s12608_s25  ;;  %2050 = vrot.lane.b32.xlu0 %v794_v56, %s12609_s26  ;;  %s12613_s25 = smov 124  }
 0x21c   :  { %2052 = vrot.lane.b32.xlu1 %v795_v57, %s12609_s26  ;;  %2048 = vrot.lane.b32.xlu0 %v793_v60, %s12609_s26 }
 0x220   :  { %2054 = vrot.lane.b32.xlu1 %v796_v0, %s12609_s26  ;;  %v9993_v0 = vld [vmem:[%s17632_s3 + $0x140] sm:$0xff]  ;;  %s12627_s26 = smov 90  }
 0x27a   :  { %v826_v1 = vpop.permute.xlu0 %825  ;;  %v824_v2 = vpop.permute.xlu1 %823 }
 0x27b   :  { %v829_v4 = vsel %vm827_vm5, %v824_v2, %v826_v1 }
 0x27c   :  { %9881 = vmatprep.subr.msk.mxu0 %vm861_vm6, %v829_v4  ;;  %12565 = vmatprep.subr.msk.mxu1 %vm861_vm6, %v829_v4  ;;  %v9996_v4 = vld [vmem:[%s17632_s3 + $0x158] sm:$0xff] }
 0x27e   :  { %v822_v5 = vpop.permute.xlu1 %821  ;;  %v1398_v9 = vpop.permute.xlu0 %1397 }
 0x27f   :  { %v828_v8 = vsel %vm827_vm5, %v822_v5, %v824_v2  ;;  %v9995_v2 = vld [vmem:[%s17632_s3 + $0x150] sm:$0xff]  ;;  %v9997_v5 = vld [vmem:[%s17632_s3 + $0x160] sm:$0xff] }
 0x280   :  { %9882 = vmatpush1.msk.msra.mxu0 %vm861_vm6, %v828_v8  ;;  %12566 = vmatpush1.msk.msra.mxu1 %vm861_vm6, %v828_v8  ;;  %v10055_v8 = vld [vmem:[%s17633_s5 + $0x318] sm:$0xff] }
 0x281   :  { %9883 = vmatmul.mubr.msk.f32.vlgmr.msra.gmra.mxu0 %vm830_vm7, %v9871_v6  ;;  %9885 = vmatmul.mubr.msk.f32.vlgmr.msra.gmra.mxu1 %vm830_vm7, %v9873_v7 }
 0x282   :  { %11689 = vmatprep.subr.msk.mxu0 %vm861_vm6, %v826_v1  ;;  %11706 = vmatprep.subr.msk.mxu1 %vm861_vm6, %v795_v57  ;;  %v1400_v10 = vpop.permute.xlu1 %1399  ;;  %v1396_v18 = vpop.permute.xlu0 %1395 }
 0x283   :  { %11690 = vmatpush3.msk.msra.mxu0 %vm861_vm6, %v826_v1  ;;  %11707 = vmatpush3.msk.msra.mxu1 %vm861_vm6, %v795_v57  ;;  %v1403_v11 = vsel %vm1401_vm8, %v1398_v9, %v1400_v10  ;;  %v1402_v26 = vsel %vm1401_vm8, %v1396_v18, %v1398_v9  ;;  %v9963_v57 = vld [vmem:[%s17632_s3 + $0x108] sm:$0xff] }
 0x284   :  { %9904 = vmatprep.subr.msk.mxu0 %vm861_vm6, %v794_v56  ;;  %938 = vmatprep.mubr.f32.mxu0 %v17642_v3  ;;  %v9994_v1 = vld [vmem:[%s17632_s3 + $0x148] sm:$0xff] }
 0x285   :  { %950 = vmatprep.mubr.f32.mxu1 %v17642_v3  ;;  %9937 = vmatprep.subr.msk.mxu1 %vm861_vm6, %v1403_v11  ;;  %v9998_v9 = vld [vmem:[%s17632_s3 + $0x168] sm:$0xff] }
 0x286   :  { %9884 = vmatmul.mubr.msk.f32.gmra.mxu0 %vm830_vm7, %v9872_v12  ;;  %9886 = vmatmul.mubr.msk.f32.gmra.mxu1 %vm830_vm7, %v9874_v13  ;;  %v1726_v21 = vpop.permute.xlu0 %1725  ;;  %v13241_v22 = vpop.permute.xlu1 %1723  ;;  %v10053_v11 = vld [vmem:[%s17633_s5 + $0x308] sm:$0xff] }
 0x287   :  { %956 = vmatprep.mubr.f32.mxu1 %v17642_v3  ;;  %11691 = vmatprep.mubr.msk.f32.mxu0 %vm830_vm7, %v9871_v6  ;;  %v1729_v23 = vsel %vm1727_vm9, %v13241_v22, %v1726_v21  ;;  %v10057_v6 = vld [vmem:[%s17633_s5 + $0x328] sm:$0xff] }
 0x288   :  { %v10002_v18 = vld [vmem:[%s17632_s3 + $0x188] sm:$0xff] }
 0x28a   :  { %9887 = vmatmul.mubr.msk.f32.gmra.mxu1 %vm830_vm7, %v9875_v14  ;;  %11692 = vmatmul.mubr.msk.f32.vlgmr.msra.gmra.mxu0 %vm830_vm7, %v9872_v12  ;;  %v1722_v33 = vpop.permute.xlu1 %1721  ;;  %v13304_v37 = vpop.permute.xlu0 %2050  ;;  %v9999_v12 = vld [vmem:[%s17632_s3 + $0x170] sm:$0xff] }
 0x28b   :  { %9905 = vmatpush1.msk.msra.mxu0 %vm861_vm6, %v793_v60  ;;  %962 = vmatprep.mubr.f32.mxu1 %v17642_v3  ;;  %v1728_v45 = vsel %vm1727_vm9, %v1722_v33, %v13241_v22  ;;  %v9966_v60 = vld [vmem:[%s17632_s3 + $0x120] sm:$0xff]  ;;  %v10045_v22 = vld [vmem:[%s17633_s5 + $0x2c8] sm:$0xff]  ;;  %v10034_v33 = vld [vmem:[%s17633_s5 + $0x270] sm:$0xff] }
 0x28c   :  { %11723 = vmatprep.subr.msk.mxu0 %vm861_vm6, %v1400_v10  ;;  %11694 = vmatprep.mubr.msk.f32.mxu0 %vm830_vm7, %v9873_v7  ;;  %v10056_v7 = vld [vmem:[%s17633_s5 + $0x320] sm:$0xff] }
 0x28e   :  { %9888 = vmatmul.mubr.msk.f32.gmra.mxu1 %vm830_vm7, %v9876_v15  ;;  %11695 = vmatmul.mubr.msk.f32.gmra.mxu0 %vm830_vm7, %v9874_v13  ;;  %v2053_v36 = vpop.permute.xlu1 %2052  ;;  %v2049_v53 = vpop.permute.xlu0 %2048  ;;  %v10052_v13 = vld [vmem:[%s17633_s5 + $0x300] sm:$0xff] }
 0x28f   :  { %968 = vmatprep.mubr.f32.mxu1 %v17642_v3  ;;  %11697 = vmatprep.mubr.msk.f32.mxu0 %vm830_vm7, %v9875_v14  ;;  %v2058_v38 = vsel %vm2056_vm10, %v13304_v37, %v2053_v36  ;;  %v2057_v56 = vsel %vm2056_vm10, %v2049_v53, %v13304_v37  ;;  %v10051_v14 = vld [vmem:[%s17633_s5 + $0x2f8] sm:$0xff]  ;;  %v10030_v37 = vld [vmem:[%s17633_s5 + $0x250] sm:$0xff] }
 0x290   :  { %v10079_v53 = vld [vmem:[%s17633_s5 + $0x3d8] sm:$0xff] }
 0x292   :  { %9889 = vmatmul.mubr.msk.f32.gmra.mxu1 %vm830_vm7, %v9877_v41  ;;  %11698 = vmatmul.mubr.msk.f32.gmra.mxu0 %vm830_vm7, %v9876_v15  ;;  %v2055_v44 = vpop.permute.xlu1 %2054  ;;  %v10000_v15 = vld [vmem:[%s17632_s3 + $0x178] sm:$0xff] }
 0x293   :  { %974 = vmatprep.mubr.f32.mxu1 %v17642_v3  ;;  %11700 = vmatprep.mubr.msk.f32.mxu0 %vm830_vm7, %v9877_v41  ;;  %v2059_v46 = vsel %vm2056_vm10, %v2053_v36, %v2055_v44  ;;  %v10001_v41 = vld [vmem:[%s17632_s3 + $0x180] sm:$0xff]  ;;  %v10031_v36 = vld [vmem:[%s17633_s5 + $0x258] sm:$0xff]  ;;  %s12612_s3 = smov 126  }
 0x294   :  { %v10088_v44 = vld [vmem:[%s17633_s5 + $0x420] sm:$0xff] }
 0x296   :  { %9890 = vmatmul.mubr.msk.f32.gmra.mxu1 %vm830_vm7, %v9878_v16  ;;  %11701 = vmatmul.mubr.msk.f32.gmra.mxu0 %vm830_vm7, %v9878_v16  ;;  %v10050_v16 = vld [vmem:[%s17633_s5 + $0x2f0] sm:$0xff] }
 0x297   :  { %980 = vmatprep.mubr.f32.mxu1 %v17642_v3  ;;  %11703 = vmatprep.mubr.msk.f32.mxu0 %vm830_vm7, %v9879_v17 }
 0x29a   :  { %9891 = vmatmul.mubr.msk.f32.gmra.mxu1 %vm830_vm7, %v9879_v17  ;;  %11704 = vmatmul.mubr.msk.f32.gmra.mxu0 %vm830_vm7, %v9880_v19  ;;  %v10049_v17 = vld [vmem:[%s17633_s5 + $0x2e8] sm:$0xff] }
 0x29b   :  { %986 = vmatprep.mubr.f32.mxu1 %v17642_v3  ;;  %1208 = vmatprep.mubr.f32.mxu0 %v17642_v3 }
 0x29e   :  { %9892 = vmatmul.mubr.msk.f32.gmra.mxu1 %vm830_vm7, %v9880_v19  ;;  %9906 = vmatmul.mubr.msk.f32.vlgmr.msra.gmra.mxu0 %vm830_vm7, %v797_v20  ;;  %v10048_v19 = vld [vmem:[%s17633_s5 + $0x2e0] sm:$0xff] }
 0x29f   :  { %11724 = vmatpush3.msk.msra.mxu0 %vm861_vm6, %v1400_v10  ;;  %1214 = vmatprep.mubr.f32.mxu0 %v17642_v3  ;;  %v10054_v10 = vld [vmem:[%s17633_s5 + $0x310] sm:$0xff] }
 0x2a0   :  { %9970 = vmatprep.subr.msk.mxu0 %vm861_vm6, %v1729_v23  ;;  %11708 = vmatprep.mubr.msk.f32.mxu1 %vm830_vm7, %v797_v20  ;;  %v10047_v20 = vld [vmem:[%s17633_s5 + $0x2d8] sm:$0xff]  ;;  %v10044_v23 = vld [vmem:[%s17633_s5 + $0x2c0] sm:$0xff] }
 0x2a2   :  { %9907 = vmatmul.mubr.msk.f32.gmra.mxu0 %vm830_vm7, %v798_v24  ;;  %11709 = vmatmul.mubr.msk.f32.vlgmr.msra.gmra.mxu1 %vm830_vm7, %v798_v24  ;;  %v10043_v24 = vld [vmem:[%s17633_s5 + $0x2b8] sm:$0xff] }
 0x2a3   :  { %9938 = vmatpush1.msk.msra.mxu1 %vm861_vm6, %v1402_v26  ;;  %1220 = vmatprep.mubr.f32.mxu0 %v17642_v3  ;;  %v10041_v26 = vld [vmem:[%s17633_s5 + $0x2a8] sm:$0xff] }
 0x2a4   :  { %11740 = vmatprep.subr.msk.mxu1 %vm861_vm6, %v1726_v21  ;;  %11711 = vmatprep.mubr.msk.f32.mxu1 %vm830_vm7, %v799_v25 }
 0x2a6   :  { %9908 = vmatmul.mubr.msk.f32.gmra.mxu0 %vm830_vm7, %v799_v25  ;;  %11712 = vmatmul.mubr.msk.f32.gmra.mxu1 %vm830_vm7, %v800_v27  ;;  %v10042_v25 = vld [vmem:[%s17633_s5 + $0x2b0] sm:$0xff] }
 0x2a7   :  { %1226 = vmatprep.mubr.f32.mxu0 %v17642_v3  ;;  %11714 = vmatprep.mubr.msk.f32.mxu1 %vm830_vm7, %v801_v28 }
 0x2aa   :  { %9909 = vmatmul.mubr.msk.f32.gmra.mxu0 %vm830_vm7, %v800_v27  ;;  %11715 = vmatmul.mubr.msk.f32.gmra.mxu1 %vm830_vm7, %v802_v29  ;;  %v10040_v27 = vld [vmem:[%s17633_s5 + $0x2a0] sm:$0xff] }
 0x2ab   :  { %1232 = vmatprep.mubr.f32.mxu0 %v17642_v3  ;;  %11717 = vmatprep.mubr.msk.f32.mxu1 %vm830_vm7, %v803_v30 }
 0x2ae   :  { %9910 = vmatmul.mubr.msk.f32.gmra.mxu0 %vm830_vm7, %v801_v28  ;;  %11718 = vmatmul.mubr.msk.f32.gmra.mxu1 %vm830_vm7, %v804_v31  ;;  %v10039_v28 = vld [vmem:[%s17633_s5 + $0x298] sm:$0xff] }
 0x2af   :  { %1238 = vmatprep.mubr.f32.mxu0 %v17642_v3  ;;  %11720 = vmatprep.mubr.msk.f32.mxu1 %vm830_vm7, %v805_v32 }
 0x2b2   :  { %9911 = vmatmul.mubr.msk.f32.gmra.mxu0 %vm830_vm7, %v802_v29  ;;  %11721 = vmatmul.mubr.msk.f32.gmra.mxu1 %vm830_vm7, %v806_v34  ;;  %v10038_v29 = vld [vmem:[%s17633_s5 + $0x290] sm:$0xff] }
 0x2b3   :  { %1244 = vmatprep.mubr.f32.mxu0 %v17642_v3  ;;  %1504 = vmatprep.mubr.f32.mxu1 %v17642_v3 }
 0x2b6   :  { %9912 = vmatmul.mubr.msk.f32.gmra.mxu0 %vm830_vm7, %v803_v30  ;;  %9939 = vmatmul.mubr.msk.f32.vlgmr.msra.gmra.mxu1 %vm830_vm7, %v9927_v35  ;;  %v10037_v30 = vld [vmem:[%s17633_s5 + $0x288] sm:$0xff] }
 0x2b7   :  { %11741 = vmatpush3.msk.msra.mxu1 %vm861_vm6, %v1726_v21  ;;  %1250 = vmatprep.mubr.f32.mxu0 %v17642_v3  ;;  %v10046_v21 = vld [vmem:[%s17633_s5 + $0x2d0] sm:$0xff] }
 0x2b8   :  { %10003 = vmatprep.subr.msk.mxu1 %vm861_vm6, %v2058_v38  ;;  %1510 = vmatprep.mubr.f32.mxu1 %v17642_v3  ;;  %v10029_v38 = vld [vmem:[%s17633_s5 + $0x248] sm:$0xff] }
 0x2ba   :  { %9913 = vmatmul.mubr.msk.f32.gmra.mxu0 %vm830_vm7, %v804_v31  ;;  %9940 = vmatmul.mubr.msk.f32.gmra.mxu1 %vm830_vm7, %v9928_v39  ;;  %v10036_v31 = vld [vmem:[%s17633_s5 + $0x280] sm:$0xff] }
 0x2bb   :  { %1256 = vmatprep.mubr.f32.mxu0 %v17642_v3  ;;  %1516 = vmatprep.mubr.f32.mxu1 %v17642_v3 }
 0x2be   :  { %9914 = vmatmul.mubr.msk.f32.gmra.mxu0 %vm830_vm7, %v805_v32  ;;  %9941 = vmatmul.mubr.msk.f32.gmra.mxu1 %vm830_vm7, %v9929_v40  ;;  %v10035_v32 = vld [vmem:[%s17633_s5 + $0x278] sm:$0xff] }
 0x2bf   :  { %1262 = vmatprep.mubr.f32.mxu0 %v17642_v3  ;;  %1522 = vmatprep.mubr.f32.mxu1 %v17642_v3 }
 0x2c2   :  { %9915 = vmatmul.mubr.msk.f32.gmra.mxu0 %vm830_vm7, %v806_v34  ;;  %9942 = vmatmul.mubr.msk.f32.gmra.mxu1 %vm830_vm7, %v9930_v42  ;;  %v10033_v34 = vld [vmem:[%s17633_s5 + $0x268] sm:$0xff] }
 0x2c3   :  { %1528 = vmatprep.mubr.f32.mxu1 %v17642_v3  ;;  %11725 = vmatprep.mubr.msk.f32.mxu0 %vm830_vm7, %v9927_v35  ;;  %v10032_v35 = vld [vmem:[%s17633_s5 + $0x260] sm:$0xff] }
 0x2c6   :  { %9943 = vmatmul.mubr.msk.f32.gmra.mxu1 %vm830_vm7, %v9931_v43  ;;  %11726 = vmatmul.mubr.msk.f32.vlgmr.msra.gmra.mxu0 %vm830_vm7, %v9928_v39  ;;  %v10028_v39 = vld [vmem:[%s17633_s5 + $0x240] sm:$0xff] }
 0x2c7   :  { %9971 = vmatpush1.msk.msra.mxu0 %vm861_vm6, %v1728_v45  ;;  %1534 = vmatprep.mubr.f32.mxu1 %v17642_v3  ;;  %v10087_v45 = vld [vmem:[%s17633_s5 + $0x418] sm:$0xff] }
 0x2c8   :  { %11757 = vmatprep.subr.msk.mxu0 %vm861_vm6, %v2059_v46  ;;  %11728 = vmatprep.mubr.msk.f32.mxu0 %vm830_vm7, %v9929_v40  ;;  %v10027_v40 = vld [vmem:[%s17633_s5 + $0x238] sm:$0xff] }
 0x2ca   :  { %9944 = vmatmul.mubr.msk.f32.gmra.mxu1 %vm830_vm7, %v9932_v47  ;;  %11729 = vmatmul.mubr.msk.f32.gmra.mxu0 %vm830_vm7, %v9930_v42  ;;  %v10026_v42 = vld [vmem:[%s17633_s5 + $0x230] sm:$0xff] }
 0x2cb   :  { %1540 = vmatprep.mubr.f32.mxu1 %v17642_v3  ;;  %11731 = vmatprep.mubr.msk.f32.mxu0 %vm830_vm7, %v9931_v43  ;;  %v10089_v43 = vld [vmem:[%s17633_s5 + $0x428] sm:$0xff] }
 0x2ce   :  { %9945 = vmatmul.mubr.msk.f32.gmra.mxu1 %vm830_vm7, %v9933_v48  ;;  %11732 = vmatmul.mubr.msk.f32.gmra.mxu0 %vm830_vm7, %v9932_v47  ;;  %v10085_v47 = vld [vmem:[%s17633_s5 + $0x408] sm:$0xff] }
 0x2cf   :  { %1546 = vmatprep.mubr.f32.mxu1 %v17642_v3  ;;  %11734 = vmatprep.mubr.msk.f32.mxu0 %vm830_vm7, %v9933_v48  ;;  %v10084_v48 = vld [vmem:[%s17633_s5 + $0x400] sm:$0xff] }
 0x2d2   :  { %9946 = vmatmul.mubr.msk.f32.gmra.mxu1 %vm830_vm7, %v9934_v49  ;;  %11735 = vmatmul.mubr.msk.f32.gmra.mxu0 %vm830_vm7, %v9934_v49  ;;  %v10083_v49 = vld [vmem:[%s17633_s5 + $0x3f8] sm:$0xff] }
 0x2d3   :  { %1552 = vmatprep.mubr.f32.mxu1 %v17642_v3  ;;  %11737 = vmatprep.mubr.msk.f32.mxu0 %vm830_vm7, %v9935_v50 }
 0x2d6   :  { %9947 = vmatmul.mubr.msk.f32.gmra.mxu1 %vm830_vm7, %v9935_v50  ;;  %11738 = vmatmul.mubr.msk.f32.gmra.mxu0 %vm830_vm7, %v9936_v51  ;;  %v10082_v50 = vld [vmem:[%s17633_s5 + $0x3f0] sm:$0xff] }
 0x2d7   :  { %1558 = vmatprep.mubr.f32.mxu1 %v17642_v3  ;;  %1830 = vmatprep.mubr.f32.mxu0 %v17642_v3 }
 0x2da   :  { %9948 = vmatmul.mubr.msk.f32.gmra.mxu1 %vm830_vm7, %v9936_v51  ;;  %9972 = vmatmul.mubr.msk.f32.vlgmr.msra.gmra.mxu0 %vm830_vm7, %v9960_v52  ;;  %v10081_v51 = vld [vmem:[%s17633_s5 + $0x3e8] sm:$0xff] }
 0x2db   :  { %11758 = vmatpush3.msk.msra.mxu0 %vm861_vm6, %v2059_v46  ;;  %1836 = vmatprep.mubr.f32.mxu0 %v17642_v3  ;;  %v10086_v46 = vld [vmem:[%s17633_s5 + $0x410] sm:$0xff] }
 0x2dc   :  { %11742 = vmatprep.mubr.msk.f32.mxu1 %vm830_vm7, %v9960_v52  ;;  %v10080_v52 = vld [vmem:[%s17633_s5 + $0x3e0] sm:$0xff] }
 0x2de   :  { %9973 = vmatmul.mubr.msk.f32.gmra.mxu0 %vm830_vm7, %v9961_v54  ;;  %11743 = vmatmul.mubr.msk.f32.vlgmr.msra.gmra.mxu1 %vm830_vm7, %v9961_v54  ;;  %v10078_v54 = vld [vmem:[%s17633_s5 + $0x3d0] sm:$0xff] }
 0x2df   :  { %10004 = vmatpush1.msk.msra.mxu1 %vm861_vm6, %v2057_v56  ;;  %1842 = vmatprep.mubr.f32.mxu0 %v17642_v3  ;;  %v10076_v56 = vld [vmem:[%s17633_s5 + $0x3c0] sm:$0xff] }
 0x2e0   :  { %11745 = vmatprep.mubr.msk.f32.mxu1 %vm830_vm7, %v9962_v55  ;;  %2514 = vmatprep.subr.mxu1 %v10057_v6  ;;  %v10065_v6 = vld [vmem:[%s17633_s5 + $0x368] sm:$0xff] }
 0x2e2   :  { %9974 = vmatmul.mubr.msk.f32.gmra.mxu0 %vm830_vm7, %v9962_v55  ;;  %11746 = vmatmul.mubr.msk.f32.gmra.mxu1 %vm830_vm7, %v9963_v57  ;;  %v10077_v55 = vld [vmem:[%s17633_s5 + $0x3c8] sm:$0xff] }
 0x2e3   :  { %1848 = vmatprep.mubr.f32.mxu0 %v17642_v3  ;;  %11748 = vmatprep.mubr.msk.f32.mxu1 %vm830_vm7, %v9964_v58 }
 0x2e6   :  { %9975 = vmatmul.mubr.msk.f32.gmra.mxu0 %vm830_vm7, %v9963_v57  ;;  %11749 = vmatmul.mubr.msk.f32.gmra.mxu1 %vm830_vm7, %v9965_v59  ;;  %v10075_v57 = vld [vmem:[%s17633_s5 + $0x3b8] sm:$0xff] }
 0x2e7   :  { %1854 = vmatprep.mubr.f32.mxu0 %v17642_v3  ;;  %11751 = vmatprep.mubr.msk.f32.mxu1 %vm830_vm7, %v9966_v60 }
 0x2ea   :  { %9976 = vmatmul.mubr.msk.f32.gmra.mxu0 %vm830_vm7, %v9964_v58  ;;  %11752 = vmatmul.mubr.msk.f32.gmra.mxu1 %vm830_vm7, %v9967_v61  ;;  %v10074_v58 = vld [vmem:[%s17633_s5 + $0x3b0] sm:$0xff] }
 0x2eb   :  { %1860 = vmatprep.mubr.f32.mxu0 %v17642_v3  ;;  %11754 = vmatprep.mubr.msk.f32.mxu1 %vm830_vm7, %v9968_v62 }
 0x2ee   :  { %9977 = vmatmul.mubr.msk.f32.gmra.mxu0 %vm830_vm7, %v9965_v59  ;;  %11755 = vmatmul.mubr.msk.f32.gmra.mxu1 %vm830_vm7, %v9969_v63  ;;  %v10073_v59 = vld [vmem:[%s17633_s5 + $0x3a8] sm:$0xff] }
 0x2ef   :  { %1866 = vmatprep.mubr.f32.mxu0 %v17642_v3  ;;  %2160 = vmatprep.mubr.f32.mxu1 %v17642_v3 }
 0x2f2   :  { %9978 = vmatmul.mubr.msk.f32.gmra.mxu0 %vm830_vm7, %v9966_v60  ;;  %10005 = vmatmul.mubr.msk.f32.vlgmr.msra.gmra.mxu1 %vm830_vm7, %v9993_v0  ;;  %v10072_v60 = vld [vmem:[%s17633_s5 + $0x3a0] sm:$0xff] }
 0x2f3   :  { %1872 = vmatprep.mubr.f32.mxu0 %v17642_v3  ;;  %2166 = vmatprep.mubr.f32.mxu1 %v17642_v3 }
 0x2f4   :  { %2515 = vmatpush1.msra.mxu1 %v10056_v7  ;;  %v10064_v7 = vld [vmem:[%s17633_s5 + $0x360] sm:$0xff] }
 0x2f5   :  { %2516 = vmatprep.subr.mxu1 %v10055_v8 }
 0x2f6   :  { %9979 = vmatmul.mubr.msk.f32.gmra.mxu0 %vm830_vm7, %v9967_v61  ;;  %10006 = vmatmul.mubr.msk.f32.gmra.mxu1 %vm830_vm7, %v9994_v1  ;;  %v10071_v61 = vld [vmem:[%s17633_s5 + $0x398] sm:$0xff] }
 0x2f7   :  { %1878 = vmatprep.mubr.f32.mxu0 %v17642_v3  ;;  %2172 = vmatprep.mubr.f32.mxu1 %v17642_v3 }
 0x2f8   :  { %2517 = vmatpush1.msra.mxu1 %v10054_v10  ;;  %v10063_v10 = vld [vmem:[%s17633_s5 + $0x358] sm:$0xff] }
 0x2f9   :  { %2518 = vmatprep.subr.mxu1 %v10053_v11  ;;  %v10093_v11 = vld [vmem:[%s17633_s5 + $0x448] sm:$0xff] }
 0x2fa   :  { %9980 = vmatmul.mubr.msk.f32.gmra.mxu0 %vm830_vm7, %v9968_v62  ;;  %10007 = vmatmul.mubr.msk.f32.gmra.mxu1 %vm830_vm7, %v9995_v2  ;;  %v10095_v62 = vld [vmem:[%s17633_s5 + $0x458] sm:$0xff] }
 0x2fb   :  { %1884 = vmatprep.mubr.f32.mxu0 %v17642_v3  ;;  %2178 = vmatprep.mubr.f32.mxu1 %v17642_v3 }
 0x2fc   :  { %2519 = vmatpush1.msra.mxu1 %v10052_v13  ;;  %2617 = vmatprep.subr.mxu0 %v10095_v62  ;;  %v10062_v13 = vld [vmem:[%s17633_s5 + $0x350] sm:$0xff] }
 0x2fd   :  { %2520 = vmatprep.subr.mxu1 %v10051_v14 }
 0x2fe   :  { %9981 = vmatmul.mubr.msk.f32.gmra.mxu0 %vm830_vm7, %v9969_v63  ;;  %10008 = vmatmul.mubr.msk.f32.gmra.mxu1 %vm830_vm7, %v9996_v4  ;;  %v10070_v63 = vld [vmem:[%s17633_s5 + $0x390] sm:$0xff] }
 0x2ff   :  { %2184 = vmatprep.mubr.f32.mxu1 %v17642_v3  ;;  %11759 = vmatprep.mubr.msk.f32.mxu0 %vm830_vm7, %v9993_v0  ;;  %v10069_v0 = vld [vmem:[%s17633_s5 + $0x388] sm:$0xff] }
 0x300   :  { %2521 = vmatpush1.msra.mxu1 %v10050_v16  ;;  %v10060_v16 = vld [vmem:[%s17633_s5 + $0x340] sm:$0xff] }
 0x301   :  { %2522 = vmatprep.subr.mxu1 %v10049_v17  ;;  %v10059_v17 = vld [vmem:[%s17633_s5 + $0x338] sm:$0xff] }
 0x302   :  { %10009 = vmatmul.mubr.msk.f32.gmra.mxu1 %vm830_vm7, %v9997_v5  ;;  %11760 = vmatmul.mubr.msk.f32.vlgmr.msra.gmra.mxu0 %vm830_vm7, %v9994_v1  ;;  %v10094_v1 = vld [vmem:[%s17633_s5 + $0x450] sm:$0xff] }
 0x303   :  { %2190 = vmatprep.mubr.f32.mxu1 %v17642_v3  ;;  %11762 = vmatprep.mubr.msk.f32.mxu0 %vm830_vm7, %v9995_v2  ;;  %v10068_v2 = vld [vmem:[%s17633_s5 + $0x380] sm:$0xff] }
 0x304   :  { %2523 = vmatpush1.msra.mxu1 %v10048_v19  ;;  %2618 = vmatpush1.msra.mxu0 %v10094_v1 }
 0x305   :  { %2524 = vmatprep.subr.mxu1 %v10047_v20  ;;  %2619 = vmatprep.subr.mxu0 %v10093_v11  ;;  %v10058_v20 = vld [vmem:[%s17633_s5 + $0x330] sm:$0xff] }
 0x306   :  { %10010 = vmatmul.mubr.msk.f32.gmra.mxu1 %vm830_vm7, %v9998_v9  ;;  %11763 = vmatmul.mubr.msk.f32.gmra.mxu0 %vm830_vm7, %v9996_v4  ;;  %v10067_v4 = vld [vmem:[%s17633_s5 + $0x378] sm:$0xff] }
 0x307   :  { %2196 = vmatprep.mubr.f32.mxu1 %v17642_v3  ;;  %11765 = vmatprep.mubr.msk.f32.mxu0 %vm830_vm7, %v9997_v5  ;;  %v10066_v5 = vld [vmem:[%s17633_s5 + $0x370] sm:$0xff] }
 0x308   :  { %2525 = vmatpush1.msra.mxu1 %v10046_v21  ;;  %v2435_v21 = vld [vmem:[%s17633_s5 + $0x228] sm:$0xff] }
 0x309   :  { %2526 = vmatprep.subr.mxu1 %v10045_v22  ;;  %v10091_v22 = vld [vmem:[%s17633_s5 + $0x438] sm:$0xff] }
 0x30a   :  { %10011 = vmatmul.mubr.msk.f32.gmra.mxu1 %vm830_vm7, %v9999_v12  ;;  %11766 = vmatmul.mubr.msk.f32.gmra.mxu0 %vm830_vm7, %v9998_v9 }
 0x30b   :  { %2202 = vmatprep.mubr.f32.mxu1 %v17642_v3  ;;  %11768 = vmatprep.mubr.msk.f32.mxu0 %vm830_vm7, %v9999_v12  ;;  %v10092_v12 = vld [vmem:[%s17633_s5 + $0x440] sm:$0xff] }
 0x30c   :  { %2527 = vmatpush1.msra.mxu1 %v10044_v23  ;;  %2620 = vmatpush1.msra.mxu0 %v10092_v12 }
 0x30d   :  { %2528 = vmatprep.subr.mxu1 %v10043_v24  ;;  %2621 = vmatprep.subr.mxu0 %v10091_v22 }
 0x30e   :  { %10012 = vmatmul.mubr.msk.f32.gmra.mxu1 %vm830_vm7, %v10000_v15  ;;  %11769 = vmatmul.mubr.msk.f32.gmra.mxu0 %vm830_vm7, %v10000_v15 }
 0x30f   :  { %2208 = vmatprep.mubr.f32.mxu1 %v17642_v3  ;;  %11771 = vmatprep.mubr.msk.f32.mxu0 %vm830_vm7, %v10001_v41 }
 0x310   :  { %2529 = vmatpush1.msra.mxu1 %v10042_v25  ;;  %v10090_v25 = vld [vmem:[%s17633_s5 + $0x430] sm:$0xff] }
 0x311   :  { %2530 = vmatprep.subr.mxu1 %v10041_v26  ;;  %2622 = vmatpush1.msra.mxu0 %v10090_v25 }
 0x312   :  { %10013 = vmatmul.mubr.msk.f32.gmra.mxu1 %vm830_vm7, %v10001_v41  ;;  %11772 = vmatmul.mubr.msk.f32.gmra.mxu0 %vm830_vm7, %v10002_v18  ;;  %v10061_v41 = vld [vmem:[%s17633_s5 + $0x348] sm:$0xff] }
 0x313   :  { %2214 = vmatprep.mubr.f32.mxu1 %v17642_v3  ;;  %2655 = vmatprep.mubr.f32.mxu0 %v17642_v3 }
 0x314   :  { %2531 = vmatpush1.msra.mxu1 %v10040_v27 }
 0x315   :  { %2532 = vmatprep.subr.mxu1 %v10039_v28  ;;  %v2397_v28 = vld [vmem:[%s17633_s5 + $0xf8] sm:$0xff] }
 0x316   :  { %10014 = vmatmul.mubr.msk.f32.gmra.mxu1 %vm830_vm7, %v10002_v18  ;;  %2674 = vmatprep.subr.mxu0 %v2397_v28 }
 0x317   :  { %2533 = vmatpush1.msra.mxu1 %v10038_v29 }
 0x318   :  { %2534 = vmatprep.subr.mxu1 %v10037_v30 }
 0x319   :  { %2535 = vmatpush1.msra.mxu1 %v10036_v31 }
 0x31a   :  { %2536 = vmatprep.subr.mxu1 %v10035_v32 }
 0x31b   :  { %2537 = vmatpush1.msra.mxu1 %v10034_v33 }
 0x31c   :  { %2538 = vmatprep.subr.mxu1 %v10033_v34 }
 0x31d   :  { %2539 = vmatpush1.msra.mxu1 %v10032_v35 }
 0x31e   :  { %2540 = vmatprep.subr.mxu1 %v10031_v36 }
 0x31f   :  { %2541 = vmatpush1.msra.mxu1 %v10030_v37 }
 0x320   :  { %2542 = vmatprep.subr.mxu1 %v10029_v38 }
 0x321   :  { %2543 = vmatpush1.msra.mxu1 %v10028_v39 }
 0x322   :  { %2544 = vmatprep.subr.mxu1 %v10027_v40 }
 0x323   :  { %2545 = vmatpush1.msra.mxu1 %v10026_v42 }
 0x324   :  { %2546 = vmatprep.subr.mxu1 %v10089_v43 }
 0x325   :  { %2547 = vmatpush2.msra.mxu1 %v10088_v44 }
 0x326   :  { %2548 = vmatprep.subr.mxu1 %v10087_v45 }
 0x327   :  { %2549 = vmatpush2.msra.mxu1 %v10086_v46 }
 0x328   :  { %2550 = vmatprep.subr.mxu1 %v10085_v47 }
 0x329   :  { %2551 = vmatpush2.msra.mxu1 %v10084_v48 }
 0x32a   :  { %2552 = vmatprep.subr.mxu1 %v10083_v49 }
 0x32b   :  { %2553 = vmatpush2.msra.mxu1 %v10082_v50 }
 0x32c   :  { %2554 = vmatprep.subr.mxu1 %v10081_v51 }
 0x32d   :  { %2555 = vmatpush2.msra.mxu1 %v10080_v52 }
 0x32e   :  { %2556 = vmatprep.subr.mxu1 %v10079_v53 }
 0x32f   :  { %2557 = vmatpush2.msra.mxu1 %v10078_v54 }
 0x330   :  { %2558 = vmatprep.subr.mxu1 %v10077_v55 }
 0x331   :  { %2559 = vmatpush2.msra.mxu1 %v10076_v56 }
 0x332   :  { %2560 = vmatprep.subr.mxu1 %v10075_v57 }
 0x333   :  { %2561 = vmatpush2.msra.mxu1 %v10074_v58 }
 0x334   :  { %2562 = vmatprep.subr.mxu1 %v10073_v59 }
 0x335   :  { %2563 = vmatpush2.msra.mxu1 %v10072_v60 }
 0x336   :  { %2564 = vmatprep.subr.mxu1 %v10071_v61 }
 0x337   :  { %2565 = vmatpush2.msra.mxu1 %v10070_v63 }
 0x338   :  { %2566 = vmatprep.subr.mxu1 %v10069_v0 }
 0x339   :  { %2567 = vmatpush2.msra.mxu1 %v10068_v2 }
 0x33a   :  { %2568 = vmatprep.subr.mxu1 %v10067_v4 }
 0x33b   :  { %2569 = vmatpush2.msra.mxu1 %v10066_v5 }
 0x33c   :  { %2570 = vmatprep.subr.mxu1 %v10065_v6 }
 0x33d   :  { %2571 = vmatpush2.msra.mxu1 %v10064_v7 }
 0x33e   :  { %2572 = vmatprep.subr.mxu1 %v10063_v10 }
 0x33f   :  { %2573 = vmatpush2.msra.mxu1 %v10062_v13 }
 0x340   :  { %2574 = vmatprep.subr.mxu1 %v10061_v41 }
 0x341   :  { %v934_v8 = vpop.f32.mrf.mxu0  ;;  %v13683_v9 = vpop.f32.mrf.mxu1  ;;  %2575 = vmatpush2.msra.mxu1 %v10060_v16 }
 0x342   :  { %2576 = vmatprep.subr.mxu1 %v10059_v17 }
 0x343   :  { %v13697_v14 = vpop.f32.mrf.mxu0  ;;  %v13699_v15 = vpop.f32.mrf.mxu1  ;;  %2577 = vmatpush2.msra.mxu1 %v10058_v20 }
 0x344   :  { %2777 = vmatprep.subr.mxu1 %v2435_v21 }
 0x346   :  { %v940_v18 = vpop.f32.mrf.mxu0  ;;  %v952_v19 = vpop.f32.mrf.mxu1 }
 0x348   :  { %v13719_v23 = vpop.f32.mrf.mxu0  ;;  %v13721_v24 = vpop.f32.mrf.mxu1 }
 0x34a   :  { %v958_v26 = vpop.f32.mrf.mxu1  ;;  %v11693_v27 = vpop.f32.mrf.mxu0 }
 0x34c   :  { %v13729_v29 = vpop.f32.mrf.mxu1  ;;  %v13731_v30 = vpop.f32.mrf.mxu0 }
 0x34e   :  { %v964_v31 = vpop.f32.mrf.mxu1  ;;  %v11696_v32 = vpop.f32.mrf.mxu0 }
 0x350   :  { %v13733_v33 = vpop.f32.mrf.mxu1  ;;  %v13735_v34 = vpop.f32.mrf.mxu0 }
 0x352   :  { %v970_v35 = vpop.f32.mrf.mxu1  ;;  %v11699_v36 = vpop.f32.mrf.mxu0 }
 0x354   :  { %v13737_v37 = vpop.f32.mrf.mxu1  ;;  %v13739_v38 = vpop.f32.mrf.mxu0 }
 0x355   :  { %17644 = vst [vmem:[#allocation2_spill] sm:$0xff] %v13737_v37  ;;  %17645 = vst [vmem:[#allocation3_spill] sm:$0xff] %v13739_v38 }
 0x356   :  { %v976_v39 = vpop.f32.mrf.mxu1  ;;  %v11702_v40 = vpop.f32.mrf.mxu0 }
 0x358   :  { %v13741_v42 = vpop.f32.mrf.mxu1  ;;  %v13743_v43 = vpop.f32.mrf.mxu0 }
 0x359   :  { %17646 = vst [vmem:[#allocation4_spill] sm:$0xff] %v13741_v42  ;;  %17647 = vst [vmem:[#allocation5_spill] sm:$0xff] %v13743_v43 }
 0x35a   :  { %v982_v44 = vpop.f32.mrf.mxu1  ;;  %v11705_v45 = vpop.f32.mrf.mxu0 }
 0x35c   :  { %v13745_v46 = vpop.f32.mrf.mxu1  ;;  %v13747_v47 = vpop.f32.mrf.mxu0 }
 0x35d   :  { %17648 = vst [vmem:[#allocation6_spill] sm:$0xff] %v13745_v46  ;;  %17649 = vst [vmem:[#allocation7_spill] sm:$0xff] %v13747_v47 }
 0x35e   :  { %v988_v48 = vpop.f32.mrf.mxu1  ;;  %v1210_v49 = vpop.f32.mrf.mxu0 }
 0x35f   :  { %v1211_v50 = vadd.f32 %v1210_v49, %v934_v8 }
 0x360   :  { %v13749_v51 = vpop.f32.mrf.mxu1  ;;  %v13751_v52 = vpop.f32.mrf.mxu0 }
 0x361   :  { %17650 = vst [vmem:[#allocation8_spill] sm:$0xff] %v13749_v51 }
 0x362   :  { %v1216_v53 = vpop.f32.mrf.mxu0  ;;  %v11710_v54 = vpop.f32.mrf.mxu1 }
 0x363   :  { %v1217_v55 = vadd.f32 %v1216_v53, %v940_v18  ;;  %v1341_v56 = vadd.f32 %v11710_v54, %v11693_v27 }
 0x364   :  { %v13753_v57 = vpop.f32.mrf.mxu0  ;;  %v13755_v58 = vpop.f32.mrf.mxu1 }
 0x366   :  { %v1222_v59 = vpop.f32.mrf.mxu0  ;;  %v11713_v60 = vpop.f32.mrf.mxu1 }
 0x367   :  { %v13758_v61 = vadd.f32 %v1222_v59, %v13683_v9  ;;  %v1351_v62 = vadd.f32 %v11713_v60, %v11696_v32 }
 0x368   :  { %v13760_v63 = vpop.f32.mrf.mxu0  ;;  %v13762_v0 = vpop.f32.mrf.mxu1 }
 0x36a   :  { %v1228_v1 = vpop.f32.mrf.mxu0  ;;  %v11716_v2 = vpop.f32.mrf.mxu1 }
 0x36b   :  { %v13764_v4 = vadd.f32 %v1228_v1, %v952_v19  ;;  %v1361_v5 = vadd.f32 %v11716_v2, %v11699_v36 }
 0x36c   :  { %v13766_v6 = vpop.f32.mrf.mxu0  ;;  %v13768_v7 = vpop.f32.mrf.mxu1 }
 0x36d   :  { %17651 = vst [vmem:[#allocation9_spill] sm:$0xff] %v13768_v7 }
 0x36e   :  { %v1234_v8 = vpop.f32.mrf.mxu0  ;;  %v11719_v10 = vpop.f32.mrf.mxu1 }
 0x36f   :  { %v1235_v11 = vadd.f32 %v1234_v8, %v958_v26  ;;  %v1371_v12 = vadd.f32 %v11719_v10, %v11702_v40 }
 0x370   :  { %v13770_v9 = vpop.f32.mrf.mxu0  ;;  %v13772_v13 = vpop.f32.mrf.mxu1 }
 0x371   :  { %17652 = vst [vmem:[#allocation10_spill] sm:$0xff] %v13772_v13 }
 0x372   :  { %v1240_v41 = vpop.f32.mrf.mxu0  ;;  %v11722_v16 = vpop.f32.mrf.mxu1 }
 0x373   :  { %v1241_v17 = vadd.f32 %v1240_v41, %v964_v31  ;;  %v1381_v18 = vadd.f32 %v11722_v16, %v11705_v45 }
 0x374   :  { %v13774_v20 = vpop.f32.mrf.mxu0  ;;  %v13776_v19 = vpop.f32.mrf.mxu1 }
 0x375   :  { %17653 = vst [vmem:[#allocation11_spill] sm:$0xff] %v13776_v19 }
 0x376   :  { %v1246_v21 = vpop.f32.mrf.mxu0  ;;  %v1506_v22 = vpop.f32.mrf.mxu1 }
 0x377   :  { %v1247_v25 = vadd.f32 %v1246_v21, %v970_v35  ;;  %v1680_v27 = vadd.f32 %v1506_v22, %v1211_v50 }
 0x378   :  { %v13778_v28 = vpop.f32.mrf.mxu0  ;;  %v13780_v26 = vpop.f32.mrf.mxu1 }
 0x379   :  { %17654 = vst [vmem:[#allocation12_spill] sm:$0xff] %v13778_v28 }
 0x37a   :  { %v1252_v32 = vpop.f32.mrf.mxu0  ;;  %v1512_v36 = vpop.f32.mrf.mxu1 }
 0x37b   :  { %v1253_v40 = vadd.f32 %v1252_v32, %v976_v39  ;;  %v1683_v49 = vadd.f32 %v1512_v36, %v1217_v55 }
 0x37c   :  { %v13782_v53 = vpop.f32.mrf.mxu0  ;;  %v13784_v31 = vpop.f32.mrf.mxu1 }
 0x37d   :  { %17655 = vst [vmem:[#allocation13_spill] sm:$0xff] %v13782_v53 }
 0x37e   :  { %v1258_v45 = vpop.f32.mrf.mxu0  ;;  %v13786_v54 = vpop.f32.mrf.mxu1 }
 0x37f   :  { %v1259_v59 = vadd.f32 %v1258_v45, %v982_v44 }
 0x380   :  { %v13788_v60 = vpop.f32.mrf.mxu0  ;;  %v13790_v35 = vpop.f32.mrf.mxu1 }
 0x381   :  { %17656 = vst [vmem:[#allocation14_spill] sm:$0xff] %v13788_v60 }
 0x382   :  { %v1264_v50 = vpop.f32.mrf.mxu0  ;;  %v13792_v1 = vpop.f32.mrf.mxu1 }
 0x383   :  { %v1265_v2 = vadd.f32 %v1264_v50, %v988_v48 }
 0x384   :  { %v13794_v8 = vpop.f32.mrf.mxu0  ;;  %v13796_v39 = vpop.f32.mrf.mxu1 }
 0x385   :  { %17657 = vst [vmem:[#allocation15_spill] sm:$0xff] %v13794_v8 }
 0x386   :  { %v1530_v55 = vpop.f32.mrf.mxu1  ;;  %v11727_v10 = vpop.f32.mrf.mxu0 }
 0x387   :  { %v1692_v41 = vadd.f32 %v1530_v55, %v1235_v11  ;;  %v13798_v16 = vadd.f32 %v11727_v10, %v1341_v56 }
 0x388   :  { %v13800_v21 = vpop.f32.mrf.mxu1  ;;  %v13802_v44 = vpop.f32.mrf.mxu0 }
 0x38a   :  { %v1536_v22 = vpop.f32.mrf.mxu1  ;;  %v11730_v32 = vpop.f32.mrf.mxu0 }
 0x38b   :  { %v1695_v36 = vadd.f32 %v1536_v22, %v1241_v17  ;;  %v13804_v45 = vadd.f32 %v11730_v32, %v1351_v62 }
 0x38c   :  { %v13806_v3 = vpop.f32.mrf.mxu1  ;;  %v13808_v48 = vpop.f32.mrf.mxu0 }
 0x38e   :  { %v1542_v50 = vpop.f32.mrf.mxu1  ;;  %v11733_v19 = vpop.f32.mrf.mxu0 }
 0x38f   :  { %v1698_v47 = vadd.f32 %v1542_v50, %v1247_v25  ;;  %v1697_v53 = vadd.f32 %v11733_v19, %v1361_v5 }
 0x390   :  { %v13810_v11 = vpop.f32.mrf.mxu1  ;;  %v13812_v56 = vpop.f32.mrf.mxu0 }
 0x391   :  { %17658 = vst [vmem:[#allocation16_spill] sm:$0xff] %v13810_v11  ;;  %17659 = vst [vmem:[#allocation17_spill] sm:$0xff] %v13812_v56 }
 0x392   :  { %v1548_v55 = vpop.f32.mrf.mxu1  ;;  %v11736_v10 = vpop.f32.mrf.mxu0 }
 0x393   :  { %v1701_v42 = vadd.f32 %v1548_v55, %v1253_v40  ;;  %v1703_v8 = vadd.f32 %v11736_v10, %v1371_v12 }
 0x394   :  { %v13814_v51 = vpop.f32.mrf.mxu1  ;;  %v13816_v62 = vpop.f32.mrf.mxu0 }
 0x395   :  { %17660 = vst [vmem:[#allocation18_spill] sm:$0xff] %v13814_v51  ;;  %17661 = vst [vmem:[#allocation19_spill] sm:$0xff] %v13816_v62 }
 0x396   :  { %v1554_v17 = vpop.f32.mrf.mxu1  ;;  %v11739_v22 = vpop.f32.mrf.mxu0 }
 0x397   :  { %v1704_v32 = vadd.f32 %v1554_v17, %v1259_v59  ;;  %v1709_v28 = vadd.f32 %v11739_v22, %v1381_v18 }
 0x398   :  { %v13818_v37 = vpop.f32.mrf.mxu1  ;;  %v13820_v25 = vpop.f32.mrf.mxu0 }
 0x399   :  { %17662 = vst [vmem:[#allocation20_spill] sm:$0xff] %v13818_v37  ;;  %17663 = vst [vmem:[#allocation21_spill] sm:$0xff] %v13820_v25 }
 0x39a   :  { %v1560_v5 = vpop.f32.mrf.mxu1  ;;  %v1832_v19 = vpop.f32.mrf.mxu0 }
 0x39b   :  { %v1707_v50 = vadd.f32 %v1560_v5, %v1265_v2  ;;  %v2006_v11 = vadd.f32 %v1832_v19, %v1680_v27 }
 0x39c   :  { %v13822_v60 = vpop.f32.mrf.mxu1  ;;  %v13824_v40 = vpop.f32.mrf.mxu0 }
 0x39d   :  { %17664 = vst [vmem:[#allocation22_spill] sm:$0xff] %v13822_v60 }
 0x39e   :  { %v1838_v12 = vpop.f32.mrf.mxu0  ;;  %v13826_v55 = vpop.f32.mrf.mxu1 }
 0x39f   :  { %v2009_v10 = vadd.f32 %v1838_v12, %v1683_v49 }
 0x3a0   :  { %v13828_v51 = vpop.f32.mrf.mxu0  ;;  %v13830_v59 = vpop.f32.mrf.mxu1 }
 0x3a2   :  { %v1844_v18 = vpop.f32.mrf.mxu0  ;;  %v13832_v17 = vpop.f32.mrf.mxu1 }
 0x3a4   :  { %v1846_v22 = vpop.f32.mrf.mxu0  ;;  %v13834_v25 = vpop.f32.mrf.mxu1 }
 0x3a6   :  { %v1850_v2 = vpop.f32.mrf.mxu0  ;;  %v11750_v27 = vpop.f32.mrf.mxu1 }
 0x3a7   :  { %v13836_v5 = vadd.f32 %v11750_v27, %v1697_v53 }
 0x3a8   :  { %v1852_v19 = vpop.f32.mrf.mxu0  ;;  %v13838_v60 = vpop.f32.mrf.mxu1 }
 0x3a9   :  { %17665 = vst [vmem:[#allocation23_spill] sm:$0xff] %v13836_v5  ;;  %17666 = vst [vmem:[#allocation24_spill] sm:$0xff] %v13838_v60 }
 0x3aa   :  { %v1856_v37 = vpop.f32.mrf.mxu0  ;;  %v11753_v46 = vpop.f32.mrf.mxu1 }
 0x3ab   :  { %v13840_v49 = vadd.f32 %v1856_v37, %v1692_v41  ;;  %v13842_v12 = vadd.f32 %v11753_v46, %v1703_v8 }
 0x3ac   :  { %v13844_v56 = vpop.f32.mrf.mxu0  ;;  %v13846_v7 = vpop.f32.mrf.mxu1 }
 0x3ad   :  { %17667 = vst [vmem:[#allocation25_spill] sm:$0xff] %v13842_v12  ;;  %17668 = vst [vmem:[#allocation26_spill] sm:$0xff] %v13846_v7 }
 0x3ae   :  { %v1862_v38 = vpop.f32.mrf.mxu0  ;;  %v11756_v62 = vpop.f32.mrf.mxu1 }
 0x3af   :  { %v13848_v13 = vadd.f32 %v1862_v38, %v1695_v36  ;;  %v13850_v43 = vadd.f32 %v11756_v62, %v1709_v28  ;;  %v1225_v38 = vadd.f32 %v13760_v63, %v13699_v15 }
 0x3b0   :  { %v13852_v53 = vpop.f32.mrf.mxu0  ;;  %v13854_v27 = vpop.f32.mrf.mxu1 }
 0x3b1   :  { %17669 = vst [vmem:[#allocation27_spill] sm:$0xff] %v13850_v43  ;;  %17670 = vst [vmem:[#allocation28_spill] sm:$0xff] %v13854_v27  ;;  %v1231_v27 = vadd.f32 %v13766_v6, %v13721_v24  ;;  %v2434_v24 = vld [vmem:[%s17633_s5 + $0x220] sm:$0xff]  ;;  %v1336_v6 = vadd.f32 %v13755_v58, %v13731_v30  ;;  %v2431_v58 = vld [vmem:[%s17633_s5 + $0x208] sm:$0xff] }
 0x3b2   :  { %v1868_v5 = vpop.f32.mrf.mxu0  ;;  %v2162_v60 = vpop.f32.mrf.mxu1 }
 0x3b3   :  { %v13856_v37 = vadd.f32 %v1868_v5, %v1698_v47  ;;  %v13858_v46 = vadd.f32 %v2162_v60, %v2006_v11  ;;  %v1687_v47 = vadd.f32 %v13790_v35, %v1225_v38  ;;  %v1686_v60 = vadd.f32 %v13786_v54, %v13758_v61 }
 0x3b4   :  { %v13860_v8 = vpop.f32.mrf.mxu0  ;;  %v13862_v41 = vpop.f32.mrf.mxu1  ;;  %v1689_v35 = vadd.f32 %v13792_v1, %v13764_v4 }
 0x3b5   :  { %17671 = vst [vmem:[#allocation29_spill] sm:$0xff] %v13860_v8  ;;  %v2013_v8 = vadd.f32 %v1846_v22, %v1687_v47  ;;  %v2430_v47 = vld [vmem:[%s17633_s5 + $0x200] sm:$0xff] }
 0x3b6   :  { %v1874_v12 = vpop.f32.mrf.mxu0  ;;  %v2168_v7 = vpop.f32.mrf.mxu1  ;;  %v2015_v22 = vadd.f32 %v1850_v2, %v1689_v35  ;;  %v1237_v35 = vadd.f32 %v13770_v9, %v13729_v29  ;;  %v2011_v29 = vadd.f32 %v13826_v55, %v13798_v16  ;;  %v2395_v16 = vld [vmem:[%s17633_s5 + $0xe8] sm:$0xff] }
 0x3b7   :  { %v13866_v28 = vadd.f32 %v1874_v12, %v1701_v42  ;;  %v13868_v36 = vadd.f32 %v2168_v7, %v2009_v10  ;;  %v2012_v42 = vadd.f32 %v1844_v18, %v1686_v60  ;;  %v1690_v10 = vadd.f32 %v13796_v39, %v1231_v27  ;;  %v2433_v39 = vld [vmem:[%s17633_s5 + $0x218] sm:$0xff]  ;;  %v2432_v27 = vld [vmem:[%s17633_s5 + $0x210] sm:$0xff] }
 0x3b8   :  { %v13870_v62 = vpop.f32.mrf.mxu0  ;;  %v13872_v43 = vpop.f32.mrf.mxu1  ;;  %v1346_v60 = vadd.f32 %v13762_v0, %v13735_v34 }
 0x3ba   :  { %v1880_v11 = vpop.f32.mrf.mxu0  ;;  %v2174_v5 = vpop.f32.mrf.mxu1 }
 0x3bb   :  { %v13879_v15 = vadd.f32 %v1880_v11, %v1704_v32  ;;  %v2342_v38 = vadd.f32 %v2174_v5, %v2012_v42  ;;  %v2016_v32 = vadd.f32 %v1852_v19, %v1690_v10  ;;  %v10131_v11 = vld [vmem:[%s17633_s5 + $0x558] sm:$0xff] }
 0x3bc   :  { %v13881_v63 = vpop.f32.mrf.mxu0  ;;  %v2176_v7 = vpop.f32.mrf.mxu1 }
 0x3bd   :  { %v2343_v12 = vadd.f32 %v2176_v7, %v2013_v8  ;;  %v1682_v8 = vadd.f32 %v13802_v44, %v1336_v6  ;;  %v1688_v7 = vadd.f32 %v13808_v48, %v1346_v60  ;;  %v10129_v48 = vld [vmem:[%s17633_s5 + $0x548] sm:$0xff]  ;;  %v1693_v6 = vadd.f32 %v13800_v21, %v1237_v35  ;;  %v10123_v60 = vld [vmem:[%s17633_s5 + $0x518] sm:$0xff]  ;;  %v2386_v35 = vld [vmem:[%s17633_s5 + $0xa0] sm:$0xff] }
 0x3be   :  { %v1886_v61 = vpop.f32.mrf.mxu0  ;;  %v2180_v54 = vpop.f32.mrf.mxu1 }
 0x3bf   :  { %v13891_v18 = vadd.f32 %v1886_v61, %v1707_v50  ;;  %2578 = vmatprep.mubr.f32.mxu1 %v2343_v12  ;;  %v2345_v50 = vadd.f32 %v2180_v54, %v2015_v22  ;;  %v2008_v44 = vadd.f32 %v13830_v59, %v1682_v8  ;;  %v17672_v12 = vmov 0.0   ;;  %v10130_v59 = vld [vmem:[%s17633_s5 + $0x550] sm:$0xff] }
 0x3c0   :  { %v13896_v4 = vpop.f32.mrf.mxu0  ;;  %v2182_v1 = vpop.f32.mrf.mxu1  ;;  %2579 = vmatmul.mubr.f32.vlgmr.msra.gmra.mxu1 %v2342_v38  ;;  %v2014_v38 = vadd.f32 %v13834_v25, %v1688_v7  ;;  %v2396_v25 = vld [vmem:[%s17633_s5 + $0xf0] sm:$0xff]  ;;  %v2019_v55 = vadd.f32 %v13844_v56, %v1693_v6  ;;  %v10125_v56 = vld [vmem:[%s17633_s5 + $0x528] sm:$0xff]  ;;  %v2017_v8 = vadd.f32 %v13832_v17, %v13804_v45  ;;  %v10115_v6 = vld [vmem:[%s17633_s5 + $0x4d8] sm:$0xff] }
 0x3c1   :  { %v2346_v30 = vadd.f32 %v2182_v1, %v2016_v32  ;;  %2778 = vmatpush1.msra.mxu1 %v2434_v24  ;;  %v10128_v24 = vld [vmem:[%s17633_s5 + $0x540] sm:$0xff]  ;;  %v10127_v32 = vld [vmem:[%s17633_s5 + $0x538] sm:$0xff]  ;;  %v2392_v17 = vld [vmem:[%s17633_s5 + $0xd0] sm:$0xff] }
 0x3c2   :  { %v13905_v19 = vpop.f32.mrf.mxu1  ;;  %v11761_v2 = vpop.f32.mrf.mxu0  ;;  %2779 = vmatprep.subr.mxu1 %v2433_v39  ;;  %v1213_v39 = vadd.f32 %v13751_v52, %v13697_v14  ;;  %v2394_v14 = vld [vmem:[%s17633_s5 + $0xe0] sm:$0xff]  ;;  %v2388_v7 = vld [vmem:[%s17633_s5 + $0xb0] sm:$0xff] }
 0x3c3   :  { %2584 = vmatprep.mubr.f32.mxu1 %v2346_v30  ;;  %2780 = vmatpush1.msra.mxu1 %v2432_v27  ;;  %v2341_v22 = vadd.f32 %v11761_v2, %v2011_v29  ;;  %v10126_v27 = vld [vmem:[%s17633_s5 + $0x530] sm:$0xff]  ;;  %v10124_v2 = vld [vmem:[%s17633_s5 + $0x520] sm:$0xff]  ;;  %v2383_v29 = vld [vmem:[%s17633_s5 + $0x88] sm:$0xff] }
 0x3c4   :  { %v2188_v5 = vpop.f32.mrf.mxu1  ;;  %v2287_v42 = vpop.f32.mrf.mxu0  ;;  %2585 = vmatmul.mubr.f32.gmra.mxu1 %v2345_v50  ;;  %2781 = vmatprep.subr.mxu1 %v2431_v58  ;;  %v2393_v58 = vld [vmem:[%s17633_s5 + $0xd8] sm:$0xff] }
 0x3c5   :  { %v2338_v10 = vadd.f32 %v2287_v42, %v2008_v44  ;;  %2782 = vmatpush1.msra.mxu1 %v2430_v47  ;;  %2815 = vmatprep.mubr.f32.mxu1 %v17672_v12  ;;  %v2349_v30 = vadd.f32 %v2188_v5, %v2019_v55  ;;  %v10121_v5 = vld [vmem:[%s17633_s5 + $0x508] sm:$0xff]  ;;  %v10120_v42 = vld [vmem:[%s17633_s5 + $0x500] sm:$0xff]  ;;  %v10111_v55 = vld [vmem:[%s17633_s5 + $0x4b8] sm:$0xff] }
 0x3c6   :  { %v13918_v34 = vpop.f32.mrf.mxu1  ;;  %v11764_v0 = vpop.f32.mrf.mxu0  ;;  %2905 = vmatprep.subr.mxu1 %v10131_v11  ;;  %v2390_v11 = vld [vmem:[%s17633_s5 + $0xc0] sm:$0xff] }
 0x3c7   :  { %v2347_v47 = vadd.f32 %v11764_v0, %v2017_v8  ;;  %v2387_v0 = vld [vmem:[%s17633_s5 + $0xa8] sm:$0xff]  ;;  %v10108_v8 = vld [vmem:[%s17633_s5 + $0x4a0] sm:$0xff] }
 0x3c8   :  { %v13929_v61 = vpop.f32.mrf.mxu1  ;;  %v2297_v54 = vpop.f32.mrf.mxu0  ;;  %10098 = vmatmul.mubr.msk.f32.vlgmr.msra.gmra.mxu1 %vm2507_vm11, %v2338_v10  ;;  %v10119_v10 = vld [vmem:[%s17633_s5 + $0x4f8] sm:$0xff] }
 0x3c9   :  { %v2344_v9 = vadd.f32 %v2297_v54, %v2014_v38  ;;  %2906 = vmatpush1.msra.mxu1 %v10130_v59  ;;  %2821 = vmatprep.mubr.f32.mxu1 %v17672_v12  ;;  %v10118_v59 = vld [vmem:[%s17633_s5 + $0x4f0] sm:$0xff]  ;;  %v10117_v38 = vld [vmem:[%s17633_s5 + $0x4e8] sm:$0xff]  ;;  %v10116_v54 = vld [vmem:[%s17633_s5 + $0x4e0] sm:$0xff] }
 0x3ca   :  { %2907 = vmatprep.subr.mxu1 %v10129_v48  ;;  %v2198_v21 = vpop.f32.mrf.mxu1  ;;  %v2385_v48 = vld [vmem:[%s17633_s5 + $0x98] sm:$0xff] }
 0x3cb   :  { %v13952_v1 = vadd.f32 %v2198_v21, %v13856_v37  ;;  %2908 = vmatpush1.msra.mxu1 %v10128_v24  ;;  %10096 = vmatmul.mubr.msk.f32.vlgmr.msra.gmra.mxu0 %vm2507_vm11, %v2344_v9  ;;  %v1681_v37 = vadd.f32 %v13780_v26, %v1213_v39  ;;  %v2384_v24 = vld [vmem:[%s17633_s5 + $0x90] sm:$0xff]  ;;  %v2381_v39 = vld [vmem:[%s17633_s5 + $0x78] sm:$0xff]  ;;  %v10112_v21 = vld [vmem:[%s17633_s5 + $0x4c0] sm:$0xff] }
 0x3cc   :  { %2675 = vmatpush1.msra.mxu0 %v2396_v25  ;;  %2909 = vmatprep.subr.mxu1 %v10127_v32  ;;  %v13961_v52 = vpop.f32.mrf.mxu1  ;;  %v10114_v9 = vld [vmem:[%s17633_s5 + $0x4d0] sm:$0xff]  ;;  %v2382_v25 = vld [vmem:[%s17633_s5 + $0x80] sm:$0xff]  ;;  %v10113_v32 = vld [vmem:[%s17633_s5 + $0x4c8] sm:$0xff] }
 0x3cd   :  { %2676 = vmatprep.subr.mxu0 %v2395_v16  ;;  %10099 = vmatmul.mubr.msk.f32.gmra.mxu1 %vm2507_vm11, %v2341_v22  ;;  %v2007_v26 = vadd.f32 %v13824_v40, %v1681_v37  ;;  %v2391_v40 = vld [vmem:[%s17633_s5 + $0xc8] sm:$0xff]  ;;  %v2380_v16 = vld [vmem:[%s17633_s5 + $0x70] sm:$0xff]  ;;  %v2377_v37 = vld [vmem:[%s17633_s5 + $0x58] sm:$0xff] }
 0x3ce   :  { %2910 = vmatpush1.msra.mxu1 %v10126_v27  ;;  %2677 = vmatpush1.msra.mxu0 %v2394_v14  ;;  %v2204_v50 = vpop.f32.mrf.mxu1  ;;  %v2379_v22 = vld [vmem:[%s17633_s5 + $0x68] sm:$0xff]  ;;  %v10110_v27 = vld [vmem:[%s17633_s5 + $0x4b0] sm:$0xff]  ;;  %v2378_v14 = vld [vmem:[%s17633_s5 + $0x60] sm:$0xff] }
 0x3cf   :  { %2911 = vmatprep.subr.mxu1 %v10125_v56  ;;  %2969 = vmatprep.mubr.f32.mxu1 %v2349_v30  ;;  %v13978_v45 = vadd.f32 %v2204_v50, %v13866_v28  ;;  %v2337_v44 = vadd.f32 %v13862_v41, %v2007_v26  ;;  %v10122_v28 = vld [vmem:[%s17633_s5 + $0x510] sm:$0xff]  ;;  %v2389_v41 = vld [vmem:[%s17633_s5 + $0xb8] sm:$0xff]  ;;  %v10109_v56 = vld [vmem:[%s17633_s5 + $0x4a8] sm:$0xff] }
 0x3d0   :  { %2661 = vmatprep.mubr.f32.mxu0 %v17672_v12  ;;  %2678 = vmatprep.subr.mxu0 %v2393_v58  ;;  %v2376_v30 = vld [vmem:[%s17633_s5 + $0x50] sm:$0xff]  ;;  %v10107_v58 = vld [vmem:[%s17633_s5 + $0x498] sm:$0xff]  ;;  %v2375_v50 = vld [vmem:[%s17633_s5 + $0x48] sm:$0xff] }
 0x3d1   :  { %2912 = vmatpush1.msra.mxu1 %v10124_v2  ;;  %10097 = vmatmul.mubr.msk.f32.gmra.mxu0 %vm2507_vm11, %v2347_v47  ;;  %v10106_v2 = vld [vmem:[%s17633_s5 + $0x490] sm:$0xff]  ;;  %v2374_v26 = vld [vmem:[%s17633_s5 + $0x40] sm:$0xff]  ;;  %v10105_v47 = vld [vmem:[%s17633_s5 + $0x488] sm:$0xff] }
 0x3d2   :  { %2679 = vmatpush1.msra.mxu0 %v2392_v17  ;;  %2913 = vmatprep.subr.mxu1 %v10123_v60  ;;  %v2373_v17 = vld [vmem:[%s17633_s5 + $0x38] sm:$0xff]  ;;  %v10104_v60 = vld [vmem:[%s17633_s5 + $0x480] sm:$0xff] }
 0x3d3   :  { %2680 = vmatprep.subr.mxu0 %v2391_v40  ;;  %2738 = vmatprep.mubr.f32.mxu0 %v2337_v44  ;;  %v2372_v40 = vld [vmem:[%s17633_s5 + $0x30] sm:$0xff]  ;;  %v10103_v44 = vld [vmem:[%s17633_s5 + $0x478] sm:$0xff] }
 0x3d4   :  { %2914 = vmatpush1.msra.mxu1 %v10122_v28  ;;  %2681 = vmatpush1.msra.mxu0 %v2390_v11  ;;  %v2371_v28 = vld [vmem:[%s17633_s5 + $0x28] sm:$0xff]  ;;  %v10102_v11 = vld [vmem:[%s17633_s5 + $0x470] sm:$0xff] }
 0x3d5   :  { %2915 = vmatprep.subr.mxu1 %v10121_v5  ;;  %2682 = vmatprep.subr.mxu0 %v2389_v41  ;;  %v2370_v5 = vld [vmem:[%s17633_s5 + $0x20] sm:$0xff]  ;;  %v10101_v41 = vld [vmem:[%s17633_s5 + $0x468] sm:$0xff] }
 0x3d6   :  { %2916 = vmatpush1.msra.mxu1 %v10120_v42  ;;  %2683 = vmatpush1.msra.mxu0 %v2388_v7  ;;  %v2369_v42 = vld [vmem:[%s17633_s5 + $0x18] sm:$0xff]  ;;  %v10100_v7 = vld [vmem:[%s17633_s5 + $0x460] sm:$0xff] }
 0x3d7   :  { %2917 = vmatprep.subr.mxu1 %v10119_v10  ;;  %2684 = vmatprep.subr.mxu0 %v2387_v0  ;;  %v2368_v10 = vld [vmem:[%s17633_s5 + $0x10] sm:$0xff]  ;;  %v10163_v0 = vld [vmem:[%s17633_s5 + $0x658] sm:$0xff] }
 0x3d8   :  { %2918 = vmatpush1.msra.mxu1 %v10118_v59  ;;  %2685 = vmatpush1.msra.mxu0 %v2386_v35  ;;  %v2367_v59 = vld [vmem:[%s17633_s5 + $0x8] sm:$0xff]  ;;  %v10162_v35 = vld [vmem:[%s17633_s5 + $0x650] sm:$0xff] }
 0x3d9   :  { %2919 = vmatprep.subr.mxu1 %v10117_v38  ;;  %2686 = vmatprep.subr.mxu0 %v2385_v48  ;;  %v2366_v38 = vld [vmem:[%s17633_s5] sm:$0xff]  ;;  %v10161_v48 = vld [vmem:[%s17633_s5 + $0x648] sm:$0xff] }
 0x3da   :  { %2920 = vmatpush1.msra.mxu1 %v10116_v54  ;;  %2687 = vmatpush1.msra.mxu0 %v2384_v24  ;;  %v2429_v54 = vld [vmem:[%s17633_s5 + $0x1f8] sm:$0xff]  ;;  %v10160_v24 = vld [vmem:[%s17633_s5 + $0x640] sm:$0xff] }
 0x3db   :  { %2921 = vmatprep.subr.mxu1 %v10115_v6  ;;  %2688 = vmatprep.subr.mxu0 %v2383_v29  ;;  %v2428_v6 = vld [vmem:[%s17633_s5 + $0x1f0] sm:$0xff]  ;;  %v10159_v29 = vld [vmem:[%s17633_s5 + $0x638] sm:$0xff] }
 0x3dc   :  { %2922 = vmatpush1.msra.mxu1 %v10114_v9  ;;  %2689 = vmatpush1.msra.mxu0 %v2382_v25  ;;  %v2427_v9 = vld [vmem:[%s17633_s5 + $0x1e8] sm:$0xff]  ;;  %v10158_v25 = vld [vmem:[%s17633_s5 + $0x630] sm:$0xff] }
 0x3dd   :  { %2923 = vmatprep.subr.mxu1 %v10113_v32  ;;  %2690 = vmatprep.subr.mxu0 %v2381_v39  ;;  %v2426_v32 = vld [vmem:[%s17633_s5 + $0x1e0] sm:$0xff]  ;;  %v10157_v39 = vld [vmem:[%s17633_s5 + $0x628] sm:$0xff] }
 0x3de   :  { %2924 = vmatpush1.msra.mxu1 %v10112_v21  ;;  %2691 = vmatpush1.msra.mxu0 %v2380_v16  ;;  %v2425_v21 = vld [vmem:[%s17633_s5 + $0x1d8] sm:$0xff]  ;;  %v10156_v16 = vld [vmem:[%s17633_s5 + $0x620] sm:$0xff] }
 0x3df   :  { %2925 = vmatprep.subr.mxu1 %v10111_v55  ;;  %2692 = vmatprep.subr.mxu0 %v2379_v22  ;;  %v2424_v55 = vld [vmem:[%s17633_s5 + $0x1d0] sm:$0xff]  ;;  %v10155_v22 = vld [vmem:[%s17633_s5 + $0x618] sm:$0xff] }
 0x3e0   :  { %2926 = vmatpush1.msra.mxu1 %v10110_v27  ;;  %2693 = vmatpush1.msra.mxu0 %v2378_v14  ;;  %v2423_v27 = vld [vmem:[%s17633_s5 + $0x1c8] sm:$0xff]  ;;  %v10154_v14 = vld [vmem:[%s17633_s5 + $0x610] sm:$0xff] }
 0x3e1   :  { %2927 = vmatprep.subr.mxu1 %v10109_v56  ;;  %2694 = vmatprep.subr.mxu0 %v2377_v37  ;;  %v2422_v56 = vld [vmem:[%s17633_s5 + $0x1c0] sm:$0xff]  ;;  %v10153_v37 = vld [vmem:[%s17633_s5 + $0x608] sm:$0xff] }
 0x3e2   :  { %2928 = vmatpush1.msra.mxu1 %v10108_v8  ;;  %2695 = vmatpush1.msra.mxu0 %v2376_v30  ;;  %v2421_v8 = vld [vmem:[%s17633_s5 + $0x1b8] sm:$0xff]  ;;  %v10152_v30 = vld [vmem:[%s17633_s5 + $0x600] sm:$0xff] }
 0x3e3   :  { %2929 = vmatprep.subr.mxu1 %v10107_v58  ;;  %2696 = vmatprep.subr.mxu0 %v2375_v50  ;;  %v2420_v58 = vld [vmem:[%s17633_s5 + $0x1b0] sm:$0xff]  ;;  %v10151_v50 = vld [vmem:[%s17633_s5 + $0x5f8] sm:$0xff] }
 0x3e4   :  { %2930 = vmatpush1.msra.mxu1 %v10106_v2  ;;  %2697 = vmatpush1.msra.mxu0 %v2374_v26  ;;  %v2419_v2 = vld [vmem:[%s17633_s5 + $0x1a8] sm:$0xff]  ;;  %v10150_v26 = vld [vmem:[%s17633_s5 + $0x5f0] sm:$0xff] }
 0x3e5   :  { %2931 = vmatprep.subr.mxu1 %v10105_v47  ;;  %2698 = vmatprep.subr.mxu0 %v2373_v17  ;;  %v2418_v47 = vld [vmem:[%s17633_s5 + $0x1a0] sm:$0xff]  ;;  %v10149_v17 = vld [vmem:[%s17633_s5 + $0x5e8] sm:$0xff] }
 0x3e6   :  { %2932 = vmatpush1.msra.mxu1 %v10104_v60  ;;  %2699 = vmatpush1.msra.mxu0 %v2372_v40  ;;  %v2417_v60 = vld [vmem:[%s17633_s5 + $0x198] sm:$0xff]  ;;  %v10148_v40 = vld [vmem:[%s17633_s5 + $0x5e0] sm:$0xff] }
 0x3e7   :  { %2933 = vmatprep.subr.mxu1 %v10103_v44  ;;  %2700 = vmatprep.subr.mxu0 %v2371_v28  ;;  %v2416_v44 = vld [vmem:[%s17633_s5 + $0x190] sm:$0xff]  ;;  %v10147_v28 = vld [vmem:[%s17633_s5 + $0x5d8] sm:$0xff] }
 0x3e8   :  { %2934 = vmatpush1.msra.mxu1 %v10102_v11  ;;  %2701 = vmatpush1.msra.mxu0 %v2370_v5  ;;  %v2415_v11 = vld [vmem:[%s17633_s5 + $0x188] sm:$0xff]  ;;  %v10146_v5 = vld [vmem:[%s17633_s5 + $0x5d0] sm:$0xff] }
 0x3e9   :  { %2935 = vmatprep.subr.mxu1 %v10101_v41  ;;  %2702 = vmatprep.subr.mxu0 %v2369_v42  ;;  %v2414_v41 = vld [vmem:[%s17633_s5 + $0x180] sm:$0xff]  ;;  %v10145_v42 = vld [vmem:[%s17633_s5 + $0x5c8] sm:$0xff] }
 0x3ea   :  { %2936 = vmatpush1.msra.mxu1 %v10100_v7  ;;  %2703 = vmatpush1.msra.mxu0 %v2368_v10  ;;  %v2413_v7 = vld [vmem:[%s17633_s5 + $0x178] sm:$0xff]  ;;  %v10144_v10 = vld [vmem:[%s17633_s5 + $0x5c0] sm:$0xff] }
 0x3eb   :  { %2937 = vmatprep.subr.mxu1 %v10163_v0  ;;  %2704 = vmatprep.subr.mxu0 %v2367_v59  ;;  %v2412_v0 = vld [vmem:[%s17633_s5 + $0x170] sm:$0xff]  ;;  %v10143_v59 = vld [vmem:[%s17633_s5 + $0x5b8] sm:$0xff] }
 0x3ec   :  { %2938 = vmatpush2.msra.mxu1 %v10162_v35  ;;  %2705 = vmatpush1.msra.mxu0 %v2366_v38  ;;  %v2411_v35 = vld [vmem:[%s17633_s5 + $0x168] sm:$0xff]  ;;  %v10142_v38 = vld [vmem:[%s17633_s5 + $0x5b0] sm:$0xff] }
 0x3ed   :  { %2939 = vmatprep.subr.mxu1 %v10161_v48  ;;  %2706 = vmatprep.subr.mxu0 %v2429_v54  ;;  %v2410_v48 = vld [vmem:[%s17633_s5 + $0x160] sm:$0xff]  ;;  %v10141_v54 = vld [vmem:[%s17633_s5 + $0x5a8] sm:$0xff] }
 0x3ee   :  { %2940 = vmatpush2.msra.mxu1 %v10160_v24  ;;  %2707 = vmatpush2.msra.mxu0 %v2428_v6  ;;  %v2409_v24 = vld [vmem:[%s17633_s5 + $0x158] sm:$0xff]  ;;  %v10140_v6 = vld [vmem:[%s17633_s5 + $0x5a0] sm:$0xff] }
 0x3ef   :  { %2941 = vmatprep.subr.mxu1 %v10159_v29  ;;  %2708 = vmatprep.subr.mxu0 %v2427_v9  ;;  %v2408_v29 = vld [vmem:[%s17633_s5 + $0x150] sm:$0xff]  ;;  %v10139_v9 = vld [vmem:[%s17633_s5 + $0x598] sm:$0xff] }
 0x3f0   :  { %2942 = vmatpush2.msra.mxu1 %v10158_v25  ;;  %2709 = vmatpush2.msra.mxu0 %v2426_v32  ;;  %v2407_v25 = vld [vmem:[%s17633_s5 + $0x148] sm:$0xff]  ;;  %v10138_v32 = vld [vmem:[%s17633_s5 + $0x590] sm:$0xff] }
 0x3f1   :  { %2943 = vmatprep.subr.mxu1 %v10157_v39  ;;  %2710 = vmatprep.subr.mxu0 %v2425_v21  ;;  %v2406_v39 = vld [vmem:[%s17633_s5 + $0x140] sm:$0xff]  ;;  %v10137_v21 = vld [vmem:[%s17633_s5 + $0x588] sm:$0xff] }
 0x3f2   :  { %2944 = vmatpush2.msra.mxu1 %v10156_v16  ;;  %2711 = vmatpush2.msra.mxu0 %v2424_v55  ;;  %v2405_v16 = vld [vmem:[%s17633_s5 + $0x138] sm:$0xff]  ;;  %v10136_v55 = vld [vmem:[%s17633_s5 + $0x580] sm:$0xff] }
 0x3f3   :  { %2945 = vmatprep.subr.mxu1 %v10155_v22  ;;  %2712 = vmatprep.subr.mxu0 %v2423_v27  ;;  %v2404_v22 = vld [vmem:[%s17633_s5 + $0x130] sm:$0xff]  ;;  %v1243_v27 = vadd.f32 %v13774_v20, %v13733_v33  ;;  %v2402_v33 = vld [vmem:[%s17633_s5 + $0x120] sm:$0xff] }
 0x3f4   :  { %2946 = vmatpush2.msra.mxu1 %v10154_v14  ;;  %2713 = vmatpush2.msra.mxu0 %v2422_v56  ;;  %v14300_v14 = vpop.f32.mrf.mxu0  ;;  %v10135_v56 = vld [vmem:[%s17633_s5 + $0x578] sm:$0xff] }
 0x3f5   :  { %2947 = vmatprep.subr.mxu1 %v10153_v37  ;;  %2714 = vmatprep.subr.mxu0 %v2421_v8  ;;  %v2403_v37 = vld [vmem:[%s17633_s5 + $0x128] sm:$0xff]  ;;  %v10134_v8 = vld [vmem:[%s17633_s5 + $0x570] sm:$0xff]  ;;  %v1696_v20 = vadd.f32 %v13806_v3, %v1243_v27  ;;  %v17680_v27 = vld [vmem:[#allocation6_spill] sm:$0xff] }
 0x3f6   :  { %2948 = vmatpush2.msra.mxu1 %v10152_v30  ;;  %2715 = vmatpush2.msra.mxu0 %v2420_v58  ;;  %v10133_v30 = vld [vmem:[%s17633_s5 + $0x568] sm:$0xff]  ;;  %v2401_v58 = vld [vmem:[%s17633_s5 + $0x118] sm:$0xff]  ;;  %v2400_v3 = vld [vmem:[%s17633_s5 + $0x110] sm:$0xff] }
 0x3f7   :  { %2949 = vmatprep.subr.mxu1 %v10151_v50  ;;  %2716 = vmatprep.subr.mxu0 %v2419_v2  ;;  %v1219_v50 = vadd.f32 %v13753_v57, %v13719_v23  ;;  %v10132_v2 = vld [vmem:[%s17633_s5 + $0x560] sm:$0xff]  ;;  %v2399_v23 = vld [vmem:[%s17633_s5 + $0x108] sm:$0xff] }
 0x3f8   :  { %2950 = vmatpush2.msra.mxu1 %v10150_v26  ;;  %2717 = vmatpush2.msra.mxu0 %v2418_v47  ;;  %v2022_v26 = vadd.f32 %v13852_v53, %v1696_v20  ;;  %v14330_v47 = vpop.f32.mrf.mxu0  ;;  %v10272_v20 = vld [vmem:[%s17633_s5 + $0x9a0] sm:$0xff] }
 0x3f9   :  { %2951 = vmatprep.subr.mxu1 %v10149_v17  ;;  %2718 = vmatprep.subr.mxu0 %v2417_v60  ;;  %v1684_v57 = vadd.f32 %v13784_v31, %v1219_v50  ;;  %v2348_v17 = vadd.f32 %v13905_v19, %v13840_v49  ;;  %v10241_v60 = vld [vmem:[%s17633_s5 + $0x8b8] sm:$0xff]  ;;  %v10240_v31 = vld [vmem:[%s17633_s5 + $0x8b0] sm:$0xff]  ;;  %v10239_v19 = vld [vmem:[%s17633_s5 + $0x8a8] sm:$0xff] }
 0x3fa   :  { %2952 = vmatpush2.msra.mxu1 %v10148_v40  ;;  %2719 = vmatpush2.msra.mxu0 %v2416_v44  ;;  %v2352_v53 = vadd.f32 %v13929_v61, %v2022_v26  ;;  %v2398_v40 = vld [vmem:[%s17633_s5 + $0x100] sm:$0xff]  ;;  %v11770_v44 = vpop.f32.mrf.mxu0  ;;  %v17673_v61 = vld [vmem:[#allocation5_spill] sm:$0xff] }
 0x3fb   :  { %2953 = vmatprep.subr.mxu1 %v10147_v28  ;;  %2720 = vmatprep.subr.mxu0 %v2415_v11  ;;  %v2010_v49 = vadd.f32 %v13828_v51, %v1684_v57  ;;  %v17674_v28 = vld [vmem:[#allocation10_spill] sm:$0xff]  ;;  %v10169_v51 = vld [vmem:[%s17633_s5 + $0x688] sm:$0xff] }
 0x3fc   :  { %2954 = vmatpush2.msra.mxu1 %v10146_v5  ;;  %2721 = vmatpush2.msra.mxu0 %v2414_v41  ;;  %v1366_v11 = vadd.f32 %v17674_v28, %v17673_v61  ;;  %v2351_v41 = vadd.f32 %v13918_v34, %v13848_v13  ;;  %v10237_v13 = vld [vmem:[%s17633_s5 + $0x898] sm:$0xff]  ;;  %v17675_v34 = vld [vmem:[#allocation19_spill] sm:$0xff]  ;;  %v17684_v57 = vld [vmem:[#allocation2_spill] sm:$0xff] }
 0x3fd   :  { %2955 = vmatprep.subr.mxu1 %v10145_v42  ;;  %2722 = vmatprep.subr.mxu0 %v2413_v7  ;;  %v2340_v5 = vadd.f32 %v13872_v43, %v2010_v49  ;;  %v10238_v42 = vld [vmem:[%s17633_s5 + $0x8a0] sm:$0xff]  ;;  %v10200_v49 = vld [vmem:[%s17633_s5 + $0x770] sm:$0xff]  ;;  %v10199_v28 = vld [vmem:[%s17633_s5 + $0x768] sm:$0xff] }
 0x3fe   :  { %2956 = vmatpush2.msra.mxu1 %v10144_v10  ;;  %2723 = vmatpush2.msra.mxu0 %v2412_v0  ;;  %v10168_v43 = vld [vmem:[%s17633_s5 + $0x680] sm:$0xff]  ;;  %v1700_v7 = vadd.f32 %v17675_v34, %v1366_v11  ;;  %v10167_v10 = vld [vmem:[%s17633_s5 + $0x678] sm:$0xff]  ;;  %v14377_v0 = vpop.f32.mrf.mxu1 }
 0x3ff   :  { %2957 = vmatprep.subr.mxu1 %v10143_v59  ;;  %2724 = vmatprep.subr.mxu0 %v2411_v35  ;;  %v2317_v59 = vpop.f32.mrf.mxu0  ;;  %v17676_v35 = vld [vmem:[#allocation3_spill] sm:$0xff]  ;;  %v10268_v11 = vld [vmem:[%s17633_s5 + $0x980] sm:$0xff]  ;;  %v10197_v34 = vld [vmem:[%s17633_s5 + $0x758] sm:$0xff] }
 0x400   :  { %2958 = vmatpush2.msra.mxu1 %v10142_v38  ;;  %2725 = vmatpush2.msra.mxu0 %v2410_v48  ;;  %v17677_v38 = vld [vmem:[#allocation9_spill] sm:$0xff] }
 0x401   :  { %2959 = vmatprep.subr.mxu1 %v10141_v54  ;;  %2726 = vmatprep.subr.mxu0 %v2409_v24  ;;  %v1356_v48 = vadd.f32 %v17677_v38, %v17676_v35  ;;  %v17678_v54 = vld [vmem:[#allocation26_spill] sm:$0xff]  ;;  %v10263_v38 = vld [vmem:[%s17633_s5 + $0x958] sm:$0xff] }
 0x402   :  { %2960 = vmatpush2.msra.mxu1 %v10140_v6  ;;  %2727 = vmatpush2.msra.mxu0 %v2408_v29  ;;  %v2026_v24 = vadd.f32 %v17678_v54, %v1700_v7  ;;  %v10166_v6 = vld [vmem:[%s17633_s5 + $0x670] sm:$0xff]  ;;  %v10275_v29 = vld [vmem:[%s17633_s5 + $0x9b8] sm:$0xff]  ;;  %v10194_v35 = vld [vmem:[%s17633_s5 + $0x740] sm:$0xff] }
 0x403   :  { %2961 = vmatprep.subr.mxu1 %v10139_v9  ;;  %2728 = vmatprep.subr.mxu0 %v2407_v25  ;;  %v10165_v9 = vld [vmem:[%s17633_s5 + $0x668] sm:$0xff]  ;;  %v17679_v25 = vld [vmem:[#allocation17_spill] sm:$0xff]  ;;  %v10262_v54 = vld [vmem:[%s17633_s5 + $0x950] sm:$0xff] }
 0x404   :  { %2962 = vmatpush2.msra.mxu1 %v10138_v32  ;;  %2729 = vmatpush2.msra.mxu0 %v2406_v39  ;;  %v1694_v32 = vadd.f32 %v17679_v25, %v1356_v48  ;;  %v2356_v39 = vadd.f32 %v2317_v59, %v2026_v24  ;;  %v10264_v59 = vld [vmem:[%s17633_s5 + $0x960] sm:$0xff]  ;;  %v10193_v48 = vld [vmem:[%s17633_s5 + $0x738] sm:$0xff]  ;;  %v10192_v24 = vld [vmem:[%s17633_s5 + $0x730] sm:$0xff] }
 0x405   :  { %2963 = vmatprep.subr.mxu1 %v10137_v21  ;;  %2730 = vmatprep.subr.mxu0 %v2405_v16  ;;  %v10274_v21 = vld [vmem:[%s17633_s5 + $0x9b0] sm:$0xff]  ;;  %v10164_v16 = vld [vmem:[%s17633_s5 + $0x660] sm:$0xff] }
 0x406   :  { %2964 = vmatpush2.msra.mxu1 %v10136_v55  ;;  %2731 = vmatpush2.msra.mxu0 %v2404_v22  ;;  %v14400_v55 = vpop.f32.mrf.mxu1  ;;  %v10273_v22 = vld [vmem:[%s17633_s5 + $0x9a8] sm:$0xff]  ;;  %v10190_v25 = vld [vmem:[%s17633_s5 + $0x720] sm:$0xff] }
 0x407   :  { %2965 = vmatprep.subr.mxu1 %v10135_v56  ;;  %2732 = vmatprep.subr.mxu0 %v2403_v37  ;;  %v17682_v37 = vld [vmem:[#allocation24_spill] sm:$0xff] }
 0x408   :  { %2966 = vmatpush2.msra.mxu1 %v10134_v8  ;;  %2733 = vmatpush2.msra.mxu0 %v2402_v33  ;;  %v2020_v8 = vadd.f32 %v17682_v37, %v1694_v32  ;;  %v10203_v33 = vld [vmem:[%s17633_s5 + $0x788] sm:$0xff]  ;;  %v2212_v26 = vpop.f32.mrf.mxu1  ;;  %v10259_v32 = vld [vmem:[%s17633_s5 + $0x938] sm:$0xff] }
 0x409   :  { %2967 = vmatprep.subr.mxu1 %v10133_v30  ;;  %2734 = vmatprep.subr.mxu0 %v2401_v58  ;;  %v17683_v30 = vld [vmem:[#allocation20_spill] sm:$0xff]  ;;  %v10255_v37 = vld [vmem:[%s17633_s5 + $0x918] sm:$0xff] }
 0x40a   :  { %2968 = vmatpush2.msra.mxu1 %v10132_v2  ;;  %2735 = vmatpush2.msra.mxu0 %v2400_v3  ;;  %v2350_v50 = vadd.f32 %v14330_v47, %v2020_v8  ;;  %v10202_v2 = vld [vmem:[%s17633_s5 + $0x780] sm:$0xff]  ;;  %v10271_v3 = vld [vmem:[%s17633_s5 + $0x998] sm:$0xff]  ;;  %v17685_v47 = vld [vmem:[#allocation12_spill] sm:$0xff] }
 0x40b   :  { %2970 = vmatmul.mubr.f32.vlgmr.msra.gmra.mxu1 %v2348_v17  ;;  %2736 = vmatprep.subr.mxu0 %v2399_v23  ;;  %v10201_v23 = vld [vmem:[%s17633_s5 + $0x778] sm:$0xff]  ;;  %v1249_v17 = vadd.f32 %v17685_v47, %v17684_v57  ;;  %v10180_v57 = vld [vmem:[%s17633_s5 + $0x6d0] sm:$0xff]  ;;  %v10249_v47 = vld [vmem:[%s17633_s5 + $0x8e8] sm:$0xff] }
 0x40c   :  { %2975 = vmatprep.mubr.f32.mxu1 %v2352_v53  ;;  %3243 = vmatprep.subr.mxu1 %v10241_v60  ;;  %v17686_v53 = vld [vmem:[#allocation25_spill] sm:$0xff] }
 0x40d   :  { %2737 = vmatpush2.msra.mxu0 %v2398_v40  ;;  %3244 = vmatpush1.msra.mxu1 %v10240_v31  ;;  %v2359_v40 = vadd.f32 %v11770_v44, %v17686_v53  ;;  %v10270_v31 = vld [vmem:[%s17633_s5 + $0x990] sm:$0xff]  ;;  %v10185_v8 = vld [vmem:[%s17633_s5 + $0x6f8] sm:$0xff]  ;;  %v10178_v53 = vld [vmem:[%s17633_s5 + $0x6c0] sm:$0xff] }
 0x40e   :  { %2739 = vmatmul.mubr.f32.vlgmr.msra.gmra.mxu0 %v13858_v46  ;;  %3245 = vmatprep.subr.mxu1 %v10239_v19  ;;  %v10236_v46 = vld [vmem:[%s17633_s5 + $0x890] sm:$0xff] }
 0x40f   :  { %2744 = vmatprep.mubr.f32.mxu0 %v2340_v5  ;;  %2976 = vmatmul.mubr.f32.gmra.mxu1 %v2351_v41  ;;  %v17687_v19 = vld [vmem:[#allocation16_spill] sm:$0xff]  ;;  %v17688_v5 = vld [vmem:[#allocation29_spill] sm:$0xff] }
 0x410   :  { %3008 = vmatprep.subr.mxu0 %v10169_v51  ;;  %3246 = vmatpush1.msra.mxu1 %v10238_v42  ;;  %v1699_v44 = vadd.f32 %v17687_v19, %v1249_v17  ;;  %v17689_v51 = vld [vmem:[#allocation23_spill] sm:$0xff] }
 0x411   :  { %3009 = vmatpush1.msra.mxu0 %v10168_v43  ;;  %3247 = vmatprep.subr.mxu1 %v10237_v13  ;;  %v2353_v42 = vadd.f32 %v14300_v14, %v17689_v51  ;;  %v10198_v43 = vld [vmem:[%s17633_s5 + $0x760] sm:$0xff]  ;;  %v10267_v13 = vld [vmem:[%s17633_s5 + $0x978] sm:$0xff]  ;;  %v10266_v14 = vld [vmem:[%s17633_s5 + $0x970] sm:$0xff] }
 0x412   :  { %3010 = vmatprep.subr.mxu0 %v10167_v10  ;;  %3248 = vmatpush1.msra.mxu1 %v10236_v46  ;;  %v2025_v41 = vadd.f32 %v17688_v5, %v1699_v44  ;;  %v10196_v10 = vld [vmem:[%s17633_s5 + $0x750] sm:$0xff]  ;;  %v10265_v46 = vld [vmem:[%s17633_s5 + $0x968] sm:$0xff]  ;;  %v10173_v5 = vld [vmem:[%s17633_s5 + $0x698] sm:$0xff] }
 0x413   :  { %2745 = vmatmul.mubr.f32.gmra.mxu0 %v13868_v36  ;;  %3281 = vmatprep.mubr.f32.mxu1 %v17672_v12  ;;  %v17681_v36 = vld [vmem:[#allocation14_spill] sm:$0xff]  ;;  %v10179_v17 = vld [vmem:[%s17633_s5 + $0x6c8] sm:$0xff]  ;;  %v10172_v51 = vld [vmem:[%s17633_s5 + $0x690] sm:$0xff] }
 0x414   :  { %3011 = vmatpush1.msra.mxu0 %v10166_v6  ;;  %3375 = vmatprep.subr.mxu1 %v10275_v29  ;;  %v1261_v56 = vadd.f32 %v17681_v36, %v17680_v27  ;;  %v2355_v7 = vadd.f32 %v13961_v52, %v2025_v41  ;;  %v10195_v52 = vld [vmem:[%s17633_s5 + $0x748] sm:$0xff]  ;;  %v10256_v36 = vld [vmem:[%s17633_s5 + $0x920] sm:$0xff]  ;;  %v10306_v41 = vld [vmem:[%s17633_s5 + $0xab0] sm:$0xff] }
 0x415   :  { %3012 = vmatprep.subr.mxu0 %v10165_v9  ;;  %10242 = vmatmul.mubr.msk.f32.vlgmr.msra.gmra.mxu1 %vm2507_vm11, %v2356_v39  ;;  %v10261_v6 = vld [vmem:[%s17633_s5 + $0x948] sm:$0xff]  ;;  %v10260_v9 = vld [vmem:[%s17633_s5 + $0x940] sm:$0xff]  ;;  %v10189_v39 = vld [vmem:[%s17633_s5 + $0x718] sm:$0xff] }
 0x416   :  { %3376 = vmatpush1.msra.mxu1 %v10274_v21  ;;  %3013 = vmatpush1.msra.mxu0 %v10164_v16  ;;  %v1705_v58 = vadd.f32 %v17683_v30, %v1261_v56  ;;  %v10191_v29 = vld [vmem:[%s17633_s5 + $0x728] sm:$0xff]  ;;  %v10258_v21 = vld [vmem:[%s17633_s5 + $0x930] sm:$0xff]  ;;  %v10186_v56 = vld [vmem:[%s17633_s5 + $0x700] sm:$0xff] }
 0x417   :  { %3377 = vmatprep.subr.mxu1 %v10273_v22  ;;  %3046 = vmatprep.mubr.f32.mxu0 %v17672_v12  ;;  %v10188_v16 = vld [vmem:[%s17633_s5 + $0x710] sm:$0xff]  ;;  %v10257_v22 = vld [vmem:[%s17633_s5 + $0x928] sm:$0xff] }
 0x418   :  { %3140 = vmatprep.subr.mxu0 %v10203_v33  ;;  %3378 = vmatpush1.msra.mxu1 %v10272_v20  ;;  %v2031_v60 = vadd.f32 %v13881_v63, %v1705_v58  ;;  %v10269_v63 = vld [vmem:[%s17633_s5 + $0x988] sm:$0xff]  ;;  %v10254_v33 = vld [vmem:[%s17633_s5 + $0x910] sm:$0xff] }
 0x419   :  { %10170 = vmatmul.mubr.msk.f32.vlgmr.msra.gmra.mxu0 %vm2507_vm11, %v2350_v50  ;;  %3287 = vmatprep.mubr.f32.mxu1 %v17672_v12  ;;  %v10187_v27 = vld [vmem:[%s17633_s5 + $0x708] sm:$0xff]  ;;  %v10184_v20 = vld [vmem:[%s17633_s5 + $0x6f0] sm:$0xff]  ;;  %v10252_v50 = vld [vmem:[%s17633_s5 + $0x900] sm:$0xff] }
 0x41a   :  { %3141 = vmatpush1.msra.mxu0 %v10202_v2  ;;  %3379 = vmatprep.subr.mxu1 %v10271_v3  ;;  %v2361_v61 = vadd.f32 %v2212_v26, %v2031_v60  ;;  %v10253_v30 = vld [vmem:[%s17633_s5 + $0x908] sm:$0xff]  ;;  %v10182_v2 = vld [vmem:[%s17633_s5 + $0x6e0] sm:$0xff]  ;;  %v10251_v3 = vld [vmem:[%s17633_s5 + $0x8f8] sm:$0xff] }
 0x41b   :  { %3142 = vmatprep.subr.mxu0 %v10201_v23  ;;  %10243 = vmatmul.mubr.msk.f32.gmra.mxu1 %vm2507_vm11, %v2359_v40  ;;  %v10183_v58 = vld [vmem:[%s17633_s5 + $0x6e8] sm:$0xff]  ;;  %v10181_v26 = vld [vmem:[%s17633_s5 + $0x6d8] sm:$0xff]  ;;  %v10250_v23 = vld [vmem:[%s17633_s5 + $0x8f0] sm:$0xff] }
 0x41c   :  { %3380 = vmatpush1.msra.mxu1 %v10270_v31  ;;  %3143 = vmatpush1.msra.mxu0 %v10200_v49  ;;  %v10248_v60 = vld [vmem:[%s17633_s5 + $0x8e0] sm:$0xff]  ;;  %v10247_v40 = vld [vmem:[%s17633_s5 + $0x8d8] sm:$0xff]  ;;  %v10246_v49 = vld [vmem:[%s17633_s5 + $0x8d0] sm:$0xff] }
 0x41d   :  { %3381 = vmatprep.subr.mxu1 %v10269_v63  ;;  %3439 = vmatprep.mubr.f32.mxu1 %v2361_v61  ;;  %v10177_v31 = vld [vmem:[%s17633_s5 + $0x6b8] sm:$0xff]  ;;  %v10176_v63 = vld [vmem:[%s17633_s5 + $0x6b0] sm:$0xff]  ;;  %v10245_v19 = vld [vmem:[%s17633_s5 + $0x8c8] sm:$0xff] }
 0x41e   :  { %3052 = vmatprep.mubr.f32.mxu0 %v17672_v12  ;;  %3144 = vmatprep.subr.mxu0 %v10199_v28  ;;  %v10175_v44 = vld [vmem:[%s17633_s5 + $0x6a8] sm:$0xff]  ;;  %v10244_v61 = vld [vmem:[%s17633_s5 + $0x8c0] sm:$0xff] }
 0x41f   :  { %3382 = vmatpush1.msra.mxu1 %v10268_v11  ;;  %10171 = vmatmul.mubr.msk.f32.gmra.mxu0 %vm2507_vm11, %v2353_v42  ;;  %v10174_v28 = vld [vmem:[%s17633_s5 + $0x6a0] sm:$0xff]  ;;  %v10307_v11 = vld [vmem:[%s17633_s5 + $0xab8] sm:$0xff]  ;;  %v10305_v42 = vld [vmem:[%s17633_s5 + $0xaa8] sm:$0xff] }
 0x420   :  { %3145 = vmatpush1.msra.mxu0 %v10198_v43  ;;  %3383 = vmatprep.subr.mxu1 %v10267_v13  ;;  %v10235_v43 = vld [vmem:[%s17633_s5 + $0x888] sm:$0xff]  ;;  %v10304_v13 = vld [vmem:[%s17633_s5 + $0xaa0] sm:$0xff] }
 0x421   :  { %3146 = vmatprep.subr.mxu0 %v10197_v34  ;;  %3204 = vmatprep.mubr.f32.mxu0 %v2355_v7  ;;  %v10234_v34 = vld [vmem:[%s17633_s5 + $0x880] sm:$0xff]  ;;  %v10303_v7 = vld [vmem:[%s17633_s5 + $0xa98] sm:$0xff] }
 0x422   :  { %3384 = vmatpush1.msra.mxu1 %v10266_v14  ;;  %3147 = vmatpush1.msra.mxu0 %v10196_v10  ;;  %v10233_v14 = vld [vmem:[%s17633_s5 + $0x878] sm:$0xff]  ;;  %v10302_v10 = vld [vmem:[%s17633_s5 + $0xa90] sm:$0xff] }
 0x423   :  { %3385 = vmatprep.subr.mxu1 %v10265_v46  ;;  %3148 = vmatprep.subr.mxu0 %v10195_v52  ;;  %v10232_v46 = vld [vmem:[%s17633_s5 + $0x870] sm:$0xff]  ;;  %v10301_v52 = vld [vmem:[%s17633_s5 + $0xa88] sm:$0xff] }
 0x424   :  { %3386 = vmatpush1.msra.mxu1 %v10264_v59  ;;  %3149 = vmatpush1.msra.mxu0 %v10194_v35  ;;  %v10231_v59 = vld [vmem:[%s17633_s5 + $0x868] sm:$0xff]  ;;  %v10300_v35 = vld [vmem:[%s17633_s5 + $0xa80] sm:$0xff] }
 0x425   :  { %3387 = vmatprep.subr.mxu1 %v10263_v38  ;;  %3150 = vmatprep.subr.mxu0 %v10193_v48  ;;  %v10230_v38 = vld [vmem:[%s17633_s5 + $0x860] sm:$0xff]  ;;  %v10299_v48 = vld [vmem:[%s17633_s5 + $0xa78] sm:$0xff] }
 0x426   :  { %3388 = vmatpush1.msra.mxu1 %v10262_v54  ;;  %3151 = vmatpush1.msra.mxu0 %v10192_v24  ;;  %v10229_v54 = vld [vmem:[%s17633_s5 + $0x858] sm:$0xff]  ;;  %v10298_v24 = vld [vmem:[%s17633_s5 + $0xa70] sm:$0xff] }
 0x427   :  { %3389 = vmatprep.subr.mxu1 %v10261_v6  ;;  %3152 = vmatprep.subr.mxu0 %v10191_v29  ;;  %v10228_v6 = vld [vmem:[%s17633_s5 + $0x850] sm:$0xff]  ;;  %v10297_v29 = vld [vmem:[%s17633_s5 + $0xa68] sm:$0xff] }
 0x428   :  { %3390 = vmatpush1.msra.mxu1 %v10260_v9  ;;  %3153 = vmatpush1.msra.mxu0 %v10190_v25  ;;  %v10227_v9 = vld [vmem:[%s17633_s5 + $0x848] sm:$0xff]  ;;  %v10296_v25 = vld [vmem:[%s17633_s5 + $0xa60] sm:$0xff] }
 0x429   :  { %3391 = vmatprep.subr.mxu1 %v10259_v32  ;;  %3154 = vmatprep.subr.mxu0 %v10189_v39  ;;  %v10226_v32 = vld [vmem:[%s17633_s5 + $0x840] sm:$0xff]  ;;  %v10295_v39 = vld [vmem:[%s17633_s5 + $0xa58] sm:$0xff] }
 0x42a   :  { %3392 = vmatpush1.msra.mxu1 %v10258_v21  ;;  %3155 = vmatpush1.msra.mxu0 %v10188_v16  ;;  %v10225_v21 = vld [vmem:[%s17633_s5 + $0x838] sm:$0xff]  ;;  %v10294_v16 = vld [vmem:[%s17633_s5 + $0xa50] sm:$0xff] }
 0x42b   :  { %3393 = vmatprep.subr.mxu1 %v10257_v22  ;;  %3156 = vmatprep.subr.mxu0 %v10187_v27  ;;  %v10224_v22 = vld [vmem:[%s17633_s5 + $0x830] sm:$0xff]  ;;  %v10293_v27 = vld [vmem:[%s17633_s5 + $0xa48] sm:$0xff] }
 0x42c   :  { %3394 = vmatpush1.msra.mxu1 %v10256_v36  ;;  %3157 = vmatpush1.msra.mxu0 %v10186_v56  ;;  %v10223_v36 = vld [vmem:[%s17633_s5 + $0x828] sm:$0xff]  ;;  %v10292_v56 = vld [vmem:[%s17633_s5 + $0xa40] sm:$0xff] }
 0x42d   :  { %3395 = vmatprep.subr.mxu1 %v10255_v37  ;;  %3158 = vmatprep.subr.mxu0 %v10185_v8  ;;  %v10222_v37 = vld [vmem:[%s17633_s5 + $0x820] sm:$0xff]  ;;  %v10291_v8 = vld [vmem:[%s17633_s5 + $0xa38] sm:$0xff] }
 0x42e   :  { %3396 = vmatpush1.msra.mxu1 %v10254_v33  ;;  %3159 = vmatpush1.msra.mxu0 %v10184_v20  ;;  %v10221_v33 = vld [vmem:[%s17633_s5 + $0x818] sm:$0xff]  ;;  %v10290_v20 = vld [vmem:[%s17633_s5 + $0xa30] sm:$0xff] }
 0x42f   :  { %3397 = vmatprep.subr.mxu1 %v10253_v30  ;;  %3160 = vmatprep.subr.mxu0 %v10183_v58  ;;  %v10220_v30 = vld [vmem:[%s17633_s5 + $0x810] sm:$0xff]  ;;  %v10289_v58 = vld [vmem:[%s17633_s5 + $0xa28] sm:$0xff] }
 0x430   :  { %3398 = vmatpush1.msra.mxu1 %v10252_v50  ;;  %3161 = vmatpush1.msra.mxu0 %v10182_v2  ;;  %v10219_v50 = vld [vmem:[%s17633_s5 + $0x808] sm:$0xff]  ;;  %v10288_v2 = vld [vmem:[%s17633_s5 + $0xa20] sm:$0xff] }
 0x431   :  { %3399 = vmatprep.subr.mxu1 %v10251_v3  ;;  %3162 = vmatprep.subr.mxu0 %v10181_v26  ;;  %v10218_v3 = vld [vmem:[%s17633_s5 + $0x800] sm:$0xff]  ;;  %v10287_v26 = vld [vmem:[%s17633_s5 + $0xa18] sm:$0xff] }
 0x432   :  { %3400 = vmatpush1.msra.mxu1 %v10250_v23  ;;  %3163 = vmatpush1.msra.mxu0 %v10180_v57  ;;  %v10217_v23 = vld [vmem:[%s17633_s5 + $0x7f8] sm:$0xff]  ;;  %v10286_v57 = vld [vmem:[%s17633_s5 + $0xa10] sm:$0xff] }
 0x433   :  { %3401 = vmatprep.subr.mxu1 %v10249_v47  ;;  %3164 = vmatprep.subr.mxu0 %v10179_v17  ;;  %v10216_v47 = vld [vmem:[%s17633_s5 + $0x7f0] sm:$0xff]  ;;  %v10285_v17 = vld [vmem:[%s17633_s5 + $0xa08] sm:$0xff] }
 0x434   :  { %3402 = vmatpush1.msra.mxu1 %v10248_v60  ;;  %3165 = vmatpush1.msra.mxu0 %v10178_v53  ;;  %v10215_v60 = vld [vmem:[%s17633_s5 + $0x7e8] sm:$0xff]  ;;  %v10284_v53 = vld [vmem:[%s17633_s5 + $0xa00] sm:$0xff] }
 0x435   :  { %3403 = vmatprep.subr.mxu1 %v10247_v40  ;;  %3166 = vmatprep.subr.mxu0 %v10177_v31  ;;  %v10214_v40 = vld [vmem:[%s17633_s5 + $0x7e0] sm:$0xff]  ;;  %v10283_v31 = vld [vmem:[%s17633_s5 + $0x9f8] sm:$0xff] }
 0x436   :  { %3404 = vmatpush1.msra.mxu1 %v10246_v49  ;;  %3167 = vmatpush1.msra.mxu0 %v10176_v63  ;;  %v10213_v49 = vld [vmem:[%s17633_s5 + $0x7d8] sm:$0xff]  ;;  %v10282_v63 = vld [vmem:[%s17633_s5 + $0x9f0] sm:$0xff] }
 0x437   :  { %3405 = vmatprep.subr.mxu1 %v10245_v19  ;;  %3168 = vmatprep.subr.mxu0 %v10175_v44  ;;  %v10212_v19 = vld [vmem:[%s17633_s5 + $0x7d0] sm:$0xff]  ;;  %v10281_v44 = vld [vmem:[%s17633_s5 + $0x9e8] sm:$0xff] }
 0x438   :  { %3406 = vmatpush1.msra.mxu1 %v10244_v61  ;;  %3169 = vmatpush1.msra.mxu0 %v10174_v28  ;;  %v10211_v61 = vld [vmem:[%s17633_s5 + $0x7c8] sm:$0xff]  ;;  %v2216_v28 = vpop.f32.mrf.mxu1 }
 0x439   :  { %3407 = vmatprep.subr.mxu1 %v10307_v11  ;;  %3170 = vmatprep.subr.mxu0 %v10173_v5  ;;  %v10280_v11 = vld [vmem:[%s17633_s5 + $0x9e0] sm:$0xff] }
 0x43a   :  { %3408 = vmatpush2.msra.mxu1 %v10306_v41  ;;  %3171 = vmatpush1.msra.mxu0 %v10172_v51  ;;  %v10210_v5 = vld [vmem:[%s17633_s5 + $0x7c0] sm:$0xff]  ;;  %v17690_v41 = vld [vmem:[#allocation8_spill] sm:$0xff]  ;;  %v17691_v51 = vld [vmem:[#allocation15_spill] sm:$0xff] }
 0x43b   :  { %3409 = vmatprep.subr.mxu1 %v10305_v42  ;;  %3172 = vmatprep.subr.mxu0 %v10235_v43  ;;  %v1267_v42 = vadd.f32 %v17691_v51, %v17690_v41  ;;  %v10279_v43 = vld [vmem:[%s17633_s5 + $0x9d8] sm:$0xff] }
 0x43c   :  { %3410 = vmatpush2.msra.mxu1 %v10304_v13  ;;  %3173 = vmatpush2.msra.mxu0 %v10234_v34  ;;  %v10209_v13 = vld [vmem:[%s17633_s5 + $0x7b8] sm:$0xff]  ;;  %v10278_v34 = vld [vmem:[%s17633_s5 + $0x9d0] sm:$0xff] }
 0x43d   :  { %3411 = vmatprep.subr.mxu1 %v10303_v7  ;;  %3174 = vmatprep.subr.mxu0 %v10233_v14  ;;  %v10208_v7 = vld [vmem:[%s17633_s5 + $0x7b0] sm:$0xff] }
 0x43e   :  { %3412 = vmatpush2.msra.mxu1 %v10302_v10  ;;  %3175 = vmatpush2.msra.mxu0 %v10232_v46  ;;  %v17692_v14 = vld [vmem:[#allocation4_spill] sm:$0xff]  ;;  %v17693_v10 = vld [vmem:[#allocation13_spill] sm:$0xff] }
 0x43f   :  { %3413 = vmatprep.subr.mxu1 %v10301_v52  ;;  %3176 = vmatprep.subr.mxu0 %v10231_v59  ;;  %v1255_v46 = vadd.f32 %v17693_v10, %v17692_v14  ;;  %v17694_v52 = vld [vmem:[#allocation22_spill] sm:$0xff] }
 0x440   :  { %3414 = vmatpush2.msra.mxu1 %v10300_v35  ;;  %3177 = vmatpush2.msra.mxu0 %v10230_v38  ;;  %v1708_v59 = vadd.f32 %v17694_v52, %v1267_v42  ;;  %v10277_v35 = vld [vmem:[%s17633_s5 + $0x9c8] sm:$0xff] }
 0x441   :  { %3415 = vmatprep.subr.mxu1 %v10299_v48  ;;  %3178 = vmatprep.subr.mxu0 %v10229_v54  ;;  %v10207_v38 = vld [vmem:[%s17633_s5 + $0x7a8] sm:$0xff]  ;;  %v2218_v48 = vpop.f32.mrf.mxu1  ;;  %v10276_v54 = vld [vmem:[%s17633_s5 + $0x9c0] sm:$0xff] }
 0x442   :  { %3416 = vmatpush2.msra.mxu1 %v10298_v24  ;;  %3179 = vmatpush2.msra.mxu0 %v10228_v6  ;;  %v10206_v24 = vld [vmem:[%s17633_s5 + $0x7a0] sm:$0xff] }
 0x443   :  { %3417 = vmatprep.subr.mxu1 %v10297_v29  ;;  %3180 = vmatprep.subr.mxu0 %v10227_v9  ;;  %v17695_v6 = vld [vmem:[#allocation18_spill] sm:$0xff]  ;;  %v2034_v9 = vadd.f32 %v13896_v4, %v1708_v59  ;;  %v10313_v4 = vld [vmem:[%s17633_s5 + $0xae8] sm:$0xff] }
 0x444   :  { %3418 = vmatpush2.msra.mxu1 %v10296_v25  ;;  %3181 = vmatpush2.msra.mxu0 %v10226_v32  ;;  %v1702_v29 = vadd.f32 %v17695_v6, %v1255_v46  ;;  %v10205_v25 = vld [vmem:[%s17633_s5 + $0x798] sm:$0xff]  ;;  %v2360_v32 = vadd.f32 %v14400_v55, %v13879_v15  ;;  %v10312_v15 = vld [vmem:[%s17633_s5 + $0xae0] sm:$0xff] }
 0x445   :  { %3419 = vmatprep.subr.mxu1 %v10295_v39  ;;  %3182 = vmatprep.subr.mxu0 %v10225_v21  ;;  %v10204_v39 = vld [vmem:[%s17633_s5 + $0x790] sm:$0xff] }
 0x446   :  { %3420 = vmatpush2.msra.mxu1 %v10294_v16  ;;  %3183 = vmatpush2.msra.mxu0 %v10224_v22  ;;  %v2028_v21 = vadd.f32 %v13870_v62, %v1702_v29  ;;  %v2364_v16 = vadd.f32 %v2218_v48, %v2034_v9  ;;  %v11773_v22 = vpop.f32.mrf.mxu0  ;;  %v10311_v62 = vld [vmem:[%s17633_s5 + $0xad8] sm:$0xff] }
 0x447   :  { %3421 = vmatprep.subr.mxu1 %v10293_v27  ;;  %3184 = vmatprep.subr.mxu0 %v10223_v36  ;;  %v17696_v27 = vld [vmem:[#allocation7_spill] sm:$0xff] }
 0x448   :  { %3422 = vmatpush2.msra.mxu1 %v10292_v56  ;;  %3185 = vmatpush2.msra.mxu0 %v10222_v37  ;;  %v2358_v55 = vadd.f32 %v14377_v0, %v2028_v21  ;;  %v17697_v36 = vld [vmem:[#allocation11_spill] sm:$0xff]  ;;  %v2363_v37 = vadd.f32 %v2216_v28, %v13891_v18  ;;  %v10308_v18 = vld [vmem:[%s17633_s5 + $0xac0] sm:$0xff] }
 0x449   :  { %3423 = vmatprep.subr.mxu1 %v10291_v8  ;;  %3186 = vmatprep.subr.mxu0 %v10221_v33  ;;  %v1376_v56 = vadd.f32 %v17697_v36, %v17696_v27  ;;  %v10310_v8 = vld [vmem:[%s17633_s5 + $0xad0] sm:$0xff]  ;;  %v10309_v0 = vld [vmem:[%s17633_s5 + $0xac8] sm:$0xff]  ;;  %v17698_v33 = vld [vmem:[#allocation21_spill] sm:$0xff]  ;;  %s12610_s5 = smov 78  }
 0x44a   :  { %3424 = vmatpush2.msra.mxu1 %v10290_v20  ;;  %3187 = vmatpush2.msra.mxu0 %v10220_v30  ;;  %v17699_v30 = vld [vmem:[#allocation28_spill] sm:$0xff] }
 0x44b   :  { %3425 = vmatprep.subr.mxu1 %v10289_v58  ;;  %3188 = vmatprep.subr.mxu0 %v10219_v50  ;;  %v1706_v20 = vadd.f32 %v17698_v33, %v1376_v56 }
 0x44c   :  { %3426 = vmatpush2.msra.mxu1 %v10288_v2  ;;  %3189 = vmatpush2.msra.mxu0 %v10218_v3  ;;  %v17700_v2 = vld [vmem:[#allocation27_spill] sm:$0xff] }
 0x44d   :  { %3427 = vmatprep.subr.mxu1 %v10287_v26  ;;  %3190 = vmatprep.subr.mxu0 %v10217_v23  ;;  %v2032_v58 = vadd.f32 %v17699_v30, %v1706_v20  ;;  %v2365_v3 = vadd.f32 %v11773_v22, %v17700_v2 }
 0x44e   :  { %3428 = vmatpush2.msra.mxu1 %v10286_v57  ;;  %3191 = vmatpush2.msra.mxu0 %v10216_v47 }
 0x44f   :  { %3429 = vmatprep.subr.mxu1 %v10285_v17  ;;  %3192 = vmatprep.subr.mxu0 %v10215_v60 }
 0x450   :  { %3430 = vmatpush2.msra.mxu1 %v10284_v53  ;;  %3193 = vmatpush2.msra.mxu0 %v10214_v40 }
 0x451   :  { %3431 = vmatprep.subr.mxu1 %v10283_v31  ;;  %3194 = vmatprep.subr.mxu0 %v10213_v49 }
 0x452   :  { %3432 = vmatpush2.msra.mxu1 %v10282_v63  ;;  %3195 = vmatpush2.msra.mxu0 %v10212_v19 }
 0x453   :  { %3433 = vmatprep.subr.mxu1 %v10281_v44  ;;  %3196 = vmatprep.subr.mxu0 %v10211_v61 }
 0x454   :  { %3434 = vmatpush2.msra.mxu1 %v10280_v11  ;;  %3197 = vmatpush2.msra.mxu0 %v10210_v5 }
 0x455   :  { %3435 = vmatprep.subr.mxu1 %v10279_v43  ;;  %3198 = vmatprep.subr.mxu0 %v10209_v13 }
 0x456   :  { %3436 = vmatpush2.msra.mxu1 %v10278_v34  ;;  %3199 = vmatpush2.msra.mxu0 %v10208_v7 }
 0x457   :  { %3437 = vmatprep.subr.mxu1 %v10277_v35  ;;  %3200 = vmatprep.subr.mxu0 %v10207_v38 }
 0x458   :  { %3438 = vmatpush2.msra.mxu1 %v10276_v54  ;;  %3201 = vmatpush2.msra.mxu0 %v10206_v24 }
 0x459   :  { %3440 = vmatmul.mubr.f32.vlgmr.msra.gmra.mxu1 %v2360_v32  ;;  %3202 = vmatprep.subr.mxu0 %v10205_v25 }
 0x45a   :  { %3445 = vmatprep.mubr.f32.mxu1 %v2364_v16  ;;  %3203 = vmatpush2.msra.mxu0 %v10204_v39 }
 0x45b   :  { %3205 = vmatmul.mubr.f32.vlgmr.msra.gmra.mxu0 %v13952_v1  ;;  %3478 = vmatprep.subr.mxu0 %v10313_v4  ;;  %v2327_v1 = vpop.f32.mrf.mxu0 }
 0x45c   :  { %3210 = vmatprep.mubr.f32.mxu0 %v2358_v55  ;;  %3479 = vmatpush1.msra.mxu0 %v10312_v15  ;;  %v2362_v50 = vadd.f32 %v2327_v1, %v2032_v58 }
 0x45d   :  { %3446 = vmatmul.mubr.f32.gmra.mxu1 %v2363_v37  ;;  %3480 = vmatprep.subr.mxu0 %v10311_v62 }
 0x45e   :  { %3481 = vmatpush1.msra.mxu0 %v10310_v8 }
 0x45f   :  { %3211 = vmatmul.mubr.f32.gmra.mxu0 %v13978_v45  ;;  %3482 = vmatprep.subr.mxu0 %v10309_v0 }
 0x460   :  { %3483 = vmatpush1.msra.mxu0 %v10308_v18  ;;  %3516 = vmatprep.mubr.f32.mxu0 %v17672_v12 }
 0x463   :  { %10314 = vmatmul.mubr.msk.f32.vlgmr.msra.gmra.mxu0 %vm2507_vm11, %v2362_v50 }
 0x464   :  { %3522 = vmatprep.mubr.f32.mxu0 %v17672_v12 }
 0x467   :  { %10315 = vmatmul.mubr.msk.f32.gmra.mxu0 %vm2507_vm11, %v2365_v3 }
 0x480   :  { %v2580_v26 = vpop.f32.mrf.mxu1 }
 0x482   :  { %v2582_v23 = vpop.f32.mrf.mxu1 }
 0x484   :  { %v2586_v57 = vpop.f32.mrf.mxu1 }
 0x486   :  { %v2588_v47 = vpop.f32.mrf.mxu1 }
 0x488   :  { %v14842_v60 = vpop.f32.mrf.mxu1 }
 0x48a   :  { %v2819_v53 = vpop.f32.mrf.mxu1 }
 0x48b   :  { %v2657_v17 = vpop.f32.mrf.mxu0 }
 0x48c   :  { %v2658_v33 = vadd.f32 %v2657_v17, %v2580_v26  ;;  %v3575_v26 = vld [vmem:[%s17634_s4 + $0x8] sm:$0xff]  ;;  %v3574_v17 = vld [vmem:[%s17634_s4] sm:$0xff]  ;;  %s12621_s4 = smov 104  }
 0x48d   :  { %v2659_v45 = vpop.f32.mrf.mxu0  ;;  %v2823_v31 = vpop.f32.mrf.mxu1 }
 0x48e   :  { %v2660_v52 = vadd.f32 %v2659_v45, %v2582_v23 }
 0x48f   :  { %v2825_v63 = vpop.f32.mrf.mxu1 }
 0x491   :  { %v2663_v40 = vpop.f32.mrf.mxu0 }
 0x492   :  { %v2664_v48 = vadd.f32 %v2663_v40, %v2586_v57 }
 0x493   :  { %v2665_v49 = vpop.f32.mrf.mxu0 }
 0x494   :  { %v2666_v54 = vadd.f32 %v2665_v49, %v2588_v47 }
 0x4cb   :  { %v2971_v44 = vpop.f32.mrf.mxu1 }
 0x4cd   :  { %v2973_v61 = vpop.f32.mrf.mxu1 }
 0x4ce   :  { %v2740_v19 = vpop.f32.mrf.mxu0 }
 0x4cf   :  { %v2977_v11 = vpop.f32.mrf.mxu1  ;;  %v2741_v3 = vadd.f32 %v2740_v19, %v2658_v33  ;;  %v10396_v33 = vld [vmem:[%s17635_s6 + $0x180] sm:$0xff] }
 0x4d0   :  { %v2742_v12 = vpop.f32.mrf.mxu0 }
 0x4d1   :  { %v2979_v41 = vpop.f32.mrf.mxu1  ;;  %v2743_v38 = vadd.f32 %v2742_v12, %v2660_v52 }
 0x4d3   :  { %v2746_v28 = vpop.f32.mrf.mxu0  ;;  %v2820_v39 = vadd.f32 %v2819_v53, %v2743_v38 }
 0x4d4   :  { %v2747_v29 = vadd.f32 %v2746_v28, %v2664_v48 }
 0x4d5   :  { %v2748_v5 = vpop.f32.mrf.mxu0  ;;  %v3283_v42 = vpop.f32.mrf.mxu1 }
 0x4d6   :  { %v2749_v9 = vadd.f32 %v2748_v5, %v2666_v54  ;;  %v2824_v22 = vadd.f32 %v2823_v31, %v2747_v29  ;;  %v2818_v31 = vadd.f32 %v14842_v60, %v2741_v3  ;;  %v9360_v3 = vld [vmem:[%s17636_s7 + $0x38] sm:$0xff] }
 0x4d7   :  { %v3285_v13 = vpop.f32.mrf.mxu1 }
 0x4d8   :  { %v2826_v62 = vadd.f32 %v2825_v63, %v2749_v9 }
 0x4d9   :  { %v3048_v51 = vpop.f32.mrf.mxu0 }
 0x4da   :  { %v3049_v45 = vadd.f32 %v3048_v51, %v2971_v44  ;;  %v3590_v51 = vld [vmem:[%s17635_s6] sm:$0xff] }
 0x4db   :  { %v3050_v43 = vpop.f32.mrf.mxu0  ;;  %v3289_v7 = vpop.f32.mrf.mxu1  ;;  %11806 = vmatprep.mubr.msk.f32.mxu1 %vm2056_vm10, %v3590_v51  ;;  %v10321_v51 = vld [vmem:[%s17635_s6 + $0xa8] sm:$0xff] }
 0x4dc   :  { %v3051_v6 = vadd.f32 %v3050_v43, %v2973_v61  ;;  %v3059_v63 = vadd.f32 %v3049_v45, %v2818_v31 }
 0x4dd   :  { %v3291_v10 = vpop.f32.mrf.mxu1 }
 0x4de   :  { %v3060_v4 = vadd.f32 %v3051_v6, %v2820_v39  ;;  %v3592_v39 = vld [vmem:[%s17635_s6 + $0x10] sm:$0xff] }
 0x4df   :  { %v3054_v34 = vpop.f32.mrf.mxu0 }
 0x4e0   :  { %v3055_v15 = vadd.f32 %v3054_v34, %v2977_v11 }
 0x4e1   :  { %v3056_v14 = vpop.f32.mrf.mxu0 }
 0x4e2   :  { %v3057_v55 = vadd.f32 %v3056_v14, %v2979_v41  ;;  %v3061_v18 = vadd.f32 %v3055_v15, %v2824_v22  ;;  %v3596_v15 = vld [vmem:[%s17635_s6 + $0x30] sm:$0xff]  ;;  %v3598_v22 = vld [vmem:[%s17635_s6 + $0x40] sm:$0xff] }
 0x4e4   :  { %v3062_v1 = vadd.f32 %v3057_v55, %v2826_v62  ;;  %v3597_v55 = vld [vmem:[%s17635_s6 + $0x38] sm:$0xff]  ;;  %v3599_v62 = vld [vmem:[%s17635_s6 + $0x48] sm:$0xff] }
 0x519   :  { %v3441_v59 = vpop.f32.mrf.mxu1 }
 0x51b   :  { %v3206_v46 = vpop.f32.mrf.mxu0  ;;  %v3443_v25 = vpop.f32.mrf.mxu1 }
 0x51c   :  { %v3284_v49 = vadd.f32 %v3283_v42, %v3206_v46 }
 0x51d   :  { %v3208_v35 = vpop.f32.mrf.mxu0  ;;  %v3447_v27 = vpop.f32.mrf.mxu1 }
 0x51e   :  { %v3286_v21 = vadd.f32 %v3285_v13, %v3208_v35  ;;  %v3294_v12 = vadd.f32 %v3284_v49, %v3059_v63 }
 0x51f   :  { %v3212_v24 = vpop.f32.mrf.mxu0  ;;  %v3449_v50 = vpop.f32.mrf.mxu1 }
 0x520   :  { %v3295_v56 = vadd.f32 %v3286_v21, %v3060_v4  ;;  %v3290_v37 = vadd.f32 %v3289_v7, %v3212_v24  ;;  %v10316_v7 = vld [vmem:[%s17635_s6 + $0x80] sm:$0xff]  ;;  %v3593_v21 = vld [vmem:[%s17635_s6 + $0x18] sm:$0xff]  ;;  %v3595_v4 = vld [vmem:[%s17635_s6 + $0x28] sm:$0xff] }
 0x521   :  { %v3214_v32 = vpop.f32.mrf.mxu0  ;;  %11778 = vmatprep.mubr.msk.f32.mxu0 %vm2056_vm10, %v10316_v7  ;;  %v9511_v7 = vld [vmem:[%s17637_s9 + $0x70] sm:$0xff] }
 0x522   :  { %v3292_v8 = vadd.f32 %v3291_v10, %v3214_v32  ;;  %v3296_v23 = vadd.f32 %v3290_v37, %v3061_v18  ;;  %v3591_v32 = vld [vmem:[%s17635_s6 + $0x8] sm:$0xff] }
 0x523   :  { %v3518_v16 = vpop.f32.mrf.mxu0  ;;  %v3603_v37 = vld [vmem:[%s17635_s6 + $0x68] sm:$0xff] }
 0x524   :  { %v3297_v57 = vadd.f32 %v3292_v8, %v3062_v1  ;;  %v3519_v19 = vadd.f32 %v3518_v16, %v3441_v59  ;;  %v3594_v16 = vld [vmem:[%s17635_s6 + $0x20] sm:$0xff]  ;;  %v3604_v8 = vld [vmem:[%s17635_s6 + $0x70] sm:$0xff]  ;;  %v9366_v18 = vld [vmem:[%s17636_s7 + $0x68] sm:$0xff] }
 0x525   :  { %v3520_v36 = vpop.f32.mrf.mxu0  ;;  %v9367_v1 = vld [vmem:[%s17636_s7 + $0x70] sm:$0xff] }
 0x526   :  { %v3521_v0 = vadd.f32 %v3520_v36, %v3443_v25  ;;  %v3529_v44 = vadd.f32 %v3519_v19, %v3294_v12  ;;  %v3601_v36 = vld [vmem:[%s17635_s6 + $0x58] sm:$0xff]  ;;  %v9355_v12 = vld [vmem:[%s17636_s7 + $0x10] sm:$0xff] }
 0x527   :  { %v3524_v20 = vpop.f32.mrf.mxu0 }
 0x528   :  { %v3530_v30 = vadd.f32 %v3521_v0, %v3295_v56  ;;  %v3525_v58 = vadd.f32 %v3524_v20, %v3447_v27  ;;  %v3600_v27 = vld [vmem:[%s17635_s6 + $0x50] sm:$0xff]  ;;  %v3602_v56 = vld [vmem:[%s17635_s6 + $0x60] sm:$0xff]  ;;  %v3605_v0 = vld [vmem:[%s17635_s6 + $0x78] sm:$0xff] }
 0x529   :  { %v3526_v2 = vpop.f32.mrf.mxu0  ;;  %v9368_v20 = vld [vmem:[%s17636_s7 + $0x78] sm:$0xff] }
 0x52a   :  { %v3527_v47 = vadd.f32 %v3526_v2, %v3449_v50  ;;  %3545 = vrot.lane.b32.xlu1 %v3530_v30, %s12610_s5  ;;  %v3531_v53 = vadd.f32 %v3525_v58, %v3296_v23  ;;  %v9365_v58 = vld [vmem:[%s17636_s7 + $0x60] sm:$0xff]  ;;  %v9362_v50 = vld [vmem:[%s17636_s7 + $0x48] sm:$0xff]  ;;  %v9363_v2 = vld [vmem:[%s17636_s7 + $0x50] sm:$0xff] }
 0x52b   :  { %v9361_v23 = vld [vmem:[%s17636_s7 + $0x40] sm:$0xff] }
 0x52c   :  { %v3532_v40 = vadd.f32 %v3527_v47, %v3297_v57  ;;  %v9358_v57 = vld [vmem:[%s17636_s7 + $0x28] sm:$0xff]  ;;  %v9359_v47 = vld [vmem:[%s17636_s7 + $0x30] sm:$0xff] }
 0x52e   :  { %3547 = vrot.lane.b32.xlu0 %v3532_v40, %s12610_s5  ;;  %3537 = vrot.lane.b32.xlu1 %v3531_v53, %s12610_s5 }
 0x532   :  { %3583 = vperm.xlu0 %12600, %v3575_v26   ;;  %3578 = vperm.xlu1 %12599, %v3574_v17   ;;  %v10317_v26 = vld [vmem:[%s17635_s6 + $0x88] sm:$0xff] }
 0x533   :  { %v9354_v17 = vld [vmem:[%s17636_s7 + $0x8] sm:$0xff] }
 0x536   :  { %3535 = vrot.lane.b32.xlu0 %v3529_v44, %s12610_s5 }
 0x59c   :  { %v3546_v11 = vpop.permute.xlu1 %3545 }
 0x59d   :  { %v3551_v5 = vmax.f32 %v3529_v44, %v3546_v11  ;;  %v3552_v41 = vmax.f32 %v3530_v30, %v3546_v11  ;;  %v9364_v30 = vld [vmem:[%s17636_s7 + $0x58] sm:$0xff] }
 0x5a0   :  { %v3548_v61 = vpop.permute.xlu0 %3547  ;;  %v3538_v43 = vpop.permute.xlu1 %3537 }
 0x5a1   :  { %v3553_v60 = vmax.f32 %v3531_v53, %v3548_v61  ;;  %v3554_v28 = vmax.f32 %v3532_v40, %v3548_v61  ;;  %v3542_v14 = vmax.f32 %v3531_v53, %v3538_v43  ;;  %v9356_v53 = vld [vmem:[%s17636_s7 + $0x18] sm:$0xff]  ;;  %v9357_v40 = vld [vmem:[%s17636_s7 + $0x20] sm:$0xff]  ;;  %v9510_v43 = vld [vmem:[%s17637_s9 + $0x68] sm:$0xff] }
 0x5a2   :  { %v10319_v61 = vld [vmem:[%s17635_s6 + $0x98] sm:$0xff] }
 0x5a3   :  { %3563 = vrot.lane.b32.xlu1 %v3553_v60, %s12611_s20  ;;  %3565 = vrot.lane.b32.xlu0 %v3554_v28, %s12611_s20  ;;  %v9512_v60 = vld [vmem:[%s17637_s9 + $0x78] sm:$0xff] }
 0x5a7   :  { %3561 = vrot.lane.b32.xlu0 %v3552_v41, %s12611_s20  ;;  %3559 = vrot.lane.b32.xlu1 %v3551_v5, %s12611_s20  ;;  %v9353_v5 = vld [vmem:[%s17636_s7] sm:$0xff] }
 0x5a8   :  { %v10320_v41 = vld [vmem:[%s17635_s6 + $0xa0] sm:$0xff] }
 0x5ad   :  { %v3584_v42 = vpop.permute.xlu0 %3583  ;;  %v3579_v13 = vpop.permute.xlu1 %3578 }
 0x5b1   :  { %v3536_v34 = vpop.permute.xlu0 %3535 }
 0x5b2   :  { %v3541_v35 = vmax.f32 %v3529_v44, %v3536_v34  ;;  %v10318_v44 = vld [vmem:[%s17635_s6 + $0x90] sm:$0xff] }
 0x615   :  { %v3564_v10 = vpop.permute.xlu1 %3563  ;;  %v3566_v46 = vpop.permute.xlu0 %3565 }
 0x616   :  { %v3569_v52 = vsel %vm3567_vm12, %v3564_v10, %v3566_v46  ;;  %v10398_v10 = vld [vmem:[%s17635_s6 + $0x190] sm:$0xff]  ;;  %v10323_v46 = vld [vmem:[%s17635_s6 + $0xb8] sm:$0xff] }
 0x617   :  { %v3573_v59 = vmax.f32 %v3542_v14, %v3569_v52  ;;  %v10322_v14 = vld [vmem:[%s17635_s6 + $0xb0] sm:$0xff]  ;;  %v10399_v52 = vld [vmem:[%s17635_s6 + $0x198] sm:$0xff] }
 0x619   :  { %v3587_v38 = vadd.f32 %v3584_v42, %v3573_v59  ;;  %v3562_v48 = vpop.permute.xlu0 %3561  ;;  %v3560_v54 = vpop.permute.xlu1 %3559  ;;  %v10397_v42 = vld [vmem:[%s17635_s6 + $0x188] sm:$0xff]  ;;  %v9508_v59 = vld [vmem:[%s17637_s9 + $0x58] sm:$0xff] }
 0x61a   :  { %v3568_v24 = vsel %vm3567_vm12, %v3560_v54, %v3562_v48  ;;  %v9509_v48 = vld [vmem:[%s17637_s9 + $0x60] sm:$0xff] }
 0x61b   :  { %v14859_v6 = vmax.f32 %v3587_v38, 0.0  ;;  %v3572_v29 = vmax.f32 %v3541_v35, %v3568_v24  ;;  %v10324_v54 = vld [vmem:[%s17635_s6 + $0xc0] sm:$0xff] }
 0x61c   :  { %v10400_v24 = vld [vmem:[%s17635_s6 + $0x1a0] sm:$0xff] }
 0x61d   :  { %v3586_v9 = vadd.f32 %v3579_v13, %v3572_v29  ;;  %11802 = vmatprep.subr.mxu1 %v14859_v6  ;;  %3627 = vrot.lane.b32.xlu1 %v14859_v6, %s12612_s3  ;;  %v10401_v29 = vld [vmem:[%s17635_s6 + $0x1a8] sm:$0xff] }
 0x61e   :  { %11803 = vmatpush3.msra.mxu1 %v14859_v6 }
 0x61f   :  { %v14864_v25 = vmax.f32 %v3586_v9, 0.0  ;;  %v9506_v9 = vld [vmem:[%s17637_s9 + $0x48] sm:$0xff] }
 0x621   :  { %4036 = vrot.lane.b32.xlu1 %v14859_v6, %s12613_s25  ;;  %3625 = vrot.lane.b32.xlu0 %v14864_v25, %s12612_s3  ;;  %s12624_s3 = smov 96  }
 0x622   :  { %11804 = vmatprep.subr.mxu1 %v14864_v25 }
 0x623   :  { %11805 = vmatpush3.msra.mxu1 %v14864_v25 }
 0x624   :  { %11807 = vmatmul.mubr.msk.f32.vlgmr.msra.gmra.mxu1 %vm2056_vm10, %v3591_v32  ;;  %v9507_v32 = vld [vmem:[%s17637_s9 + $0x50] sm:$0xff] }
 0x625   :  { %4268 = vrot.lane.b32.xlu1 %v14859_v6, %s12614_s30  ;;  %4034 = vrot.lane.b32.xlu0 %v14864_v25, %s12613_s25  ;;  %s12625_s25 = smov 94  }
 0x626   :  { %11809 = vmatprep.mubr.msk.f32.mxu1 %vm2056_vm10, %v3592_v39  ;;  %v10326_v39 = vld [vmem:[%s17635_s6 + $0xd0] sm:$0xff] }
 0x628   :  { %11810 = vmatmul.mubr.msk.f32.gmra.mxu1 %vm2056_vm10, %v3593_v21  ;;  %v10402_v21 = vld [vmem:[%s17635_s6 + $0x1b0] sm:$0xff] }
 0x629   :  { %4500 = vrot.lane.b32.xlu1 %v14859_v6, %s12604_s21  ;;  %4266 = vrot.lane.b32.xlu0 %v14864_v25, %s12614_s30  ;;  %s12632_s30 = smov 80  }
 0x62a   :  { %11812 = vmatprep.mubr.msk.f32.mxu1 %vm2056_vm10, %v3594_v16  ;;  %v10327_v16 = vld [vmem:[%s17635_s6 + $0xd8] sm:$0xff] }
 0x62c   :  { %11813 = vmatmul.mubr.msk.f32.gmra.mxu1 %vm2056_vm10, %v3595_v4  ;;  %v10403_v4 = vld [vmem:[%s17635_s6 + $0x1b8] sm:$0xff] }
 0x62d   :  { %4732 = vrot.lane.b32.xlu1 %v14859_v6, %s12615_s1  ;;  %4498 = vrot.lane.b32.xlu0 %v14864_v25, %s12604_s21  ;;  %s12626_s21 = smov 92  }
 0x62e   :  { %11815 = vmatprep.mubr.msk.f32.mxu1 %vm2056_vm10, %v3596_v15  ;;  %v9504_v15 = vld [vmem:[%s17637_s9 + $0x38] sm:$0xff] }
 0x630   :  { %11816 = vmatmul.mubr.msk.f32.gmra.mxu1 %vm2056_vm10, %v3597_v55  ;;  %v10328_v55 = vld [vmem:[%s17635_s6 + $0xe0] sm:$0xff] }
 0x631   :  { %4964 = vrot.lane.b32.xlu1 %v14859_v6, %s12616_s24  ;;  %4730 = vrot.lane.b32.xlu0 %v14864_v25, %s12615_s1 }
 0x632   :  { %11818 = vmatprep.mubr.msk.f32.mxu1 %vm2056_vm10, %v3598_v22  ;;  %v9505_v22 = vld [vmem:[%s17637_s9 + $0x40] sm:$0xff] }
 0x634   :  { %11819 = vmatmul.mubr.msk.f32.gmra.mxu1 %vm2056_vm10, %v3599_v62  ;;  %v10404_v62 = vld [vmem:[%s17635_s6 + $0x1c0] sm:$0xff] }
 0x635   :  { %5196 = vrot.lane.b32.xlu1 %v14859_v6, %s12617_s27  ;;  %4962 = vrot.lane.b32.xlu0 %v14864_v25, %s12616_s24  ;;  %s12623_s24 = smov 98  }
 0x636   :  { %11821 = vmatprep.mubr.msk.f32.mxu1 %vm2056_vm10, %v3600_v27  ;;  %v10329_v27 = vld [vmem:[%s17635_s6 + $0xe8] sm:$0xff] }
 0x638   :  { %11822 = vmatmul.mubr.msk.f32.gmra.mxu1 %vm2056_vm10, %v3601_v36  ;;  %v10405_v36 = vld [vmem:[%s17635_s6 + $0x1c8] sm:$0xff] }
 0x639   :  { %5428 = vrot.lane.b32.xlu1 %v14859_v6, %s12605_s23  ;;  %5194 = vrot.lane.b32.xlu0 %v14864_v25, %s12617_s27  ;;  %s12629_s27 = smov 86  }
 0x63a   :  { %11824 = vmatprep.mubr.msk.f32.mxu1 %vm2056_vm10, %v3602_v56  ;;  %v9502_v56 = vld [vmem:[%s17637_s9 + $0x28] sm:$0xff] }
 0x63c   :  { %11825 = vmatmul.mubr.msk.f32.gmra.mxu1 %vm2056_vm10, %v3603_v37  ;;  %v10330_v37 = vld [vmem:[%s17635_s6 + $0xf0] sm:$0xff] }
 0x63d   :  { %5660 = vrot.lane.b32.xlu1 %v14859_v6, %s12618_s17  ;;  %5426 = vrot.lane.b32.xlu0 %v14864_v25, %s12605_s23  ;;  %s12620_s23 = smov 106  }
 0x63e   :  { %11827 = vmatprep.mubr.msk.f32.mxu1 %vm2056_vm10, %v3604_v8  ;;  %v9503_v8 = vld [vmem:[%s17637_s9 + $0x30] sm:$0xff] }
 0x640   :  { %11828 = vmatmul.mubr.msk.f32.gmra.mxu1 %vm2056_vm10, %v3605_v0  ;;  %v10406_v0 = vld [vmem:[%s17635_s6 + $0x1d0] sm:$0xff] }
 0x641   :  { %5892 = vrot.lane.b32.xlu1 %v14859_v6, %s12619_s0  ;;  %5658 = vrot.lane.b32.xlu0 %v14864_v25, %s12618_s17 }
 0x642   :  { %11862 = vmatprep.mubr.msk.f32.mxu1 %vm2056_vm10, %v10396_v33  ;;  %v10331_v33 = vld [vmem:[%s17635_s6 + $0xf8] sm:$0xff] }
 0x645   :  { %6124 = vrot.lane.b32.xlu1 %v14859_v6, %s12620_s23  ;;  %5890 = vrot.lane.b32.xlu0 %v14864_v25, %s12619_s0 }
 0x649   :  { %6356 = vrot.lane.b32.xlu1 %v14859_v6, %s12621_s4  ;;  %6122 = vrot.lane.b32.xlu0 %v14864_v25, %s12620_s23 }
 0x64d   :  { %6588 = vrot.lane.b32.xlu1 %v14859_v6, %s12622_s22  ;;  %6354 = vrot.lane.b32.xlu0 %v14864_v25, %s12621_s4 }
 0x651   :  { %6820 = vrot.lane.b32.xlu1 %v14859_v6, %s12606_s2  ;;  %6586 = vrot.lane.b32.xlu0 %v14864_v25, %s12622_s22 }
 0x655   :  { %7052 = vrot.lane.b32.xlu1 %v14859_v6, %s12623_s24  ;;  %6818 = vrot.lane.b32.xlu0 %v14864_v25, %s12606_s2  ;;  %s12628_s2 = smov 88  }
 0x659   :  { %7284 = vrot.lane.b32.xlu1 %v14859_v6, %s12624_s3  ;;  %7050 = vrot.lane.b32.xlu0 %v14864_v25, %s12623_s24 }
 0x65d   :  { %7516 = vrot.lane.b32.xlu1 %v14859_v6, %s12625_s25  ;;  %7282 = vrot.lane.b32.xlu0 %v14864_v25, %s12624_s3 }
 0x661   :  { %7748 = vrot.lane.b32.xlu1 %v14859_v6, %s12626_s21  ;;  %7514 = vrot.lane.b32.xlu0 %v14864_v25, %s12625_s25 }
 0x665   :  { %7980 = vrot.lane.b32.xlu1 %v14859_v6, %s12627_s26  ;;  %7746 = vrot.lane.b32.xlu0 %v14864_v25, %s12626_s21 }
 0x669   :  { %8212 = vrot.lane.b32.xlu1 %v14859_v6, %s12628_s2  ;;  %7978 = vrot.lane.b32.xlu0 %v14864_v25, %s12627_s26 }
 0x66d   :  { %8444 = vrot.lane.b32.xlu1 %v14859_v6, %s12629_s27  ;;  %8210 = vrot.lane.b32.xlu0 %v14864_v25, %s12628_s2 }
 0x671   :  { %8676 = vrot.lane.b32.xlu1 %v14859_v6, %s12630_s28  ;;  %8442 = vrot.lane.b32.xlu0 %v14864_v25, %s12629_s27 }
 0x675   :  { %8908 = vrot.lane.b32.xlu1 %v14859_v6, %s12631_s29  ;;  %8674 = vrot.lane.b32.xlu0 %v14864_v25, %s12630_s28 }
 0x679   :  { %9140 = vrot.lane.b32.xlu1 %v14859_v6, %s12632_s30  ;;  %8906 = vrot.lane.b32.xlu0 %v14864_v25, %s12631_s29  ;;  %v10325_v6 = vld [vmem:[%s17635_s6 + $0xc8] sm:$0xff] }
 0x67d   :  { %9446 = vperm.xlu1 %12599, %v9368_v20   ;;  %9138 = vrot.lane.b32.xlu0 %v14864_v25, %s12632_s30  ;;  %v10407_v20 = vld [vmem:[%s17635_s6 + $0x1d8] sm:$0xff] }
 0x681   :  { %9436 = vperm.xlu1 %12599, %v9366_v18   ;;  %9441 = vperm.xlu0 %12600, %v9367_v1   ;;  %v9500_v18 = vld [vmem:[%s17637_s9 + $0x18] sm:$0xff]  ;;  %v10364_v1 = vld [vmem:[%s17635_s6 + $0x100] sm:$0xff] }
 0x685   :  { %9426 = vperm.xlu1 %12599, %v9364_v30   ;;  %9431 = vperm.xlu0 %12600, %v9365_v58   ;;  %v9501_v30 = vld [vmem:[%s17637_s9 + $0x20] sm:$0xff] }
 0x686   :  { %v10408_v58 = vld [vmem:[%s17635_s6 + $0x1e0] sm:$0xff] }
 0x689   :  { %9416 = vperm.xlu1 %12599, %v9362_v50   ;;  %9421 = vperm.xlu0 %12600, %v9363_v2   ;;  %v10365_v50 = vld [vmem:[%s17635_s6 + $0x108] sm:$0xff] }
 0x68a   :  { %v10409_v2 = vld [vmem:[%s17635_s6 + $0x1e8] sm:$0xff] }
 0x68d   :  { %9406 = vperm.xlu1 %12599, %v9360_v3   ;;  %9411 = vperm.xlu0 %12600, %v9361_v23   ;;  %v9498_v3 = vld [vmem:[%s17637_s9 + $0x8] sm:$0xff]  ;;  %v9499_v23 = vld [vmem:[%s17637_s9 + $0x10] sm:$0xff] }
 0x68f   :  { %v3628_v45 = vpop.permute.xlu1 %3627 }
 0x690   :  { %11774 = vmatprep.subr.mxu0 %v3628_v45 }
 0x691   :  { %9396 = vperm.xlu1 %12599, %v9358_v57   ;;  %9401 = vperm.xlu0 %12600, %v9359_v47   ;;  %v10366_v57 = vld [vmem:[%s17635_s6 + $0x110] sm:$0xff] }
 0x692   :  { %11775 = vmatpush3.msra.mxu0 %v3628_v45  ;;  %v10410_v47 = vld [vmem:[%s17635_s6 + $0x1f0] sm:$0xff]  ;;  %v10367_v45 = vld [vmem:[%s17635_s6 + $0x118] sm:$0xff] }
 0x693   :  { %v3626_v31 = vpop.permute.xlu0 %3625  ;;  %v4037_v49 = vpop.permute.xlu1 %4036 }
 0x694   :  { %11776 = vmatprep.subr.mxu0 %v3626_v31 }
 0x695   :  { %9386 = vperm.xlu1 %12599, %v9356_v53   ;;  %9391 = vperm.xlu0 %12600, %v9357_v40   ;;  %v10411_v53 = vld [vmem:[%s17635_s6 + $0x1f8] sm:$0xff]  ;;  %v9756_v40 = vld [vmem:[%s17638_s11] sm:$0xff] }
 0x696   :  { %11777 = vmatpush3.msra.mxu0 %v3626_v31  ;;  %v9497_v31 = vld [vmem:[%s17637_s9] sm:$0xff] }
 0x697   :  { %11779 = vmatmul.mubr.msk.f32.vlgmr.msra.gmra.mxu0 %vm2056_vm10, %v10317_v26  ;;  %11830 = vmatprep.subr.mxu0 %v4037_v49  ;;  %v4035_v63 = vpop.permute.xlu0 %4034  ;;  %v4269_v19 = vpop.permute.xlu1 %4268  ;;  %v10368_v26 = vld [vmem:[%s17635_s6 + $0x120] sm:$0xff] }
 0x698   :  { %11831 = vmatpush3.msra.mxu0 %v4037_v49  ;;  %11858 = vmatprep.subr.mxu1 %v4269_v19 }
 0x699   :  { %11832 = vmatprep.subr.mxu0 %v4035_v63  ;;  %9376 = vperm.xlu1 %12599, %v9354_v17   ;;  %v10460_v17 = vld [vmem:[%s17635_s6 + $0x280] sm:$0xff] }
 0x69a   :  { %9381 = vperm.xlu0 %12600, %v9355_v12   ;;  %11781 = vmatprep.mubr.msk.f32.mxu0 %vm2056_vm10, %v10318_v44  ;;  %v10461_v12 = vld [vmem:[%s17635_s6 + $0x288] sm:$0xff] }
 0x69b   :  { %11833 = vmatpush3.msra.mxu0 %v4035_v63  ;;  %11859 = vmatpush3.msra.mxu1 %v4269_v19  ;;  %v4267_v28 = vpop.permute.xlu0 %4266  ;;  %v15044_v11 = vpop.permute.xlu1 %4500  ;;  %v10369_v19 = vld [vmem:[%s17635_s6 + $0x128] sm:$0xff] }
 0x69c   :  { %11782 = vmatmul.mubr.msk.f32.gmra.mxu0 %vm2056_vm10, %v10319_v61  ;;  %11860 = vmatprep.subr.mxu1 %v4267_v28  ;;  %v9757_v44 = vld [vmem:[%s17638_s11 + $0x8] sm:$0x3]  ;;  %v10370_v61 = vld [vmem:[%s17635_s6 + $0x130] sm:$0xff] }
 0x69d   :  { %11886 = vmatprep.subr.mxu0 %v15044_v11  ;;  %9590 = vperm.xlu1 %12599, %v9512_v60   ;;  %v10462_v60 = vld [vmem:[%s17635_s6 + $0x290] sm:$0xff] }
 0x69e   :  { %9371 = vperm.xlu0 %12600, %v9353_v5   ;;  %11784 = vmatprep.mubr.msk.f32.mxu0 %vm2056_vm10, %v10320_v41  ;;  %v10463_v5 = vld [vmem:[%s17635_s6 + $0x298] sm:$0xff]  ;;  %v10372_v41 = vld [vmem:[%s17635_s6 + $0x140] sm:$0xff] }
 0x69f   :  { %11861 = vmatpush3.msra.mxu1 %v4267_v28  ;;  %v15064_v13 = vpop.permute.xlu0 %4498  ;;  %v4733_v34 = vpop.permute.xlu1 %4732 }
 0x6a0   :  { %11785 = vmatmul.mubr.msk.f32.gmra.mxu0 %vm2056_vm10, %v10321_v51  ;;  %11863 = vmatmul.mubr.msk.f32.vlgmr.msra.gmra.mxu1 %vm2056_vm10, %v10397_v42  ;;  %v10464_v42 = vld [vmem:[%s17635_s6 + $0x2a0] sm:$0xff] }
 0x6a1   :  { %11914 = vmatprep.subr.mxu1 %v4733_v34  ;;  %9580 = vperm.xlu1 %12599, %v9510_v43   ;;  %v10373_v43 = vld [vmem:[%s17635_s6 + $0x148] sm:$0xff] }
 0x6a2   :  { %9585 = vperm.xlu0 %12600, %v9511_v7   ;;  %11787 = vmatprep.mubr.msk.f32.mxu0 %vm2056_vm10, %v10322_v14  ;;  %v10466_v7 = vld [vmem:[%s17635_s6 + $0x2b0] sm:$0xff]  ;;  %v10375_v14 = vld [vmem:[%s17635_s6 + $0x158] sm:$0xff] }
 0x6a3   :  { %11865 = vmatprep.mubr.msk.f32.mxu1 %vm2056_vm10, %v10398_v10  ;;  %11915 = vmatpush3.msra.mxu1 %v4733_v34  ;;  %v4731_v35 = vpop.permute.xlu0 %4730  ;;  %v15088_v38 = vpop.permute.xlu1 %4964  ;;  %v10374_v34 = vld [vmem:[%s17635_s6 + $0x150] sm:$0xff]  ;;  %v10467_v10 = vld [vmem:[%s17635_s6 + $0x2b8] sm:$0xff] }
 0x6a4   :  { %11788 = vmatmul.mubr.msk.f32.gmra.mxu0 %vm2056_vm10, %v10323_v46  ;;  %11866 = vmatmul.mubr.msk.f32.gmra.mxu1 %vm2056_vm10, %v10399_v52  ;;  %v10376_v46 = vld [vmem:[%s17635_s6 + $0x160] sm:$0xff] }
 0x6a5   :  { %11916 = vmatprep.subr.mxu1 %v4731_v35  ;;  %9570 = vperm.xlu1 %12599, %v9508_v59   ;;  %v10468_v52 = vld [vmem:[%s17635_s6 + $0x2c0] sm:$0xff]  ;;  %v10377_v59 = vld [vmem:[%s17635_s6 + $0x168] sm:$0xff] }
 0x6a6   :  { %9575 = vperm.xlu0 %12600, %v9509_v48   ;;  %11790 = vmatprep.mubr.msk.f32.mxu0 %vm2056_vm10, %v10324_v54  ;;  %v10378_v48 = vld [vmem:[%s17635_s6 + $0x170] sm:$0xff] }
 0x6a7   :  { %11868 = vmatprep.mubr.msk.f32.mxu1 %vm2056_vm10, %v10400_v24  ;;  %11917 = vmatpush3.msra.mxu1 %v4731_v35  ;;  %v15112_v25 = vpop.permute.xlu1 %5196  ;;  %v15230_v49 = vpop.permute.xlu0 %4962  ;;  %v10469_v35 = vld [vmem:[%s17635_s6 + $0x2c8] sm:$0xff]  ;;  %v10470_v54 = vld [vmem:[%s17635_s6 + $0x2d0] sm:$0xff]  ;;  %v10379_v24 = vld [vmem:[%s17635_s6 + $0x178] sm:$0xff] }
 0x6a8   :  { %11791 = vmatmul.mubr.msk.f32.gmra.mxu0 %vm2056_vm10, %v10325_v6  ;;  %11869 = vmatmul.mubr.msk.f32.gmra.mxu1 %vm2056_vm10, %v10401_v29  ;;  %v10471_v6 = vld [vmem:[%s17635_s6 + $0x2d8] sm:$0xff]  ;;  %v10428_v29 = vld [vmem:[%s17635_s6 + $0x200] sm:$0xff] }
 0x6a9   :  { %11970 = vmatprep.subr.mxu1 %v15112_v25  ;;  %9560 = vperm.xlu1 %12599, %v9506_v9   ;;  %v10472_v9 = vld [vmem:[%s17635_s6 + $0x2e0] sm:$0xff] }
 0x6aa   :  { %9565 = vperm.xlu0 %12600, %v9507_v32   ;;  %11793 = vmatprep.mubr.msk.f32.mxu0 %vm2056_vm10, %v10326_v39  ;;  %v10473_v32 = vld [vmem:[%s17635_s6 + $0x2e8] sm:$0xff]  ;;  %v10430_v39 = vld [vmem:[%s17635_s6 + $0x210] sm:$0xff] }
 0x6ab   :  { %11871 = vmatprep.mubr.msk.f32.mxu1 %vm2056_vm10, %v10402_v21  ;;  %v15242_v63 = vpop.permute.xlu1 %5428  ;;  %v5195_v28 = vpop.permute.xlu0 %5194  ;;  %v10474_v21 = vld [vmem:[%s17635_s6 + $0x2f0] sm:$0xff] }
 0x6ac   :  { %11794 = vmatmul.mubr.msk.f32.gmra.mxu0 %vm2056_vm10, %v10327_v16  ;;  %11872 = vmatmul.mubr.msk.f32.gmra.mxu1 %vm2056_vm10, %v10403_v4  ;;  %v10431_v16 = vld [vmem:[%s17635_s6 + $0x218] sm:$0xff] }
 0x6ad   :  { %9550 = vperm.xlu1 %12599, %v9504_v15   ;;  %11796 = vmatprep.mubr.msk.f32.mxu0 %vm2056_vm10, %v10328_v55  ;;  %v10475_v4 = vld [vmem:[%s17635_s6 + $0x2f8] sm:$0xff]  ;;  %v10432_v15 = vld [vmem:[%s17635_s6 + $0x220] sm:$0xff] }
 0x6ae   :  { %9555 = vperm.xlu0 %12600, %v9505_v22   ;;  %11874 = vmatprep.mubr.msk.f32.mxu1 %vm2056_vm10, %v10404_v62  ;;  %v10433_v22 = vld [vmem:[%s17635_s6 + $0x228] sm:$0xff] }
 0x6af   :  { %v15274_v51 = vpop.permute.xlu1 %5660  ;;  %v15380_v55 = vpop.permute.xlu0 %5426 }
 0x6b0   :  { %11797 = vmatmul.mubr.msk.f32.gmra.mxu0 %vm2056_vm10, %v10329_v27  ;;  %11875 = vmatmul.mubr.msk.f32.gmra.mxu1 %vm2056_vm10, %v10405_v36  ;;  %v10525_v27 = vld [vmem:[%s17635_s6 + $0x388] sm:$0xff]  ;;  %v10434_v36 = vld [vmem:[%s17635_s6 + $0x230] sm:$0xff] }
 0x6b1   :  { %9540 = vperm.xlu1 %12599, %v9502_v56   ;;  %11799 = vmatprep.mubr.msk.f32.mxu0 %vm2056_vm10, %v10330_v37  ;;  %v10526_v56 = vld [vmem:[%s17635_s6 + $0x390] sm:$0xff]  ;;  %v10435_v37 = vld [vmem:[%s17635_s6 + $0x238] sm:$0xff] }
 0x6b2   :  { %9545 = vperm.xlu0 %12600, %v9503_v8   ;;  %11877 = vmatprep.mubr.msk.f32.mxu1 %vm2056_vm10, %v10406_v0  ;;  %v10527_v0 = vld [vmem:[%s17635_s6 + $0x398] sm:$0xff] }
 0x6b3   :  { %v15389_v62 = vpop.permute.xlu1 %5892  ;;  %v5659_v8 = vpop.permute.xlu0 %5658 }
 0x6b4   :  { %11800 = vmatmul.mubr.msk.f32.gmra.mxu0 %vm2056_vm10, %v10331_v33  ;;  %11878 = vmatmul.mubr.msk.f32.gmra.mxu1 %vm2056_vm10, %v10407_v20  ;;  %v10436_v33 = vld [vmem:[%s17635_s6 + $0x240] sm:$0xff] }
 0x6b5   :  { %9530 = vperm.xlu1 %12599, %v9500_v18   ;;  %11834 = vmatprep.mubr.msk.f32.mxu0 %vm2056_vm10, %v10364_v1  ;;  %v10528_v20 = vld [vmem:[%s17635_s6 + $0x3a0] sm:$0xff]  ;;  %v10437_v1 = vld [vmem:[%s17635_s6 + $0x248] sm:$0xff] }
 0x6b6   :  { %9535 = vperm.xlu0 %12600, %v9501_v30   ;;  %11880 = vmatprep.mubr.msk.f32.mxu1 %vm2056_vm10, %v10408_v58  ;;  %v10529_v30 = vld [vmem:[%s17635_s6 + $0x3a8] sm:$0xff]  ;;  %v10438_v58 = vld [vmem:[%s17635_s6 + $0x250] sm:$0xff] }
 0x6b7   :  { %v15418_v18 = vpop.permute.xlu1 %6124 }
 0x6b8   :  { %11835 = vmatmul.mubr.msk.f32.vlgmr.msra.gmra.mxu0 %vm2056_vm10, %v10365_v50  ;;  %11881 = vmatmul.mubr.msk.f32.gmra.mxu1 %vm2056_vm10, %v10409_v2  ;;  %v10530_v50 = vld [vmem:[%s17635_s6 + $0x3b0] sm:$0xff]  ;;  %v10439_v2 = vld [vmem:[%s17635_s6 + $0x258] sm:$0xff] }
 0x6b9   :  { %11887 = vmatpush3.msra.mxu0 %v15044_v11  ;;  %9520 = vperm.xlu1 %12599, %v9498_v3   ;;  %v10371_v11 = vld [vmem:[%s17635_s6 + $0x138] sm:$0xff] }
 0x6ba   :  { %11888 = vmatprep.subr.mxu0 %v15064_v13  ;;  %9525 = vperm.xlu0 %12600, %v9499_v23   ;;  %v10531_v3 = vld [vmem:[%s17635_s6 + $0x3b8] sm:$0xff]  ;;  %v10440_v23 = vld [vmem:[%s17635_s6 + $0x260] sm:$0xff] }
 0x6bb   :  { %11889 = vmatpush3.msra.mxu0 %v15064_v13  ;;  %11837 = vmatprep.mubr.msk.f32.mxu0 %vm2056_vm10, %v10366_v57  ;;  %v10465_v13 = vld [vmem:[%s17635_s6 + $0x2a8] sm:$0xff]  ;;  %v10532_v57 = vld [vmem:[%s17635_s6 + $0x3c0] sm:$0xff] }
 0x6bc   :  { %11883 = vmatprep.mubr.msk.f32.mxu1 %vm2056_vm10, %v10410_v47  ;;  %11942 = vmatprep.subr.mxu0 %v15088_v38  ;;  %v10441_v47 = vld [vmem:[%s17635_s6 + $0x268] sm:$0xff] }
 0x6bd   :  { %11838 = vmatmul.mubr.msk.f32.gmra.mxu0 %vm2056_vm10, %v10367_v45  ;;  %11884 = vmatmul.mubr.msk.f32.gmra.mxu1 %vm2056_vm10, %v10411_v53  ;;  %v10533_v45 = vld [vmem:[%s17635_s6 + $0x3c8] sm:$0xff]  ;;  %v10442_v53 = vld [vmem:[%s17635_s6 + $0x270] sm:$0xff] }
 0x6be   :  { %9760 = vperm.xlu1 %12599, %v9756_v40   ;;  %9515 = vperm.xlu0 %12600, %v9497_v31   ;;  %v10534_v40 = vld [vmem:[%s17635_s6 + $0x3d0] sm:$0xff]  ;;  %v10443_v31 = vld [vmem:[%s17635_s6 + $0x278] sm:$0xff] }
 0x6bf   :  { %11840 = vmatprep.mubr.msk.f32.mxu0 %vm2056_vm10, %v10368_v26  ;;  %11918 = vmatprep.mubr.msk.f32.mxu1 %vm2056_vm10, %v10460_v17  ;;  %v10492_v26 = vld [vmem:[%s17635_s6 + $0x300] sm:$0xff] }
 0x6c0   :  { %v10536_v17 = vld [vmem:[%s17635_s6 + $0x3e0] sm:$0xff] }
 0x6c1   :  { %11841 = vmatmul.mubr.msk.f32.gmra.mxu0 %vm2056_vm10, %v10369_v19  ;;  %11919 = vmatmul.mubr.msk.f32.vlgmr.msra.gmra.mxu1 %vm2056_vm10, %v10461_v12  ;;  %v10493_v19 = vld [vmem:[%s17635_s6 + $0x308] sm:$0xff] }
 0x6c2   :  { %11971 = vmatpush3.msra.mxu1 %v15112_v25  ;;  %9765 = vperm.xlu0 %12600, %v9757_v44   ;;  %v10429_v25 = vld [vmem:[%s17635_s6 + $0x208] sm:$0xff]  ;;  %v10494_v44 = vld [vmem:[%s17635_s6 + $0x310] sm:$0xff] }
 0x6c3   :  { %11972 = vmatprep.subr.mxu1 %v5195_v28  ;;  %11843 = vmatprep.mubr.msk.f32.mxu0 %vm2056_vm10, %v10370_v61  ;;  %v10537_v12 = vld [vmem:[%s17635_s6 + $0x3e8] sm:$0xff]  ;;  %v10538_v61 = vld [vmem:[%s17635_s6 + $0x3f0] sm:$0xff] }
 0x6c4   :  { %11973 = vmatpush3.msra.mxu1 %v5195_v28  ;;  %11921 = vmatprep.mubr.msk.f32.mxu1 %vm2056_vm10, %v10462_v60  ;;  %v10495_v60 = vld [vmem:[%s17635_s6 + $0x318] sm:$0xff] }
 0x6c5   :  { %12026 = vmatprep.subr.mxu1 %v15274_v51  ;;  %11844 = vmatmul.mubr.msk.f32.gmra.mxu0 %vm2056_vm10, %v10371_v11  ;;  %v10539_v28 = vld [vmem:[%s17635_s6 + $0x3f8] sm:$0xff]  ;;  %v10496_v11 = vld [vmem:[%s17635_s6 + $0x320] sm:$0xff] }
 0x6c6   :  { %11922 = vmatmul.mubr.msk.f32.gmra.mxu1 %vm2056_vm10, %v10463_v5  ;;  %11846 = vmatprep.mubr.msk.f32.mxu0 %vm2056_vm10, %v10372_v41  ;;  %v15520_v5 = vpop.permute.xlu0 %5890  ;;  %v10497_v41 = vld [vmem:[%s17635_s6 + $0x328] sm:$0xff] }
 0x6c7   :  { %11924 = vmatprep.mubr.msk.f32.mxu1 %vm2056_vm10, %v10464_v42  ;;  %v10589_v42 = vld [vmem:[%s17635_s6 + $0x488] sm:$0xff] }
 0x6c9   :  { %11847 = vmatmul.mubr.msk.f32.gmra.mxu0 %vm2056_vm10, %v10373_v43  ;;  %v10498_v43 = vld [vmem:[%s17635_s6 + $0x330] sm:$0xff] }
 0x6ca   :  { %11925 = vmatmul.mubr.msk.f32.gmra.mxu1 %vm2056_vm10, %v10465_v13  ;;  %11849 = vmatprep.mubr.msk.f32.mxu0 %vm2056_vm10, %v10374_v34  ;;  %v10590_v13 = vld [vmem:[%s17635_s6 + $0x490] sm:$0xff]  ;;  %v10499_v34 = vld [vmem:[%s17635_s6 + $0x338] sm:$0xff] }
 0x6cb   :  { %11927 = vmatprep.mubr.msk.f32.mxu1 %vm2056_vm10, %v10466_v7  ;;  %v6123_v7 = vpop.permute.xlu0 %6122 }
 0x6cd   :  { %11850 = vmatmul.mubr.msk.f32.gmra.mxu0 %vm2056_vm10, %v10375_v14  ;;  %v10591_v14 = vld [vmem:[%s17635_s6 + $0x498] sm:$0xff] }
 0x6ce   :  { %11928 = vmatmul.mubr.msk.f32.gmra.mxu1 %vm2056_vm10, %v10467_v10  ;;  %11852 = vmatprep.mubr.msk.f32.mxu0 %vm2056_vm10, %v10376_v46  ;;  %v10500_v10 = vld [vmem:[%s17635_s6 + $0x340] sm:$0xff] }
 0x6cf   :  { %11930 = vmatprep.mubr.msk.f32.mxu1 %vm2056_vm10, %v10468_v52  ;;  %v10592_v46 = vld [vmem:[%s17635_s6 + $0x4a0] sm:$0xff] }
 0x6d1   :  { %11853 = vmatmul.mubr.msk.f32.gmra.mxu0 %vm2056_vm10, %v10377_v59  ;;  %v10501_v59 = vld [vmem:[%s17635_s6 + $0x348] sm:$0xff] }
 0x6d2   :  { %11931 = vmatmul.mubr.msk.f32.gmra.mxu1 %vm2056_vm10, %v10469_v35  ;;  %11855 = vmatprep.mubr.msk.f32.mxu0 %vm2056_vm10, %v10378_v48  ;;  %v10593_v35 = vld [vmem:[%s17635_s6 + $0x4a8] sm:$0xff]  ;;  %v10502_v48 = vld [vmem:[%s17635_s6 + $0x350] sm:$0xff] }
 0x6d3   :  { %11933 = vmatprep.mubr.msk.f32.mxu1 %vm2056_vm10, %v10470_v54  ;;  %v10594_v54 = vld [vmem:[%s17635_s6 + $0x4b0] sm:$0xff] }
 0x6d5   :  { %11856 = vmatmul.mubr.msk.f32.gmra.mxu0 %vm2056_vm10, %v10379_v24  ;;  %v10503_v24 = vld [vmem:[%s17635_s6 + $0x358] sm:$0xff] }
 0x6d6   :  { %11934 = vmatmul.mubr.msk.f32.gmra.mxu1 %vm2056_vm10, %v10471_v6  ;;  %11890 = vmatprep.mubr.msk.f32.mxu0 %vm2056_vm10, %v10428_v29  ;;  %v10595_v6 = vld [vmem:[%s17635_s6 + $0x4b8] sm:$0xff]  ;;  %v10504_v29 = vld [vmem:[%s17635_s6 + $0x360] sm:$0xff] }
 0x6d7   :  { %11936 = vmatprep.mubr.msk.f32.mxu1 %vm2056_vm10, %v10472_v9  ;;  %v10596_v9 = vld [vmem:[%s17635_s6 + $0x4c0] sm:$0xff] }
 0x6d9   :  { %11891 = vmatmul.mubr.msk.f32.vlgmr.msra.gmra.mxu0 %vm2056_vm10, %v10429_v25  ;;  %v10505_v25 = vld [vmem:[%s17635_s6 + $0x368] sm:$0xff] }
 0x6da   :  { %11937 = vmatmul.mubr.msk.f32.gmra.mxu1 %vm2056_vm10, %v10473_v32  ;;  %11943 = vmatpush3.msra.mxu0 %v15088_v38  ;;  %v10524_v38 = vld [vmem:[%s17635_s6 + $0x380] sm:$0xff]  ;;  %v10597_v32 = vld [vmem:[%s17635_s6 + $0x4c8] sm:$0xff] }
 0x6db   :  { %11944 = vmatprep.subr.mxu0 %v15230_v49  ;;  %11893 = vmatprep.mubr.msk.f32.mxu0 %vm2056_vm10, %v10430_v39  ;;  %v10506_v39 = vld [vmem:[%s17635_s6 + $0x370] sm:$0xff] }
 0x6dc   :  { %11945 = vmatpush3.msra.mxu0 %v15230_v49  ;;  %11939 = vmatprep.mubr.msk.f32.mxu1 %vm2056_vm10, %v10474_v21  ;;  %v10535_v49 = vld [vmem:[%s17635_s6 + $0x3d8] sm:$0xff]  ;;  %v10598_v21 = vld [vmem:[%s17635_s6 + $0x4d0] sm:$0xff] }
 0x6dd   :  { %11998 = vmatprep.subr.mxu0 %v15242_v63  ;;  %11894 = vmatmul.mubr.msk.f32.gmra.mxu0 %vm2056_vm10, %v10431_v16  ;;  %v10507_v16 = vld [vmem:[%s17635_s6 + $0x378] sm:$0xff] }
 0x6de   :  { %11940 = vmatmul.mubr.msk.f32.gmra.mxu1 %vm2056_vm10, %v10475_v4  ;;  %11896 = vmatprep.mubr.msk.f32.mxu0 %vm2056_vm10, %v10432_v15  ;;  %v10599_v4 = vld [vmem:[%s17635_s6 + $0x4d8] sm:$0xff]  ;;  %v10556_v15 = vld [vmem:[%s17635_s6 + $0x400] sm:$0xff] }
 0x6df   :  { %11974 = vmatprep.mubr.msk.f32.mxu1 %vm2056_vm10, %v10524_v38  ;;  %v10600_v38 = vld [vmem:[%s17635_s6 + $0x4e0] sm:$0xff] }
 0x6e1   :  { %11897 = vmatmul.mubr.msk.f32.gmra.mxu0 %vm2056_vm10, %v10433_v22  ;;  %v10601_v22 = vld [vmem:[%s17635_s6 + $0x4e8] sm:$0xff] }
 0x6e2   :  { %11975 = vmatmul.mubr.msk.f32.vlgmr.msra.gmra.mxu1 %vm2056_vm10, %v10525_v27  ;;  %11899 = vmatprep.mubr.msk.f32.mxu0 %vm2056_vm10, %v10434_v36  ;;  %v10558_v27 = vld [vmem:[%s17635_s6 + $0x410] sm:$0xff] }
 0x6e3   :  { %12027 = vmatpush3.msra.mxu1 %v15274_v51  ;;  %11977 = vmatprep.mubr.msk.f32.mxu1 %vm2056_vm10, %v10526_v56  ;;  %v15529_v51 = vpop.permute.xlu1 %6356  ;;  %v10602_v36 = vld [vmem:[%s17635_s6 + $0x4f0] sm:$0xff]  ;;  %v10559_v56 = vld [vmem:[%s17635_s6 + $0x418] sm:$0xff] }
 0x6e4   :  { %12028 = vmatprep.subr.mxu1 %v5659_v8 }
 0x6e5   :  { %12029 = vmatpush3.msra.mxu1 %v5659_v8  ;;  %11900 = vmatmul.mubr.msk.f32.gmra.mxu0 %vm2056_vm10, %v10435_v37  ;;  %v10603_v37 = vld [vmem:[%s17635_s6 + $0x4f8] sm:$0xff]  ;;  %v10560_v8 = vld [vmem:[%s17635_s6 + $0x420] sm:$0xff] }
 0x6e6   :  { %12082 = vmatprep.subr.mxu1 %v15418_v18  ;;  %11978 = vmatmul.mubr.msk.f32.gmra.mxu1 %vm2056_vm10, %v10527_v0  ;;  %v15660_v0 = vpop.permute.xlu0 %6354 }
 0x6e7   :  { %11902 = vmatprep.mubr.msk.f32.mxu0 %vm2056_vm10, %v10436_v33  ;;  %11980 = vmatprep.mubr.msk.f32.mxu1 %vm2056_vm10, %v10528_v20  ;;  %v15558_v52 = vpop.permute.xlu1 %6588  ;;  %v10561_v33 = vld [vmem:[%s17635_s6 + $0x428] sm:$0xff] }
 0x6e9   :  { %11903 = vmatmul.mubr.msk.f32.gmra.mxu0 %vm2056_vm10, %v10437_v1  ;;  %v10562_v1 = vld [vmem:[%s17635_s6 + $0x430] sm:$0xff] }
 0x6ea   :  { %11981 = vmatmul.mubr.msk.f32.gmra.mxu1 %vm2056_vm10, %v10529_v30  ;;  %11905 = vmatprep.mubr.msk.f32.mxu0 %vm2056_vm10, %v10438_v58  ;;  %v10654_v30 = vld [vmem:[%s17635_s6 + $0x590] sm:$0xff]  ;;  %v10563_v58 = vld [vmem:[%s17635_s6 + $0x438] sm:$0xff] }
 0x6eb   :  { %11983 = vmatprep.mubr.msk.f32.mxu1 %vm2056_vm10, %v10530_v50  ;;  %v15669_v20 = vpop.permute.xlu1 %6820  ;;  %v15687_v50 = vpop.f32.mrf.mxu1 }
 0x6ed   :  { %11906 = vmatmul.mubr.msk.f32.gmra.mxu0 %vm2056_vm10, %v10439_v2  ;;  %v6587_v2 = vpop.permute.xlu0 %6586 }
 0x6ee   :  { %11984 = vmatmul.mubr.msk.f32.gmra.mxu1 %vm2056_vm10, %v10531_v3  ;;  %11908 = vmatprep.mubr.msk.f32.mxu0 %vm2056_vm10, %v10440_v23  ;;  %v10655_v3 = vld [vmem:[%s17635_s6 + $0x598] sm:$0xff]  ;;  %v10564_v23 = vld [vmem:[%s17635_s6 + $0x440] sm:$0xff] }
 0x6ef   :  { %11986 = vmatprep.mubr.msk.f32.mxu1 %vm2056_vm10, %v10532_v57  ;;  %v10656_v57 = vld [vmem:[%s17635_s6 + $0x5a0] sm:$0xff] }
 0x6f1   :  { %11909 = vmatmul.mubr.msk.f32.gmra.mxu0 %vm2056_vm10, %v10441_v47  ;;  %v15700_v47 = vpop.permute.xlu1 %7052 }
 0x6f2   :  { %11987 = vmatmul.mubr.msk.f32.gmra.mxu1 %vm2056_vm10, %v10533_v45  ;;  %11911 = vmatprep.mubr.msk.f32.mxu0 %vm2056_vm10, %v10442_v53  ;;  %v10565_v45 = vld [vmem:[%s17635_s6 + $0x448] sm:$0xff]  ;;  %v15708_v53 = vpop.f32.mrf.mxu1 }
 0x6f3   :  { %11989 = vmatprep.mubr.msk.f32.mxu1 %vm2056_vm10, %v10534_v40  ;;  %v10657_v40 = vld [vmem:[%s17635_s6 + $0x5a8] sm:$0xff] }
 0x6f5   :  { %11912 = vmatmul.mubr.msk.f32.gmra.mxu0 %vm2056_vm10, %v10443_v31  ;;  %v10566_v31 = vld [vmem:[%s17635_s6 + $0x450] sm:$0xff] }
 0x6f6   :  { %11990 = vmatmul.mubr.msk.f32.gmra.mxu1 %vm2056_vm10, %v10535_v49  ;;  %11946 = vmatprep.mubr.msk.f32.mxu0 %vm2056_vm10, %v10492_v26  ;;  %v10658_v49 = vld [vmem:[%s17635_s6 + $0x5b0] sm:$0xff]  ;;  %v10567_v26 = vld [vmem:[%s17635_s6 + $0x458] sm:$0xff] }
 0x6f7   :  { %11992 = vmatprep.mubr.msk.f32.mxu1 %vm2056_vm10, %v10536_v17  ;;  %v15727_v17 = vpop.f32.mrf.mxu1 }
 0x6f9   :  { %11947 = vmatmul.mubr.msk.f32.vlgmr.msra.gmra.mxu0 %vm2056_vm10, %v10493_v19  ;;  %v10659_v19 = vld [vmem:[%s17635_s6 + $0x5b8] sm:$0xff] }
 0x6fa   :  { %11993 = vmatmul.mubr.msk.f32.gmra.mxu1 %vm2056_vm10, %v10537_v12  ;;  %11999 = vmatpush3.msra.mxu0 %v15242_v63  ;;  %v10588_v63 = vld [vmem:[%s17635_s6 + $0x480] sm:$0xff] }
 0x6fb   :  { %12000 = vmatprep.subr.mxu0 %v15380_v55  ;;  %11949 = vmatprep.mubr.msk.f32.mxu0 %vm2056_vm10, %v10494_v44  ;;  %v10568_v12 = vld [vmem:[%s17635_s6 + $0x460] sm:$0xff] }
 0x6fc   :  { %12001 = vmatpush3.msra.mxu0 %v15380_v55  ;;  %11995 = vmatprep.mubr.msk.f32.mxu1 %vm2056_vm10, %v10538_v61  ;;  %v10557_v55 = vld [vmem:[%s17635_s6 + $0x408] sm:$0xff]  ;;  %v10660_v44 = vld [vmem:[%s17635_s6 + $0x5c0] sm:$0xff] }
 0x6fd   :  { %12054 = vmatprep.subr.mxu0 %v15389_v62  ;;  %11950 = vmatmul.mubr.msk.f32.gmra.mxu0 %vm2056_vm10, %v10495_v60  ;;  %v10569_v61 = vld [vmem:[%s17635_s6 + $0x468] sm:$0xff]  ;;  %v15745_v60 = vpop.f32.mrf.mxu1 }
 0x6fe   :  { %11996 = vmatmul.mubr.msk.f32.gmra.mxu1 %vm2056_vm10, %v10539_v28  ;;  %11952 = vmatprep.mubr.msk.f32.mxu0 %vm2056_vm10, %v10496_v11  ;;  %v10661_v28 = vld [vmem:[%s17635_s6 + $0x5c8] sm:$0xff]  ;;  %v10570_v11 = vld [vmem:[%s17635_s6 + $0x470] sm:$0xff] }
 0x6ff   :  { %12030 = vmatprep.mubr.msk.f32.mxu1 %vm2056_vm10, %v10588_v63  ;;  %v10662_v63 = vld [vmem:[%s17635_s6 + $0x5d0] sm:$0xff] }
 0x701   :  { %11953 = vmatmul.mubr.msk.f32.gmra.mxu0 %vm2056_vm10, %v10497_v41  ;;  %v15763_v41 = vpop.f32.mrf.mxu1 }
 0x702   :  { %12031 = vmatmul.mubr.msk.f32.vlgmr.msra.gmra.mxu1 %vm2056_vm10, %v10589_v42  ;;  %11955 = vmatprep.mubr.msk.f32.mxu0 %vm2056_vm10, %v10498_v43  ;;  %v10663_v42 = vld [vmem:[%s17635_s6 + $0x5d8] sm:$0xff]  ;;  %v10620_v43 = vld [vmem:[%s17635_s6 + $0x500] sm:$0xff] }
 0x703   :  { %12083 = vmatpush3.msra.mxu1 %v15418_v18  ;;  %12033 = vmatprep.mubr.msk.f32.mxu1 %vm2056_vm10, %v10590_v13  ;;  %v10653_v18 = vld [vmem:[%s17635_s6 + $0x588] sm:$0xff]  ;;  %v10664_v13 = vld [vmem:[%s17635_s6 + $0x5e0] sm:$0xff] }
 0x704   :  { %12084 = vmatprep.subr.mxu1 %v6123_v7 }
 0x705   :  { %12085 = vmatpush3.msra.mxu1 %v6123_v7  ;;  %11956 = vmatmul.mubr.msk.f32.gmra.mxu0 %vm2056_vm10, %v10499_v34  ;;  %v10621_v34 = vld [vmem:[%s17635_s6 + $0x508] sm:$0xff]  ;;  %v15781_v7 = vpop.f32.mrf.mxu1 }
 0x706   :  { %12138 = vmatprep.subr.mxu1 %v15558_v52  ;;  %12034 = vmatmul.mubr.msk.f32.gmra.mxu1 %vm2056_vm10, %v10591_v14  ;;  %v10665_v14 = vld [vmem:[%s17635_s6 + $0x5e8] sm:$0xff] }
 0x707   :  { %11958 = vmatprep.mubr.msk.f32.mxu0 %vm2056_vm10, %v10500_v10  ;;  %12036 = vmatprep.mubr.msk.f32.mxu1 %vm2056_vm10, %v10592_v46  ;;  %v10622_v10 = vld [vmem:[%s17635_s6 + $0x510] sm:$0xff] }
 0x708   :  { %v10666_v46 = vld [vmem:[%s17635_s6 + $0x5f0] sm:$0xff] }
 0x709   :  { %11959 = vmatmul.mubr.msk.f32.gmra.mxu0 %vm2056_vm10, %v10501_v59  ;;  %v15799_v59 = vpop.f32.mrf.mxu1 }
 0x70a   :  { %12037 = vmatmul.mubr.msk.f32.gmra.mxu1 %vm2056_vm10, %v10593_v35  ;;  %11961 = vmatprep.mubr.msk.f32.mxu0 %vm2056_vm10, %v10502_v48  ;;  %v10667_v35 = vld [vmem:[%s17635_s6 + $0x5f8] sm:$0xff]  ;;  %v10624_v48 = vld [vmem:[%s17635_s6 + $0x520] sm:$0xff] }
 0x70b   :  { %12039 = vmatprep.mubr.msk.f32.mxu1 %vm2056_vm10, %v10594_v54  ;;  %v15814_v54 = vpop.permute.xlu0 %6818 }
 0x70d   :  { %11962 = vmatmul.mubr.msk.f32.gmra.mxu0 %vm2056_vm10, %v10503_v24  ;;  %v10625_v24 = vld [vmem:[%s17635_s6 + $0x528] sm:$0xff] }
 0x70e   :  { %12040 = vmatmul.mubr.msk.f32.gmra.mxu1 %vm2056_vm10, %v10595_v6  ;;  %11964 = vmatprep.mubr.msk.f32.mxu0 %vm2056_vm10, %v10504_v29  ;;  %v15823_v6 = vpop.f32.mrf.mxu1  ;;  %v15825_v29 = vpop.permute.xlu1 %7284 }
 0x70f   :  { %12042 = vmatprep.mubr.msk.f32.mxu1 %vm2056_vm10, %v10596_v9  ;;  %v10717_v9 = vld [vmem:[%s17635_s6 + $0x688] sm:$0xff] }
 0x711   :  { %11965 = vmatmul.mubr.msk.f32.gmra.mxu0 %vm2056_vm10, %v10505_v25  ;;  %v10626_v25 = vld [vmem:[%s17635_s6 + $0x530] sm:$0xff] }
 0x712   :  { %12043 = vmatmul.mubr.msk.f32.gmra.mxu1 %vm2056_vm10, %v10597_v32  ;;  %11967 = vmatprep.mubr.msk.f32.mxu0 %vm2056_vm10, %v10506_v39  ;;  %v10718_v32 = vld [vmem:[%s17635_s6 + $0x690] sm:$0xff]  ;;  %v10627_v39 = vld [vmem:[%s17635_s6 + $0x538] sm:$0xff] }
 0x713   :  { %12045 = vmatprep.mubr.msk.f32.mxu1 %vm2056_vm10, %v10598_v21  ;;  %v15843_v21 = vpop.f32.mrf.mxu1 }
 0x715   :  { %11968 = vmatmul.mubr.msk.f32.gmra.mxu0 %vm2056_vm10, %v10507_v16  ;;  %v7051_v16 = vpop.permute.xlu0 %7050 }
 0x716   :  { %12046 = vmatmul.mubr.msk.f32.gmra.mxu1 %vm2056_vm10, %v10599_v4  ;;  %12002 = vmatprep.mubr.msk.f32.mxu0 %vm2056_vm10, %v10556_v15  ;;  %v10719_v4 = vld [vmem:[%s17635_s6 + $0x698] sm:$0xff]  ;;  %v10628_v15 = vld [vmem:[%s17635_s6 + $0x540] sm:$0xff] }
 0x717   :  { %12048 = vmatprep.mubr.msk.f32.mxu1 %vm2056_vm10, %v10600_v38  ;;  %v10720_v38 = vld [vmem:[%s17635_s6 + $0x6a0] sm:$0xff] }
 0x719   :  { %12003 = vmatmul.mubr.msk.f32.vlgmr.msra.gmra.mxu0 %vm2056_vm10, %v10557_v55  ;;  %v15856_v55 = vpop.permute.xlu1 %7516 }
 0x71a   :  { %12049 = vmatmul.mubr.msk.f32.gmra.mxu1 %vm2056_vm10, %v10601_v22  ;;  %12055 = vmatpush3.msra.mxu0 %v15389_v62  ;;  %v10652_v62 = vld [vmem:[%s17635_s6 + $0x580] sm:$0xff]  ;;  %v10629_v22 = vld [vmem:[%s17635_s6 + $0x548] sm:$0xff] }
 0x71b   :  { %12056 = vmatprep.subr.mxu0 %v15520_v5  ;;  %12005 = vmatprep.mubr.msk.f32.mxu0 %vm2056_vm10, %v10558_v27  ;;  %v15864_v27 = vpop.f32.mrf.mxu1 }
 0x71c   :  { %12057 = vmatpush3.msra.mxu0 %v15520_v5  ;;  %12051 = vmatprep.mubr.msk.f32.mxu1 %vm2056_vm10, %v10602_v36  ;;  %v10571_v5 = vld [vmem:[%s17635_s6 + $0x478] sm:$0xff]  ;;  %v10721_v36 = vld [vmem:[%s17635_s6 + $0x6a8] sm:$0xff] }
 0x71d   :  { %12110 = vmatprep.subr.mxu0 %v15529_v51  ;;  %12006 = vmatmul.mubr.msk.f32.gmra.mxu0 %vm2056_vm10, %v10559_v56  ;;  %v10630_v56 = vld [vmem:[%s17635_s6 + $0x550] sm:$0xff] }
 0x71e   :  { %12052 = vmatmul.mubr.msk.f32.gmra.mxu1 %vm2056_vm10, %v10603_v37  ;;  %12008 = vmatprep.mubr.msk.f32.mxu0 %vm2056_vm10, %v10560_v8  ;;  %v10722_v37 = vld [vmem:[%s17635_s6 + $0x6b0] sm:$0xff]  ;;  %v10631_v8 = vld [vmem:[%s17635_s6 + $0x558] sm:$0xff] }
 0x71f   :  { %12086 = vmatprep.mubr.msk.f32.mxu1 %vm2056_vm10, %v10652_v62  ;;  %v15883_v62 = vpop.f32.mrf.mxu1 }
 0x721   :  { %12009 = vmatmul.mubr.msk.f32.gmra.mxu0 %vm2056_vm10, %v10561_v33  ;;  %v10632_v33 = vld [vmem:[%s17635_s6 + $0x560] sm:$0xff] }
 0x722   :  { %12087 = vmatmul.mubr.msk.f32.vlgmr.msra.gmra.mxu1 %vm2056_vm10, %v10653_v18  ;;  %12011 = vmatprep.mubr.msk.f32.mxu0 %vm2056_vm10, %v10562_v1  ;;  %v10724_v18 = vld [vmem:[%s17635_s6 + $0x6c0] sm:$0xff]  ;;  %v10633_v1 = vld [vmem:[%s17635_s6 + $0x568] sm:$0xff] }
 0x723   :  { %12139 = vmatpush3.msra.mxu1 %v15558_v52  ;;  %12089 = vmatprep.mubr.msk.f32.mxu1 %vm2056_vm10, %v10654_v30  ;;  %v10623_v52 = vld [vmem:[%s17635_s6 + $0x518] sm:$0xff]  ;;  %v15901_v30 = vpop.f32.mrf.mxu1 }
 0x724   :  { %12140 = vmatprep.subr.mxu1 %v6587_v2 }
 0x725   :  { %12141 = vmatpush3.msra.mxu1 %v6587_v2  ;;  %12012 = vmatmul.mubr.msk.f32.gmra.mxu0 %vm2056_vm10, %v10563_v58  ;;  %v10725_v58 = vld [vmem:[%s17635_s6 + $0x6c8] sm:$0xff]  ;;  %v10634_v2 = vld [vmem:[%s17635_s6 + $0x570] sm:$0xff] }
 0x726   :  { %12194 = vmatprep.subr.mxu1 %v15700_v47  ;;  %12090 = vmatmul.mubr.msk.f32.gmra.mxu1 %vm2056_vm10, %v10655_v3  ;;  %v10726_v3 = vld [vmem:[%s17635_s6 + $0x6d0] sm:$0xff] }
 0x727   :  { %12014 = vmatprep.mubr.msk.f32.mxu0 %vm2056_vm10, %v10564_v23  ;;  %12092 = vmatprep.mubr.msk.f32.mxu1 %vm2056_vm10, %v10656_v57  ;;  %v10635_v23 = vld [vmem:[%s17635_s6 + $0x578] sm:$0xff]  ;;  %v15919_v57 = vpop.f32.mrf.mxu1 }
 0x729   :  { %12015 = vmatmul.mubr.msk.f32.gmra.mxu0 %vm2056_vm10, %v10565_v45  ;;  %v10684_v45 = vld [vmem:[%s17635_s6 + $0x600] sm:$0xff] }
 0x72a   :  { %12093 = vmatmul.mubr.msk.f32.gmra.mxu1 %vm2056_vm10, %v10657_v40  ;;  %12017 = vmatprep.mubr.msk.f32.mxu0 %vm2056_vm10, %v10566_v31  ;;  %v10728_v40 = vld [vmem:[%s17635_s6 + $0x6e0] sm:$0xff]  ;;  %v10685_v31 = vld [vmem:[%s17635_s6 + $0x608] sm:$0xff] }
 0x72b   :  { %12095 = vmatprep.mubr.msk.f32.mxu1 %vm2056_vm10, %v10658_v49  ;;  %v15937_v49 = vpop.f32.mrf.mxu1 }
 0x72d   :  { %12018 = vmatmul.mubr.msk.f32.gmra.mxu0 %vm2056_vm10, %v10567_v26 }
 0x72e   :  { %12096 = vmatmul.mubr.msk.f32.gmra.mxu1 %vm2056_vm10, %v10659_v19  ;;  %12020 = vmatprep.mubr.msk.f32.mxu0 %vm2056_vm10, %v10568_v12  ;;  %v10729_v19 = vld [vmem:[%s17635_s6 + $0x6e8] sm:$0xff]  ;;  %v10686_v12 = vld [vmem:[%s17635_s6 + $0x610] sm:$0xff] }
 0x72f   :  { %12098 = vmatprep.mubr.msk.f32.mxu1 %vm2056_vm10, %v10660_v44 }
 0x731   :  { %12021 = vmatmul.mubr.msk.f32.gmra.mxu0 %vm2056_vm10, %v10569_v61  ;;  %v10730_v61 = vld [vmem:[%s17635_s6 + $0x6f0] sm:$0xff] }
 0x732   :  { %12099 = vmatmul.mubr.msk.f32.gmra.mxu1 %vm2056_vm10, %v10661_v28  ;;  %12023 = vmatprep.mubr.msk.f32.mxu0 %vm2056_vm10, %v10570_v11  ;;  %v10687_v28 = vld [vmem:[%s17635_s6 + $0x618] sm:$0xff]  ;;  %v15959_v11 = vpop.f32.mrf.mxu1 }
 0x733   :  { %12101 = vmatprep.mubr.msk.f32.mxu1 %vm2056_vm10, %v10662_v63  ;;  %v10731_v63 = vld [vmem:[%s17635_s6 + $0x6f8] sm:$0xff] }
 0x735   :  { %12024 = vmatmul.mubr.msk.f32.gmra.mxu0 %vm2056_vm10, %v10571_v5  ;;  %v10688_v5 = vld [vmem:[%s17635_s6 + $0x620] sm:$0xff] }
 0x736   :  { %12102 = vmatmul.mubr.msk.f32.gmra.mxu1 %vm2056_vm10, %v10663_v42  ;;  %12058 = vmatprep.mubr.msk.f32.mxu0 %vm2056_vm10, %v10620_v43  ;;  %v10780_v42 = vld [vmem:[%s17635_s6 + $0x780] sm:$0xff]  ;;  %v15976_v43 = vpop.permute.xlu0 %7282 }
 0x737   :  { %12104 = vmatprep.mubr.msk.f32.mxu1 %vm2056_vm10, %v10664_v13 }
 0x739   :  { %12059 = vmatmul.mubr.msk.f32.vlgmr.msra.gmra.mxu0 %vm2056_vm10, %v10621_v34  ;;  %v10689_v34 = vld [vmem:[%s17635_s6 + $0x628] sm:$0xff] }
 0x73a   :  { %12105 = vmatmul.mubr.msk.f32.gmra.mxu1 %vm2056_vm10, %v10665_v14  ;;  %12111 = vmatpush3.msra.mxu0 %v15529_v51  ;;  %v10716_v51 = vld [vmem:[%s17635_s6 + $0x680] sm:$0xff]  ;;  %v15987_v14 = vpop.f32.mrf.mxu1 }
 0x73b   :  { %12112 = vmatprep.subr.mxu0 %v15660_v0  ;;  %12061 = vmatprep.mubr.msk.f32.mxu0 %vm2056_vm10, %v10622_v10  ;;  %v15989_v10 = vpop.permute.xlu1 %7748 }
 0x73c   :  { %12113 = vmatpush3.msra.mxu0 %v15660_v0  ;;  %12107 = vmatprep.mubr.msk.f32.mxu1 %vm2056_vm10, %v10666_v46  ;;  %v10723_v0 = vld [vmem:[%s17635_s6 + $0x6b8] sm:$0xff]  ;;  %v10781_v46 = vld [vmem:[%s17635_s6 + $0x788] sm:$0xff] }
 0x73d   :  { %12166 = vmatprep.subr.mxu0 %v15669_v20  ;;  %12062 = vmatmul.mubr.msk.f32.gmra.mxu0 %vm2056_vm10, %v10623_v52  ;;  %v10690_v52 = vld [vmem:[%s17635_s6 + $0x630] sm:$0xff] }
 0x73e   :  { %12108 = vmatmul.mubr.msk.f32.gmra.mxu1 %vm2056_vm10, %v10667_v35  ;;  %12064 = vmatprep.mubr.msk.f32.mxu0 %vm2056_vm10, %v10624_v48  ;;  %v10782_v48 = vld [vmem:[%s17635_s6 + $0x790] sm:$0xff] }
 0x73f   :  { %12142 = vmatprep.mubr.msk.f32.mxu1 %vm2056_vm10, %v10716_v51 }
 0x741   :  { %12065 = vmatmul.mubr.msk.f32.gmra.mxu0 %vm2056_vm10, %v10625_v24  ;;  %v10691_v24 = vld [vmem:[%s17635_s6 + $0x638] sm:$0xff] }
 0x742   :  { %12143 = vmatmul.mubr.msk.f32.vlgmr.msra.gmra.mxu1 %vm2056_vm10, %v10717_v9  ;;  %12067 = vmatprep.mubr.msk.f32.mxu0 %vm2056_vm10, %v10626_v25  ;;  %v7515_v25 = vpop.permute.xlu0 %7514 }
 0x743   :  { %12195 = vmatpush3.msra.mxu1 %v15700_v47  ;;  %12145 = vmatprep.mubr.msk.f32.mxu1 %vm2056_vm10, %v10718_v32  ;;  %v10727_v47 = vld [vmem:[%s17635_s6 + $0x6d8] sm:$0xff] }
 0x744   :  { %12196 = vmatprep.subr.mxu1 %v7051_v16  ;;  %v10783_v32 = vld [vmem:[%s17635_s6 + $0x798] sm:$0xff] }
 0x745   :  { %12197 = vmatpush3.msra.mxu1 %v7051_v16  ;;  %12068 = vmatmul.mubr.msk.f32.gmra.mxu0 %vm2056_vm10, %v10627_v39  ;;  %v10692_v16 = vld [vmem:[%s17635_s6 + $0x640] sm:$0xff] }
 0x746   :  { %12250 = vmatprep.subr.mxu1 %v15856_v55  ;;  %12146 = vmatmul.mubr.msk.f32.gmra.mxu1 %vm2056_vm10, %v10719_v4  ;;  %v10784_v4 = vld [vmem:[%s17635_s6 + $0x7a0] sm:$0xff] }
 0x747   :  { %12070 = vmatprep.mubr.msk.f32.mxu0 %vm2056_vm10, %v10628_v15  ;;  %12148 = vmatprep.mubr.msk.f32.mxu1 %vm2056_vm10, %v10720_v38  ;;  %v16030_v38 = vpop.permute.xlu1 %7980 }
 0x749   :  { %12071 = vmatmul.mubr.msk.f32.gmra.mxu0 %vm2056_vm10, %v10629_v22  ;;  %v10693_v22 = vld [vmem:[%s17635_s6 + $0x648] sm:$0xff] }
 0x74a   :  { %12149 = vmatmul.mubr.msk.f32.gmra.mxu1 %vm2056_vm10, %v10721_v36  ;;  %12073 = vmatprep.mubr.msk.f32.mxu0 %vm2056_vm10, %v10630_v56  ;;  %v10785_v56 = vld [vmem:[%s17635_s6 + $0x7a8] sm:$0xff] }
 0x74b   :  { %12151 = vmatprep.mubr.msk.f32.mxu1 %vm2056_vm10, %v10722_v37  ;;  %v10694_v37 = vld [vmem:[%s17635_s6 + $0x650] sm:$0xff] }
 0x74d   :  { %12074 = vmatmul.mubr.msk.f32.gmra.mxu0 %vm2056_vm10, %v10631_v8 }
 0x74e   :  { %12152 = vmatmul.mubr.msk.f32.gmra.mxu1 %vm2056_vm10, %v10723_v0  ;;  %12076 = vmatprep.mubr.msk.f32.mxu0 %vm2056_vm10, %v10632_v33  ;;  %v10786_v0 = vld [vmem:[%s17635_s6 + $0x7b0] sm:$0xff] }
 0x74f   :  { %12154 = vmatprep.mubr.msk.f32.mxu1 %vm2056_vm10, %v10724_v18 }
 0x751   :  { %12077 = vmatmul.mubr.msk.f32.gmra.mxu0 %vm2056_vm10, %v10633_v1  ;;  %v10695_v1 = vld [vmem:[%s17635_s6 + $0x658] sm:$0xff] }
 0x752   :  { %12155 = vmatmul.mubr.msk.f32.gmra.mxu1 %vm2056_vm10, %v10725_v58  ;;  %12079 = vmatprep.mubr.msk.f32.mxu0 %vm2056_vm10, %v10634_v2  ;;  %v10787_v2 = vld [vmem:[%s17635_s6 + $0x7b8] sm:$0xff] }
 0x753   :  { %12157 = vmatprep.mubr.msk.f32.mxu1 %vm2056_vm10, %v10726_v3  ;;  %v10696_v3 = vld [vmem:[%s17635_s6 + $0x660] sm:$0xff] }
 0x755   :  { %12080 = vmatmul.mubr.msk.f32.gmra.mxu0 %vm2056_vm10, %v10635_v23 }
 0x756   :  { %12158 = vmatmul.mubr.msk.f32.gmra.mxu1 %vm2056_vm10, %v10727_v47  ;;  %12114 = vmatprep.mubr.msk.f32.mxu0 %vm2056_vm10, %v10684_v45  ;;  %v10788_v47 = vld [vmem:[%s17635_s6 + $0x7c0] sm:$0xff] }
 0x757   :  { %12160 = vmatprep.mubr.msk.f32.mxu1 %vm2056_vm10, %v10728_v40  ;;  %v15940_v26 = vpop.f32.mrf.mxu0 }
 0x759   :  { %12115 = vmatmul.mubr.msk.f32.vlgmr.msra.gmra.mxu0 %vm2056_vm10, %v10685_v31  ;;  %v15949_v44 = vpop.f32.mrf.mxu0  ;;  %v10697_v31 = vld [vmem:[%s17635_s6 + $0x668] sm:$0xff] }
 0x75a   :  { %12161 = vmatmul.mubr.msk.f32.gmra.mxu1 %vm2056_vm10, %v10729_v19  ;;  %12167 = vmatpush3.msra.mxu0 %v15669_v20 }
 0x75b   :  { %12168 = vmatprep.subr.mxu0 %v15814_v54  ;;  %12117 = vmatprep.mubr.msk.f32.mxu0 %vm2056_vm10, %v10686_v12  ;;  %v10789_v12 = vld [vmem:[%s17635_s6 + $0x7c8] sm:$0xff] }
 0x75c   :  { %12169 = vmatpush3.msra.mxu0 %v15814_v54  ;;  %12163 = vmatprep.mubr.msk.f32.mxu1 %vm2056_vm10, %v10730_v61  ;;  %v15971_v20 = vpop.f32.mrf.mxu0  ;;  %v10698_v61 = vld [vmem:[%s17635_s6 + $0x670] sm:$0xff] }
 0x75d   :  { %12222 = vmatprep.subr.mxu0 %v15825_v29  ;;  %12118 = vmatmul.mubr.msk.f32.gmra.mxu0 %vm2056_vm10, %v10687_v28 }
 0x75e   :  { %12164 = vmatmul.mubr.msk.f32.gmra.mxu1 %vm2056_vm10, %v10731_v63  ;;  %v15981_v13 = vpop.f32.mrf.mxu0  ;;  %12120 = vmatprep.mubr.msk.f32.mxu0 %vm2056_vm10, %v10688_v5  ;;  %v10790_v63 = vld [vmem:[%s17635_s6 + $0x7d0] sm:$0xff] }
 0x75f   :  { %12198 = vmatprep.mubr.msk.f32.mxu1 %vm2056_vm10, %v10780_v42 }
 0x760   :  { %v15998_v35 = vpop.f32.mrf.mxu0  ;;  %v16003_v51 = vpop.f32.mrf.mxu1 }
 0x761   :  { %12121 = vmatmul.mubr.msk.f32.gmra.mxu0 %vm2056_vm10, %v10689_v34  ;;  %v10699_v34 = vld [vmem:[%s17635_s6 + $0x678] sm:$0xff] }
 0x762   :  { %12199 = vmatmul.mubr.msk.f32.vlgmr.msra.gmra.mxu1 %vm2056_vm10, %v10781_v46  ;;  %v16007_v54 = vpop.f32.mrf.mxu0  ;;  %12123 = vmatprep.mubr.msk.f32.mxu0 %vm2056_vm10, %v10690_v52  ;;  %v16013_v9 = vpop.f32.mrf.mxu1  ;;  %v10791_v52 = vld [vmem:[%s17635_s6 + $0x7d8] sm:$0xff] }
 0x763   :  { %12251 = vmatpush3.msra.mxu1 %v15856_v55  ;;  %12201 = vmatprep.mubr.msk.f32.mxu1 %vm2056_vm10, %v10782_v48  ;;  %v10748_v48 = vld [vmem:[%s17635_s6 + $0x700] sm:$0xff] }
 0x764   :  { %12252 = vmatprep.subr.mxu1 %v7515_v25  ;;  %v16020_v39 = vpop.f32.mrf.mxu0  ;;  %v16028_v15 = vpop.f32.mrf.mxu1 }
 0x765   :  { %12253 = vmatpush3.msra.mxu1 %v7515_v25  ;;  %12124 = vmatmul.mubr.msk.f32.gmra.mxu0 %vm2056_vm10, %v10691_v24  ;;  %v10792_v25 = vld [vmem:[%s17635_s6 + $0x7e0] sm:$0xff] }
 0x766   :  { %12306 = vmatprep.subr.mxu1 %v16030_v38  ;;  %12202 = vmatmul.mubr.msk.f32.gmra.mxu1 %vm2056_vm10, %v10783_v32  ;;  %v16035_v55 = vpop.f32.mrf.mxu0  ;;  %v16040_v36 = vpop.f32.mrf.mxu1 }
 0x767   :  { %12126 = vmatprep.mubr.msk.f32.mxu0 %vm2056_vm10, %v10692_v16  ;;  %12204 = vmatprep.mubr.msk.f32.mxu1 %vm2056_vm10, %v10784_v4  ;;  %v10749_v4 = vld [vmem:[%s17635_s6 + $0x708] sm:$0xff] }
 0x768   :  { %v16050_v8 = vpop.f32.mrf.mxu0  ;;  %v16055_v33 = vpop.f32.mrf.mxu1 }
 0x769   :  { %12127 = vmatmul.mubr.msk.f32.gmra.mxu0 %vm2056_vm10, %v10693_v22 }
 0x76a   :  { %12205 = vmatmul.mubr.msk.f32.gmra.mxu1 %vm2056_vm10, %v10785_v56  ;;  %v16059_v18 = vpop.f32.mrf.mxu0  ;;  %12129 = vmatprep.mubr.msk.f32.mxu0 %vm2056_vm10, %v10694_v37  ;;  %v16065_v58 = vpop.f32.mrf.mxu1  ;;  %v3944_v56 = vadd.f32 %v15687_v50, %v15940_v26  ;;  %v10794_v26 = vld [vmem:[%s17635_s6 + $0x7f0] sm:$0xff] }
 0x76b   :  { %12207 = vmatprep.mubr.msk.f32.mxu1 %vm2056_vm10, %v10786_v0  ;;  %v10793_v0 = vld [vmem:[%s17635_s6 + $0x7e8] sm:$0xff] }
 0x76c   :  { %v16074_v23 = vpop.f32.mrf.mxu0  ;;  %v16079_v45 = vpop.f32.mrf.mxu1 }
 0x76d   :  { %12130 = vmatmul.mubr.msk.f32.gmra.mxu0 %vm2056_vm10, %v10695_v1 }
 0x76e   :  { %12208 = vmatmul.mubr.msk.f32.gmra.mxu1 %vm2056_vm10, %v10787_v2  ;;  %v16083_v40 = vpop.f32.mrf.mxu0  ;;  %12132 = vmatprep.mubr.msk.f32.mxu0 %vm2056_vm10, %v10696_v3  ;;  %v16089_v19 = vpop.f32.mrf.mxu1  ;;  %v10750_v2 = vld [vmem:[%s17635_s6 + $0x710] sm:$0xff] }
 0x76f   :  { %12210 = vmatprep.mubr.msk.f32.mxu1 %vm2056_vm10, %v10788_v47  ;;  %v3939_v47 = vadd.f32 %v15708_v53, %v15949_v44 }
 0x770   :  { %v16098_v28 = vpop.f32.mrf.mxu0  ;;  %v16103_v5 = vpop.f32.mrf.mxu1 }
 0x771   :  { %12133 = vmatmul.mubr.msk.f32.gmra.mxu0 %vm2056_vm10, %v10697_v31  ;;  %v10751_v31 = vld [vmem:[%s17635_s6 + $0x718] sm:$0xff] }
 0x772   :  { %12211 = vmatmul.mubr.msk.f32.gmra.mxu1 %vm2056_vm10, %v10789_v12  ;;  %v16107_v42 = vpop.f32.mrf.mxu0  ;;  %12135 = vmatprep.mubr.msk.f32.mxu0 %vm2056_vm10, %v10698_v61  ;;  %v16113_v46 = vpop.f32.mrf.mxu1  ;;  %v10795_v61 = vld [vmem:[%s17635_s6 + $0x7f8] sm:$0xff] }
 0x773   :  { %12213 = vmatprep.mubr.msk.f32.mxu1 %vm2056_vm10, %v10790_v63  ;;  %v16175_v63 = vpop.permute.xlu0 %7746 }
 0x774   :  { %v16122_v24 = vpop.f32.mrf.mxu0  ;;  %v16127_v32 = vpop.f32.mrf.mxu1 }
 0x775   :  { %12136 = vmatmul.mubr.msk.f32.gmra.mxu0 %vm2056_vm10, %v10699_v34  ;;  %v3954_v34 = vadd.f32 %v15727_v17, %v15971_v20  ;;  %v3949_v17 = vadd.f32 %v15745_v60, %v15981_v13  ;;  %v10754_v60 = vld [vmem:[%s17635_s6 + $0x730] sm:$0xff] }
 0x776   :  { %12214 = vmatmul.mubr.msk.f32.gmra.mxu1 %vm2056_vm10, %v10791_v52  ;;  %v3815_v16 = vpop.f32.mrf.mxu0  ;;  %12170 = vmatprep.mubr.msk.f32.mxu0 %vm2056_vm10, %v10748_v48  ;;  %v16135_v22 = vpop.f32.mrf.mxu1 }
 0x777   :  { %v16140_v37 = vadd.f32 %v15987_v14, %v3815_v16  ;;  %12216 = vmatprep.mubr.msk.f32.mxu1 %vm2056_vm10, %v10792_v25  ;;  %v16191_v16 = vpop.permute.xlu1 %8212 }
 0x778   :  { %v11836_v1 = vpop.f32.mrf.mxu0  ;;  %v16149_v3 = vpop.f32.mrf.mxu1 }
 0x779   :  { %v4234_v50 = vadd.f32 %v11836_v1, %v3944_v56  ;;  %12171 = vmatmul.mubr.msk.f32.vlgmr.msra.gmra.mxu0 %vm2056_vm10, %v10749_v4  ;;  %v10845_v4 = vld [vmem:[%s17635_s6 + $0x888] sm:$0xff]  ;;  %v3964_v56 = vadd.f32 %v15763_v41, %v15998_v35  ;;  %v10755_v35 = vld [vmem:[%s17635_s6 + $0x738] sm:$0xff] }
 0x77a   :  { %12217 = vmatmul.mubr.msk.f32.gmra.mxu1 %vm2056_vm10, %v10793_v0  ;;  %12223 = vmatpush3.msra.mxu0 %v15825_v29  ;;  %v4154_v14 = vpop.f32.mrf.mxu0  ;;  %v16162_v12 = vpop.f32.mrf.mxu1  ;;  %v10752_v29 = vld [vmem:[%s17635_s6 + $0x720] sm:$0xff] }
 0x77b   :  { %12224 = vmatprep.subr.mxu0 %v15976_v43  ;;  %v4233_v53 = vadd.f32 %v4154_v14, %v3939_v47  ;;  %v16166_v44 = vadd.f32 %v16003_v51, %v4234_v50  ;;  %12173 = vmatprep.mubr.msk.f32.mxu0 %vm2056_vm10, %v10750_v2  ;;  %v10844_v51 = vld [vmem:[%s17635_s6 + $0x880] sm:$0xff]  ;;  %v10846_v2 = vld [vmem:[%s17635_s6 + $0x890] sm:$0xff]  ;;  %v3959_v14 = vadd.f32 %v15781_v7, %v16007_v54  ;;  %v10847_v7 = vld [vmem:[%s17635_s6 + $0x898] sm:$0xff] }
 0x77c   :  { %12225 = vmatpush3.msra.mxu0 %v15976_v43  ;;  %12219 = vmatprep.mubr.msk.f32.mxu1 %vm2056_vm10, %v10794_v26  ;;  %v10753_v43 = vld [vmem:[%s17635_s6 + $0x728] sm:$0xff]  ;;  %v7979_v26 = vpop.permute.xlu0 %7978 }
 0x77d   :  { %12278 = vmatprep.subr.mxu0 %v15989_v10  ;;  %v11839_v52 = vpop.f32.mrf.mxu0  ;;  %v16186_v48 = vadd.f32 %v16013_v9, %v4233_v53  ;;  %12174 = vmatmul.mubr.msk.f32.gmra.mxu0 %vm2056_vm10, %v10751_v31  ;;  %v16189_v25 = vpop.f32.mrf.mxu1 }
 0x77e   :  { %v4236_v20 = vadd.f32 %v11839_v52, %v3954_v34  ;;  %12220 = vmatmul.mubr.msk.f32.gmra.mxu1 %vm2056_vm10, %v10795_v61  ;;  %12176 = vmatprep.mubr.msk.f32.mxu0 %vm2056_vm10, %v10752_v29  ;;  %v10848_v29 = vld [vmem:[%s17635_s6 + $0x8a0] sm:$0xff]  ;;  %v16248_v34 = vpop.permute.xlu1 %8444  ;;  %v10757_v52 = vld [vmem:[%s17635_s6 + $0x748] sm:$0xff] }
 0x77f   :  { %v4164_v9 = vpop.f32.mrf.mxu0  ;;  %12254 = vmatprep.mubr.msk.f32.mxu1 %vm2056_vm10, %v10844_v51  ;;  %v16207_v13 = vpop.f32.mrf.mxu1 }
 0x780   :  { %v4235_v0 = vadd.f32 %v4164_v9, %v3949_v17  ;;  %v16212_v1 = vadd.f32 %v16028_v15, %v4236_v20 }
 0x781   :  { %v11842_v47 = vpop.f32.mrf.mxu0  ;;  %12177 = vmatmul.mubr.msk.f32.gmra.mxu0 %vm2056_vm10, %v10753_v43  ;;  %v16218_v50 = vpop.f32.mrf.mxu1 }
 0x782   :  { %v4238_v31 = vadd.f32 %v11842_v47, %v3964_v56  ;;  %v16223_v41 = vadd.f32 %v16040_v36, %v4235_v0  ;;  %12255 = vmatmul.mubr.msk.f32.vlgmr.msra.gmra.mxu1 %vm2056_vm10, %v10845_v4  ;;  %12179 = vmatprep.mubr.msk.f32.mxu0 %vm2056_vm10, %v10754_v60  ;;  %v3974_v36 = vadd.f32 %v15799_v59, %v16020_v39  ;;  %v10850_v4 = vld [vmem:[%s17635_s6 + $0x8b0] sm:$0xff] }
 0x783   :  { %12307 = vmatpush3.msra.mxu1 %v16030_v38  ;;  %v4174_v15 = vpop.f32.mrf.mxu0  ;;  %12257 = vmatprep.mubr.msk.f32.mxu1 %vm2056_vm10, %v10846_v2  ;;  %v16235_v54 = vpop.f32.mrf.mxu1  ;;  %v10756_v38 = vld [vmem:[%s17635_s6 + $0x740] sm:$0xff]  ;;  %v3969_v59 = vadd.f32 %v15823_v6, %v16035_v55  ;;  %v10849_v6 = vld [vmem:[%s17635_s6 + $0x8a8] sm:$0xff]  ;;  %v10758_v55 = vld [vmem:[%s17635_s6 + $0x750] sm:$0xff]  ;;  %v3979_v0 = vadd.f32 %v15864_v27, %v16059_v18 }
 0x784   :  { %12308 = vmatprep.subr.mxu1 %v7979_v26  ;;  %v4237_v53 = vadd.f32 %v4174_v15, %v3959_v14  ;;  %v16240_v61 = vadd.f32 %v16055_v33, %v4238_v31  ;;  %v10851_v27 = vld [vmem:[%s17635_s6 + $0x8b8] sm:$0xff]  ;;  %v10760_v18 = vld [vmem:[%s17635_s6 + $0x760] sm:$0xff] }
 0x785   :  { %12309 = vmatpush3.msra.mxu1 %v7979_v26  ;;  %v11845_v51 = vpop.f32.mrf.mxu0  ;;  %12180 = vmatmul.mubr.msk.f32.gmra.mxu0 %vm2056_vm10, %v10755_v35  ;;  %v10852_v31 = vld [vmem:[%s17635_s6 + $0x8c0] sm:$0xff] }
 0x786   :  { %12362 = vmatprep.subr.mxu1 %v16248_v34  ;;  %v4240_v39 = vadd.f32 %v11845_v51, %v3974_v36  ;;  %v16255_v33 = vadd.f32 %v16065_v58, %v4237_v53  ;;  %12258 = vmatmul.mubr.msk.f32.gmra.mxu1 %vm2056_vm10, %v10847_v7  ;;  %v16261_v17 = vpop.f32.mrf.mxu1  ;;  %v3984_v58 = vadd.f32 %v15843_v21, %v16050_v8  ;;  %v10759_v21 = vld [vmem:[%s17635_s6 + $0x758] sm:$0xff]  ;;  %v10854_v51 = vld [vmem:[%s17635_s6 + $0x8d0] sm:$0xff] }
 0x787   :  { %v4184_v20 = vpop.f32.mrf.mxu0  ;;  %12182 = vmatprep.mubr.msk.f32.mxu0 %vm2056_vm10, %v10756_v38  ;;  %12260 = vmatprep.mubr.msk.f32.mxu1 %vm2056_vm10, %v10848_v29  ;;  %v3989_v7 = vadd.f32 %v15901_v30, %v16083_v40  ;;  %v10853_v30 = vld [vmem:[%s17635_s6 + $0x8c8] sm:$0xff]  ;;  %v10762_v40 = vld [vmem:[%s17635_s6 + $0x770] sm:$0xff] }
 0x788   :  { %v4239_v43 = vadd.f32 %v4184_v20, %v3969_v59  ;;  %v16274_v9 = vadd.f32 %v16079_v45, %v4240_v39  ;;  %v16279_v60 = vpop.f32.mrf.mxu1 }
 0x789   :  { %v11848_v56 = vpop.f32.mrf.mxu0  ;;  %12183 = vmatmul.mubr.msk.f32.gmra.mxu0 %vm2056_vm10, %v10757_v52  ;;  %v3999_v52 = vadd.f32 %v15937_v49, %v16107_v42  ;;  %v10855_v49 = vld [vmem:[%s17635_s6 + $0x8d8] sm:$0xff]  ;;  %v10812_v42 = vld [vmem:[%s17635_s6 + $0x800] sm:$0xff] }
 0x78a   :  { %v4242_v2 = vadd.f32 %v11848_v56, %v3984_v58  ;;  %v16285_v47 = vadd.f32 %v16089_v19, %v4239_v43  ;;  %12261 = vmatmul.mubr.msk.f32.gmra.mxu1 %vm2056_vm10, %v10849_v6  ;;  %12185 = vmatprep.mubr.msk.f32.mxu0 %vm2056_vm10, %v10758_v55  ;;  %v16292_v8 = vpop.f32.mrf.mxu1  ;;  %v3994_v19 = vadd.f32 %v15883_v62, %v16074_v23  ;;  %v10761_v62 = vld [vmem:[%s17635_s6 + $0x768] sm:$0xff]  ;;  %v10856_v43 = vld [vmem:[%s17635_s6 + $0x8e0] sm:$0xff] }
 0x78b   :  { %v4194_v45 = vpop.f32.mrf.mxu0  ;;  %12263 = vmatprep.mubr.msk.f32.mxu1 %vm2056_vm10, %v10850_v4 }
 0x78c   :  { %v4241_v26 = vadd.f32 %v4194_v45, %v3979_v0  ;;  %v16304_v14 = vadd.f32 %v16103_v5, %v4242_v2  ;;  %v16309_v35 = vpop.f32.mrf.mxu1 }
 0x78d   :  { %v11851_v15 = vpop.f32.mrf.mxu0  ;;  %12186 = vmatmul.mubr.msk.f32.gmra.mxu0 %vm2056_vm10, %v10759_v21  ;;  %v10857_v21 = vld [vmem:[%s17635_s6 + $0x8e8] sm:$0xff] }
 0x78e   :  { %v4244_v36 = vadd.f32 %v11851_v15, %v3994_v19  ;;  %v16315_v53 = vadd.f32 %v16113_v46, %v4241_v26  ;;  %12264 = vmatmul.mubr.msk.f32.gmra.mxu1 %vm2056_vm10, %v10851_v27  ;;  %12188 = vmatprep.mubr.msk.f32.mxu0 %vm2056_vm10, %v10760_v18  ;;  %v16322_v23 = vpop.f32.mrf.mxu1  ;;  %v4004_v46 = vadd.f32 %v15919_v57, %v16098_v28  ;;  %v10763_v57 = vld [vmem:[%s17635_s6 + $0x778] sm:$0xff]  ;;  %v10814_v27 = vld [vmem:[%s17635_s6 + $0x810] sm:$0xff] }
 0x78f   :  { %v4204_v5 = vpop.f32.mrf.mxu0  ;;  %12266 = vmatprep.mubr.msk.f32.mxu1 %vm2056_vm10, %v10852_v31  ;;  %v10858_v26 = vld [vmem:[%s17635_s6 + $0x8f0] sm:$0xff] }
 0x790   :  { %v4243_v38 = vadd.f32 %v4204_v5, %v3989_v7  ;;  %v16334_v29 = vadd.f32 %v16127_v32, %v4244_v36  ;;  %v16339_v59 = vpop.f32.mrf.mxu1 }
 0x791   :  { %v11854_v39 = vpop.f32.mrf.mxu0  ;;  %12189 = vmatmul.mubr.msk.f32.gmra.mxu0 %vm2056_vm10, %v10761_v62  ;;  %v10908_v62 = vld [vmem:[%s17635_s6 + $0x980] sm:$0xff] }
 0x792   :  { %v4246_v20 = vadd.f32 %v11854_v39, %v4004_v46  ;;  %v16345_v6 = vadd.f32 %v16135_v22, %v4243_v38  ;;  %12267 = vmatmul.mubr.msk.f32.gmra.mxu1 %vm2056_vm10, %v10853_v30  ;;  %12191 = vmatprep.mubr.msk.f32.mxu0 %vm2056_vm10, %v10762_v40  ;;  %v16352_v28 = vpop.f32.mrf.mxu1  ;;  %v4014_v22 = vadd.f32 %v15959_v11, %v16122_v24  ;;  %v10813_v11 = vld [vmem:[%s17635_s6 + $0x808] sm:$0xff]  ;;  %v16429_v30 = vpop.permute.xlu0 %8210 }
 0x793   :  { %v4214_v32 = vpop.f32.mrf.mxu0  ;;  %12269 = vmatprep.mubr.msk.f32.mxu1 %vm2056_vm10, %v10854_v51  ;;  %v16444_v38 = vpop.permute.xlu1 %8676 }
 0x794   :  { %v4245_v55 = vadd.f32 %v4214_v32, %v3999_v52  ;;  %v16364_v58 = vadd.f32 %v16149_v3, %v4246_v20  ;;  %v16369_v4 = vpop.f32.mrf.mxu1  ;;  %v10910_v20 = vld [vmem:[%s17635_s6 + $0x990] sm:$0xff] }
 0x795   :  { %v11857_v56 = vpop.f32.mrf.mxu0  ;;  %12192 = vmatmul.mubr.msk.f32.gmra.mxu0 %vm2056_vm10, %v10763_v57 }
 0x796   :  { %v4248_v0 = vadd.f32 %v11857_v56, %v4014_v22  ;;  %v16373_v2 = vadd.f32 %v16162_v12, %v4245_v55  ;;  %12270 = vmatmul.mubr.msk.f32.gmra.mxu1 %vm2056_vm10, %v10855_v49  ;;  %12226 = vmatprep.mubr.msk.f32.mxu0 %vm2056_vm10, %v10812_v42  ;;  %v16380_v24 = vpop.f32.mrf.mxu1  ;;  %v8443_v22 = vpop.permute.xlu0 %8442  ;;  %v10820_v56 = vld [vmem:[%s17635_s6 + $0x840] sm:$0xff] }
 0x797   :  { %v4224_v3 = vpop.f32.mrf.mxu0  ;;  %12272 = vmatprep.mubr.msk.f32.mxu1 %vm2056_vm10, %v10856_v43 }
 0x798   :  { %v4247_v12 = vadd.f32 %v4224_v3, %v16140_v37  ;;  %v16388_v45 = vadd.f32 %v16189_v25, %v4248_v0  ;;  %v16393_v18 = vpop.f32.mrf.mxu1  ;;  %v10815_v25 = vld [vmem:[%s17635_s6 + $0x818] sm:$0xff] }
 0x799   :  { %v11892_v19 = vpop.f32.mrf.mxu0  ;;  %12227 = vmatmul.mubr.msk.f32.vlgmr.msra.gmra.mxu0 %vm2056_vm10, %v10813_v11  ;;  %v16491_v11 = vpop.permute.xlu1 %8908 }
 0x79a   :  { %v16400_v31 = vadd.f32 %v16207_v13, %v4247_v12  ;;  %v4698_v37 = vadd.f32 %v11892_v19, %v16166_v44  ;;  %12273 = vmatmul.mubr.msk.f32.gmra.mxu1 %vm2056_vm10, %v10857_v21  ;;  %12279 = vmatpush3.msra.mxu0 %v15989_v10  ;;  %v16408_v15 = vpop.f32.mrf.mxu1  ;;  %v10859_v13 = vld [vmem:[%s17635_s6 + $0x8f8] sm:$0xff]  ;;  %v10816_v44 = vld [vmem:[%s17635_s6 + $0x820] sm:$0xff]  ;;  %v10821_v21 = vld [vmem:[%s17635_s6 + $0x848] sm:$0xff] }
 0x79b   :  { %12280 = vmatprep.subr.mxu0 %v16175_v63  ;;  %v4618_v7 = vpop.f32.mrf.mxu0  ;;  %12229 = vmatprep.mubr.msk.f32.mxu0 %vm2056_vm10, %v10814_v27 }
 0x79c   :  { %v4697_v10 = vadd.f32 %v4618_v7, %v16186_v48  ;;  %v16420_v36 = vadd.f32 %v16218_v50, %v4698_v37  ;;  %12281 = vmatpush3.msra.mxu0 %v16175_v63  ;;  %12275 = vmatprep.mubr.msk.f32.mxu1 %vm2056_vm10, %v10858_v26  ;;  %v16427_v5 = vpop.f32.mrf.mxu1  ;;  %v10817_v63 = vld [vmem:[%s17635_s6 + $0x828] sm:$0xff]  ;;  %v10914_v37 = vld [vmem:[%s17635_s6 + $0x9b0] sm:$0xff] }
 0x79d   :  { %12334 = vmatprep.subr.mxu0 %v16191_v16  ;;  %v11895_v40 = vpop.f32.mrf.mxu0  ;;  %12230 = vmatmul.mubr.msk.f32.gmra.mxu0 %vm2056_vm10, %v10815_v25 }
 0x79e   :  { %v4700_v48 = vadd.f32 %v11895_v40, %v16212_v1  ;;  %v16435_v50 = vadd.f32 %v16235_v54, %v4697_v10  ;;  %12276 = vmatmul.mubr.msk.f32.gmra.mxu1 %vm2056_vm10, %v10859_v13  ;;  %12232 = vmatprep.mubr.msk.f32.mxu0 %vm2056_vm10, %v10816_v44  ;;  %v16442_v46 = vpop.f32.mrf.mxu1  ;;  %v10909_v1 = vld [vmem:[%s17635_s6 + $0x988] sm:$0xff]  ;;  %v10818_v54 = vld [vmem:[%s17635_s6 + $0x830] sm:$0xff] }
 0x79f   :  { %v4628_v51 = vpop.f32.mrf.mxu0  ;;  %12310 = vmatprep.mubr.msk.f32.mxu1 %vm2056_vm10, %v10908_v62 }
 0x7a0   :  { %v4699_v39 = vadd.f32 %v4628_v51, %v16223_v41  ;;  %v16455_v52 = vadd.f32 %v16261_v17, %v4700_v48  ;;  %v16460_v57 = vpop.f32.mrf.mxu1  ;;  %v10819_v41 = vld [vmem:[%s17635_s6 + $0x838] sm:$0xff]  ;;  %v10916_v48 = vld [vmem:[%s17635_s6 + $0x9c0] sm:$0xff] }
 0x7a1   :  { %v11898_v32 = vpop.f32.mrf.mxu0  ;;  %12233 = vmatmul.mubr.msk.f32.gmra.mxu0 %vm2056_vm10, %v10817_v63 }
 0x7a2   :  { %v4702_v49 = vadd.f32 %v11898_v32, %v16240_v61  ;;  %v16465_v42 = vadd.f32 %v16279_v60, %v4699_v39  ;;  %12311 = vmatmul.mubr.msk.f32.vlgmr.msra.gmra.mxu1 %vm2056_vm10, %v10909_v1  ;;  %12235 = vmatprep.mubr.msk.f32.mxu0 %vm2056_vm10, %v10818_v54  ;;  %v16472_v17 = vpop.f32.mrf.mxu1  ;;  %v10911_v61 = vld [vmem:[%s17635_s6 + $0x998] sm:$0xff] }
 0x7a3   :  { %12363 = vmatpush3.msra.mxu1 %v16248_v34  ;;  %v4638_v55 = vpop.f32.mrf.mxu0  ;;  %12313 = vmatprep.mubr.msk.f32.mxu1 %vm2056_vm10, %v10910_v20  ;;  %v10912_v34 = vld [vmem:[%s17635_s6 + $0x9a0] sm:$0xff] }
 0x7a4   :  { %12364 = vmatprep.subr.mxu1 %v8443_v22  ;;  %v4701_v60 = vadd.f32 %v4638_v55, %v16255_v33  ;;  %v16481_v43 = vadd.f32 %v16292_v8, %v4702_v49  ;;  %v16489_v0 = vpop.f32.mrf.mxu1  ;;  %v10918_v49 = vld [vmem:[%s17635_s6 + $0x9d0] sm:$0xff] }
 0x7a5   :  { %12365 = vmatpush3.msra.mxu1 %v8443_v22  ;;  %v11901_v3 = vpop.f32.mrf.mxu0  ;;  %12236 = vmatmul.mubr.msk.f32.gmra.mxu0 %vm2056_vm10, %v10819_v41 }
 0x7a6   :  { %12418 = vmatprep.subr.mxu1 %v16491_v11  ;;  %v4704_v33 = vadd.f32 %v11901_v3, %v16274_v9  ;;  %v16497_v8 = vadd.f32 %v16309_v35, %v4701_v60  ;;  %12314 = vmatmul.mubr.msk.f32.gmra.mxu1 %vm2056_vm10, %v10911_v61  ;;  %v16503_v12 = vpop.f32.mrf.mxu1  ;;  %v10913_v9 = vld [vmem:[%s17635_s6 + $0x9a8] sm:$0xff]  ;;  %v10822_v35 = vld [vmem:[%s17635_s6 + $0x850] sm:$0xff]  ;;  %v10920_v3 = vld [vmem:[%s17635_s6 + $0x9e0] sm:$0xff] }
 0x7a7   :  { %v4648_v27 = vpop.f32.mrf.mxu0  ;;  %12238 = vmatprep.mubr.msk.f32.mxu0 %vm2056_vm10, %v10820_v56  ;;  %12316 = vmatprep.mubr.msk.f32.mxu1 %vm2056_vm10, %v10912_v34 }
 0x7a8   :  { %v4703_v19 = vadd.f32 %v4648_v27, %v16285_v47  ;;  %v16515_v26 = vadd.f32 %v16322_v23, %v4704_v33  ;;  %v16520_v25 = vpop.f32.mrf.mxu1  ;;  %v10823_v47 = vld [vmem:[%s17635_s6 + $0x858] sm:$0xff] }
 0x7a9   :  { %v11904_v7 = vpop.f32.mrf.mxu0  ;;  %12239 = vmatmul.mubr.msk.f32.gmra.mxu0 %vm2056_vm10, %v10821_v21 }
 0x7aa   :  { %v4706_v13 = vadd.f32 %v11904_v7, %v16304_v14  ;;  %v16525_v44 = vadd.f32 %v16339_v59, %v4703_v19  ;;  %12317 = vmatmul.mubr.msk.f32.gmra.mxu1 %vm2056_vm10, %v10913_v9  ;;  %12241 = vmatprep.mubr.msk.f32.mxu0 %vm2056_vm10, %v10822_v35  ;;  %v16532_v23 = vpop.f32.mrf.mxu1  ;;  %v10915_v14 = vld [vmem:[%s17635_s6 + $0x9b8] sm:$0xff]  ;;  %v10824_v59 = vld [vmem:[%s17635_s6 + $0x860] sm:$0xff] }
 0x7ab   :  { %v4658_v10 = vpop.f32.mrf.mxu0  ;;  %12319 = vmatprep.mubr.msk.f32.mxu1 %vm2056_vm10, %v10914_v37  ;;  %v10878_v37 = vld [vmem:[%s17635_s6 + $0x910] sm:$0xff] }
 0x7ac   :  { %v4705_v62 = vadd.f32 %v4658_v10, %v16315_v53  ;;  %v16543_v40 = vadd.f32 %v16352_v28, %v4706_v13  ;;  %v16548_v63 = vpop.f32.mrf.mxu1  ;;  %v10825_v53 = vld [vmem:[%s17635_s6 + $0x868] sm:$0xff] }
 0x7ad   :  { %v11907_v51 = vpop.f32.mrf.mxu0  ;;  %12242 = vmatmul.mubr.msk.f32.gmra.mxu0 %vm2056_vm10, %v10823_v47  ;;  %v10922_v47 = vld [vmem:[%s17635_s6 + $0x9f0] sm:$0xff] }
 0x7ae   :  { %v4708_v1 = vadd.f32 %v11907_v51, %v16334_v29  ;;  %v16553_v54 = vadd.f32 %v16369_v4, %v4705_v62  ;;  %12320 = vmatmul.mubr.msk.f32.gmra.mxu1 %vm2056_vm10, %v10915_v14  ;;  %12244 = vmatprep.mubr.msk.f32.mxu0 %vm2056_vm10, %v10824_v59  ;;  %v16560_v28 = vpop.f32.mrf.mxu1  ;;  %v10917_v29 = vld [vmem:[%s17635_s6 + $0x9c8] sm:$0xff]  ;;  %v10826_v4 = vld [vmem:[%s17635_s6 + $0x870] sm:$0xff] }
 0x7af   :  { %v4668_v39 = vpop.f32.mrf.mxu0  ;;  %12322 = vmatprep.mubr.msk.f32.mxu1 %vm2056_vm10, %v10916_v48  ;;  %v10972_v48 = vld [vmem:[%s17635_s6 + $0xa80] sm:$0xff] }
 0x7b0   :  { %v4707_v20 = vadd.f32 %v4668_v39, %v16345_v6  ;;  %v16571_v32 = vadd.f32 %v16380_v24, %v4708_v1  ;;  %v16576_v41 = vpop.f32.mrf.mxu1  ;;  %v10827_v6 = vld [vmem:[%s17635_s6 + $0x878] sm:$0xff]  ;;  %v16665_v1 = vpop.permute.xlu0 %8674 }
 0x7b1   :  { %v11910_v22 = vpop.f32.mrf.mxu0  ;;  %12245 = vmatmul.mubr.msk.f32.gmra.mxu0 %vm2056_vm10, %v10825_v53 }
 0x7b2   :  { %v4710_v55 = vadd.f32 %v11910_v22, %v16364_v58  ;;  %v16581_v61 = vadd.f32 %v16393_v18, %v4707_v20  ;;  %12323 = vmatmul.mubr.msk.f32.gmra.mxu1 %vm2056_vm10, %v10917_v29  ;;  %12247 = vmatprep.mubr.msk.f32.mxu0 %vm2056_vm10, %v10826_v4  ;;  %v16588_v24 = vpop.f32.mrf.mxu1  ;;  %v10919_v58 = vld [vmem:[%s17635_s6 + $0x9d8] sm:$0xff]  ;;  %v10876_v18 = vld [vmem:[%s17635_s6 + $0x900] sm:$0xff]  ;;  %v10974_v22 = vld [vmem:[%s17635_s6 + $0xa90] sm:$0xff] }
 0x7b3   :  { %v4678_v60 = vpop.f32.mrf.mxu0  ;;  %12325 = vmatprep.mubr.msk.f32.mxu1 %vm2056_vm10, %v10918_v49 }
 0x7b4   :  { %v4709_v56 = vadd.f32 %v4678_v60, %v16373_v2  ;;  %v16599_v34 = vadd.f32 %v16408_v15, %v4710_v55  ;;  %v16604_v33 = vpop.f32.mrf.mxu1  ;;  %v10877_v2 = vld [vmem:[%s17635_s6 + $0x908] sm:$0xff] }
 0x7b5   :  { %v11913_v21 = vpop.f32.mrf.mxu0  ;;  %12248 = vmatmul.mubr.msk.f32.gmra.mxu0 %vm2056_vm10, %v10827_v6 }
 0x7b6   :  { %v4712_v27 = vadd.f32 %v11913_v21, %v16388_v45  ;;  %v16609_v9 = vadd.f32 %v16427_v5, %v4709_v56  ;;  %12326 = vmatmul.mubr.msk.f32.gmra.mxu1 %vm2056_vm10, %v10919_v58  ;;  %12282 = vmatprep.mubr.msk.f32.mxu0 %vm2056_vm10, %v10876_v18  ;;  %v16616_v15 = vpop.f32.mrf.mxu1  ;;  %v10921_v45 = vld [vmem:[%s17635_s6 + $0x9e8] sm:$0xff]  ;;  %v8907_v58 = vpop.permute.xlu0 %8906 }
 0x7b7   :  { %v4688_v35 = vpop.f32.mrf.mxu0  ;;  %12328 = vmatprep.mubr.msk.f32.mxu1 %vm2056_vm10, %v10920_v3 }
 0x7b8   :  { %v4711_v5 = vadd.f32 %v4688_v35, %v16400_v31  ;;  %v16624_v19 = vadd.f32 %v16442_v46, %v4712_v27  ;;  %v16629_v7 = vpop.f32.mrf.mxu1  ;;  %v10879_v46 = vld [vmem:[%s17635_s6 + $0x918] sm:$0xff] }
 0x7b9   :  { %v11948_v13 = vpop.f32.mrf.mxu0  ;;  %12283 = vmatmul.mubr.msk.f32.vlgmr.msra.gmra.mxu0 %vm2056_vm10, %v10877_v2 }
 0x7ba   :  { %v16636_v10 = vadd.f32 %v16460_v57, %v4711_v5  ;;  %v5162_v31 = vadd.f32 %v11948_v13, %v16420_v36  ;;  %12329 = vmatmul.mubr.msk.f32.gmra.mxu1 %vm2056_vm10, %v10921_v45  ;;  %12335 = vmatpush3.msra.mxu0 %v16191_v16  ;;  %v16644_v14 = vpop.f32.mrf.mxu1  ;;  %v10923_v57 = vld [vmem:[%s17635_s6 + $0x9f8] sm:$0xff]  ;;  %v10880_v36 = vld [vmem:[%s17635_s6 + $0x920] sm:$0xff]  ;;  %v10886_v5 = vld [vmem:[%s17635_s6 + $0x950] sm:$0xff] }
 0x7bb   :  { %12336 = vmatprep.subr.mxu0 %v16429_v30  ;;  %v5082_v59 = vpop.f32.mrf.mxu0  ;;  %12285 = vmatprep.mubr.msk.f32.mxu0 %vm2056_vm10, %v10878_v37 }
 0x7bc   :  { %v5161_v16 = vadd.f32 %v5082_v59, %v16435_v50  ;;  %v16656_v62 = vadd.f32 %v16472_v17, %v5162_v31  ;;  %12337 = vmatpush3.msra.mxu0 %v16429_v30  ;;  %12331 = vmatprep.mubr.msk.f32.mxu1 %vm2056_vm10, %v10922_v47  ;;  %v16663_v51 = vpop.f32.mrf.mxu1  ;;  %v10881_v30 = vld [vmem:[%s17635_s6 + $0x928] sm:$0xff]  ;;  %v10978_v47 = vld [vmem:[%s17635_s6 + $0xab0] sm:$0xff] }
 0x7bd   :  { %12390 = vmatprep.subr.mxu0 %v16444_v38  ;;  %v11951_v53 = vpop.f32.mrf.mxu0  ;;  %12286 = vmatmul.mubr.msk.f32.gmra.mxu0 %vm2056_vm10, %v10879_v46 }
 0x7be   :  { %v5164_v50 = vadd.f32 %v11951_v53, %v16455_v52  ;;  %v16671_v17 = vadd.f32 %v16489_v0, %v5161_v16  ;;  %12332 = vmatmul.mubr.msk.f32.gmra.mxu1 %vm2056_vm10, %v10923_v57  ;;  %12288 = vmatprep.mubr.msk.f32.mxu0 %vm2056_vm10, %v10880_v36  ;;  %v16678_v39 = vpop.f32.mrf.mxu1  ;;  %v10973_v52 = vld [vmem:[%s17635_s6 + $0xa88] sm:$0xff]  ;;  %v10882_v0 = vld [vmem:[%s17635_s6 + $0x930] sm:$0xff]  ;;  %v10888_v36 = vld [vmem:[%s17635_s6 + $0x960] sm:$0xff] }
 0x7bf   :  { %v5092_v29 = vpop.f32.mrf.mxu0  ;;  %12366 = vmatprep.mubr.msk.f32.mxu1 %vm2056_vm10, %v10972_v48  ;;  %v10980_v53 = vld [vmem:[%s17635_s6 + $0xac0] sm:$0xff] }
 0x7c0   :  { %v5163_v4 = vadd.f32 %v5092_v29, %v16465_v42  ;;  %v16689_v20 = vadd.f32 %v16503_v12, %v5164_v50  ;;  %v16691_v49 = vpop.f32.mrf.mxu1  ;;  %v10883_v42 = vld [vmem:[%s17635_s6 + $0x938] sm:$0xff] }
 0x7c1   :  { %v11954_v55 = vpop.f32.mrf.mxu0  ;;  %12289 = vmatmul.mubr.msk.f32.gmra.mxu0 %vm2056_vm10, %v10881_v30 }
 0x7c2   :  { %v5166_v6 = vadd.f32 %v11954_v55, %v16481_v43  ;;  %v16699_v60 = vadd.f32 %v16520_v25, %v5163_v4  ;;  %12367 = vmatmul.mubr.msk.f32.vlgmr.msra.gmra.mxu1 %vm2056_vm10, %v10973_v52  ;;  %12291 = vmatprep.mubr.msk.f32.mxu0 %vm2056_vm10, %v10882_v0  ;;  %v16706_v12 = vpop.f32.mrf.mxu1  ;;  %v10884_v43 = vld [vmem:[%s17635_s6 + $0x940] sm:$0xff]  ;;  %v10975_v25 = vld [vmem:[%s17635_s6 + $0xa98] sm:$0xff]  ;;  %v10890_v0 = vld [vmem:[%s17635_s6 + $0x970] sm:$0xff] }
 0x7c3   :  { %12419 = vmatpush3.msra.mxu1 %v16491_v11  ;;  %v5102_v18 = vpop.f32.mrf.mxu0  ;;  %12369 = vmatprep.mubr.msk.f32.mxu1 %vm2056_vm10, %v10974_v22  ;;  %v10976_v11 = vld [vmem:[%s17635_s6 + $0xaa0] sm:$0xff]  ;;  %v10982_v55 = vld [vmem:[%s17635_s6 + $0xad0] sm:$0xff] }
 0x7c4   :  { %12420 = vmatprep.subr.mxu1 %v8907_v58  ;;  %v5165_v56 = vadd.f32 %v5102_v18, %v16497_v8  ;;  %v16718_v3 = vadd.f32 %v16532_v23, %v5166_v6  ;;  %v16720_v21 = vpop.f32.mrf.mxu1  ;;  %v10885_v8 = vld [vmem:[%s17635_s6 + $0x948] sm:$0xff] }
 0x7c5   :  { %12421 = vmatpush3.msra.mxu1 %v8907_v58  ;;  %v11957_v27 = vpop.f32.mrf.mxu0  ;;  %12292 = vmatmul.mubr.msk.f32.gmra.mxu0 %vm2056_vm10, %v10883_v42 }
 0x7c6   :  { %v5168_v2 = vadd.f32 %v11957_v27, %v16515_v26  ;;  %v16728_v35 = vadd.f32 %v16548_v63, %v5165_v56  ;;  %12294 = vmatprep.mubr.msk.f32.mxu0 %vm2056_vm10, %v10884_v43  ;;  %v16734_v23 = vpop.f32.mrf.mxu1  ;;  %12370 = vmatmul.mubr.msk.f32.gmra.mxu1 %vm2056_vm10, %v10975_v25  ;;  %v10977_v26 = vld [vmem:[%s17635_s6 + $0xaa8] sm:$0xff]  ;;  %v10940_v43 = vld [vmem:[%s17635_s6 + $0xa00] sm:$0xff] }
 0x7c7   :  { %v5112_v45 = vpop.f32.mrf.mxu0  ;;  %12372 = vmatprep.mubr.msk.f32.mxu1 %vm2056_vm10, %v10976_v11  ;;  %v10984_v11 = vld [vmem:[%s17635_s6 + $0xae0] sm:$0xff] }
 0x7c8   :  { %v5167_v63 = vadd.f32 %v5112_v45, %v16525_v44  ;;  %v16746_v37 = vadd.f32 %v16560_v28, %v5168_v2  ;;  %v16748_v13 = vpop.f32.mrf.mxu1  ;;  %v10887_v44 = vld [vmem:[%s17635_s6 + $0x958] sm:$0xff] }
 0x7c9   :  { %v11960_v31 = vpop.f32.mrf.mxu0  ;;  %12295 = vmatmul.mubr.msk.f32.gmra.mxu0 %vm2056_vm10, %v10885_v8 }
 0x7ca   :  { %v5170_v46 = vadd.f32 %v11960_v31, %v16543_v40  ;;  %v16756_v59 = vadd.f32 %v16576_v41, %v5167_v63  ;;  %12297 = vmatprep.mubr.msk.f32.mxu0 %vm2056_vm10, %v10886_v5  ;;  %v16762_v28 = vpop.f32.mrf.mxu1  ;;  %12373 = vmatmul.mubr.msk.f32.gmra.mxu1 %vm2056_vm10, %v10977_v26  ;;  %v10979_v40 = vld [vmem:[%s17635_s6 + $0xab8] sm:$0xff]  ;;  %v10942_v5 = vld [vmem:[%s17635_s6 + $0xa10] sm:$0xff]  ;;  %v10985_v63 = vld [vmem:[%s17635_s6 + $0xae8] sm:$0xff] }
 0x7cb   :  { %v5122_v57 = vpop.f32.mrf.mxu0  ;;  %12375 = vmatprep.mubr.msk.f32.mxu1 %vm2056_vm10, %v10978_v47  ;;  %v10986_v31 = vld [vmem:[%s17635_s6 + $0xaf0] sm:$0xff] }
 0x7cc   :  { %v5169_v41 = vadd.f32 %v5122_v57, %v16553_v54  ;;  %v16774_v16 = vadd.f32 %v16588_v24, %v5170_v46  ;;  %v16776_v48 = vpop.f32.mrf.mxu1  ;;  %v10889_v54 = vld [vmem:[%s17635_s6 + $0x968] sm:$0xff] }
 0x7cd   :  { %v11963_v50 = vpop.f32.mrf.mxu0  ;;  %12298 = vmatmul.mubr.msk.f32.gmra.mxu0 %vm2056_vm10, %v10887_v44 }
 0x7ce   :  { %v5172_v30 = vadd.f32 %v11963_v50, %v16571_v32  ;;  %v16784_v29 = vadd.f32 %v16604_v33, %v5169_v41  ;;  %12300 = vmatprep.mubr.msk.f32.mxu0 %vm2056_vm10, %v10888_v36  ;;  %v16790_v24 = vpop.f32.mrf.mxu1  ;;  %12376 = vmatmul.mubr.msk.f32.gmra.mxu1 %vm2056_vm10, %v10979_v40  ;;  %v10981_v32 = vld [vmem:[%s17635_s6 + $0xac8] sm:$0xff]  ;;  %v10987_v41 = vld [vmem:[%s17635_s6 + $0xaf8] sm:$0xff] }
 0x7cf   :  { %v5132_v52 = vpop.f32.mrf.mxu0  ;;  %12378 = vmatprep.mubr.msk.f32.mxu1 %vm2056_vm10, %v10980_v53  ;;  %v10945_v50 = vld [vmem:[%s17635_s6 + $0xa28] sm:$0xff] }
 0x7d0   :  { %v5171_v33 = vadd.f32 %v5132_v52, %v16581_v61  ;;  %v16802_v4 = vadd.f32 %v16616_v15, %v5172_v30  ;;  %v16804_v22 = vpop.f32.mrf.mxu1  ;;  %v10891_v61 = vld [vmem:[%s17635_s6 + $0x978] sm:$0xff]  ;;  %v10946_v52 = vld [vmem:[%s17635_s6 + $0xa30] sm:$0xff] }
 0x7d1   :  { %v11966_v6 = vpop.f32.mrf.mxu0  ;;  %12301 = vmatmul.mubr.msk.f32.gmra.mxu0 %vm2056_vm10, %v10889_v54 }
 0x7d2   :  { %v5174_v42 = vadd.f32 %v11966_v6, %v16599_v34  ;;  %v16812_v58 = vadd.f32 %v16629_v7, %v5171_v33  ;;  %12303 = vmatprep.mubr.msk.f32.mxu0 %vm2056_vm10, %v10890_v0  ;;  %v16818_v15 = vpop.f32.mrf.mxu1  ;;  %12379 = vmatmul.mubr.msk.f32.gmra.mxu1 %vm2056_vm10, %v10981_v32  ;;  %v10983_v34 = vld [vmem:[%s17635_s6 + $0xad8] sm:$0xff]  ;;  %v11037_v32 = vld [vmem:[%s17635_s6 + $0xb88] sm:$0xff] }
 0x7d3   :  { %v5142_v18 = vpop.f32.mrf.mxu0  ;;  %12381 = vmatprep.mubr.msk.f32.mxu1 %vm2056_vm10, %v10982_v55  ;;  %v11038_v55 = vld [vmem:[%s17635_s6 + $0xb90] sm:$0xff]  ;;  %v10947_v6 = vld [vmem:[%s17635_s6 + $0xa38] sm:$0xff] }
 0x7d4   :  { %v5173_v7 = vadd.f32 %v5142_v18, %v16609_v9  ;;  %v16830_v25 = vadd.f32 %v16644_v14, %v5174_v42  ;;  %v16832_v56 = vpop.f32.mrf.mxu1  ;;  %v10941_v9 = vld [vmem:[%s17635_s6 + $0xa08] sm:$0xff]  ;;  %v10948_v18 = vld [vmem:[%s17635_s6 + $0xa40] sm:$0xff] }
 0x7d5   :  { %v11969_v27 = vpop.f32.mrf.mxu0  ;;  %12304 = vmatmul.mubr.msk.f32.gmra.mxu0 %vm2056_vm10, %v10891_v61 }
 0x7d6   :  { %v5176_v2 = vadd.f32 %v11969_v27, %v16624_v19  ;;  %v16840_v8 = vadd.f32 %v16663_v51, %v5173_v7  ;;  %12338 = vmatprep.mubr.msk.f32.mxu0 %vm2056_vm10, %v10940_v43  ;;  %v16846_v14 = vpop.f32.mrf.mxu1  ;;  %12382 = vmatmul.mubr.msk.f32.gmra.mxu1 %vm2056_vm10, %v10983_v34  ;;  %v11039_v34 = vld [vmem:[%s17635_s6 + $0xb98] sm:$0xff]  ;;  %v10949_v27 = vld [vmem:[%s17635_s6 + $0xa48] sm:$0xff] }
 0x7d7   :  { %v5152_v45 = vpop.f32.mrf.mxu0  ;;  %12384 = vmatprep.mubr.msk.f32.mxu1 %vm2056_vm10, %v10984_v11  ;;  %v11040_v11 = vld [vmem:[%s17635_s6 + $0xba0] sm:$0xff] }
 0x7d8   :  { %v5175_v19 = vadd.f32 %v5152_v45, %v16636_v10  ;;  %v16855_v51 = vadd.f32 %v16678_v39, %v5176_v2  ;;  %v16857_v26 = vpop.f32.mrf.mxu1  ;;  %v10943_v39 = vld [vmem:[%s17635_s6 + $0xa18] sm:$0xff]  ;;  %v10950_v45 = vld [vmem:[%s17635_s6 + $0xa50] sm:$0xff] }
 0x7d9   :  { %v12004_v47 = vpop.f32.mrf.mxu0  ;;  %12339 = vmatmul.mubr.msk.f32.vlgmr.msra.gmra.mxu0 %vm2056_vm10, %v10941_v9 }
 0x7da   :  { %v16867_v46 = vadd.f32 %v16691_v49, %v5175_v19  ;;  %v5626_v10 = vadd.f32 %v12004_v47, %v16656_v62  ;;  %12391 = vmatpush3.msra.mxu0 %v16444_v38  ;;  %12341 = vmatprep.mubr.msk.f32.mxu0 %vm2056_vm10, %v10942_v5  ;;  %v16875_v44 = vpop.f32.mrf.mxu1  ;;  %v10944_v49 = vld [vmem:[%s17635_s6 + $0xa20] sm:$0xff]  ;;  %v16882_v62 = vpop.permute.xlu1 %9140  ;;  %v11041_v19 = vld [vmem:[%s17635_s6 + $0xba8] sm:$0xff]  ;;  %v11042_v47 = vld [vmem:[%s17635_s6 + $0xbb0] sm:$0xff] }
 0x7db   :  { %12392 = vmatprep.subr.mxu0 %v16665_v1  ;;  %v5546_v57 = vpop.f32.mrf.mxu0  ;;  %12385 = vmatmul.mubr.msk.f32.gmra.mxu1 %vm2056_vm10, %v10985_v63 }
 0x7dc   :  { %v5625_v38 = vadd.f32 %v5546_v57, %v16671_v17  ;;  %v16886_v36 = vadd.f32 %v16706_v12, %v5626_v10  ;;  %12393 = vmatpush3.msra.mxu0 %v16665_v1  ;;  %v16889_v40 = vpop.f32.mrf.mxu1  ;;  %12387 = vmatprep.mubr.msk.f32.mxu1 %vm2056_vm10, %v10986_v31  ;;  %v11036_v17 = vld [vmem:[%s17635_s6 + $0xb80] sm:$0xff]  ;;  %v10951_v31 = vld [vmem:[%s17635_s6 + $0xa58] sm:$0xff] }
 0x7dd   :  { %12446 = vmatprep.subr.mxu0 %v16882_v62  ;;  %v12007_v53 = vpop.f32.mrf.mxu0  ;;  %12342 = vmatmul.mubr.msk.f32.gmra.mxu0 %vm2056_vm10, %v10943_v39  ;;  %v10952_v57 = vld [vmem:[%s17635_s6 + $0xa60] sm:$0xff] }
 0x7de   :  { %v5628_v12 = vadd.f32 %v12007_v53, %v16689_v20  ;;  %v16902_v1 = vadd.f32 %v16720_v21, %v5625_v38  ;;  %12344 = vmatprep.mubr.msk.f32.mxu0 %vm2056_vm10, %v10944_v49  ;;  %v16908_v30 = vpop.f32.mrf.mxu1  ;;  %v11043_v38 = vld [vmem:[%s17635_s6 + $0xbb8] sm:$0xff]  ;;  %v11044_v53 = vld [vmem:[%s17635_s6 + $0xbc0] sm:$0xff] }
 0x7df   :  { %v5556_v54 = vpop.f32.mrf.mxu0  ;;  %12388 = vmatmul.mubr.msk.f32.gmra.mxu1 %vm2056_vm10, %v10987_v41 }
 0x7e0   :  { %v5627_v20 = vadd.f32 %v5556_v54, %v16699_v60  ;;  %v16916_v21 = vadd.f32 %v16734_v23, %v5628_v12  ;;  %v16918_v0 = vpop.f32.mrf.mxu1  ;;  %12422 = vmatprep.mubr.msk.f32.mxu1 %vm2056_vm10, %v11036_v17  ;;  %v10953_v17 = vld [vmem:[%s17635_s6 + $0xa68] sm:$0xff]  ;;  %v10954_v54 = vld [vmem:[%s17635_s6 + $0xa70] sm:$0xff] }
 0x7e1   :  { %v12010_v33 = vpop.f32.mrf.mxu0  ;;  %12345 = vmatmul.mubr.msk.f32.gmra.mxu0 %vm2056_vm10, %v10945_v50 }
 0x7e2   :  { %v5630_v60 = vadd.f32 %v12010_v33, %v16718_v3  ;;  %v16930_v23 = vadd.f32 %v16748_v13, %v5627_v20  ;;  %12347 = vmatprep.mubr.msk.f32.mxu0 %vm2056_vm10, %v10946_v52  ;;  %v16936_v42 = vpop.f32.mrf.mxu1  ;;  %v11045_v20 = vld [vmem:[%s17635_s6 + $0xbc8] sm:$0xff]  ;;  %v11046_v33 = vld [vmem:[%s17635_s6 + $0xbd0] sm:$0xff] }
 0x7e3   :  { %v5566_v61 = vpop.f32.mrf.mxu0  ;;  %12423 = vmatmul.mubr.msk.f32.vlgmr.msra.gmra.mxu1 %vm2056_vm10, %v11037_v32 }
 0x7e4   :  { %v5629_v3 = vadd.f32 %v5566_v61, %v16728_v35  ;;  %v16944_v13 = vadd.f32 %v16762_v28, %v5630_v60  ;;  %v16946_v43 = vpop.f32.mrf.mxu1  ;;  %12425 = vmatprep.mubr.msk.f32.mxu1 %vm2056_vm10, %v11038_v55  ;;  %v10955_v55 = vld [vmem:[%s17635_s6 + $0xa78] sm:$0xff]  ;;  %v11004_v61 = vld [vmem:[%s17635_s6 + $0xb00] sm:$0xff] }
 0x7e5   :  { %v12013_v7 = vpop.f32.mrf.mxu0  ;;  %12348 = vmatmul.mubr.msk.f32.gmra.mxu0 %vm2056_vm10, %v10947_v6 }
 0x7e6   :  { %v5632_v35 = vadd.f32 %v12013_v7, %v16746_v37  ;;  %v16958_v28 = vadd.f32 %v16776_v48, %v5629_v3  ;;  %12350 = vmatprep.mubr.msk.f32.mxu0 %vm2056_vm10, %v10948_v18  ;;  %v16964_v2 = vpop.f32.mrf.mxu1  ;;  %v11047_v3 = vld [vmem:[%s17635_s6 + $0xbd8] sm:$0xff]  ;;  %v11048_v7 = vld [vmem:[%s17635_s6 + $0xbe0] sm:$0xff] }
 0x7e7   :  { %v5576_v9 = vpop.f32.mrf.mxu0  ;;  %12426 = vmatmul.mubr.msk.f32.gmra.mxu1 %vm2056_vm10, %v11039_v34 }
 0x7e8   :  { %v5631_v37 = vadd.f32 %v5576_v9, %v16756_v59  ;;  %v16972_v48 = vadd.f32 %v16790_v24, %v5632_v35  ;;  %v16974_v5 = vpop.f32.mrf.mxu1  ;;  %12428 = vmatprep.mubr.msk.f32.mxu1 %vm2056_vm10, %v11040_v11  ;;  %v11005_v11 = vld [vmem:[%s17635_s6 + $0xb08] sm:$0xff]  ;;  %v11006_v9 = vld [vmem:[%s17635_s6 + $0xb10] sm:$0xff] }
 0x7e9   :  { %v12016_v63 = vpop.f32.mrf.mxu0  ;;  %12351 = vmatmul.mubr.msk.f32.gmra.mxu0 %vm2056_vm10, %v10949_v27 }
 0x7ea   :  { %v5634_v59 = vadd.f32 %v12016_v63, %v16774_v16  ;;  %v16986_v24 = vadd.f32 %v16804_v22, %v5631_v37  ;;  %12353 = vmatprep.mubr.msk.f32.mxu0 %vm2056_vm10, %v10950_v45  ;;  %v16992_v10 = vpop.f32.mrf.mxu1  ;;  %v11049_v37 = vld [vmem:[%s17635_s6 + $0xbe8] sm:$0xff]  ;;  %v11050_v63 = vld [vmem:[%s17635_s6 + $0xbf0] sm:$0xff] }
 0x7eb   :  { %v5586_v39 = vpop.f32.mrf.mxu0  ;;  %12429 = vmatmul.mubr.msk.f32.gmra.mxu1 %vm2056_vm10, %v11041_v19 }
 0x7ec   :  { %v5633_v16 = vadd.f32 %v5586_v39, %v16784_v29  ;;  %v17000_v22 = vadd.f32 %v16818_v15, %v5634_v59  ;;  %v17002_v49 = vpop.f32.mrf.mxu1  ;;  %12431 = vmatprep.mubr.msk.f32.mxu1 %vm2056_vm10, %v11042_v47  ;;  %v9139_v47 = vpop.permute.xlu0 %9138  ;;  %v11007_v59 = vld [vmem:[%s17635_s6 + $0xb18] sm:$0xff] }
 0x7ed   :  { %v12019_v41 = vpop.f32.mrf.mxu0  ;;  %12354 = vmatmul.mubr.msk.f32.gmra.mxu0 %vm2056_vm10, %v10951_v31 }
 0x7ee   :  { %v5636_v29 = vadd.f32 %v12019_v41, %v16802_v4  ;;  %v17014_v15 = vadd.f32 %v16832_v56, %v5633_v16  ;;  %12356 = vmatprep.mubr.msk.f32.mxu0 %vm2056_vm10, %v10952_v57  ;;  %v17020_v12 = vpop.f32.mrf.mxu1  ;;  %v11008_v57 = vld [vmem:[%s17635_s6 + $0xb20] sm:$0xff]  ;;  %v11051_v16 = vld [vmem:[%s17635_s6 + $0xbf8] sm:$0xff] }
 0x7ef   :  { %v5596_v50 = vpop.f32.mrf.mxu0  ;;  %12432 = vmatmul.mubr.msk.f32.gmra.mxu1 %vm2056_vm10, %v11043_v38 }
 0x7f0   :  { %v5635_v4 = vadd.f32 %v5596_v50, %v16812_v58  ;;  %v17028_v56 = vadd.f32 %v16846_v14, %v5636_v29  ;;  %v17030_v52 = vpop.f32.mrf.mxu1  ;;  %12434 = vmatprep.mubr.msk.f32.mxu1 %vm2056_vm10, %v11044_v53  ;;  %v11010_v29 = vld [vmem:[%s17635_s6 + $0xb30] sm:$0xff] }
 0x7f1   :  { %v12022_v32 = vpop.f32.mrf.mxu0  ;;  %12357 = vmatmul.mubr.msk.f32.gmra.mxu0 %vm2056_vm10, %v10953_v17 }
 0x7f2   :  { %v5638_v58 = vadd.f32 %v12022_v32, %v16830_v25  ;;  %v17042_v14 = vadd.f32 %v16857_v26, %v5635_v4  ;;  %12359 = vmatprep.mubr.msk.f32.mxu0 %vm2056_vm10, %v10954_v54  ;;  %v17048_v60 = vpop.f32.mrf.mxu1 }
 0x7f3   :  { %v5606_v6 = vpop.f32.mrf.mxu0  ;;  %12435 = vmatmul.mubr.msk.f32.gmra.mxu1 %vm2056_vm10, %v11045_v20  ;;  %v11011_v20 = vld [vmem:[%s17635_s6 + $0xb38] sm:$0xff] }
 0x7f4   :  { %v5637_v25 = vadd.f32 %v5606_v6, %v16840_v8  ;;  %v17056_v26 = vadd.f32 %v16875_v44, %v5638_v58  ;;  %v17058_v18 = vpop.f32.mrf.mxu1  ;;  %12437 = vmatprep.mubr.msk.f32.mxu1 %vm2056_vm10, %v11046_v33 }
 0x7f5   :  { %v12025_v34 = vpop.f32.mrf.mxu0  ;;  %12360 = vmatmul.mubr.msk.f32.gmra.mxu0 %vm2056_vm10, %v10955_v55 }
 0x7f6   :  { %v5640_v8 = vadd.f32 %v12025_v34, %v16855_v51  ;;  %v17070_v44 = vadd.f32 %v16889_v40, %v5637_v25  ;;  %12394 = vmatprep.mubr.msk.f32.mxu0 %vm2056_vm10, %v11004_v61  ;;  %v17076_v35 = vpop.f32.mrf.mxu1  ;;  %v11013_v61 = vld [vmem:[%s17635_s6 + $0xb48] sm:$0xff] }
 0x7f7   :  { %v5616_v27 = vpop.f32.mrf.mxu0  ;;  %12438 = vmatmul.mubr.msk.f32.gmra.mxu1 %vm2056_vm10, %v11047_v3 }
 0x7f8   :  { %v5639_v51 = vadd.f32 %v5616_v27, %v16867_v46  ;;  %v17084_v40 = vadd.f32 %v16908_v30, %v5640_v8  ;;  %v17086_v45 = vpop.f32.mrf.mxu1  ;;  %12440 = vmatprep.mubr.msk.f32.mxu1 %vm2056_vm10, %v11048_v7 }
 0x7f9   :  { %v12060_v19 = vpop.f32.mrf.mxu0  ;;  %12395 = vmatmul.mubr.msk.f32.vlgmr.msra.gmra.mxu0 %vm2056_vm10, %v11005_v11  ;;  %v11015_v11 = vld [vmem:[%s17635_s6 + $0xb58] sm:$0xff] }
 0x7fa   :  { %v17097_v46 = vadd.f32 %v16918_v0, %v5639_v51  ;;  %v6090_v30 = vadd.f32 %v12060_v19, %v16886_v36  ;;  %12447 = vmatpush3.msra.mxu0 %v16882_v62  ;;  %12397 = vmatprep.mubr.msk.f32.mxu0 %vm2056_vm10, %v11006_v9  ;;  %v17105_v31 = vpop.f32.mrf.mxu1 }
 0x7fb   :  { %12448 = vmatprep.subr.mxu0 %v9139_v47  ;;  %v6010_v39 = vpop.f32.mrf.mxu0  ;;  %12441 = vmatmul.mubr.msk.f32.gmra.mxu1 %vm2056_vm10, %v11049_v37 }
 0x7fc   :  { %v17112_v36 = vadd.f32 %v6010_v39, %v16902_v1  ;;  %v17115_v62 = vadd.f32 %v16936_v42, %v6090_v30  ;;  %12449 = vmatpush3.msra.mxu0 %v9139_v47  ;;  %v17117_v0 = vpop.f32.mrf.mxu1  ;;  %12443 = vmatprep.mubr.msk.f32.mxu1 %vm2056_vm10, %v11050_v63  ;;  %v11009_v1 = vld [vmem:[%s17635_s6 + $0xb28] sm:$0xff] }
 0x7fd   :  { %v12063_v38 = vpop.f32.mrf.mxu0  ;;  %12398 = vmatmul.mubr.msk.f32.gmra.mxu0 %vm2056_vm10, %v11007_v59  ;;  %v11017_v63 = vld [vmem:[%s17635_s6 + $0xb68] sm:$0xff] }
 0x7fe   :  { %v6092_v41 = vadd.f32 %v12063_v38, %v16916_v21  ;;  %12400 = vmatprep.mubr.msk.f32.mxu0 %vm2056_vm10, %v11008_v57  ;;  %v17129_v42 = vpop.f32.mrf.mxu1 }
 0x7ff   :  { %v6020_v53 = vpop.f32.mrf.mxu0  ;;  %12444 = vmatmul.mubr.msk.f32.gmra.mxu1 %vm2056_vm10, %v11051_v16  ;;  %v11019_v16 = vld [vmem:[%s17635_s6 + $0xb78] sm:$0xff] }
 0x800   :  { %v17136_v17 = vadd.f32 %v6020_v53, %v16930_v23  ;;  %v17139_v21 = vadd.f32 %v16964_v2, %v6092_v41  ;;  %v17141_v50 = vpop.f32.mrf.mxu1  ;;  %v11012_v2 = vld [vmem:[%s17635_s6 + $0xb40] sm:$0xff] }
 0x801   :  { %v12066_v54 = vpop.f32.mrf.mxu0  ;;  %12401 = vmatmul.mubr.msk.f32.gmra.mxu0 %vm2056_vm10, %v11009_v1 }
 0x802   :  { %v6094_v4 = vadd.f32 %v12066_v54, %v16944_v13  ;;  %12403 = vmatprep.mubr.msk.f32.mxu0 %vm2056_vm10, %v11010_v29  ;;  %v17149_v32 = vpop.f32.mrf.mxu1  ;;  %v11069_v54 = vld [vmem:[%s17635_s6 + $0xc08] sm:$0xff] }
 0x803   :  { %v6030_v23 = vpop.f32.mrf.mxu0 }
 0x804   :  { %v17155_v33 = vadd.f32 %v6030_v23, %v16958_v28  ;;  %v17158_v58 = vadd.f32 %v16992_v10, %v6094_v4  ;;  %v17160_v13 = vpop.f32.mrf.mxu1  ;;  %v11014_v10 = vld [vmem:[%s17635_s6 + $0xb50] sm:$0xff] }
 0x805   :  { %v12069_v55 = vpop.f32.mrf.mxu0  ;;  %12404 = vmatmul.mubr.msk.f32.gmra.mxu0 %vm2056_vm10, %v11011_v20 }
 0x806   :  { %v6096_v6 = vadd.f32 %v12069_v55, %v16972_v48  ;;  %12406 = vmatprep.mubr.msk.f32.mxu0 %vm2056_vm10, %v11012_v2  ;;  %v17168_v25 = vpop.f32.mrf.mxu1  ;;  %v6321_v55 = vadd.f32 %v16946_v43, %v17112_v36 }
 0x807   :  { %v6040_v28 = vpop.f32.mrf.mxu0 }
 0x808   :  { %v17174_v3 = vadd.f32 %v6040_v28, %v16986_v24  ;;  %v17177_v34 = vadd.f32 %v17020_v12, %v6096_v6  ;;  %v17179_v48 = vpop.f32.mrf.mxu1  ;;  %v11016_v12 = vld [vmem:[%s17635_s6 + $0xb60] sm:$0xff] }
 0x809   :  { %v12072_v7 = vpop.f32.mrf.mxu0  ;;  %12407 = vmatmul.mubr.msk.f32.gmra.mxu0 %vm2056_vm10, %v11013_v61  ;;  %v11072_v28 = vld [vmem:[%s17635_s6 + $0xc20] sm:$0xff] }
 0x80a   :  { %v6098_v8 = vadd.f32 %v12072_v7, %v17000_v22  ;;  %12409 = vmatprep.mubr.msk.f32.mxu0 %vm2056_vm10, %v11014_v10  ;;  %v17187_v27 = vpop.f32.mrf.mxu1 }
 0x80b   :  { %v6050_v24 = vpop.f32.mrf.mxu0 }
 0x80c   :  { %v17193_v9 = vadd.f32 %v6050_v24, %v17014_v15  ;;  %v17196_v51 = vadd.f32 %v17048_v60, %v6098_v8  ;;  %v17198_v22 = vpop.f32.mrf.mxu1  ;;  %v11018_v60 = vld [vmem:[%s17635_s6 + $0xb70] sm:$0xff] }
 0x80d   :  { %v12075_v37 = vpop.f32.mrf.mxu0  ;;  %12410 = vmatmul.mubr.msk.f32.gmra.mxu0 %vm2056_vm10, %v11015_v11 }
 0x80e   :  { %v6100_v19 = vadd.f32 %v12075_v37, %v17028_v56  ;;  %12412 = vmatprep.mubr.msk.f32.mxu0 %vm2056_vm10, %v11016_v12  ;;  %v17206_v47 = vpop.f32.mrf.mxu1  ;;  %v11074_v37 = vld [vmem:[%s17635_s6 + $0xc30] sm:$0xff] }
 0x80f   :  { %v6060_v15 = vpop.f32.mrf.mxu0 }
 0x810   :  { %v17212_v30 = vadd.f32 %v6060_v15, %v17042_v14  ;;  %v17215_v59 = vadd.f32 %v17076_v35, %v6100_v19  ;;  %v17217_v56 = vpop.f32.mrf.mxu1  ;;  %v11068_v35 = vld [vmem:[%s17635_s6 + $0xc00] sm:$0xff] }
 0x811   :  { %v12078_v39 = vpop.f32.mrf.mxu0  ;;  %12413 = vmatmul.mubr.msk.f32.gmra.mxu0 %vm2056_vm10, %v11017_v63 }
 0x812   :  { %v6102_v57 = vadd.f32 %v12078_v39, %v17056_v26  ;;  %12415 = vmatprep.mubr.msk.f32.mxu0 %vm2056_vm10, %v11018_v60  ;;  %v17225_v38 = vpop.f32.mrf.mxu1 }
 0x813   :  { %v6070_v14 = vpop.f32.mrf.mxu0 }
 0x814   :  { %v17231_v41 = vadd.f32 %v6070_v14, %v17070_v44  ;;  %v17234_v1 = vadd.f32 %v17105_v31, %v6102_v57  ;;  %v17236_v26 = vpop.f32.mrf.mxu1  ;;  %v11070_v31 = vld [vmem:[%s17635_s6 + $0xc10] sm:$0xff]  ;;  %v11076_v57 = vld [vmem:[%s17635_s6 + $0xc40] sm:$0xff] }
 0x815   :  { %v12081_v53 = vpop.f32.mrf.mxu0  ;;  %12416 = vmatmul.mubr.msk.f32.gmra.mxu0 %vm2056_vm10, %v11019_v16 }
 0x816   :  { %v6104_v29 = vadd.f32 %v12081_v53, %v17084_v40  ;;  %12450 = vmatprep.mubr.msk.f32.mxu0 %vm2056_vm10, %v11068_v35  ;;  %v17244_v4 = vpop.f32.mrf.mxu1 }
 0x817   :  { %v6080_v44 = vpop.f32.mrf.mxu0 }
 0x818   :  { %v17250_v20 = vadd.f32 %v6080_v44, %v17097_v46  ;;  %v17253_v23 = vadd.f32 %v17129_v42, %v6104_v29  ;;  %v17255_v40 = vpop.f32.mrf.mxu1  ;;  %v11071_v46 = vld [vmem:[%s17635_s6 + $0xc18] sm:$0xff] }
 0x819   :  { %v12116_v2 = vpop.f32.mrf.mxu0  ;;  %12451 = vmatmul.mubr.msk.f32.vlgmr.msra.gmra.mxu0 %vm2056_vm10, %v11069_v54  ;;  %v11078_v54 = vld [vmem:[%s17635_s6 + $0xc50] sm:$0xff] }
 0x81a   :  { %v6554_v6 = vadd.f32 %v12116_v2, %v17115_v62  ;;  %12453 = vmatprep.mubr.msk.f32.mxu0 %vm2056_vm10, %v11070_v31  ;;  %v17265_v61 = vpop.f32.mrf.mxu1  ;;  %v6323_v62 = vadd.f32 %v16974_v5, %v17136_v17 }
 0x81b   :  { %v6474_v42 = vpop.f32.mrf.mxu0 }
 0x81c   :  { %v6553_v10 = vadd.f32 %v6474_v42, %v6321_v55  ;;  %v17271_v7 = vadd.f32 %v17149_v32, %v6554_v6  ;;  %v17273_v43 = vpop.f32.mrf.mxu1  ;;  %v11073_v32 = vld [vmem:[%s17635_s6 + $0xc28] sm:$0xff] }
 0x81d   :  { %v12119_v36 = vpop.f32.mrf.mxu0  ;;  %12454 = vmatmul.mubr.msk.f32.gmra.mxu0 %vm2056_vm10, %v11071_v46  ;;  %v11080_v46 = vld [vmem:[%s17635_s6 + $0xc60] sm:$0xff] }
 0x81e   :  { %v6556_v8 = vadd.f32 %v12119_v36, %v17139_v21  ;;  %v17280_v11 = vadd.f32 %v17160_v13, %v6553_v10  ;;  %12456 = vmatprep.mubr.msk.f32.mxu0 %vm2056_vm10, %v11072_v28  ;;  %v17286_v24 = vpop.f32.mrf.mxu1  ;;  %v6325_v13 = vadd.f32 %v17002_v49, %v17155_v33  ;;  %v11081_v36 = vld [vmem:[%s17635_s6 + $0xc68] sm:$0xff] }
 0x81f   :  { %v6484_v12 = vpop.f32.mrf.mxu0 }
 0x820   :  { %v6555_v19 = vadd.f32 %v6484_v12, %v6323_v62  ;;  %v17292_v5 = vadd.f32 %v17168_v25, %v6556_v8  ;;  %v17294_v17 = vpop.f32.mrf.mxu1  ;;  %v11075_v25 = vld [vmem:[%s17635_s6 + $0xc38] sm:$0xff]  ;;  %v11082_v8 = vld [vmem:[%s17635_s6 + $0xc70] sm:$0xff] }
 0x821   :  { %v12122_v21 = vpop.f32.mrf.mxu0  ;;  %12457 = vmatmul.mubr.msk.f32.gmra.mxu0 %vm2056_vm10, %v11073_v32 }
 0x822   :  { %v6558_v63 = vadd.f32 %v12122_v21, %v17158_v58  ;;  %v17301_v15 = vadd.f32 %v17179_v48, %v6555_v19  ;;  %12459 = vmatprep.mubr.msk.f32.mxu0 %vm2056_vm10, %v11074_v37  ;;  %v17307_v60 = vpop.f32.mrf.mxu1  ;;  %v6327_v48 = vadd.f32 %v17030_v52, %v17174_v3  ;;  %v11083_v19 = vld [vmem:[%s17635_s6 + $0xc78] sm:$0xff] }
 0x823   :  { %v6494_v39 = vpop.f32.mrf.mxu0 }
 0x824   :  { %v6557_v16 = vadd.f32 %v6494_v39, %v6325_v13  ;;  %v17313_v49 = vadd.f32 %v17187_v27, %v6558_v63  ;;  %v17315_v33 = vpop.f32.mrf.mxu1  ;;  %v11077_v27 = vld [vmem:[%s17635_s6 + $0xc48] sm:$0xff] }
 0x825   :  { %v12125_v58 = vpop.f32.mrf.mxu0  ;;  %12460 = vmatmul.mubr.msk.f32.gmra.mxu0 %vm2056_vm10, %v11075_v25 }
 0x826   :  { %v6560_v14 = vadd.f32 %v12125_v58, %v17177_v34  ;;  %v17322_v35 = vadd.f32 %v17198_v22, %v6557_v16  ;;  %12462 = vmatprep.mubr.msk.f32.mxu0 %vm2056_vm10, %v11076_v57  ;;  %v17328_v53 = vpop.f32.mrf.mxu1  ;;  %v6329_v22 = vadd.f32 %v17058_v18, %v17193_v9 }
 0x827   :  { %v6504_v29 = vpop.f32.mrf.mxu0 }
 0x828   :  { %v6559_v44 = vadd.f32 %v6504_v29, %v6327_v48  ;;  %v17334_v52 = vadd.f32 %v17206_v47, %v6560_v14  ;;  %v17336_v3 = vpop.f32.mrf.mxu1  ;;  %v11079_v47 = vld [vmem:[%s17635_s6 + $0xc58] sm:$0xff] }
 0x829   :  { %v12128_v34 = vpop.f32.mrf.mxu0  ;;  %12463 = vmatmul.mubr.msk.f32.gmra.mxu0 %vm2056_vm10, %v11077_v27 }
 0x82a   :  { %v6562_v31 = vadd.f32 %v12128_v34, %v17196_v51  ;;  %v17343_v2 = vadd.f32 %v17217_v56, %v6559_v44  ;;  %12465 = vmatprep.mubr.msk.f32.mxu0 %vm2056_vm10, %v11078_v54  ;;  %v17349_v55 = vpop.f32.mrf.mxu1  ;;  %v6331_v56 = vadd.f32 %v17086_v45, %v17212_v30 }
 0x82b   :  { %v6514_v6 = vpop.f32.mrf.mxu0 }
 0x82c   :  { %v6561_v42 = vadd.f32 %v6514_v6, %v6329_v22  ;;  %v17355_v18 = vadd.f32 %v17225_v38, %v6562_v31  ;;  %v7190_v9 = vpop.f32.mrf.mxu1 }
 0x82d   :  { %v12131_v51 = vpop.f32.mrf.mxu0  ;;  %12466 = vmatmul.mubr.msk.f32.gmra.mxu0 %vm2056_vm10, %v11079_v47 }
 0x82e   :  { %v6564_v28 = vadd.f32 %v12131_v51, %v17215_v59  ;;  %v17362_v10 = vadd.f32 %v17236_v26, %v6561_v42  ;;  %12468 = vmatprep.mubr.msk.f32.mxu0 %vm2056_vm10, %v11080_v46  ;;  %v12209_v38 = vpop.f32.mrf.mxu1  ;;  %v6333_v26 = vadd.f32 %v17117_v0, %v17231_v41  ;;  %v6335_v0 = vadd.f32 %v17141_v50, %v17250_v20 }
 0x82f   :  { %v6524_v62 = vpop.f32.mrf.mxu0 }
 0x830   :  { %v6563_v32 = vadd.f32 %v6524_v62, %v6331_v56  ;;  %v17372_v45 = vadd.f32 %v17244_v4, %v6564_v28  ;;  %v7200_v30 = vpop.f32.mrf.mxu1 }
 0x831   :  { %v12134_v59 = vpop.f32.mrf.mxu0  ;;  %12469 = vmatmul.mubr.msk.f32.gmra.mxu0 %vm2056_vm10, %v11081_v36 }
 0x832   :  { %v6566_v12 = vadd.f32 %v12134_v59, %v17234_v1  ;;  %v17379_v37 = vadd.f32 %v17255_v40, %v6563_v32  ;;  %12471 = vmatprep.mubr.msk.f32.mxu0 %vm2056_vm10, %v11082_v8  ;;  %v12212_v4 = vpop.f32.mrf.mxu1 }
 0x833   :  { %v6534_v21 = vpop.f32.mrf.mxu0 }
 0x834   :  { %v6565_v13 = vadd.f32 %v6534_v21, %v6333_v26  ;;  %v6798_v63 = vadd.f32 %v17265_v61, %v6566_v12  ;;  %v7210_v25 = vpop.f32.mrf.mxu1 }
 0x835   :  { %v12137_v39 = vpop.f32.mrf.mxu0  ;;  %12472 = vmatmul.mubr.msk.f32.gmra.mxu0 %vm2056_vm10, %v11083_v19 }
 0x836   :  { %v6568_v41 = vadd.f32 %v12137_v39, %v17253_v23  ;;  %v6797_v1 = vadd.f32 %v17273_v43, %v6565_v13  ;;  %v12215_v40 = vpop.f32.mrf.mxu1 }
 0x837   :  { %v6544_v57 = vpop.f32.mrf.mxu0 }
 0x838   :  { %v6567_v16 = vadd.f32 %v6544_v57, %v6335_v0  ;;  %v6800_v58 = vadd.f32 %v17286_v24, %v6568_v41  ;;  %v7220_v48 = vpop.f32.mrf.mxu1 }
 0x839   :  { %v12172_v14 = vpop.f32.mrf.mxu0 }
 0x83a   :  { %v6799_v61 = vadd.f32 %v17294_v17, %v6567_v16  ;;  %v7018_v27 = vadd.f32 %v12172_v14, %v17271_v7  ;;  %v12218_v29 = vpop.f32.mrf.mxu1 }
 0x83b   :  { %v6938_v54 = vpop.f32.mrf.mxu0 }
 0x83c   :  { %v7017_v44 = vadd.f32 %v6938_v54, %v17280_v11  ;;  %v7250_v50 = vadd.f32 %v17307_v60, %v7018_v27  ;;  %v7230_v20 = vpop.f32.mrf.mxu1 }
 0x83d   :  { %v12175_v23 = vpop.f32.mrf.mxu0 }
 0x83e   :  { %v7020_v43 = vadd.f32 %v12175_v23, %v17292_v5  ;;  %v7249_v34 = vadd.f32 %v17315_v33, %v7017_v44  ;;  %v12221_v22 = vpop.f32.mrf.mxu1 }
 0x83f   :  { %v6948_v24 = vpop.f32.mrf.mxu0 }
 0x840   :  { %v7019_v31 = vadd.f32 %v6948_v24, %v17301_v15  ;;  %v7252_v17 = vadd.f32 %v17328_v53, %v7020_v43  ;;  %v7240_v47 = vpop.f32.mrf.mxu1 }
 0x841   :  { %v12178_v7 = vpop.f32.mrf.mxu0 }
 0x842   :  { %v7022_v6 = vadd.f32 %v12178_v7, %v17313_v49  ;;  %v7251_v11 = vadd.f32 %v17336_v3, %v7019_v31  ;;  %v12256_v46 = vpop.f32.mrf.mxu1 }
 0x843   :  { %v6958_v60 = vpop.f32.mrf.mxu0 }
 0x844   :  { %v7021_v42 = vadd.f32 %v6958_v60, %v17322_v35  ;;  %v7254_v5 = vadd.f32 %v17349_v55, %v7022_v6  ;;  %v7634_v51 = vpop.f32.mrf.mxu1 }
 0x845   :  { %v12181_v33 = vpop.f32.mrf.mxu0 }
 0x846   :  { %v7024_v56 = vadd.f32 %v12181_v33, %v17334_v52  ;;  %v7253_v28 = vadd.f32 %v7190_v9, %v7021_v42  ;;  %v12259_v15 = vpop.f32.mrf.mxu1 }
 0x847   :  { %v6968_v36 = vpop.f32.mrf.mxu0 }
 0x848   :  { %v7023_v53 = vadd.f32 %v6968_v36, %v17343_v2  ;;  %v7256_v62 = vadd.f32 %v12209_v38, %v7024_v56  ;;  %v7644_v8 = vpop.f32.mrf.mxu1 }
 0x849   :  { %v12184_v49 = vpop.f32.mrf.mxu0 }
 0x84a   :  { %v7026_v3 = vadd.f32 %v12184_v49, %v17355_v18  ;;  %v7255_v32 = vadd.f32 %v7200_v30, %v7023_v53  ;;  %v12262_v59 = vpop.f32.mrf.mxu1 }
 0x84b   :  { %v6978_v26 = vpop.f32.mrf.mxu0 }
 0x84c   :  { %v7025_v35 = vadd.f32 %v6978_v26, %v17362_v10  ;;  %v7258_v55 = vadd.f32 %v12212_v4, %v7026_v3  ;;  %v7654_v12 = vpop.f32.mrf.mxu1 }
 0x84d   :  { %v12187_v19 = vpop.f32.mrf.mxu0 }
 0x84e   :  { %v7028_v52 = vadd.f32 %v12187_v19, %v17372_v45  ;;  %v7257_v9 = vadd.f32 %v7210_v25, %v7025_v35  ;;  %v12265_v21 = vpop.f32.mrf.mxu1 }
 0x84f   :  { %v6988_v13 = vpop.f32.mrf.mxu0 }
 0x850   :  { %v7027_v2 = vadd.f32 %v6988_v13, %v17379_v37  ;;  %v7260_v38 = vadd.f32 %v12215_v40, %v7028_v52  ;;  %v7664_v39 = vpop.f32.mrf.mxu1 }
 0x851   :  { %v12190_v0 = vpop.f32.mrf.mxu0 }
 0x852   :  { %v7030_v41 = vadd.f32 %v12190_v0, %v6798_v63  ;;  %v7259_v18 = vadd.f32 %v7220_v48, %v7027_v2  ;;  %v12268_v30 = vpop.f32.mrf.mxu1 }
 0x853   :  { %v6998_v57 = vpop.f32.mrf.mxu0 }
 0x854   :  { %v7029_v16 = vadd.f32 %v6998_v57, %v6797_v1  ;;  %v7262_v14 = vadd.f32 %v12218_v29, %v7030_v41  ;;  %v7674_v10 = vpop.f32.mrf.mxu1 }
 0x855   :  { %v12193_v4 = vpop.f32.mrf.mxu0 }
 0x856   :  { %v7032_v27 = vadd.f32 %v12193_v4, %v6800_v58  ;;  %v7261_v54 = vadd.f32 %v7230_v20, %v7029_v16  ;;  %v12271_v44 = vpop.f32.mrf.mxu1 }
 0x857   :  { %v7008_v45 = vpop.f32.mrf.mxu0 }
 0x858   :  { %v7031_v25 = vadd.f32 %v7008_v45, %v6799_v61  ;;  %v7264_v23 = vadd.f32 %v12221_v22, %v7032_v27  ;;  %v7684_v43 = vpop.f32.mrf.mxu1 }
 0x859   :  { %v12228_v24 = vpop.f32.mrf.mxu0 }
 0x85a   :  { %v7263_v37 = vadd.f32 %v7240_v47, %v7031_v25  ;;  %v7482_v40 = vadd.f32 %v12228_v24, %v7250_v50  ;;  %v12274_v31 = vpop.f32.mrf.mxu1 }
 0x85b   :  { %v7402_v7 = vpop.f32.mrf.mxu0 }
 0x85c   :  { %v7481_v63 = vadd.f32 %v7402_v7, %v7249_v34  ;;  %v7714_v48 = vadd.f32 %v12256_v46, %v7482_v40  ;;  %v7694_v6 = vpop.f32.mrf.mxu1 }
 0x85d   :  { %v12231_v60 = vpop.f32.mrf.mxu0 }
 0x85e   :  { %v7484_v1 = vadd.f32 %v12231_v60, %v7252_v17  ;;  %v7713_v29 = vadd.f32 %v7634_v51, %v7481_v63  ;;  %v12277_v42 = vpop.f32.mrf.mxu1 }
 0x85f   :  { %v7412_v33 = vpop.f32.mrf.mxu0 }
 0x860   :  { %v7483_v58 = vadd.f32 %v7412_v33, %v7251_v11  ;;  %v7716_v20 = vadd.f32 %v12259_v15, %v7484_v1  ;;  %v7704_v56 = vpop.f32.mrf.mxu1 }
 0x861   :  { %v12234_v36 = vpop.f32.mrf.mxu0 }
 0x862   :  { %v7486_v61 = vadd.f32 %v12234_v36, %v7254_v5  ;;  %v7715_v22 = vadd.f32 %v7644_v8, %v7483_v58  ;;  %v12312_v53 = vpop.f32.mrf.mxu1 }
 0x863   :  { %v7422_v49 = vpop.f32.mrf.mxu0 }
 0x864   :  { %v7485_v47 = vadd.f32 %v7422_v49, %v7253_v28  ;;  %v7718_v50 = vadd.f32 %v12262_v59, %v7486_v61  ;;  %v8098_v3 = vpop.f32.mrf.mxu1 }
 0x865   :  { %v12237_v26 = vpop.f32.mrf.mxu0 }
 0x866   :  { %v7488_v34 = vadd.f32 %v12237_v26, %v7256_v62  ;;  %v7717_v46 = vadd.f32 %v7654_v12, %v7485_v47  ;;  %v12315_v35 = vpop.f32.mrf.mxu1 }
 0x867   :  { %v7432_v19 = vpop.f32.mrf.mxu0 }
 0x868   :  { %v7487_v17 = vadd.f32 %v7432_v19, %v7255_v32  ;;  %v7720_v51 = vadd.f32 %v12265_v21, %v7488_v34  ;;  %v8108_v52 = vpop.f32.mrf.mxu1 }
 0x869   :  { %v12240_v13 = vpop.f32.mrf.mxu0 }
 0x86a   :  { %v7490_v11 = vadd.f32 %v12240_v13, %v7258_v55  ;;  %v7719_v15 = vadd.f32 %v7664_v39, %v7487_v17  ;;  %v12318_v2 = vpop.f32.mrf.mxu1 }
 0x86b   :  { %v7442_v0 = vpop.f32.mrf.mxu0 }
 0x86c   :  { %v7489_v5 = vadd.f32 %v7442_v0, %v7257_v9  ;;  %v7722_v8 = vadd.f32 %v12268_v30, %v7490_v11  ;;  %v8118_v41 = vpop.f32.mrf.mxu1 }
 0x86d   :  { %v12243_v57 = vpop.f32.mrf.mxu0 }
 0x86e   :  { %v7492_v28 = vadd.f32 %v12243_v57, %v7260_v38  ;;  %v7721_v59 = vadd.f32 %v7674_v10, %v7489_v5  ;;  %v12321_v16 = vpop.f32.mrf.mxu1 }
 0x86f   :  { %v7452_v4 = vpop.f32.mrf.mxu0 }
 0x870   :  { %v7491_v62 = vadd.f32 %v7452_v4, %v7259_v18  ;;  %v7724_v12 = vadd.f32 %v12271_v44, %v7492_v28  ;;  %v8128_v27 = vpop.f32.mrf.mxu1 }
 0x871   :  { %v12246_v45 = vpop.f32.mrf.mxu0 }
 0x872   :  { %v7494_v32 = vadd.f32 %v12246_v45, %v7262_v14  ;;  %v7723_v21 = vadd.f32 %v7684_v43, %v7491_v62  ;;  %v12324_v25 = vpop.f32.mrf.mxu1 }
 0x873   :  { %v7462_v24 = vpop.f32.mrf.mxu0 }
 0x874   :  { %v7493_v55 = vadd.f32 %v7462_v24, %v7261_v54  ;;  %v7726_v39 = vadd.f32 %v12274_v31, %v7494_v32  ;;  %v8138_v40 = vpop.f32.mrf.mxu1 }
 0x875   :  { %v12249_v7 = vpop.f32.mrf.mxu0 }
 0x876   :  { %v7496_v9 = vadd.f32 %v12249_v7, %v7264_v23  ;;  %v7725_v30 = vadd.f32 %v7694_v6, %v7493_v55  ;;  %v12327_v63 = vpop.f32.mrf.mxu1 }
 0x877   :  { %v7472_v60 = vpop.f32.mrf.mxu0 }
 0x878   :  { %v7495_v38 = vadd.f32 %v7472_v60, %v7263_v37  ;;  %v7728_v10 = vadd.f32 %v12277_v42, %v7496_v9  ;;  %v8148_v1 = vpop.f32.mrf.mxu1 }
 0x879   :  { %v12284_v33 = vpop.f32.mrf.mxu0 }
 0x87a   :  { %v7727_v18 = vadd.f32 %v7704_v56, %v7495_v38  ;;  %v7946_v44 = vadd.f32 %v12284_v33, %v7714_v48  ;;  %v12330_v58 = vpop.f32.mrf.mxu1 }
 0x87b   :  { %v7866_v36 = vpop.f32.mrf.mxu0 }
 0x87c   :  { %v7945_v14 = vadd.f32 %v7866_v36, %v7713_v29  ;;  %v8178_v43 = vadd.f32 %v12312_v53, %v7946_v44  ;;  %v8158_v61 = vpop.f32.mrf.mxu1 }
 0x87d   :  { %v12287_v49 = vpop.f32.mrf.mxu0 }
 0x87e   :  { %v7948_v54 = vadd.f32 %v12287_v49, %v7716_v20  ;;  %v8177_v31 = vadd.f32 %v8098_v3, %v7945_v14  ;;  %v17410_v47 = vpop.f32.mrf.mxu1 }
 0x87f   :  { %v7876_v23 = vpop.f32.mrf.mxu0 }
 0x880   :  { %v7947_v6 = vadd.f32 %v7876_v23, %v7715_v22  ;;  %v8180_v26 = vadd.f32 %v12315_v35, %v7948_v54  ;;  %v17412_v34 = vpop.f32.mrf.mxu1 }
 0x881   :  { %v12290_v37 = vpop.f32.mrf.mxu0 }
 0x882   :  { %v7950_v42 = vadd.f32 %v12290_v37, %v7718_v50  ;;  %v8179_v19 = vadd.f32 %v8108_v52, %v7947_v6  ;;  %v12368_v56 = vpop.f32.mrf.mxu1 }
 0x883   :  { %v7886_v48 = vpop.f32.mrf.mxu0 }
 0x884   :  { %v7949_v17 = vadd.f32 %v7886_v48, %v7717_v46  ;;  %v8182_v13 = vadd.f32 %v12318_v2, %v7950_v42  ;;  %v8562_v29 = vpop.f32.mrf.mxu1 }
 0x885   :  { %v12293_v53 = vpop.f32.mrf.mxu0 }
 0x886   :  { %v7952_v11 = vadd.f32 %v12293_v53, %v7720_v51  ;;  %v8181_v0 = vadd.f32 %v8118_v41, %v7949_v17  ;;  %v12371_v20 = vpop.f32.mrf.mxu1 }
 0x887   :  { %v7896_v3 = vpop.f32.mrf.mxu0 }
 0x888   :  { %v7951_v5 = vadd.f32 %v7896_v3, %v7719_v15  ;;  %v8184_v57 = vadd.f32 %v12321_v16, %v7952_v11  ;;  %v8572_v28 = vpop.f32.mrf.mxu1 }
 0x889   :  { %v12296_v22 = vpop.f32.mrf.mxu0 }
 0x88a   :  { %v7954_v35 = vadd.f32 %v12296_v22, %v7722_v8  ;;  %v8183_v4 = vadd.f32 %v8128_v27, %v7951_v5  ;;  %v12374_v62 = vpop.f32.mrf.mxu1 }
 0x88b   :  { %v7906_v45 = vpop.f32.mrf.mxu0 }
 0x88c   :  { %v7953_v50 = vadd.f32 %v7906_v45, %v7721_v59  ;;  %v8186_v52 = vadd.f32 %v12324_v25, %v7954_v35  ;;  %v8582_v32 = vpop.f32.mrf.mxu1 }
 0x88d   :  { %v12299_v24 = vpop.f32.mrf.mxu0 }
 0x88e   :  { %v7956_v46 = vadd.f32 %v12299_v24, %v7724_v12  ;;  %v8185_v2 = vadd.f32 %v8138_v40, %v7953_v50  ;;  %v17414_v7 = vpop.f32.mrf.mxu1 }
 0x88f   :  { %v7916_v55 = vpop.f32.mrf.mxu0 }
 0x890   :  { %v7955_v51 = vadd.f32 %v7916_v55, %v7723_v21  ;;  %v8188_v41 = vadd.f32 %v12327_v63, %v7956_v46  ;;  %v17416_v38 = vpop.f32.mrf.mxu1 }
 0x891   :  { %v12302_v9 = vpop.f32.mrf.mxu0 }
 0x892   :  { %v7958_v15 = vadd.f32 %v12302_v9, %v7726_v39  ;;  %v8187_v16 = vadd.f32 %v8148_v1, %v7955_v51  ;;  %v17420_v12 = vpop.f32.mrf.mxu1 }
 0x893   :  { %v7926_v60 = vpop.f32.mrf.mxu0 }
 0x894   :  { %v7957_v8 = vadd.f32 %v7926_v60, %v7725_v30  ;;  %v8190_v27 = vadd.f32 %v12330_v58, %v7958_v15  ;;  %v17424_v14 = vpop.f32.mrf.mxu1  ;;  %v9481_v30 = vld [vmem:[%s17639_s8] sm:$0xff] }
 0x895   :  { %v12305_v33 = vpop.f32.mrf.mxu0  ;;  %12506 = vmatprep.mubr.f32.mxu1 %v9481_v30 }
 0x896   :  { %v17418_v59 = vadd.f32 %v12305_v33, %v7728_v10  ;;  %v8189_v25 = vadd.f32 %v8158_v61, %v7957_v8  ;;  %v17429_v54 = vpop.f32.mrf.mxu1 }
 0x897   :  { %v7936_v44 = vpop.f32.mrf.mxu0 }
 0x898   :  { %v17422_v40 = vadd.f32 %v7936_v44, %v7727_v18  ;;  %v17431_v48 = vpop.f32.mrf.mxu1 }
 0x899   :  { %v12340_v36 = vpop.f32.mrf.mxu0 }
 0x89a   :  { %v8410_v21 = vadd.f32 %v12340_v36, %v8178_v43 }
 0x89b   :  { %v8330_v63 = vpop.f32.mrf.mxu0 }
 0x89c   :  { %v8409_v39 = vadd.f32 %v8330_v63, %v8177_v31  ;;  %v8642_v1 = vadd.f32 %v12368_v56, %v8410_v21 }
 0x89d   :  { %v12343_v58 = vpop.f32.mrf.mxu0 }
 0x89e   :  { %v8412_v10 = vadd.f32 %v12343_v58, %v8180_v26  ;;  %v8641_v61 = vadd.f32 %v8562_v29, %v8409_v39  ;;  %v17435_v26 = vpop.f32.mrf.mxu1 }
 0x89f   :  { %v8340_v49 = vpop.f32.mrf.mxu0 }
 0x8a0   :  { %v8411_v18 = vadd.f32 %v8340_v49, %v8179_v19  ;;  %v8644_v23 = vadd.f32 %v12371_v20, %v8412_v10 }
 0x8a1   :  { %v12346_v6 = vpop.f32.mrf.mxu0 }
 0x8a2   :  { %v8414_v43 = vadd.f32 %v12346_v6, %v8182_v13  ;;  %v8643_v37 = vadd.f32 %v8572_v28, %v8411_v18  ;;  %v17441_v13 = vpop.f32.mrf.mxu1 }
 0x8a3   :  { %v8350_v42 = vpop.f32.mrf.mxu0 }
 0x8a4   :  { %v8413_v31 = vadd.f32 %v8350_v42, %v8181_v0  ;;  %v8646_v56 = vadd.f32 %v12374_v62, %v8414_v43 }
 0x8a5   :  { %v12349_v17 = vpop.f32.mrf.mxu0 }
 0x8a6   :  { %v17433_v53 = vadd.f32 %v12349_v17, %v8184_v57  ;;  %v8645_v11 = vadd.f32 %v8582_v32, %v8413_v31  ;;  %v17447_v57 = vpop.f32.mrf.mxu1 }
 0x8a7   :  { %v8360_v3 = vpop.f32.mrf.mxu0 }
 0x8a8   :  { %v17437_v29 = vadd.f32 %v8360_v3, %v8183_v4  ;;  %v17451_v32 = vpop.f32.mrf.mxu1 }
 0x8a9   :  { %v12352_v5 = vpop.f32.mrf.mxu0 }
 0x8aa   :  { %v17439_v19 = vadd.f32 %v12352_v5, %v8186_v52  ;;  %v17453_v55 = vpop.f32.mrf.mxu1 }
 0x8ab   :  { %v8370_v20 = vpop.f32.mrf.mxu0  ;;  %17701 = vst [vmem:[#allocation5_spill] sm:$0xff] %v17453_v55 }
 0x8ac   :  { %v17443_v28 = vadd.f32 %v8370_v20, %v8185_v2  ;;  %v17457_v9 = vpop.f32.mrf.mxu1 }
 0x8ad   :  { %v12355_v22 = vpop.f32.mrf.mxu0  ;;  %17703 = vst [vmem:[#allocation19_spill] sm:$0xff] %v17457_v9 }
 0x8ae   :  { %v17445_v0 = vadd.f32 %v12355_v22, %v8188_v41 }
 0x8af   :  { %v8380_v35 = vpop.f32.mrf.mxu0 }
 0x8b0   :  { %v17449_v62 = vadd.f32 %v8380_v35, %v8187_v16 }
 0x8b1   :  { %v12358_v45 = vpop.f32.mrf.mxu0 }
 0x8b2   :  { %v8422_v50 = vadd.f32 %v12358_v45, %v8190_v27  ;;  %v17463_v27 = vpop.f32.mrf.mxu1 }
 0x8b3   :  { %v8390_v4 = vpop.f32.mrf.mxu0  ;;  %17706 = vst [vmem:[#allocation26_spill] sm:$0xff] %v17463_v27 }
 0x8b4   :  { %v8421_v52 = vadd.f32 %v8390_v4, %v8189_v25  ;;  %v17469_v36 = vpop.f32.mrf.mxu1 }
 0x8b5   :  { %v12361_v24 = vpop.f32.mrf.mxu0  ;;  %17708 = vst [vmem:[#allocation6_spill] sm:$0xff] %v17469_v36 }
 0x8b7   :  { %v8400_v46 = vpop.f32.mrf.mxu0 }
 0x8b9   :  { %v12396_v2 = vpop.f32.mrf.mxu0 }
 0x8ba   :  { %v17455_v51 = vadd.f32 %v12396_v2, %v8642_v1  ;;  %v17475_v1 = vpop.f32.mrf.mxu1 }
 0x8bb   :  { %v8794_v41 = vpop.f32.mrf.mxu0 }
 0x8bc   :  { %17702 = vst [vmem:[#allocation10_spill] sm:$0xff] %v17455_v51  ;;  %v17459_v15 = vadd.f32 %v8794_v41, %v8641_v61  ;;  %v17481_v10 = vpop.f32.mrf.mxu1  ;;  %v9447_v41 = vpop.permute.xlu1 %9446 }
 0x8bd   :  { %v12399_v16 = vpop.f32.mrf.mxu0  ;;  %17710 = vst [vmem:[#allocation24_spill] sm:$0xff] %v17481_v10 }
 0x8be   :  { %17704 = vst [vmem:[#allocation3_spill] sm:$0xff] %v17459_v15  ;;  %v17461_v60 = vadd.f32 %v12399_v16, %v8644_v23  ;;  %v17485_v18 = vpop.f32.mrf.mxu1 }
 0x8bf   :  { %v8804_v8 = vpop.f32.mrf.mxu0 }
 0x8c0   :  { %17705 = vst [vmem:[#allocation9_spill] sm:$0xff] %v17461_v60  ;;  %v17465_v33 = vadd.f32 %v8804_v8, %v8643_v37  ;;  %v17487_v43 = vpop.f32.mrf.mxu1  ;;  %v9437_v55 = vpop.permute.xlu1 %9436 }
 0x8c1   :  { %v12402_v25 = vpop.f32.mrf.mxu0 }
 0x8c2   :  { %17707 = vst [vmem:[#allocation17_spill] sm:$0xff] %v17465_v33  ;;  %v17467_v44 = vadd.f32 %v12402_v25, %v8646_v56  ;;  %v17489_v31 = vpop.f32.mrf.mxu1  ;;  %v9442_v25 = vpop.permute.xlu0 %9441  ;;  %v8654_v33 = vadd.f32 %v17435_v26, %v8422_v50  ;;  %v8651_v26 = vadd.f32 %v17431_v48, %v17449_v62 }
 0x8c3   :  { %v8814_v21 = vpop.f32.mrf.mxu0 }
 0x8c4   :  { %v17471_v63 = vadd.f32 %v8814_v21, %v8645_v11  ;;  %v17493_v11 = vpop.f32.mrf.mxu1  ;;  %v8192_v21 = vadd.f32 %v17410_v47, %v17418_v59  ;;  %v8653_v47 = vadd.f32 %v17441_v13, %v8421_v52 }
 0x8c5   :  { %v17473_v39 = vpop.f32.mrf.mxu0 }
 0x8c6   :  { %17709 = vst [vmem:[#allocation14_spill] sm:$0xff] %v17471_v63  ;;  %v12439_v20 = vpop.f32.mrf.mxu1  ;;  %v8424_v9 = vadd.f32 %v12361_v24, %v8192_v21  ;;  %v9432_v36 = vpop.permute.xlu0 %9431  ;;  %v8652_v21 = vadd.f32 %v17429_v54, %v17445_v0  ;;  %v8649_v0 = vadd.f32 %v17424_v14, %v17443_v28  ;;  %v8647_v14 = vadd.f32 %v17416_v38, %v17437_v29 }
 0x8c7   :  { %v17477_v30 = vpop.f32.mrf.mxu0  ;;  %v9427_v24 = vpop.permute.xlu1 %9426 }
 0x8c8   :  { %v9076_v45 = vpop.f32.mrf.mxu1 }
 0x8c9   :  { %v17479_v58 = vpop.f32.mrf.mxu0 }
 0x8ca   :  { %v12442_v16 = vpop.f32.mrf.mxu1  ;;  %v9422_v13 = vpop.permute.xlu0 %9421 }
 0x8cb   :  { %v17483_v61 = vpop.f32.mrf.mxu0 }
 0x8cc   :  { %v9086_v15 = vpop.f32.mrf.mxu1 }
 0x8cd   :  { %v12411_v49 = vpop.f32.mrf.mxu0 }
 0x8ce   :  { %v12445_v27 = vpop.f32.mrf.mxu1 }
 0x8cf   :  { %v8844_v23 = vpop.f32.mrf.mxu0 }
 0x8d0   :  { %v9096_v50 = vpop.f32.mrf.mxu1  ;;  %v8883_v52 = vadd.f32 %v8844_v23, %v8651_v26 }
 0x8d1   :  { %v12414_v6 = vpop.f32.mrf.mxu0 }
 0x8d3   :  { %v8854_v37 = vpop.f32.mrf.mxu0 }
 0x8d5   :  { %v12417_v42 = vpop.f32.mrf.mxu0 }
 0x8d7   :  { %v8864_v56 = vpop.f32.mrf.mxu0 }
 0x8d9   :  { %v17491_v17 = vpop.f32.mrf.mxu0 }
 0x8da   :  { %17711 = vst [vmem:[#allocation20_spill] sm:$0xff] %v17491_v17  ;;  %v8191_v17 = vadd.f32 %v17412_v34, %v17422_v40 }
 0x8db   :  { %v17495_v3 = vpop.f32.mrf.mxu0 }
 0x8dc   :  { %17712 = vst [vmem:[#allocation2_spill] sm:$0xff] %v17495_v3  ;;  %v8423_v51 = vadd.f32 %v8400_v46, %v8191_v17  ;;  %v8885_v46 = vadd.f32 %v8854_v37, %v8653_v47 }
 0x8dd   :  { %v17497_v5 = vpop.f32.mrf.mxu0 }
 0x8de   :  { %17713 = vst [vmem:[#allocation12_spill] sm:$0xff] %v17497_v5  ;;  %v8655_v59 = vadd.f32 %v17451_v32, %v8423_v51  ;;  %v8650_v32 = vadd.f32 %v17420_v12, %v17439_v19  ;;  %v8648_v12 = vadd.f32 %v17414_v7, %v17433_v53  ;;  %v8881_v19 = vadd.f32 %v17483_v61, %v8649_v0 }
 0x8df   :  { %v17499_v22 = vpop.f32.mrf.mxu0  ;;  %v8879_v7 = vadd.f32 %v17477_v30, %v8647_v14 }
 0x8e0   :  { %17714 = vst [vmem:[#allocation25_spill] sm:$0xff] %v17499_v22  ;;  %v8887_v17 = vadd.f32 %v8864_v56, %v8655_v59  ;;  %v8882_v48 = vadd.f32 %v17479_v58, %v8650_v32  ;;  %v8880_v28 = vadd.f32 %v17473_v39, %v8648_v12  ;;  %v9113_v53 = vadd.f32 %v17493_v11, %v8881_v19  ;;  %v17723_v32 = vld [vmem:[#allocation17_spill] sm:$0xff]  ;;  %v17729_v19 = vld [vmem:[#allocation3_spill] sm:$0xff] }
 0x8e1   :  { %v17501_v35 = vpop.f32.mrf.mxu0  ;;  %v9111_v30 = vadd.f32 %v17487_v43, %v8879_v7 }
 0x8e2   :  { %17715 = vst [vmem:[#allocation16_spill] sm:$0xff] %v17501_v35  ;;  %v8886_v35 = vadd.f32 %v12414_v6, %v8654_v33  ;;  %v9117_v33 = vadd.f32 %v9086_v15, %v8885_v46  ;;  %v9119_v6 = vadd.f32 %v9096_v50, %v8887_v17  ;;  %v9115_v15 = vadd.f32 %v9076_v45, %v8883_v52  ;;  %v17720_v50 = vld [vmem:[#allocation9_spill] sm:$0xff]  ;;  %v17724_v52 = vld [vmem:[#allocation6_spill] sm:$0xff] }
 0x8e3   :  { %v17503_v4 = vpop.f32.mrf.mxu0  ;;  %v9114_v58 = vadd.f32 %v17489_v31, %v8882_v48  ;;  %v9112_v38 = vadd.f32 %v17485_v18, %v8880_v28  ;;  %v17726_v48 = vld [vmem:[#allocation10_spill] sm:$0xff] }
 0x8e4   :  { %17716 = vst [vmem:[#allocation29_spill] sm:$0xff] %v17503_v4  ;;  %v8656_v4 = vadd.f32 %v17447_v57, %v8424_v9  ;;  %v8884_v9 = vadd.f32 %v12411_v49, %v8652_v21  ;;  %v9118_v10 = vadd.f32 %v12442_v16, %v8886_v35  ;;  %v9417_v35 = vpop.permute.xlu1 %9416  ;;  %v9412_v16 = vpop.permute.xlu0 %9411  ;;  %v17732_v14 = vld [vmem:[#allocation2_spill] sm:$0xff] }
 0x8e5   :  { %v17505_v2 = vpop.f32.mrf.mxu0 }
 0x8e6   :  { %v8888_v34 = vadd.f32 %v12417_v42, %v8656_v4  ;;  %v9116_v37 = vadd.f32 %v12439_v20, %v8884_v9  ;;  %v9344_v31 = vadd.f32 %v17505_v2, %v9112_v38  ;;  %v9482_v38 = vld [vmem:[%s17639_s8 + $0x8] sm:$0xff] }
 0x8e7   :  { %v17507_v8 = vpop.f32.mrf.mxu0 }
 0x8e8   :  { %v9120_v63 = vadd.f32 %v12445_v27, %v8888_v34  ;;  %v9407_v45 = vpop.permute.xlu1 %9406  ;;  %v9343_v18 = vadd.f32 %v17507_v8, %v9111_v30  ;;  %v9487_v30 = vld [vmem:[%s17639_s8 + $0x30] sm:$0xff] }
 0x8e9   :  { %v12464_v3 = vpop.f32.mrf.mxu0  ;;  %v17719_v43 = vld [vmem:[#allocation16_spill] sm:$0xff]  ;;  %v9456_v2 = vadd.f32 %v9407_v45, %v9344_v31  ;;  %v9488_v31 = vld [vmem:[%s17639_s8 + $0x38] sm:$0xff] }
 0x8eb   :  { %v17513_v22 = vpop.f32.mrf.mxu0 }
 0x8ec   :  { %v9345_v29 = vadd.f32 %v17513_v22, %v9113_v53  ;;  %v9397_v34 = vpop.permute.xlu1 %9396 }
 0x8ed   :  { %v12467_v5 = vpop.f32.mrf.mxu0 }
 0x8ee   :  { %v9348_v23 = vadd.f32 %v12467_v5, %v9116_v37  ;;  %v9457_v59 = vadd.f32 %v9412_v16, %v9345_v29  ;;  %v9483_v29 = vld [vmem:[%s17639_s8 + $0x10] sm:$0xff] }
 0x8ef   :  { %v9308_v60 = vpop.f32.mrf.mxu0 }
 0x8f0   :  { %v9347_v20 = vadd.f32 %v9308_v60, %v9115_v15  ;;  %v9460_v61 = vadd.f32 %v9427_v24, %v9348_v23  ;;  %v17718_v24 = vld [vmem:[#allocation24_spill] sm:$0xff]  ;;  %v9387_v0 = vpop.permute.xlu1 %9386  ;;  %v17730_v15 = vld [vmem:[#allocation19_spill] sm:$0xff] }
 0x8f1   :  { %v12470_v40 = vpop.f32.mrf.mxu0  ;;  %v9105_v23 = vadd.f32 %v17730_v15, %v17729_v19 }
 0x8f2   :  { %v9350_v42 = vadd.f32 %v12470_v40, %v9118_v10  ;;  %v9459_v39 = vadd.f32 %v9422_v13, %v9347_v20  ;;  %v17717_v40 = vld [vmem:[#allocation14_spill] sm:$0xff]  ;;  %v9473_v13 = vmax.f32 %v9457_v59, 0.0 }
 0x8f3   :  { %v9318_v57 = vpop.f32.mrf.mxu0  ;;  %v9109_v21 = vadd.f32 %v17718_v24, %v17717_v40  ;;  %v9337_v28 = vadd.f32 %v17732_v14, %v9105_v23  ;;  %v9493_v59 = vld [vmem:[%s17639_s8 + $0x60] sm:$0xff]  ;;  %v9496_v40 = vld [vmem:[%s17639_s8 + $0x78] sm:$0xff] }
 0x8f4   :  { %v9349_v49 = vadd.f32 %v9318_v57, %v9117_v33  ;;  %v9462_v10 = vadd.f32 %v9437_v55, %v9350_v42  ;;  %v9346_v55 = vadd.f32 %v12464_v3, %v9114_v58  ;;  %v9476_v3 = vmax.f32 %v9460_v61, 0.0  ;;  %v17721_v57 = vld [vmem:[#allocation26_spill] sm:$0xff]  ;;  %v17725_v33 = vld [vmem:[#allocation12_spill] sm:$0xff] }
 0x8f5   :  { %v12473_v51 = vpop.f32.mrf.mxu0  ;;  %v9475_v22 = vmax.f32 %v9459_v39, 0.0  ;;  %v9484_v39 = vld [vmem:[%s17639_s8 + $0x18] sm:$0xff]  ;;  %v9754_v24 = vld [vmem:[%s17640_s10] sm:$0xff] }
 0x8f6   :  { %v9352_v54 = vadd.f32 %v12473_v51, %v9120_v63  ;;  %v9478_v5 = vmax.f32 %v9462_v10, 0.0  ;;  %v9458_v11 = vadd.f32 %v9417_v35, %v9346_v55  ;;  %v9107_v51 = vadd.f32 %v17724_v52, %v17723_v32  ;;  %v17731_v10 = vld [vmem:[#allocation20_spill] sm:$0xff]  ;;  %12562 = vmatprep.mubr.f32.mxu0 %v9754_v24 }
 0x8f7   :  { %v9328_v62 = vpop.f32.mrf.mxu0 }
 0x8f8   :  { %v9464_v56 = vadd.f32 %v9447_v41, %v9352_v54  ;;  %v9351_v27 = vadd.f32 %v9328_v62, %v9119_v6  ;;  %v9461_v41 = vadd.f32 %v9432_v36, %v9349_v49  ;;  %v9402_v36 = vpop.permute.xlu0 %9401  ;;  %v9474_v17 = vmax.f32 %v9458_v11, 0.0  ;;  %v17727_v62 = vld [vmem:[#allocation5_spill] sm:$0xff]  ;;  %v9489_v11 = vld [vmem:[%s17639_s8 + $0x40] sm:$0xff] }
 0x8f9   :  { %v9455_v9 = vadd.f32 %v9402_v36, %v9343_v18  ;;  %v9472_v54 = vmax.f32 %v9456_v2, 0.0  ;;  %v9106_v37 = vadd.f32 %v17727_v62, %v17726_v48  ;;  %v17728_v49 = vld [vmem:[#allocation25_spill] sm:$0xff]  ;;  %v9486_v36 = vld [vmem:[%s17639_s8 + $0x28] sm:$0xff] }
 0x8fa   :  { %v9480_v63 = vmax.f32 %v9464_v56, 0.0  ;;  %v9463_v4 = vadd.f32 %v9442_v25, %v9351_v27  ;;  %v9477_v60 = vmax.f32 %v9461_v41, 0.0  ;;  %v9110_v25 = vadd.f32 %v17475_v1, %v17467_v44  ;;  %v17722_v1 = vld [vmem:[#allocation29_spill] sm:$0xff]  ;;  %v9377_v41 = vpop.permute.xlu1 %9376 }
 0x8fb   :  { %v9108_v44 = vadd.f32 %v17721_v57, %v17720_v50  ;;  %v9341_v8 = vadd.f32 %v17722_v1, %v9109_v21  ;;  %v9339_v56 = vadd.f32 %v17728_v49, %v9107_v51  ;;  %v9471_v35 = vmax.f32 %v9455_v9, 0.0  ;;  %v9492_v18 = vld [vmem:[%s17639_s8 + $0x58] sm:$0xff] }
 0x8fc   :  { %v9479_v47 = vmax.f32 %v9463_v4, 0.0  ;;  %12474 = vmatprep.subr.mxu1 %v9480_v63  ;;  %v9342_v46 = vadd.f32 %v17719_v43, %v9110_v25  ;;  %v9392_v26 = vpop.permute.xlu0 %9391  ;;  %v9491_v25 = vld [vmem:[%s17639_s8 + $0x50] sm:$0xff] }
 0x8fd   :  { %12475 = vmatpush3.msra.mxu1 %v9480_v63  ;;  %v9340_v6 = vadd.f32 %v17725_v33, %v9108_v44  ;;  %v9453_v27 = vadd.f32 %v9392_v26, %v9341_v8  ;;  %v9338_v63 = vadd.f32 %v17731_v10, %v9106_v37 }
 0x8fe   :  { %12476 = vmatprep.subr.mxu1 %v9479_v47  ;;  %v9454_v42 = vadd.f32 %v9397_v34, %v9342_v46  ;;  %v9495_v34 = vld [vmem:[%s17639_s8 + $0x70] sm:$0xff]  ;;  %v9591_v50 = vpop.permute.xlu1 %9590 }
 0x8ff   :  { %12477 = vmatpush3.msra.mxu1 %v9479_v47  ;;  %v9452_v4 = vadd.f32 %v9387_v0, %v9340_v6  ;;  %v9469_v20 = vmax.f32 %v9453_v27, 0.0  ;;  %v9450_v47 = vadd.f32 %v9377_v41, %v9338_v63 }
 0x900   :  { %12478 = vmatprep.subr.mxu1 %v9478_v5  ;;  %v9382_v12 = vpop.permute.xlu0 %9381  ;;  %v9470_v16 = vmax.f32 %v9454_v42, 0.0 }
 0x901   :  { %12479 = vmatpush3.msra.mxu1 %v9478_v5  ;;  %v9451_v58 = vadd.f32 %v9382_v12, %v9339_v56  ;;  %v9468_v7 = vmax.f32 %v9452_v4, 0.0  ;;  %v9466_v5 = vmax.f32 %v9450_v47, 0.0 }
 0x902   :  { %12480 = vmatprep.subr.mxu1 %v9477_v60  ;;  %v9581_v9 = vpop.permute.xlu1 %9580 }
 0x903   :  { %12481 = vmatpush3.msra.mxu1 %v9477_v60  ;;  %v9467_v61 = vmax.f32 %v9451_v58, 0.0  ;;  %v9485_v60 = vld [vmem:[%s17639_s8 + $0x20] sm:$0xff] }
 0x904   :  { %12482 = vmatprep.subr.mxu1 %v9476_v3  ;;  %v9372_v53 = vpop.permute.xlu0 %9371 }
 0x905   :  { %12483 = vmatpush3.msra.mxu1 %v9476_v3  ;;  %v9449_v55 = vadd.f32 %v9372_v53, %v9337_v28  ;;  %v9490_v3 = vld [vmem:[%s17639_s8 + $0x48] sm:$0xff] }
 0x906   :  { %12484 = vmatprep.subr.mxu1 %v9475_v22  ;;  %v9571_v33 = vpop.permute.xlu1 %9570 }
 0x907   :  { %12485 = vmatpush3.msra.mxu1 %v9475_v22  ;;  %v9465_v45 = vmax.f32 %v9449_v55, 0.0  ;;  %v9494_v22 = vld [vmem:[%s17639_s8 + $0x68] sm:$0xff] }
 0x908   :  { %12486 = vmatprep.subr.mxu1 %v9474_v17  ;;  %v9586_v44 = vpop.permute.xlu0 %9585 }
 0x909   :  { %12487 = vmatpush3.msra.mxu1 %v9474_v17 }
 0x90a   :  { %12488 = vmatprep.subr.mxu1 %v9473_v13  ;;  %v9561_v62 = vpop.permute.xlu1 %9560 }
 0x90b   :  { %12489 = vmatpush3.msra.mxu1 %v9473_v13 }
 0x90c   :  { %12490 = vmatprep.subr.mxu1 %v9472_v54  ;;  %v9576_v32 = vpop.permute.xlu0 %9575 }
 0x90d   :  { %12491 = vmatpush3.msra.mxu1 %v9472_v54 }
 0x90e   :  { %12492 = vmatprep.subr.mxu1 %v9471_v35  ;;  %v9551_v10 = vpop.permute.xlu1 %9550 }
 0x90f   :  { %12493 = vmatpush3.msra.mxu1 %v9471_v35 }
 0x910   :  { %12494 = vmatprep.subr.mxu1 %v9470_v16  ;;  %v9566_v42 = vpop.permute.xlu0 %9565 }
 0x911   :  { %12495 = vmatpush3.msra.mxu1 %v9470_v16 }
 0x912   :  { %12496 = vmatprep.subr.mxu1 %v9469_v20  ;;  %v9541_v41 = vpop.permute.xlu1 %9540 }
 0x913   :  { %12497 = vmatpush3.msra.mxu1 %v9469_v20 }
 0x914   :  { %12498 = vmatprep.subr.mxu1 %v9468_v7  ;;  %v9556_v35 = vpop.permute.xlu0 %9555 }
 0x915   :  { %12499 = vmatpush3.msra.mxu1 %v9468_v7 }
 0x916   :  { %12500 = vmatprep.subr.mxu1 %v9467_v61 }
 0x917   :  { %12501 = vmatpush3.msra.mxu1 %v9467_v61 }
 0x918   :  { %12502 = vmatprep.subr.mxu1 %v9466_v5  ;;  %v9546_v16 = vpop.permute.xlu0 %9545 }
 0x919   :  { %12503 = vmatpush3.msra.mxu1 %v9466_v5 }
 0x91a   :  { %12504 = vmatprep.subr.mxu1 %v9465_v45 }
 0x91b   :  { %12505 = vmatpush3.msra.mxu1 %v9465_v45 }
 0x91c   :  { %12507 = vmatmul.mubr.f32.vlgmr.msra.gmra.mxu1 %v9482_v38  ;;  %v9536_v53 = vpop.permute.xlu0 %9535  ;;  %v9531_v38 = vpop.permute.xlu1 %9530 }
 0x91d   :  { %12509 = vmatprep.mubr.f32.mxu1 %v9483_v29 }
 0x920   :  { %12510 = vmatmul.mubr.f32.gmra.mxu1 %v9484_v39 }
 0x921   :  { %12512 = vmatprep.mubr.f32.mxu1 %v9485_v60  ;;  %v9526_v60 = vpop.permute.xlu0 %9525 }
 0x924   :  { %12513 = vmatmul.mubr.f32.gmra.mxu1 %v9486_v36 }
 0x925   :  { %12515 = vmatprep.mubr.f32.mxu1 %v9487_v30 }
 0x928   :  { %12516 = vmatmul.mubr.f32.gmra.mxu1 %v9488_v31 }
 0x929   :  { %12518 = vmatprep.mubr.f32.mxu1 %v9489_v11 }
 0x92c   :  { %12519 = vmatmul.mubr.f32.gmra.mxu1 %v9490_v3  ;;  %v9521_v3 = vpop.permute.xlu1 %9520 }
 0x92d   :  { %12521 = vmatprep.mubr.f32.mxu1 %v9491_v25 }
 0x930   :  { %12522 = vmatmul.mubr.f32.gmra.mxu1 %v9492_v18 }
 0x931   :  { %12524 = vmatprep.mubr.f32.mxu1 %v9493_v59  ;;  %v9516_v59 = vpop.permute.xlu0 %9515 }
 0x934   :  { %12525 = vmatmul.mubr.f32.gmra.mxu1 %v9494_v22 }
 0x935   :  { %12527 = vmatprep.mubr.f32.mxu1 %v9495_v34 }
 0x938   :  { %12528 = vmatmul.mubr.f32.gmra.mxu1 %v9496_v40 }
 0x9dc   :  { %v17608_v21 = vpop.f32.mrf.mxu1 }
 0x9dd   :  { %v9665_v25 = vadd.f32 %v17608_v21, %v9521_v3  ;;  %v9766_v21 = vpop.permute.xlu0 %9765 }
 0x9de   :  { %v17610_v43 = vpop.f32.mrf.mxu1 }
 0x9df   :  { %v9660_v22 = vadd.f32 %v17610_v43, %v9516_v59  ;;  %v9739_v40 = vmax.f32 %v9665_v25, 0.0 }
 0x9e0   :  { %v17612_v46 = vpop.f32.mrf.mxu1 }
 0x9e1   :  { %v9675_v36 = vadd.f32 %v17612_v46, %v9531_v38  ;;  %v9738_v24 = vmax.f32 %v9660_v22, 0.0  ;;  %v9755_v46 = vld [vmem:[%s17640_s10 + $0x8] sm:$0x3] }
 0x9e2   :  { %v17614_v2 = vpop.f32.mrf.mxu1 }
 0x9e3   :  { %v9670_v31 = vadd.f32 %v17614_v2, %v9526_v60  ;;  %v9741_v18 = vmax.f32 %v9675_v36, 0.0 }
 0x9e4   :  { %v12514_v17 = vpop.f32.mrf.mxu1 }
 0x9e5   :  { %v9685_v5 = vadd.f32 %v12514_v17, %v9541_v41  ;;  %v9740_v34 = vmax.f32 %v9670_v31, 0.0  ;;  %v9761_v17 = vpop.permute.xlu1 %9760 }
 0x9e6   :  { %v9679_v26 = vpop.f32.mrf.mxu1 }
 0x9e7   :  { %v9680_v29 = vadd.f32 %v9679_v26, %v9536_v53  ;;  %v9743_v30 = vmax.f32 %v9685_v5, 0.0 }
 0x9e8   :  { %v12517_v57 = vpop.f32.mrf.mxu1 }
 0x9e9   :  { %v9695_v47 = vadd.f32 %v12517_v57, %v9551_v10  ;;  %v9742_v11 = vmax.f32 %v9680_v29, 0.0 }
 0x9ea   :  { %v9689_v1 = vpop.f32.mrf.mxu1 }
 0x9eb   :  { %v9690_v55 = vadd.f32 %v9689_v1, %v9546_v16  ;;  %v9745_v45 = vmax.f32 %v9695_v47, 0.0 }
 0x9ec   :  { %v12520_v8 = vpop.f32.mrf.mxu1 }
 0x9ed   :  { %v9705_v14 = vadd.f32 %v12520_v8, %v9561_v62  ;;  %v9744_v39 = vmax.f32 %v9690_v55, 0.0 }
 0x9ee   :  { %v9699_v13 = vpop.f32.mrf.mxu1 }
 0x9ef   :  { %v9700_v58 = vadd.f32 %v9699_v13, %v9556_v35  ;;  %v9747_v7 = vmax.f32 %v9705_v14, 0.0 }
 0x9f0   :  { %v12523_v52 = vpop.f32.mrf.mxu1 }
 0x9f1   :  { %v9715_v15 = vadd.f32 %v12523_v52, %v9571_v33  ;;  %v9746_v61 = vmax.f32 %v9700_v58, 0.0 }
 0x9f2   :  { %v9709_v51 = vpop.f32.mrf.mxu1 }
 0x9f3   :  { %v9710_v63 = vadd.f32 %v9709_v51, %v9566_v42  ;;  %v9749_v28 = vmax.f32 %v9715_v15, 0.0 }
 0x9f4   :  { %v12526_v6 = vpop.f32.mrf.mxu1 }
 0x9f5   :  { %v9725_v49 = vadd.f32 %v12526_v6, %v9581_v9  ;;  %v9748_v20 = vmax.f32 %v9710_v63, 0.0 }
 0x9f6   :  { %v9719_v54 = vpop.f32.mrf.mxu1 }
 0x9f7   :  { %v9720_v12 = vadd.f32 %v9719_v54, %v9576_v32  ;;  %v9751_v23 = vmax.f32 %v9725_v49, 0.0 }
 0x9f8   :  { %v12529_v0 = vpop.f32.mrf.mxu1 }
 0x9f9   :  { %v9735_v48 = vadd.f32 %v12529_v0, %v9591_v50  ;;  %v9750_v4 = vmax.f32 %v9720_v12, 0.0 }
 0x9fa   :  { %v9729_v37 = vpop.f32.mrf.mxu1 }
 0x9fb   :  { %v9753_v56 = vmax.f32 %v9735_v48, 0.0  ;;  %v9730_v27 = vadd.f32 %v9729_v37, %v9586_v44 }
 0x9fd   :  { %v9752_v19 = vmax.f32 %v9730_v27, 0.0  ;;  %12530 = vmatprep.subr.mxu0 %v9753_v56 }
 0x9fe   :  { %12531 = vmatpush3.msra.mxu0 %v9753_v56 }
 0x9ff   :  { %12532 = vmatprep.subr.mxu0 %v9752_v19 }
 0xa00   :  { %12533 = vmatpush3.msra.mxu0 %v9752_v19 }
 0xa01   :  { %12534 = vmatprep.subr.mxu0 %v9751_v23 }
 0xa02   :  { %12535 = vmatpush3.msra.mxu0 %v9751_v23 }
 0xa03   :  { %12536 = vmatprep.subr.mxu0 %v9750_v4 }
 0xa04   :  { %12537 = vmatpush3.msra.mxu0 %v9750_v4 }
 0xa05   :  { %12538 = vmatprep.subr.mxu0 %v9749_v28 }
 0xa06   :  { %12539 = vmatpush3.msra.mxu0 %v9749_v28 }
 0xa07   :  { %12540 = vmatprep.subr.mxu0 %v9748_v20 }
 0xa08   :  { %12541 = vmatpush3.msra.mxu0 %v9748_v20 }
 0xa09   :  { %12542 = vmatprep.subr.mxu0 %v9747_v7 }
 0xa0a   :  { %12543 = vmatpush3.msra.mxu0 %v9747_v7 }
 0xa0b   :  { %12544 = vmatprep.subr.mxu0 %v9746_v61 }
 0xa0c   :  { %12545 = vmatpush3.msra.mxu0 %v9746_v61 }
 0xa0d   :  { %12546 = vmatprep.subr.mxu0 %v9745_v45 }
 0xa0e   :  { %12547 = vmatpush3.msra.mxu0 %v9745_v45 }
 0xa0f   :  { %12548 = vmatprep.subr.mxu0 %v9744_v39 }
 0xa10   :  { %12549 = vmatpush3.msra.mxu0 %v9744_v39 }
 0xa11   :  { %12550 = vmatprep.subr.mxu0 %v9743_v30 }
 0xa12   :  { %12551 = vmatpush3.msra.mxu0 %v9743_v30 }
 0xa13   :  { %12552 = vmatprep.subr.mxu0 %v9742_v11 }
 0xa14   :  { %12553 = vmatpush3.msra.mxu0 %v9742_v11 }
 0xa15   :  { %12554 = vmatprep.subr.mxu0 %v9741_v18 }
 0xa16   :  { %12555 = vmatpush3.msra.mxu0 %v9741_v18 }
 0xa17   :  { %12556 = vmatprep.subr.mxu0 %v9740_v34 }
 0xa18   :  { %12557 = vmatpush3.msra.mxu0 %v9740_v34 }
 0xa19   :  { %12558 = vmatprep.subr.mxu0 %v9739_v40 }
 0xa1a   :  { %12559 = vmatpush3.msra.mxu0 %v9739_v40 }
 0xa1b   :  { %12560 = vmatprep.subr.mxu0 %v9738_v24 }
 0xa1c   :  { %12561 = vmatpush3.msra.mxu0 %v9738_v24 }
 0xa1d   :  { %12563 = vmatmul.mubr.f32.vlgmr.msra.gmra.mxu0 %v9755_v46 }
 0xadd   :  { %v12564_v2 = vpop.f32.mrf.mxu0 }
 0xade   :  { %v9840_v43 = vadd.f32 %v12564_v2, %v9766_v21 }
 0xadf   :  { %v9834_v26 = vpop.f32.mrf.mxu0 }
 0xae0   :  { %9846 = vst.msk [vmem:[%s17641_s12 + $0x8] sm:$0x3] %vm9845_vm13, %v9840_v43  ;;  %v9835_v50 = vadd.f32 %v9834_v26, %v9761_v17 }
 0xae2   :  { %9844 = vst.msk [vmem:[%s17641_s12] sm:$0xff] %vm9843_vm14, %v9835_v50 }

</bundles_post_ra>
